<compile_context>
chip_gen: v6e
topology: v6e:2x2x1
jax: 0.10.0
libtpu: 0.0.40
codegen_flags: <defaults>
</compile_context>

<pallas_src>
import functools

import jax
import jax.numpy as jnp
from jax.experimental import pallas as pl
from jax.experimental.pallas import tpu as pltpu


# ------------------------------ Pallas kernel -------------------------------

def _fused_mnist_kernel(xpk_ref, m1_ref, b1_ref, m2_ref, b2_ref,
                        w1_ref, bf1_ref, w2_ref, bf2_ref, w3_ref, bo_ref,
                        o_ref, a1_ref, a2_ref, *, bt):
    f32 = jnp.float32
    bf16 = jnp.bfloat16

    # ---- conv1 + ReLU + 2x2 max-pool ---------------------------------------
    # M rows are (b, parity, q): pooled row ph = 2*q + parity (q=7 is junk and
    # never stored).  K = kh*32 + wp (kh folded into the contraction).
    lhs1 = [xpk_ref[:, 2 * dh:2 * dh + 2].reshape(bt * 16, 160) for dh in (0, 1)]
    pooled1 = None
    for dh in (0, 1):                                   # pool row offset
        for dw in (0, 1):                               # pool col offset (in band)
            r = jnp.dot(lhs1[dh], m1_ref[dw], preferred_element_type=f32)
            pooled1 = r if pooled1 is None else jnp.maximum(pooled1, r)
    a1 = jnp.maximum(pooled1 + b1_ref[...], 0.0)        # (bt*16, 512) f32
    a1 = a1.astype(bf16).reshape(bt, 2, 8, 512)

    # Scatter into the parity-split conv2 input scratch (lane-dense, offset 0).
    # Data rows: plane row q+1 for q=0..6; halo rows 0 and 8..9 are zeroed
    # every step -> the scratch is stateless across grid iterations.
    a1_ref[:, :, 1:8, :] = a1[:, :, 0:7, :]
    a1_ref[:, :, 0:1, :] = jnp.zeros((bt, 2, 1, 512), bf16)
    a1_ref[:, :, 8:10, :] = jnp.zeros((bt, 2, 2, 512), bf16)

    # ---- conv2 + ReLU + 2x2 max-pool ---------------------------------------
    # 6 unique LHS slabs (s = dh + kh), each a contiguous 8-row read.
    lhs2 = []
    for s in range(6):
        p = s % 2
        rs = (s - p) // 2
        lhs2.append(a1_ref[:, p, rs:rs + 8, :].reshape(bt * 8, 512))
    pooled2 = None
    for dh in (0, 1):
        for dw in (0, 1):
            acc = None
            for kh in range(5):
                part = jnp.dot(lhs2[dh + kh], m2_ref[dw, kh],
                               preferred_element_type=f32)
                acc = part if acc is None else acc + part
            pooled2 = acc if pooled2 is None else jnp.maximum(pooled2, acc)
    a2 = jnp.maximum(pooled2 + b2_ref[...], 0.0)         # (bt*8, 256) f32
    a2_ref[...] = a2.astype(bf16).reshape(bt, 8, 256)    # row 7 / col-group 7 junk

    # ---- fc1 + ReLU, fc2 + ReLU, out (NCHW flatten folded into w1) ----------
    h1 = None
    for ph in range(7):                                  # contract over pooled rows
        part = jnp.dot(a2_ref[:, ph, :], w1_ref[ph], preferred_element_type=f32)
        h1 = part if h1 is None else h1 + part
    h1 = jnp.maximum(h1 + bf1_ref[...], 0.0)                             # (bt,120)
    h2 = jnp.dot(h1.astype(bf16), w2_ref[...], preferred_element_type=f32)
    h2 = jnp.maximum(h2 + bf2_ref[...], 0.0)                             # (bt, 84)
    out = jnp.dot(h2.astype(bf16), w3_ref[...], preferred_element_type=f32)
    o_ref[0] = out + bo_ref[...]                                         # (bt,128)


# ------------------------------ weight prep ---------------------------------

def _banded_conv_weights(w_oihw, w_pad, w_out, col_offsets=(0, 1)):
    """Banded matrices folding the kw/ci contraction and the pool column offset.

    Returns (len(col_offsets), KH, w_pad*Cin, w_out*Cout) with
      M[j, kh][(wp*Cin + ci), (pw*Cout + co)] = w[co, ci, kh, wp - 2*pw - off_j]
    (zero where the kw index falls outside [0, KW)).  Out-of-range input
    columns simply have no band row -> implicit zero padding.
    """
    cout, cin, kh_sz, kw_sz = w_oihw.shape
    w_k = jnp.transpose(w_oihw, (2, 3, 1, 0))              # (KH, KW, Cin, Cout)
    wp = jnp.arange(w_pad)[:, None]
    pw = jnp.arange(w_out)[None, :]
    mats = []
    for off in col_offsets:
        kw = wp - 2 * pw - off                             # (w_pad, w_out)
        valid = (kw >= 0) & (kw < kw_sz)
        g = w_k[:, jnp.clip(kw, 0, kw_sz - 1)]             # (KH,w_pad,w_out,Cin,Cout)
        g = jnp.where(valid[None, :, :, None, None], g, 0.0)
        g = jnp.transpose(g, (0, 1, 3, 2, 4))              # (KH,w_pad,Cin,w_out,Cout)
        mats.append(g.reshape(kh_sz, w_pad * cin, w_out * cout))
    return jnp.stack(mats, axis=0)


def _pick_bt(batch):
    """Largest batch tile <= 32 dividing B, preferring >= 2 grid steps (v7x)."""
    for b in (32, 16, 8, 4, 2, 1):
        if batch % b == 0 and batch // b >= 2:
            return b
    for b in (32, 16, 8, 4, 2, 1):
        if batch % b == 0:
            return b
    return 1


# -------------------------------- wrapper ------------------------------------

def mnist_cnn_forward(x_nchw, p):
    B = x_nchw.shape[0]
    bt = _pick_bt(B)
    g = B // bt
    bf16 = jnp.bfloat16
    f32 = jnp.float32

    # conv1 input: zero-pad 28x28 -> 36x32 (conv pad=2 plus extra bottom rows
    # so the packed gather for the junk q=7 rows stays in bounds).
    xp = jnp.pad(x_nchw[:, 0].astype(f32), ((0, 0), (2, 6), (2, 2)))   # (B,36,32)

    # Pre-packed conv1 LHS: xpk[b, 2*dh + parity, q, kh*32 + wp]
    #   = xp[b, 4*q + 2*parity + dh + kh, wp]     (bf16, ~10 KB per image).
    dh_i = jnp.arange(2)[:, None, None, None]
    par_i = jnp.arange(2)[None, :, None, None]
    q_i = jnp.arange(8)[None, None, :, None]
    kh_i = jnp.arange(5)[None, None, None, :]
    ridx = 4 * q_i + 2 * par_i + dh_i + kh_i               # (2,2,8,5), max idx 35
    xpk = xp[:, ridx, :].reshape(B, 4, 8, 160).astype(bf16)

    # Banded conv weights (bf16), lane-padded with ZERO band + ZERO bias cols.
    m1 = _banded_conv_weights(p["w1"], 32, 14, (0, 1))               # (2,5,32,448)
    m1 = jnp.pad(m1, ((0, 0), (0, 0), (0, 0), (0, 64)))              # -> 512 cols
    m1 = m1.reshape(2, 160, 512).astype(bf16)
    b1c = jnp.pad(jnp.tile(p["b1"], 14), (0, 64)).reshape(1, 512).astype(f32)

    # conv2 band over the 16 stored column groups (col zero-padding is implicit
    # in the band clipping), pool col offsets -> (-2, -1).
    m2 = _banded_conv_weights(p["w2"], 16, 7, (-2, -1))              # (2,5,512,224)
    m2 = jnp.pad(m2, ((0, 0), (0, 0), (0, 0), (0, 32))).astype(bf16)  # -> 256 cols
    b2c = jnp.pad(jnp.tile(p["b2"], 7), (0, 32)).reshape(1, 256).astype(f32)

    # fc1 weight with PyTorch's NCHW flatten (c*49 + h*7 + w) folded into the
    # kernel's (h, w*32 + c) activation layout; zero rows for the padded col.
    w1r = p["fc1_w"].reshape(120, 32, 7, 7).transpose(2, 3, 1, 0)    # (7,7,32,120)
    w1r = jnp.pad(w1r.reshape(7, 224, 120), ((0, 0), (0, 32), (0, 0))).astype(bf16)
    bf1 = p["fc1_b"].reshape(1, 120).astype(f32)
    w2r = p["fc2_w"].T.astype(bf16)                                  # (120, 84)
    bf2 = p["fc2_b"].reshape(1, 84).astype(f32)
    w3r = jnp.pad(p["out_w"].T, ((0, 0), (0, 118))).astype(bf16)     # (84, 128)
    bo = jnp.pad(p["out_b"], (0, 118)).reshape(1, 128).astype(f32)

    out = pl.pallas_call(
        functools.partial(_fused_mnist_kernel, bt=bt),
        out_shape=jax.ShapeDtypeStruct((g, bt, 128), f32),
        grid=(g,),
        in_specs=[
            pl.BlockSpec((bt, 4, 8, 160), lambda i: (i, 0, 0, 0)),    # packed image
            pl.BlockSpec((2, 160, 512), lambda i: (0, 0, 0)),         # conv1 band
            pl.BlockSpec((1, 512), lambda i: (0, 0)),                 # conv1 bias cols
            pl.BlockSpec((2, 5, 512, 256), lambda i: (0, 0, 0, 0)),   # conv2 band
            pl.BlockSpec((1, 256), lambda i: (0, 0)),                 # conv2 bias cols
            pl.BlockSpec((7, 256, 120), lambda i: (0, 0, 0)),         # fc1 w (reordered)
            pl.BlockSpec((1, 120), lambda i: (0, 0)),
            pl.BlockSpec((120, 84), lambda i: (0, 0)),                # fc2 w
            pl.BlockSpec((1, 84), lambda i: (0, 0)),
            pl.BlockSpec((84, 128), lambda i: (0, 0)),                # out w (padded)
            pl.BlockSpec((1, 128), lambda i: (0, 0)),
        ],
        out_specs=pl.BlockSpec((1, bt, 128), lambda i: (i, 0, 0)),
        scratch_shapes=[
            pltpu.VMEM((bt, 2, 10, 512), bf16),   # parity-split conv2 input
            pltpu.VMEM((bt, 8, 256), bf16),       # pooled conv2 output staging
        ],
        compiler_params=pltpu.CompilerParams(
            dimension_semantics=("parallel",),
            vmem_limit_bytes=32 * 1024 * 1024),
    )(xpk, m1, b1c, m2, b2c, w1r, bf1, w2r, bf2, w3r, bo)
    return out.reshape(B, 128)[:, :10]


# ------------------------ deterministic parameters ---------------------------

def init_params(key):
    def u(k, shape, fan_in):
        bound = 1.0 / jnp.sqrt(jnp.float32(fan_in))
        return jax.random.uniform(k, shape, jnp.float32, -bound, bound)

    ks = jax.random.split(key, 10)
    return {
        "w1": u(ks[0], (32, 1, 5, 5), 25), "b1": u(ks[1], (32,), 25),
        "w2": u(ks[2], (32, 32, 5, 5), 800), "b2": u(ks[3], (32,), 800),
        "fc1_w": u(ks[4], (120, 7 * 7 * 32), 7 * 7 * 32),
        "fc1_b": u(ks[5], (120,), 7 * 7 * 32),
        "fc2_w": u(ks[6], (84, 120), 120), "fc2_b": u(ks[7], (84,), 120),
        "out_w": u(ks[8], (10, 84), 84), "out_b": u(ks[9], (10,), 84),
    }


# --------------------------- pure-JAX reference ------------------------------

def reference_forward(x, p):
    def conv(x, w, b):
        y = jax.lax.conv_general_dilated(
            x, w, (1, 1), [(2, 2), (2, 2)],
            dimension_numbers=("NCHW", "OIHW", "NCHW"))
        return y + b.reshape(1, -1, 1, 1)

    def pool(x):
        B, C, H, W = x.shape
        return x.reshape(B, C, H // 2, 2, W // 2, 2).max(axis=(3, 5))

    a1 = pool(jax.nn.relu(conv(x, p["w1"], p["b1"])))
    a2 = pool(jax.nn.relu(conv(a1, p["w2"], p["b2"])))
    f = a2.reshape(x.shape[0], -1)
    h1 = jax.nn.relu(f @ p["fc1_w"].T + p["fc1_b"])
    h2 = jax.nn.relu(h1 @ p["fc2_w"].T + p["fc2_b"])
    return h2 @ p["out_w"].T + p["out_b"]


if __name__ == "__main__":
    key = jax.random.PRNGKey(0)
    kp, kx = jax.random.split(key)
    params = init_params(kp)
    # MNIST-shaped input (28x28 is required by fc1's 7*7*32 in_features).
    x = jax.random.normal(kx, (4, 1, 28, 28), jnp.float32)

    out = jax.jit(mnist_cnn_forward)(x, params)
    out = jax.block_until_ready(out)

    ref = reference_forward(x, params)
    assert out.shape == (4, 10), out.shape
    assert jnp.allclose(out, ref, rtol=2e-2, atol=2e-2), "mismatch vs reference"
    print("KERNEL_OK")
</pallas_src>

<mosaic_0001>
module attributes {stable_mosaic.version = 11 : i64} {
  func.func @_fused_mnist_kernel(%arg0: i32, %arg1: memref<2x4x8x160xbf16, #tpu.memory_space<vmem>>, %arg2: memref<2x160x512xbf16, #tpu.memory_space<vmem>>, %arg3: memref<1x512xf32, #tpu.memory_space<vmem>>, %arg4: memref<2x5x512x256xbf16, #tpu.memory_space<vmem>>, %arg5: memref<1x256xf32, #tpu.memory_space<vmem>>, %arg6: memref<7x256x120xbf16, #tpu.memory_space<vmem>>, %arg7: memref<1x120xf32, #tpu.memory_space<vmem>>, %arg8: memref<120x84xbf16, #tpu.memory_space<vmem>>, %arg9: memref<1x84xf32, #tpu.memory_space<vmem>>, %arg10: memref<84x128xbf16, #tpu.memory_space<vmem>>, %arg11: memref<1x128xf32, #tpu.memory_space<vmem>>, %arg12: memref<1x2x128xf32, #tpu.memory_space<vmem>>, %arg13: memref<2x2x10x512xbf16, #tpu.memory_space<vmem>>, %arg14: memref<2x8x256xbf16, #tpu.memory_space<vmem>>) attributes {dimension_semantics = [#tpu.dimension_semantics<parallel>], iteration_bounds = array<i64: 2>, scalar_prefetch = 0 : i64, scratch_operands = 2 : i64, tpu.core_type = #tpu.core_type<tc>, window_params = [{transform_indices = @transform_0, window_bounds = array<i64: 2, 4, 8, 160>}, {pipeline_mode = #tpu.pipeline_mode<synchronous>, transform_indices = @transform_1, window_bounds = array<i64: 2, 160, 512>}, {pipeline_mode = #tpu.pipeline_mode<synchronous>, transform_indices = @transform_2, window_bounds = array<i64: 1, 512>}, {pipeline_mode = #tpu.pipeline_mode<synchronous>, transform_indices = @transform_3, window_bounds = array<i64: 2, 5, 512, 256>}, {pipeline_mode = #tpu.pipeline_mode<synchronous>, transform_indices = @transform_4, window_bounds = array<i64: 1, 256>}, {pipeline_mode = #tpu.pipeline_mode<synchronous>, transform_indices = @transform_5, window_bounds = array<i64: 7, 256, 120>}, {pipeline_mode = #tpu.pipeline_mode<synchronous>, transform_indices = @transform_6, window_bounds = array<i64: 1, 120>}, {pipeline_mode = #tpu.pipeline_mode<synchronous>, transform_indices = @transform_7, window_bounds = array<i64: 120, 84>}, {pipeline_mode = #tpu.pipeline_mode<synchronous>, transform_indices = @transform_8, window_bounds = array<i64: 1, 84>}, {pipeline_mode = #tpu.pipeline_mode<synchronous>, transform_indices = @transform_9, window_bounds = array<i64: 84, 128>}, {pipeline_mode = #tpu.pipeline_mode<synchronous>, transform_indices = @transform_10, window_bounds = array<i64: 1, 128>}, {transform_indices = @transform_11, window_bounds = array<i64: 1, 2, 128>}]} {
    %c0 = arith.constant 0 : index
    %c0_0 = arith.constant 0 : index
    %c0_1 = arith.constant 0 : index
    %c0_2 = arith.constant 0 : index
    %0 = vector.load %arg1[%c0, %c0_0, %c0_1, %c0_2] : memref<2x4x8x160xbf16, #tpu.memory_space<vmem>>, vector<2x2x8x160xbf16>
    %1 = vector.shape_cast %0 : vector<2x2x8x160xbf16> to vector<32x160xbf16>
    %c0_3 = arith.constant 0 : index
    %c2 = arith.constant 2 : index
    %c0_4 = arith.constant 0 : index
    %c0_5 = arith.constant 0 : index
    %2 = vector.load %arg1[%c0_3, %c2, %c0_4, %c0_5] : memref<2x4x8x160xbf16, #tpu.memory_space<vmem>>, vector<2x2x8x160xbf16>
    %3 = vector.shape_cast %2 : vector<2x2x8x160xbf16> to vector<32x160xbf16>
    %c0_6 = arith.constant 0 : index
    %c0_7 = arith.constant 0 : index
    %c0_8 = arith.constant 0 : index
    %4 = vector.load %arg2[%c0_6, %c0_7, %c0_8] : memref<2x160x512xbf16, #tpu.memory_space<vmem>>, vector<1x160x512xbf16>
    %5 = vector.shape_cast %4 : vector<1x160x512xbf16> to vector<160x512xbf16>
    %cst = arith.constant dense<0.000000e+00> : vector<32x512xf32>
    %6 = tpu.matmul %1, %5, %cst {dimension_numbers = #tpu.dot_dimension_numbers<[1], [0], [0], [1], [0, 0, 1, 1], [], []>} : vector<32x160xbf16>, vector<160x512xbf16>, vector<32x512xf32> -> vector<32x512xf32>
    %c1 = arith.constant 1 : index
    %c0_9 = arith.constant 0 : index
    %c0_10 = arith.constant 0 : index
    %7 = vector.load %arg2[%c1, %c0_9, %c0_10] : memref<2x160x512xbf16, #tpu.memory_space<vmem>>, vector<1x160x512xbf16>
    %8 = vector.shape_cast %7 : vector<1x160x512xbf16> to vector<160x512xbf16>
    %cst_11 = arith.constant dense<0.000000e+00> : vector<32x512xf32>
    %9 = tpu.matmul %1, %8, %cst_11 {dimension_numbers = #tpu.dot_dimension_numbers<[1], [0], [0], [1], [0, 0, 1, 1], [], []>} : vector<32x160xbf16>, vector<160x512xbf16>, vector<32x512xf32> -> vector<32x512xf32>
    %10 = arith.maximumf %6, %9 : vector<32x512xf32>
    %c0_12 = arith.constant 0 : index
    %c0_13 = arith.constant 0 : index
    %c0_14 = arith.constant 0 : index
    %11 = vector.load %arg2[%c0_12, %c0_13, %c0_14] : memref<2x160x512xbf16, #tpu.memory_space<vmem>>, vector<1x160x512xbf16>
    %12 = vector.shape_cast %11 : vector<1x160x512xbf16> to vector<160x512xbf16>
    %cst_15 = arith.constant dense<0.000000e+00> : vector<32x512xf32>
    %13 = tpu.matmul %3, %12, %cst_15 {dimension_numbers = #tpu.dot_dimension_numbers<[1], [0], [0], [1], [0, 0, 1, 1], [], []>} : vector<32x160xbf16>, vector<160x512xbf16>, vector<32x512xf32> -> vector<32x512xf32>
    %14 = arith.maximumf %10, %13 : vector<32x512xf32>
    %c1_16 = arith.constant 1 : index
    %c0_17 = arith.constant 0 : index
    %c0_18 = arith.constant 0 : index
    %15 = vector.load %arg2[%c1_16, %c0_17, %c0_18] : memref<2x160x512xbf16, #tpu.memory_space<vmem>>, vector<1x160x512xbf16>
    %16 = vector.shape_cast %15 : vector<1x160x512xbf16> to vector<160x512xbf16>
    %cst_19 = arith.constant dense<0.000000e+00> : vector<32x512xf32>
    %17 = tpu.matmul %3, %16, %cst_19 {dimension_numbers = #tpu.dot_dimension_numbers<[1], [0], [0], [1], [0, 0, 1, 1], [], []>} : vector<32x160xbf16>, vector<160x512xbf16>, vector<32x512xf32> -> vector<32x512xf32>
    %18 = arith.maximumf %14, %17 : vector<32x512xf32>
    %c0_20 = arith.constant 0 : index
    %c0_21 = arith.constant 0 : index
    %19 = vector.load %arg3[%c0_20, %c0_21] : memref<1x512xf32, #tpu.memory_space<vmem>>, vector<1x512xf32>
    %20 = vector.broadcast %19 : vector<1x512xf32> to vector<32x512xf32>
    %21 = arith.addf %18, %20 : vector<32x512xf32>
    %cst_22 = arith.constant 0.000000e+00 : f32
    %22 = vector.broadcast %cst_22 : f32 to vector<32x512xf32>
    %23 = arith.maximumf %21, %22 : vector<32x512xf32>
    %24 = arith.truncf %23 : vector<32x512xf32> to vector<32x512xbf16>
    %25 = vector.shape_cast %24 : vector<32x512xbf16> to vector<2x2x8x512xbf16>
    %26 = vector.extract_strided_slice %25 {offsets = [0, 0, 0, 0], sizes = [2, 2, 7, 512], strides = [1, 1, 1, 1]} : vector<2x2x8x512xbf16> to vector<2x2x7x512xbf16>
    %c0_23 = arith.constant 0 : index
    %c0_24 = arith.constant 0 : index
    %c1_25 = arith.constant 1 : index
    %c0_26 = arith.constant 0 : index
    %27 = vector.load %arg13[%c0_23, %c0_24, %c1_25, %c0_26] : memref<2x2x10x512xbf16, #tpu.memory_space<vmem>>, vector<2x2x7x512xbf16>
    tpu.vector_store %arg13[%c0_23, %c0_24, %c1_25, %c0_26], %26 {strides = array<i32>} : memref<2x2x10x512xbf16, #tpu.memory_space<vmem>>, vector<2x2x7x512xbf16>,
    %cst_27 = arith.constant 0.000000e+00 : bf16
    %28 = vector.broadcast %cst_27 : bf16 to vector<2x2x1x512xbf16>
    %c0_28 = arith.constant 0 : index
    %c0_29 = arith.constant 0 : index
    %c0_30 = arith.constant 0 : index
    %c0_31 = arith.constant 0 : index
    %29 = vector.load %arg13[%c0_28, %c0_29, %c0_30, %c0_31] : memref<2x2x10x512xbf16, #tpu.memory_space<vmem>>, vector<2x2x1x512xbf16>
    tpu.vector_store %arg13[%c0_28, %c0_29, %c0_30, %c0_31], %28 {strides = array<i32>} : memref<2x2x10x512xbf16, #tpu.memory_space<vmem>>, vector<2x2x1x512xbf16>,
    %cst_32 = arith.constant 0.000000e+00 : bf16
    %30 = vector.broadcast %cst_32 : bf16 to vector<2x2x2x512xbf16>
    %c0_33 = arith.constant 0 : index
    %c0_34 = arith.constant 0 : index
    %c8 = arith.constant 8 : index
    %c0_35 = arith.constant 0 : index
    %31 = vector.load %arg13[%c0_33, %c0_34, %c8, %c0_35] : memref<2x2x10x512xbf16, #tpu.memory_space<vmem>>, vector<2x2x2x512xbf16>
    tpu.vector_store %arg13[%c0_33, %c0_34, %c8, %c0_35], %30 {strides = array<i32>} : memref<2x2x10x512xbf16, #tpu.memory_space<vmem>>, vector<2x2x2x512xbf16>,
    %c0_36 = arith.constant 0 : index
    %c0_37 = arith.constant 0 : index
    %c0_38 = arith.constant 0 : index
    %c0_39 = arith.constant 0 : index
    %32 = vector.load %arg13[%c0_36, %c0_37, %c0_38, %c0_39] : memref<2x2x10x512xbf16, #tpu.memory_space<vmem>>, vector<2x1x8x512xbf16>
    %33 = vector.shape_cast %32 : vector<2x1x8x512xbf16> to vector<2x8x512xbf16>
    %34 = vector.shape_cast %33 : vector<2x8x512xbf16> to vector<16x512xbf16>
    %c0_40 = arith.constant 0 : index
    %c1_41 = arith.constant 1 : index
    %c0_42 = arith.constant 0 : index
    %c0_43 = arith.constant 0 : index
    %35 = vector.load %arg13[%c0_40, %c1_41, %c0_42, %c0_43] : memref<2x2x10x512xbf16, #tpu.memory_space<vmem>>, vector<2x1x8x512xbf16>
    %36 = vector.shape_cast %35 : vector<2x1x8x512xbf16> to vector<2x8x512xbf16>
    %37 = vector.shape_cast %36 : vector<2x8x512xbf16> to vector<16x512xbf16>
    %c0_44 = arith.constant 0 : index
    %c0_45 = arith.constant 0 : index
    %c1_46 = arith.constant 1 : index
    %c0_47 = arith.constant 0 : index
    %38 = vector.load %arg13[%c0_44, %c0_45, %c1_46, %c0_47] : memref<2x2x10x512xbf16, #tpu.memory_space<vmem>>, vector<2x1x8x512xbf16>
    %39 = vector.shape_cast %38 : vector<2x1x8x512xbf16> to vector<2x8x512xbf16>
    %40 = vector.shape_cast %39 : vector<2x8x512xbf16> to vector<16x512xbf16>
    %c0_48 = arith.constant 0 : index
    %c1_49 = arith.constant 1 : index
    %c1_50 = arith.constant 1 : index
    %c0_51 = arith.constant 0 : index
    %41 = vector.load %arg13[%c0_48, %c1_49, %c1_50, %c0_51] : memref<2x2x10x512xbf16, #tpu.memory_space<vmem>>, vector<2x1x8x512xbf16>
    %42 = vector.shape_cast %41 : vector<2x1x8x512xbf16> to vector<2x8x512xbf16>
    %43 = vector.shape_cast %42 : vector<2x8x512xbf16> to vector<16x512xbf16>
    %c0_52 = arith.constant 0 : index
    %c0_53 = arith.constant 0 : index
    %c2_54 = arith.constant 2 : index
    %c0_55 = arith.constant 0 : index
    %44 = vector.load %arg13[%c0_52, %c0_53, %c2_54, %c0_55] : memref<2x2x10x512xbf16, #tpu.memory_space<vmem>>, vector<2x1x8x512xbf16>
    %45 = vector.shape_cast %44 : vector<2x1x8x512xbf16> to vector<2x8x512xbf16>
    %46 = vector.shape_cast %45 : vector<2x8x512xbf16> to vector<16x512xbf16>
    %c0_56 = arith.constant 0 : index
    %c1_57 = arith.constant 1 : index
    %c2_58 = arith.constant 2 : index
    %c0_59 = arith.constant 0 : index
    %47 = vector.load %arg13[%c0_56, %c1_57, %c2_58, %c0_59] : memref<2x2x10x512xbf16, #tpu.memory_space<vmem>>, vector<2x1x8x512xbf16>
    %48 = vector.shape_cast %47 : vector<2x1x8x512xbf16> to vector<2x8x512xbf16>
    %49 = vector.shape_cast %48 : vector<2x8x512xbf16> to vector<16x512xbf16>
    %c0_60 = arith.constant 0 : index
    %c0_61 = arith.constant 0 : index
    %c0_62 = arith.constant 0 : index
    %c0_63 = arith.constant 0 : index
    %50 = vector.load %arg4[%c0_60, %c0_61, %c0_62, %c0_63] : memref<2x5x512x256xbf16, #tpu.memory_space<vmem>>, vector<1x1x512x256xbf16>
    %51 = vector.shape_cast %50 : vector<1x1x512x256xbf16> to vector<512x256xbf16>
    %cst_64 = arith.constant dense<0.000000e+00> : vector<16x256xf32>
    %52 = tpu.matmul %34, %51, %cst_64 {dimension_numbers = #tpu.dot_dimension_numbers<[1], [0], [0], [1], [0, 0, 1, 1], [], []>} : vector<16x512xbf16>, vector<512x256xbf16>, vector<16x256xf32> -> vector<16x256xf32>
    %c0_65 = arith.constant 0 : index
    %c1_66 = arith.constant 1 : index
    %c0_67 = arith.constant 0 : index
    %c0_68 = arith.constant 0 : index
    %53 = vector.load %arg4[%c0_65, %c1_66, %c0_67, %c0_68] : memref<2x5x512x256xbf16, #tpu.memory_space<vmem>>, vector<1x1x512x256xbf16>
    %54 = vector.shape_cast %53 : vector<1x1x512x256xbf16> to vector<512x256xbf16>
    %cst_69 = arith.constant dense<0.000000e+00> : vector<16x256xf32>
    %55 = tpu.matmul %37, %54, %cst_69 {dimension_numbers = #tpu.dot_dimension_numbers<[1], [0], [0], [1], [0, 0, 1, 1], [], []>} : vector<16x512xbf16>, vector<512x256xbf16>, vector<16x256xf32> -> vector<16x256xf32>
    %56 = arith.addf %52, %55 : vector<16x256xf32>
    %c0_70 = arith.constant 0 : index
    %c2_71 = arith.constant 2 : index
    %c0_72 = arith.constant 0 : index
    %c0_73 = arith.constant 0 : index
    %57 = vector.load %arg4[%c0_70, %c2_71, %c0_72, %c0_73] : memref<2x5x512x256xbf16, #tpu.memory_space<vmem>>, vector<1x1x512x256xbf16>
    %58 = vector.shape_cast %57 : vector<1x1x512x256xbf16> to vector<512x256xbf16>
    %cst_74 = arith.constant dense<0.000000e+00> : vector<16x256xf32>
    %59 = tpu.matmul %40, %58, %cst_74 {dimension_numbers = #tpu.dot_dimension_numbers<[1], [0], [0], [1], [0, 0, 1, 1], [], []>} : vector<16x512xbf16>, vector<512x256xbf16>, vector<16x256xf32> -> vector<16x256xf32>
    %60 = arith.addf %56, %59 : vector<16x256xf32>
    %c0_75 = arith.constant 0 : index
    %c3 = arith.constant 3 : index
    %c0_76 = arith.constant 0 : index
    %c0_77 = arith.constant 0 : index
    %61 = vector.load %arg4[%c0_75, %c3, %c0_76, %c0_77] : memref<2x5x512x256xbf16, #tpu.memory_space<vmem>>, vector<1x1x512x256xbf16>
    %62 = vector.shape_cast %61 : vector<1x1x512x256xbf16> to vector<512x256xbf16>
    %cst_78 = arith.constant dense<0.000000e+00> : vector<16x256xf32>
    %63 = tpu.matmul %43, %62, %cst_78 {dimension_numbers = #tpu.dot_dimension_numbers<[1], [0], [0], [1], [0, 0, 1, 1], [], []>} : vector<16x512xbf16>, vector<512x256xbf16>, vector<16x256xf32> -> vector<16x256xf32>
    %64 = arith.addf %60, %63 : vector<16x256xf32>
    %c0_79 = arith.constant 0 : index
    %c4 = arith.constant 4 : index
    %c0_80 = arith.constant 0 : index
    %c0_81 = arith.constant 0 : index
    %65 = vector.load %arg4[%c0_79, %c4, %c0_80, %c0_81] : memref<2x5x512x256xbf16, #tpu.memory_space<vmem>>, vector<1x1x512x256xbf16>
    %66 = vector.shape_cast %65 : vector<1x1x512x256xbf16> to vector<512x256xbf16>
    %cst_82 = arith.constant dense<0.000000e+00> : vector<16x256xf32>
    %67 = tpu.matmul %46, %66, %cst_82 {dimension_numbers = #tpu.dot_dimension_numbers<[1], [0], [0], [1], [0, 0, 1, 1], [], []>} : vector<16x512xbf16>, vector<512x256xbf16>, vector<16x256xf32> -> vector<16x256xf32>
    %68 = arith.addf %64, %67 : vector<16x256xf32>
    %c1_83 = arith.constant 1 : index
    %c0_84 = arith.constant 0 : index
    %c0_85 = arith.constant 0 : index
    %c0_86 = arith.constant 0 : index
    %69 = vector.load %arg4[%c1_83, %c0_84, %c0_85, %c0_86] : memref<2x5x512x256xbf16, #tpu.memory_space<vmem>>, vector<1x1x512x256xbf16>
    %70 = vector.shape_cast %69 : vector<1x1x512x256xbf16> to vector<512x256xbf16>
    %cst_87 = arith.constant dense<0.000000e+00> : vector<16x256xf32>
    %71 = tpu.matmul %34, %70, %cst_87 {dimension_numbers = #tpu.dot_dimension_numbers<[1], [0], [0], [1], [0, 0, 1, 1], [], []>} : vector<16x512xbf16>, vector<512x256xbf16>, vector<16x256xf32> -> vector<16x256xf32>
    %c1_88 = arith.constant 1 : index
    %c1_89 = arith.constant 1 : index
    %c0_90 = arith.constant 0 : index
    %c0_91 = arith.constant 0 : index
    %72 = vector.load %arg4[%c1_88, %c1_89, %c0_90, %c0_91] : memref<2x5x512x256xbf16, #tpu.memory_space<vmem>>, vector<1x1x512x256xbf16>
    %73 = vector.shape_cast %72 : vector<1x1x512x256xbf16> to vector<512x256xbf16>
    %cst_92 = arith.constant dense<0.000000e+00> : vector<16x256xf32>
    %74 = tpu.matmul %37, %73, %cst_92 {dimension_numbers = #tpu.dot_dimension_numbers<[1], [0], [0], [1], [0, 0, 1, 1], [], []>} : vector<16x512xbf16>, vector<512x256xbf16>, vector<16x256xf32> -> vector<16x256xf32>
    %75 = arith.addf %71, %74 : vector<16x256xf32>
    %c1_93 = arith.constant 1 : index
    %c2_94 = arith.constant 2 : index
    %c0_95 = arith.constant 0 : index
    %c0_96 = arith.constant 0 : index
    %76 = vector.load %arg4[%c1_93, %c2_94, %c0_95, %c0_96] : memref<2x5x512x256xbf16, #tpu.memory_space<vmem>>, vector<1x1x512x256xbf16>
    %77 = vector.shape_cast %76 : vector<1x1x512x256xbf16> to vector<512x256xbf16>
    %cst_97 = arith.constant dense<0.000000e+00> : vector<16x256xf32>
    %78 = tpu.matmul %40, %77, %cst_97 {dimension_numbers = #tpu.dot_dimension_numbers<[1], [0], [0], [1], [0, 0, 1, 1], [], []>} : vector<16x512xbf16>, vector<512x256xbf16>, vector<16x256xf32> -> vector<16x256xf32>
    %79 = arith.addf %75, %78 : vector<16x256xf32>
    %c1_98 = arith.constant 1 : index
    %c3_99 = arith.constant 3 : index
    %c0_100 = arith.constant 0 : index
    %c0_101 = arith.constant 0 : index
    %80 = vector.load %arg4[%c1_98, %c3_99, %c0_100, %c0_101] : memref<2x5x512x256xbf16, #tpu.memory_space<vmem>>, vector<1x1x512x256xbf16>
    %81 = vector.shape_cast %80 : vector<1x1x512x256xbf16> to vector<512x256xbf16>
    %cst_102 = arith.constant dense<0.000000e+00> : vector<16x256xf32>
    %82 = tpu.matmul %43, %81, %cst_102 {dimension_numbers = #tpu.dot_dimension_numbers<[1], [0], [0], [1], [0, 0, 1, 1], [], []>} : vector<16x512xbf16>, vector<512x256xbf16>, vector<16x256xf32> -> vector<16x256xf32>
    %83 = arith.addf %79, %82 : vector<16x256xf32>
    %c1_103 = arith.constant 1 : index
    %c4_104 = arith.constant 4 : index
    %c0_105 = arith.constant 0 : index
    %c0_106 = arith.constant 0 : index
    %84 = vector.load %arg4[%c1_103, %c4_104, %c0_105, %c0_106] : memref<2x5x512x256xbf16, #tpu.memory_space<vmem>>, vector<1x1x512x256xbf16>
    %85 = vector.shape_cast %84 : vector<1x1x512x256xbf16> to vector<512x256xbf16>
    %cst_107 = arith.constant dense<0.000000e+00> : vector<16x256xf32>
    %86 = tpu.matmul %46, %85, %cst_107 {dimension_numbers = #tpu.dot_dimension_numbers<[1], [0], [0], [1], [0, 0, 1, 1], [], []>} : vector<16x512xbf16>, vector<512x256xbf16>, vector<16x256xf32> -> vector<16x256xf32>
    %87 = arith.addf %83, %86 : vector<16x256xf32>
    %88 = arith.maximumf %68, %87 : vector<16x256xf32>
    %c0_108 = arith.constant 0 : index
    %c0_109 = arith.constant 0 : index
    %c0_110 = arith.constant 0 : index
    %c0_111 = arith.constant 0 : index
    %89 = vector.load %arg4[%c0_108, %c0_109, %c0_110, %c0_111] : memref<2x5x512x256xbf16, #tpu.memory_space<vmem>>, vector<1x1x512x256xbf16>
    %90 = vector.shape_cast %89 : vector<1x1x512x256xbf16> to vector<512x256xbf16>
    %cst_112 = arith.constant dense<0.000000e+00> : vector<16x256xf32>
    %91 = tpu.matmul %37, %90, %cst_112 {dimension_numbers = #tpu.dot_dimension_numbers<[1], [0], [0], [1], [0, 0, 1, 1], [], []>} : vector<16x512xbf16>, vector<512x256xbf16>, vector<16x256xf32> -> vector<16x256xf32>
    %c0_113 = arith.constant 0 : index
    %c1_114 = arith.constant 1 : index
    %c0_115 = arith.constant 0 : index
    %c0_116 = arith.constant 0 : index
    %92 = vector.load %arg4[%c0_113, %c1_114, %c0_115, %c0_116] : memref<2x5x512x256xbf16, #tpu.memory_space<vmem>>, vector<1x1x512x256xbf16>
    %93 = vector.shape_cast %92 : vector<1x1x512x256xbf16> to vector<512x256xbf16>
    %cst_117 = arith.constant dense<0.000000e+00> : vector<16x256xf32>
    %94 = tpu.matmul %40, %93, %cst_117 {dimension_numbers = #tpu.dot_dimension_numbers<[1], [0], [0], [1], [0, 0, 1, 1], [], []>} : vector<16x512xbf16>, vector<512x256xbf16>, vector<16x256xf32> -> vector<16x256xf32>
    %95 = arith.addf %91, %94 : vector<16x256xf32>
    %c0_118 = arith.constant 0 : index
    %c2_119 = arith.constant 2 : index
    %c0_120 = arith.constant 0 : index
    %c0_121 = arith.constant 0 : index
    %96 = vector.load %arg4[%c0_118, %c2_119, %c0_120, %c0_121] : memref<2x5x512x256xbf16, #tpu.memory_space<vmem>>, vector<1x1x512x256xbf16>
    %97 = vector.shape_cast %96 : vector<1x1x512x256xbf16> to vector<512x256xbf16>
    %cst_122 = arith.constant dense<0.000000e+00> : vector<16x256xf32>
    %98 = tpu.matmul %43, %97, %cst_122 {dimension_numbers = #tpu.dot_dimension_numbers<[1], [0], [0], [1], [0, 0, 1, 1], [], []>} : vector<16x512xbf16>, vector<512x256xbf16>, vector<16x256xf32> -> vector<16x256xf32>
    %99 = arith.addf %95, %98 : vector<16x256xf32>
    %c0_123 = arith.constant 0 : index
    %c3_124 = arith.constant 3 : index
    %c0_125 = arith.constant 0 : index
    %c0_126 = arith.constant 0 : index
    %100 = vector.load %arg4[%c0_123, %c3_124, %c0_125, %c0_126] : memref<2x5x512x256xbf16, #tpu.memory_space<vmem>>, vector<1x1x512x256xbf16>
    %101 = vector.shape_cast %100 : vector<1x1x512x256xbf16> to vector<512x256xbf16>
    %cst_127 = arith.constant dense<0.000000e+00> : vector<16x256xf32>
    %102 = tpu.matmul %46, %101, %cst_127 {dimension_numbers = #tpu.dot_dimension_numbers<[1], [0], [0], [1], [0, 0, 1, 1], [], []>} : vector<16x512xbf16>, vector<512x256xbf16>, vector<16x256xf32> -> vector<16x256xf32>
    %103 = arith.addf %99, %102 : vector<16x256xf32>
    %c0_128 = arith.constant 0 : index
    %c4_129 = arith.constant 4 : index
    %c0_130 = arith.constant 0 : index
    %c0_131 = arith.constant 0 : index
    %104 = vector.load %arg4[%c0_128, %c4_129, %c0_130, %c0_131] : memref<2x5x512x256xbf16, #tpu.memory_space<vmem>>, vector<1x1x512x256xbf16>
    %105 = vector.shape_cast %104 : vector<1x1x512x256xbf16> to vector<512x256xbf16>
    %cst_132 = arith.constant dense<0.000000e+00> : vector<16x256xf32>
    %106 = tpu.matmul %49, %105, %cst_132 {dimension_numbers = #tpu.dot_dimension_numbers<[1], [0], [0], [1], [0, 0, 1, 1], [], []>} : vector<16x512xbf16>, vector<512x256xbf16>, vector<16x256xf32> -> vector<16x256xf32>
    %107 = arith.addf %103, %106 : vector<16x256xf32>
    %108 = arith.maximumf %88, %107 : vector<16x256xf32>
    %c1_133 = arith.constant 1 : index
    %c0_134 = arith.constant 0 : index
    %c0_135 = arith.constant 0 : index
    %c0_136 = arith.constant 0 : index
    %109 = vector.load %arg4[%c1_133, %c0_134, %c0_135, %c0_136] : memref<2x5x512x256xbf16, #tpu.memory_space<vmem>>, vector<1x1x512x256xbf16>
    %110 = vector.shape_cast %109 : vector<1x1x512x256xbf16> to vector<512x256xbf16>
    %cst_137 = arith.constant dense<0.000000e+00> : vector<16x256xf32>
    %111 = tpu.matmul %37, %110, %cst_137 {dimension_numbers = #tpu.dot_dimension_numbers<[1], [0], [0], [1], [0, 0, 1, 1], [], []>} : vector<16x512xbf16>, vector<512x256xbf16>, vector<16x256xf32> -> vector<16x256xf32>
    %c1_138 = arith.constant 1 : index
    %c1_139 = arith.constant 1 : index
    %c0_140 = arith.constant 0 : index
    %c0_141 = arith.constant 0 : index
    %112 = vector.load %arg4[%c1_138, %c1_139, %c0_140, %c0_141] : memref<2x5x512x256xbf16, #tpu.memory_space<vmem>>, vector<1x1x512x256xbf16>
    %113 = vector.shape_cast %112 : vector<1x1x512x256xbf16> to vector<512x256xbf16>
    %cst_142 = arith.constant dense<0.000000e+00> : vector<16x256xf32>
    %114 = tpu.matmul %40, %113, %cst_142 {dimension_numbers = #tpu.dot_dimension_numbers<[1], [0], [0], [1], [0, 0, 1, 1], [], []>} : vector<16x512xbf16>, vector<512x256xbf16>, vector<16x256xf32> -> vector<16x256xf32>
    %115 = arith.addf %111, %114 : vector<16x256xf32>
    %c1_143 = arith.constant 1 : index
    %c2_144 = arith.constant 2 : index
    %c0_145 = arith.constant 0 : index
    %c0_146 = arith.constant 0 : index
    %116 = vector.load %arg4[%c1_143, %c2_144, %c0_145, %c0_146] : memref<2x5x512x256xbf16, #tpu.memory_space<vmem>>, vector<1x1x512x256xbf16>
    %117 = vector.shape_cast %116 : vector<1x1x512x256xbf16> to vector<512x256xbf16>
    %cst_147 = arith.constant dense<0.000000e+00> : vector<16x256xf32>
    %118 = tpu.matmul %43, %117, %cst_147 {dimension_numbers = #tpu.dot_dimension_numbers<[1], [0], [0], [1], [0, 0, 1, 1], [], []>} : vector<16x512xbf16>, vector<512x256xbf16>, vector<16x256xf32> -> vector<16x256xf32>
    %119 = arith.addf %115, %118 : vector<16x256xf32>
    %c1_148 = arith.constant 1 : index
    %c3_149 = arith.constant 3 : index
    %c0_150 = arith.constant 0 : index
    %c0_151 = arith.constant 0 : index
    %120 = vector.load %arg4[%c1_148, %c3_149, %c0_150, %c0_151] : memref<2x5x512x256xbf16, #tpu.memory_space<vmem>>, vector<1x1x512x256xbf16>
    %121 = vector.shape_cast %120 : vector<1x1x512x256xbf16> to vector<512x256xbf16>
    %cst_152 = arith.constant dense<0.000000e+00> : vector<16x256xf32>
    %122 = tpu.matmul %46, %121, %cst_152 {dimension_numbers = #tpu.dot_dimension_numbers<[1], [0], [0], [1], [0, 0, 1, 1], [], []>} : vector<16x512xbf16>, vector<512x256xbf16>, vector<16x256xf32> -> vector<16x256xf32>
    %123 = arith.addf %119, %122 : vector<16x256xf32>
    %c1_153 = arith.constant 1 : index
    %c4_154 = arith.constant 4 : index
    %c0_155 = arith.constant 0 : index
    %c0_156 = arith.constant 0 : index
    %124 = vector.load %arg4[%c1_153, %c4_154, %c0_155, %c0_156] : memref<2x5x512x256xbf16, #tpu.memory_space<vmem>>, vector<1x1x512x256xbf16>
    %125 = vector.shape_cast %124 : vector<1x1x512x256xbf16> to vector<512x256xbf16>
    %cst_157 = arith.constant dense<0.000000e+00> : vector<16x256xf32>
    %126 = tpu.matmul %49, %125, %cst_157 {dimension_numbers = #tpu.dot_dimension_numbers<[1], [0], [0], [1], [0, 0, 1, 1], [], []>} : vector<16x512xbf16>, vector<512x256xbf16>, vector<16x256xf32> -> vector<16x256xf32>
    %127 = arith.addf %123, %126 : vector<16x256xf32>
    %128 = arith.maximumf %108, %127 : vector<16x256xf32>
    %c0_158 = arith.constant 0 : index
    %c0_159 = arith.constant 0 : index
    %129 = vector.load %arg5[%c0_158, %c0_159] : memref<1x256xf32, #tpu.memory_space<vmem>>, vector<1x256xf32>
    %130 = vector.broadcast %129 : vector<1x256xf32> to vector<16x256xf32>
    %131 = arith.addf %128, %130 : vector<16x256xf32>
    %cst_160 = arith.constant 0.000000e+00 : f32
    %132 = vector.broadcast %cst_160 : f32 to vector<16x256xf32>
    %133 = arith.maximumf %131, %132 : vector<16x256xf32>
    %134 = arith.truncf %133 : vector<16x256xf32> to vector<16x256xbf16>
    %135 = vector.shape_cast %134 : vector<16x256xbf16> to vector<2x8x256xbf16>
    %c0_161 = arith.constant 0 : index
    %c0_162 = arith.constant 0 : index
    %c0_163 = arith.constant 0 : index
    %136 = vector.load %arg14[%c0_161, %c0_162, %c0_163] : memref<2x8x256xbf16, #tpu.memory_space<vmem>>, vector<2x8x256xbf16>
    tpu.vector_store %arg14[%c0_161, %c0_162, %c0_163], %135 {strides = array<i32>} : memref<2x8x256xbf16, #tpu.memory_space<vmem>>, vector<2x8x256xbf16>,
    %c0_164 = arith.constant 0 : index
    %c0_165 = arith.constant 0 : index
    %c0_166 = arith.constant 0 : index
    %137 = vector.load %arg14[%c0_164, %c0_165, %c0_166] : memref<2x8x256xbf16, #tpu.memory_space<vmem>>, vector<2x1x256xbf16>
    %138 = vector.shape_cast %137 : vector<2x1x256xbf16> to vector<2x256xbf16>
    %c0_167 = arith.constant 0 : index
    %c0_168 = arith.constant 0 : index
    %c0_169 = arith.constant 0 : index
    %139 = vector.load %arg6[%c0_167, %c0_168, %c0_169] : memref<7x256x120xbf16, #tpu.memory_space<vmem>>, vector<1x256x120xbf16>
    %140 = vector.shape_cast %139 : vector<1x256x120xbf16> to vector<256x120xbf16>
    %cst_170 = arith.constant dense<0.000000e+00> : vector<2x120xf32>
    %141 = tpu.matmul %138, %140, %cst_170 {dimension_numbers = #tpu.dot_dimension_numbers<[1], [0], [0], [1], [0, 0, 1, 1], [], []>} : vector<2x256xbf16>, vector<256x120xbf16>, vector<2x120xf32> -> vector<2x120xf32>
    %c0_171 = arith.constant 0 : index
    %c1_172 = arith.constant 1 : index
    %c0_173 = arith.constant 0 : index
    %142 = vector.load %arg14[%c0_171, %c1_172, %c0_173] : memref<2x8x256xbf16, #tpu.memory_space<vmem>>, vector<2x1x256xbf16>
    %143 = vector.shape_cast %142 : vector<2x1x256xbf16> to vector<2x256xbf16>
    %c1_174 = arith.constant 1 : index
    %c0_175 = arith.constant 0 : index
    %c0_176 = arith.constant 0 : index
    %144 = vector.load %arg6[%c1_174, %c0_175, %c0_176] : memref<7x256x120xbf16, #tpu.memory_space<vmem>>, vector<1x256x120xbf16>
    %145 = vector.shape_cast %144 : vector<1x256x120xbf16> to vector<256x120xbf16>
    %cst_177 = arith.constant dense<0.000000e+00> : vector<2x120xf32>
    %146 = tpu.matmul %143, %145, %cst_177 {dimension_numbers = #tpu.dot_dimension_numbers<[1], [0], [0], [1], [0, 0, 1, 1], [], []>} : vector<2x256xbf16>, vector<256x120xbf16>, vector<2x120xf32> -> vector<2x120xf32>
    %147 = arith.addf %141, %146 : vector<2x120xf32>
    %c0_178 = arith.constant 0 : index
    %c2_179 = arith.constant 2 : index
    %c0_180 = arith.constant 0 : index
    %148 = vector.load %arg14[%c0_178, %c2_179, %c0_180] : memref<2x8x256xbf16, #tpu.memory_space<vmem>>, vector<2x1x256xbf16>
    %149 = vector.shape_cast %148 : vector<2x1x256xbf16> to vector<2x256xbf16>
    %c2_181 = arith.constant 2 : index
    %c0_182 = arith.constant 0 : index
    %c0_183 = arith.constant 0 : index
    %150 = vector.load %arg6[%c2_181, %c0_182, %c0_183] : memref<7x256x120xbf16, #tpu.memory_space<vmem>>, vector<1x256x120xbf16>
    %151 = vector.shape_cast %150 : vector<1x256x120xbf16> to vector<256x120xbf16>
    %cst_184 = arith.constant dense<0.000000e+00> : vector<2x120xf32>
    %152 = tpu.matmul %149, %151, %cst_184 {dimension_numbers = #tpu.dot_dimension_numbers<[1], [0], [0], [1], [0, 0, 1, 1], [], []>} : vector<2x256xbf16>, vector<256x120xbf16>, vector<2x120xf32> -> vector<2x120xf32>
    %153 = arith.addf %147, %152 : vector<2x120xf32>
    %c0_185 = arith.constant 0 : index
    %c3_186 = arith.constant 3 : index
    %c0_187 = arith.constant 0 : index
    %154 = vector.load %arg14[%c0_185, %c3_186, %c0_187] : memref<2x8x256xbf16, #tpu.memory_space<vmem>>, vector<2x1x256xbf16>
    %155 = vector.shape_cast %154 : vector<2x1x256xbf16> to vector<2x256xbf16>
    %c3_188 = arith.constant 3 : index
    %c0_189 = arith.constant 0 : index
    %c0_190 = arith.constant 0 : index
    %156 = vector.load %arg6[%c3_188, %c0_189, %c0_190] : memref<7x256x120xbf16, #tpu.memory_space<vmem>>, vector<1x256x120xbf16>
    %157 = vector.shape_cast %156 : vector<1x256x120xbf16> to vector<256x120xbf16>
    %cst_191 = arith.constant dense<0.000000e+00> : vector<2x120xf32>
    %158 = tpu.matmul %155, %157, %cst_191 {dimension_numbers = #tpu.dot_dimension_numbers<[1], [0], [0], [1], [0, 0, 1, 1], [], []>} : vector<2x256xbf16>, vector<256x120xbf16>, vector<2x120xf32> -> vector<2x120xf32>
    %159 = arith.addf %153, %158 : vector<2x120xf32>
    %c0_192 = arith.constant 0 : index
    %c4_193 = arith.constant 4 : index
    %c0_194 = arith.constant 0 : index
    %160 = vector.load %arg14[%c0_192, %c4_193, %c0_194] : memref<2x8x256xbf16, #tpu.memory_space<vmem>>, vector<2x1x256xbf16>
    %161 = vector.shape_cast %160 : vector<2x1x256xbf16> to vector<2x256xbf16>
    %c4_195 = arith.constant 4 : index
    %c0_196 = arith.constant 0 : index
    %c0_197 = arith.constant 0 : index
    %162 = vector.load %arg6[%c4_195, %c0_196, %c0_197] : memref<7x256x120xbf16, #tpu.memory_space<vmem>>, vector<1x256x120xbf16>
    %163 = vector.shape_cast %162 : vector<1x256x120xbf16> to vector<256x120xbf16>
    %cst_198 = arith.constant dense<0.000000e+00> : vector<2x120xf32>
    %164 = tpu.matmul %161, %163, %cst_198 {dimension_numbers = #tpu.dot_dimension_numbers<[1], [0], [0], [1], [0, 0, 1, 1], [], []>} : vector<2x256xbf16>, vector<256x120xbf16>, vector<2x120xf32> -> vector<2x120xf32>
    %165 = arith.addf %159, %164 : vector<2x120xf32>
    %c0_199 = arith.constant 0 : index
    %c5 = arith.constant 5 : index
    %c0_200 = arith.constant 0 : index
    %166 = vector.load %arg14[%c0_199, %c5, %c0_200] : memref<2x8x256xbf16, #tpu.memory_space<vmem>>, vector<2x1x256xbf16>
    %167 = vector.shape_cast %166 : vector<2x1x256xbf16> to vector<2x256xbf16>
    %c5_201 = arith.constant 5 : index
    %c0_202 = arith.constant 0 : index
    %c0_203 = arith.constant 0 : index
    %168 = vector.load %arg6[%c5_201, %c0_202, %c0_203] : memref<7x256x120xbf16, #tpu.memory_space<vmem>>, vector<1x256x120xbf16>
    %169 = vector.shape_cast %168 : vector<1x256x120xbf16> to vector<256x120xbf16>
    %cst_204 = arith.constant dense<0.000000e+00> : vector<2x120xf32>
    %170 = tpu.matmul %167, %169, %cst_204 {dimension_numbers = #tpu.dot_dimension_numbers<[1], [0], [0], [1], [0, 0, 1, 1], [], []>} : vector<2x256xbf16>, vector<256x120xbf16>, vector<2x120xf32> -> vector<2x120xf32>
    %171 = arith.addf %165, %170 : vector<2x120xf32>
    %c0_205 = arith.constant 0 : index
    %c6 = arith.constant 6 : index
    %c0_206 = arith.constant 0 : index
    %172 = vector.load %arg14[%c0_205, %c6, %c0_206] : memref<2x8x256xbf16, #tpu.memory_space<vmem>>, vector<2x1x256xbf16>
    %173 = vector.shape_cast %172 : vector<2x1x256xbf16> to vector<2x256xbf16>
    %c6_207 = arith.constant 6 : index
    %c0_208 = arith.constant 0 : index
    %c0_209 = arith.constant 0 : index
    %174 = vector.load %arg6[%c6_207, %c0_208, %c0_209] : memref<7x256x120xbf16, #tpu.memory_space<vmem>>, vector<1x256x120xbf16>
    %175 = vector.shape_cast %174 : vector<1x256x120xbf16> to vector<256x120xbf16>
    %cst_210 = arith.constant dense<0.000000e+00> : vector<2x120xf32>
    %176 = tpu.matmul %173, %175, %cst_210 {dimension_numbers = #tpu.dot_dimension_numbers<[1], [0], [0], [1], [0, 0, 1, 1], [], []>} : vector<2x256xbf16>, vector<256x120xbf16>, vector<2x120xf32> -> vector<2x120xf32>
    %177 = arith.addf %171, %176 : vector<2x120xf32>
    %c0_211 = arith.constant 0 : index
    %c0_212 = arith.constant 0 : index
    %178 = vector.load %arg7[%c0_211, %c0_212] : memref<1x120xf32, #tpu.memory_space<vmem>>, vector<1x120xf32>
    %179 = vector.broadcast %178 : vector<1x120xf32> to vector<2x120xf32>
    %180 = arith.addf %177, %179 : vector<2x120xf32>
    %cst_213 = arith.constant 0.000000e+00 : f32
    %181 = vector.broadcast %cst_213 : f32 to vector<2x120xf32>
    %182 = arith.maximumf %180, %181 : vector<2x120xf32>
    %183 = arith.truncf %182 : vector<2x120xf32> to vector<2x120xbf16>
    %c0_214 = arith.constant 0 : index
    %c0_215 = arith.constant 0 : index
    %184 = vector.load %arg8[%c0_214, %c0_215] : memref<120x84xbf16, #tpu.memory_space<vmem>>, vector<120x84xbf16>
    %cst_216 = arith.constant dense<0.000000e+00> : vector<2x84xf32>
    %185 = tpu.matmul %183, %184, %cst_216 {dimension_numbers = #tpu.dot_dimension_numbers<[1], [0], [0], [1], [0, 0, 1, 1], [], []>} : vector<2x120xbf16>, vector<120x84xbf16>, vector<2x84xf32> -> vector<2x84xf32>
    %c0_217 = arith.constant 0 : index
    %c0_218 = arith.constant 0 : index
    %186 = vector.load %arg9[%c0_217, %c0_218] : memref<1x84xf32, #tpu.memory_space<vmem>>, vector<1x84xf32>
    %187 = vector.broadcast %186 : vector<1x84xf32> to vector<2x84xf32>
    %188 = arith.addf %185, %187 : vector<2x84xf32>
    %cst_219 = arith.constant 0.000000e+00 : f32
    %189 = vector.broadcast %cst_219 : f32 to vector<2x84xf32>
    %190 = arith.maximumf %188, %189 : vector<2x84xf32>
    %191 = arith.truncf %190 : vector<2x84xf32> to vector<2x84xbf16>
    %c0_220 = arith.constant 0 : index
    %c0_221 = arith.constant 0 : index
    %192 = vector.load %arg10[%c0_220, %c0_221] : memref<84x128xbf16, #tpu.memory_space<vmem>>, vector<84x128xbf16>
    %cst_222 = arith.constant dense<0.000000e+00> : vector<2x128xf32>
    %193 = tpu.matmul %191, %192, %cst_222 {dimension_numbers = #tpu.dot_dimension_numbers<[1], [0], [0], [1], [0, 0, 1, 1], [], []>} : vector<2x84xbf16>, vector<84x128xbf16>, vector<2x128xf32> -> vector<2x128xf32>
    %c0_223 = arith.constant 0 : index
    %c0_224 = arith.constant 0 : index
    %194 = vector.load %arg11[%c0_223, %c0_224] : memref<1x128xf32, #tpu.memory_space<vmem>>, vector<1x128xf32>
    %195 = vector.broadcast %194 : vector<1x128xf32> to vector<2x128xf32>
    %196 = arith.addf %193, %195 : vector<2x128xf32>
    %c0_225 = arith.constant 0 : index
    %c0_226 = arith.constant 0 : index
    %c0_227 = arith.constant 0 : index
    %197 = vector.load %arg12[%c0_225, %c0_226, %c0_227] : memref<1x2x128xf32, #tpu.memory_space<vmem>>, vector<1x2x128xf32>
    %198 = vector.shape_cast %197 : vector<1x2x128xf32> to vector<2x128xf32>
    %199 = vector.shape_cast %196 : vector<2x128xf32> to vector<1x2x128xf32>
    tpu.vector_store %arg12[%c0_225, %c0_226, %c0_227], %199 {strides = array<i32>} : memref<1x2x128xf32, #tpu.memory_space<vmem>>, vector<1x2x128xf32>,
    return
  }
  func.func @transform_0(%arg0: i32) -> (i32, i32, i32, i32) {
    %c0_i32 = arith.constant 0 : i32
    %c0_i32_0 = arith.constant 0 : i32
    %c0_i32_1 = arith.constant 0 : i32
    %c0_i32_2 = arith.constant 0 : i32
    return %arg0, %c0_i32, %c0_i32_0, %c0_i32_1 : i32, i32, i32, i32
  }
  func.func @transform_1(%arg0: i32) -> (i32, i32, i32) {
    %c0_i32 = arith.constant 0 : i32
    %c0_i32_0 = arith.constant 0 : i32
    %c0_i32_1 = arith.constant 0 : i32
    %c0_i32_2 = arith.constant 0 : i32
    return %c0_i32, %c0_i32_0, %c0_i32_1 : i32, i32, i32
  }
  func.func @transform_2(%arg0: i32) -> (i32, i32) {
    %c0_i32 = arith.constant 0 : i32
    %c0_i32_0 = arith.constant 0 : i32
    %c0_i32_1 = arith.constant 0 : i32
    return %c0_i32, %c0_i32_0 : i32, i32
  }
  func.func @transform_3(%arg0: i32) -> (i32, i32, i32, i32) {
    %c0_i32 = arith.constant 0 : i32
    %c0_i32_0 = arith.constant 0 : i32
    %c0_i32_1 = arith.constant 0 : i32
    %c0_i32_2 = arith.constant 0 : i32
    %c0_i32_3 = arith.constant 0 : i32
    return %c0_i32, %c0_i32_0, %c0_i32_1, %c0_i32_2 : i32, i32, i32, i32
  }
  func.func @transform_4(%arg0: i32) -> (i32, i32) {
    %c0_i32 = arith.constant 0 : i32
    %c0_i32_0 = arith.constant 0 : i32
    %c0_i32_1 = arith.constant 0 : i32
    return %c0_i32, %c0_i32_0 : i32, i32
  }
  func.func @transform_5(%arg0: i32) -> (i32, i32, i32) {
    %c0_i32 = arith.constant 0 : i32
    %c0_i32_0 = arith.constant 0 : i32
    %c0_i32_1 = arith.constant 0 : i32
    %c0_i32_2 = arith.constant 0 : i32
    return %c0_i32, %c0_i32_0, %c0_i32_1 : i32, i32, i32
  }
  func.func @transform_6(%arg0: i32) -> (i32, i32) {
    %c0_i32 = arith.constant 0 : i32
    %c0_i32_0 = arith.constant 0 : i32
    %c0_i32_1 = arith.constant 0 : i32
    return %c0_i32, %c0_i32_0 : i32, i32
  }
  func.func @transform_7(%arg0: i32) -> (i32, i32) {
    %c0_i32 = arith.constant 0 : i32
    %c0_i32_0 = arith.constant 0 : i32
    %c0_i32_1 = arith.constant 0 : i32
    return %c0_i32, %c0_i32_0 : i32, i32
  }
  func.func @transform_8(%arg0: i32) -> (i32, i32) {
    %c0_i32 = arith.constant 0 : i32
    %c0_i32_0 = arith.constant 0 : i32
    %c0_i32_1 = arith.constant 0 : i32
    return %c0_i32, %c0_i32_0 : i32, i32
  }
  func.func @transform_9(%arg0: i32) -> (i32, i32) {
    %c0_i32 = arith.constant 0 : i32
    %c0_i32_0 = arith.constant 0 : i32
    %c0_i32_1 = arith.constant 0 : i32
    return %c0_i32, %c0_i32_0 : i32, i32
  }
  func.func @transform_10(%arg0: i32) -> (i32, i32) {
    %c0_i32 = arith.constant 0 : i32
    %c0_i32_0 = arith.constant 0 : i32
    %c0_i32_1 = arith.constant 0 : i32
    return %c0_i32, %c0_i32_0 : i32, i32
  }
  func.func @transform_11(%arg0: i32) -> (i32, i32, i32) {
    %c0_i32 = arith.constant 0 : i32
    %c0_i32_0 = arith.constant 0 : i32
    %c0_i32_1 = arith.constant 0 : i32
    return %arg0, %c0_i32, %c0_i32_0 : i32, i32, i32
  }
}

</mosaic_0001>

<bundles_post_ra>
// kernel: tile.13
= control target key start
LH: loop header
LB: loop body
LE: loop exit
PB: predicated region body
PF: predicated region fallthrough
CT: control target
= control target key end

     0   :  { %s28_s0 = inlined_call_operand.vmem [shape: f32[32], index: 0, kind: input, shape index: {}]   ;;  %s29_s1 = inlined_call_operand.vmem [shape: f32[14,32], index: 1, kind: output, shape index: {}]  }
   0x1   :  { %v4_v0 = vld [vmem:[%s28_s0] ss:$0 sm:$0xff] }
   0x2   :  { %5 = vst [vmem:[%s29_s1] sm:$0xff] %v4_v0  ;;  %8 = vst [vmem:[%s29_s1 + $0x8] sm:$0xff] %v4_v0 }

// kernel: tile.14
= control target key start
LH: loop header
LB: loop body
LE: loop exit
PB: predicated region body
PF: predicated region fallthrough
CT: control target
= control target key end

     0   :  { %s37_s8 = smov 96   ;;  %vm3_vm0 = vcmask 261120   ;;  %s39_s15 = smov 64   ;;  %vm9_vm1 = vcmask 1048320   ;;  %vm15_vm2 = vcmask 785920   ;;  %vm21_vm3 = vcmask 523520   ;;  %s65_s0 = inlined_call_operand.vmem [shape: f32[14,32], index: 0, kind: input, shape index: {}]   ;;  %s66_s1 = inlined_call_operand.vmem [shape: f32[448], index: 1, kind: output, shape index: {}]  }
   0x1   :  { %v31_v0 = vld [vmem:[%s65_s0 + $0x3] ss:$4 sm:$0x7]   ;;  %v32_v1 = vld [vmem:[%s65_s0 + $0x2] ss:$4 sm:$0x7]  }
   0x2   :  { %7 = vrot.lane.b32.xlu0 %v31_v0, %s37_s8  ;;  %v33_v2 = vld [vmem:[%s65_s0 + $0x1] ss:$4 sm:$0xf]   ;;  %v2_v3 = vld [vmem:[%s65_s0] ss:$4 sm:$0xf]  }
   0x3   :  { %s38_s0 = smov 32   ;;  %4 = vst.msk [vmem:[#allocation0] sm:$0xf] %vm3_vm0, %v2_v3  }
   0x4   :  { %19 = vrot.lane.b32.xlu1 %v33_v2, %s38_s0 }
   0x6   :  { %13 = vrot.lane.b32.xlu0 %v32_v1, %s39_s15 }
  0x74   :  { %v8_v4 = vpop.permute.xlu0 %7  }
  0x75   :  { %10 = vst.msk [vmem:[#allocation0] sm:$0x7] %vm9_vm1, %v8_v4  }
  0x76   :  { %v20_v5 = vpop.permute.xlu1 %19  }
  0x78   :  { %v14_v6 = vpop.permute.xlu0 %13  }
  0x79   :  { %16 = vst.msk [vmem:[#allocation0] sm:$0x7] %vm15_vm2, %v14_v6  }
  0x7a   :  { %22 = vst.msk [vmem:[#allocation0] sm:$0xf] %vm21_vm3, %v20_v5  }
  0x81   :  { %v27_v7 = vld [vmem:[#allocation0] sm:$0xf] }
  0x82   :  { %30 = vst [vmem:[%s66_s1] sm:$0xf] %v27_v7 }

// kernel: tile.18
= control target key start
LH: loop header
LB: loop body
LE: loop exit
PB: predicated region body
PF: predicated region fallthrough
CT: control target
= control target key end

     0   :  { %s22_s0 = inlined_call_operand.vmem [shape: f32[32], index: 0, kind: input, shape index: {}]   ;;  %s23_s1 = inlined_call_operand.vmem [shape: f32[7,32], index: 1, kind: output, shape index: {}]  }
   0x1   :  { %v4_v0 = vld [vmem:[%s22_s0] ss:$0 sm:$0xff] }
   0x2   :  { %5 = vst [vmem:[%s23_s1] sm:$0xff] %v4_v0 }

// kernel: tile.19
= control target key start
LH: loop header
LB: loop body
LE: loop exit
PB: predicated region body
PF: predicated region fallthrough
CT: control target
= control target key end

     0   :  { %s13_s8 = smov 3  ;;  %s40_s9 = smov 96   ;;  %vm4_vm0 = vcmask 261120   ;;  %vm10_vm1 = vcmask 1048320   ;;  %vm17_vm2 = vcmask 785920   ;;  %vm24_vm3 = vcmask 523520   ;;  %s68_s0 = inlined_call_operand.vmem [shape: f32[7,32], index: 0, kind: input, shape index: {}]   ;;  %s69_s1 = inlined_call_operand.vmem [shape: f32[224], index: 1, kind: output, shape index: {}]  }
   0x1   :  { %v34_v0 = vld [vmem:[%s68_s0 + $0x3] sm:$0x1]   ;;  %s20_s10 = smov 3  ;;  %v35_v1 = vld [vmem:[%s68_s0 + $0x2] ss:$4 sm:%s13_s8]   ;;  %s2_s15 = smov 3 }
   0x2   :  { %8 = vrot.lane.b32.xlu0 %v34_v0, %s40_s9  ;;  %v36_v2 = vld [vmem:[%s68_s0 + $0x1] ss:$4 sm:%s20_s10]   ;;  %s41_s16 = smov 32  }
   0x3   :  { %22 = vrot.lane.b32.xlu1 %v36_v2, %s41_s16  ;;  %v3_v3 = vld [vmem:[%s68_s0] ss:$4 sm:%s2_s15]   ;;  %s42_s0 = smov 64  }
   0x4   :  { %5 = vst.msk [vmem:[#allocation0] sm:$0x3] %vm4_vm0, %v3_v3  }
   0x6   :  { %15 = vrot.lane.b32.xlu0 %v35_v1, %s42_s0 }
  0x74   :  { %v9_v4 = vpop.permute.xlu0 %8  }
  0x75   :  { %11 = vst.msk [vmem:[#allocation0] sm:$0x1] %vm10_vm1, %v9_v4   ;;  %v23_v5 = vpop.permute.xlu1 %22  }
  0x78   :  { %v16_v6 = vpop.permute.xlu0 %15  }
  0x79   :  { %18 = vst.msk [vmem:[#allocation0] sm:$0x3] %vm17_vm2, %v16_v6  }
  0x7a   :  { %25 = vst.msk [vmem:[#allocation0] sm:$0x3] %vm24_vm3, %v23_v5  }
  0x81   :  { %v30_v7 = vld [vmem:[#allocation0] sm:$0x3] }
  0x82   :  { %33 = vst [vmem:[%s69_s1] sm:$0x3] %v30_v7 }

// kernel: mnist_cnn_forward.1
= control target key start
LH: loop header
LB: loop body
LE: loop exit
PB: predicated region body
PF: predicated region fallthrough
CT: control target
= control target key end

     0   :  { %s18943_s0 = inlined_call_operand.vmem [shape: bf16[4,4,8,160], index: 0, kind: input, shape index: {}]   ;;  %s18944_s1 = inlined_call_operand.vmem [shape: bf16[2,160,512], index: 1, kind: input, shape index: {}]   ;;  %s18945_s2 = inlined_call_operand.vmem [shape: f32[1,512], index: 2, kind: input, shape index: {}]   ;;  %s18946_s3 = inlined_call_operand.vmem [shape: bf16[2,5,512,256], index: 3, kind: input, shape index: {}]   ;;  %s18947_s4 = inlined_call_operand.vmem [shape: f32[1,256], index: 4, kind: input, shape index: {}]   ;;  %s18948_s5 = inlined_call_operand.vmem [shape: bf16[7,256,120], index: 5, kind: input, shape index: {}]   ;;  %s18949_s6 = inlined_call_operand.vmem [shape: f32[1,120], index: 6, kind: input, shape index: {}]   ;;  %s18950_s7 = inlined_call_operand.vmem [shape: bf16[120,84], index: 7, kind: input, shape index: {}]   ;;  %s18951_s8 = inlined_call_operand.vmem [shape: f32[1,84], index: 8, kind: input, shape index: {}]   ;;  %s18952_s9 = inlined_call_operand.vmem [shape: bf16[84,128], index: 9, kind: input, shape index: {}]   ;;  %s18953_s10 = inlined_call_operand.vmem [shape: f32[1,128], index: 10, kind: input, shape index: {}]   ;;  %s18954_s11 = inlined_call_operand.hbm [shape: f32[2,2,128], index: 11, kind: output, shape index: {}]  }
   0x1   :  { %18976 = sst [smem:[#allocation26_spill]] %s18943_s0 }
   0x2   :  { %16 = vsyncpa [#allocation5], 0 }
   0x3   :  { %18 = vsyncpa [#allocation5 + $0x1], 0  ;;  %s13230_s17 = smov 0   ;;  %s13232_s18 = smov 0  }
   0x4   :  { %s13234_s19 = smov 0   ;;  %s13236_s20 = smov 0  }
   0x5 LB: > { %s13251_s21 = sadd.s32 4294967295, %s13164_s20   ;;  %s9206_s22 = sadd.s32 4294967294, %s13164_s20   ;;  %s13164_s20 = sphi %s13236_s20, %s19041_s20   ;;  %s13160_s19 = sphi %s13234_s19, %s19040_s19   ;;  %s13156_s18 = sphi %s13232_s18, %s19039_s18   ;;  %s13152_s17 = sphi %s13230_s17, %s19038_s17  }
   0x6   : > { %s13255_s23 = sadd.s32 1, %s13164_s20   ;;  %s267_s24 = sadd.s32 1, %s13160_s19 }
   0x7   : > { %s264_s25 = ssub.s32 %s13164_s20, %s13255_s23  ;;  %p277_p0 = scmp.ne.s32.totalorder %s13160_s19, %s13156_s18 }
   0x8   : > { %p265_p1 = scmp.eq.s32.totalorder %s264_s25, 0  ;;  %p278_p2 = scmp.eq.s32.totalorder %s13251_s21, 1 }
   0x9   : > { %p283_p3 = scmp.ne.s32.totalorder %s13156_s18, %s13152_s17  ;;  %p284_p4 = scmp.eq.s32.totalorder %s9206_s22, 1 }
   0xa   : > { %s13266_s26 = scalar_select %p265_p1, %s13160_s19, %s267_s24  }
   0xb   : > { %p13268_p5 = por %p278_p2, %p277_p0  ;;  %p13272_p6 = por %p284_p4, %p283_p3 }
   0xc   : > { %p9209_p7 = scmp.ge.s32.totalorder %s13164_s20, 1  ;;  %p342_p8 = scmp.lt.s32.totalorder %s13164_s20, 3 }
   0xe   : > { %p343_p9 = pnand %p9209_p7, %p342_p8 }
  0x10   : > { %346 = sbr.rel (%p343_p9) target bundleno = 2583 (0xa17), region = 64 }
  0x15   : > { %v13281_v0 = vld [vmem:[%s18944_s1 + $0xe4] ss:$16 sps:$4 sm:$0xff]   ;;  %v13286_v1 = vld [vmem:[%s18944_s1 + $0xec] ss:$16 sps:$4 sm:$0xff]   ;;  %v13292_v2 = vld [vmem:[%s18944_s1 + $0xe0] ss:$16 sps:$4 sm:$0xff]  }
  0x16   : > { %665 = vmatprep.subr.bf16.mxu0 %v13281_v0  ;;  %v13297_v3 = vld [vmem:[%s18944_s1 + $0xe8] ss:$16 sps:$4 sm:$0xff]   ;;  %718 = vmatprep.subr.bf16.mxu1 %v13286_v1  ;;  %v13303_v4 = vld [vmem:[%s18944_s1 + $0xc4] ss:$16 sps:$4 sm:$0xff]   ;;  %v13310_v5 = vld [vmem:[%s18944_s1 + $0xcc] ss:$16 sps:$4 sm:$0xff]  }
  0x17   : > { %666 = vmatpush1.bf16.msra.mxu0 %v13292_v2  ;;  %719 = vmatpush1.bf16.msra.mxu1 %v13297_v3  ;;  %v13315_v6 = vld [vmem:[%s18944_s1 + $0xc0] ss:$16 sps:$4 sm:$0xff]   ;;  %v13321_v7 = vld [vmem:[%s18944_s1 + $0xc8] ss:$16 sps:$4 sm:$0xff]   ;;  %v13327_v8 = vld [vmem:[%s18944_s1 + $0xa4] ss:$16 sps:$4 sm:$0xff]  }
  0x18   : > { %667 = vmatprep.subr.bf16.mxu0 %v13303_v4  ;;  %720 = vmatprep.subr.bf16.mxu1 %v13310_v5  ;;  %v13332_v9 = vld [vmem:[%s18944_s1 + $0xac] ss:$16 sps:$4 sm:$0xff]   ;;  %v13337_v10 = vld [vmem:[%s18944_s1 + $0xa0] ss:$16 sps:$4 sm:$0xff]   ;;  %v13342_v11 = vld [vmem:[%s18944_s1 + $0xa8] ss:$16 sps:$4 sm:$0xff]  }
  0x19   : > { %v13349_v12 = vld [vmem:[%s18944_s1 + $0x84] ss:$16 sps:$4 sm:$0xff]   ;;  %v13356_v13 = vld [vmem:[%s18944_s1 + $0x8c] ss:$16 sps:$4 sm:$0xff]   ;;  %s9211_s24 = sshll.u32 %s13251_s21, 1  ;;  %s18979_s0 = sld [smem:[#allocation26_spill]] }
  0x1a   : > { %v13362_v14 = vld [vmem:[%s18944_s1 + $0x80] ss:$16 sps:$4 sm:$0xff]   ;;  %v13369_v15 = vld [vmem:[%s18944_s1 + $0x88] ss:$16 sps:$4 sm:$0xff]   ;;  %v13374_v16 = vld [vmem:[%s18944_s1 + $0x64] ss:$16 sps:$4 sm:$0xff]  }
  0x1b   : > { %668 = vmatpush1.bf16.msra.mxu0 %v13315_v6  ;;  %721 = vmatpush1.bf16.msra.mxu1 %v13321_v7  ;;  %v13381_v17 = vld [vmem:[%s18944_s1 + $0x6c] ss:$16 sps:$4 sm:$0xff]   ;;  %p384_p10 = scmp.lt.s32.totalorder %s9211_s24, 3  ;;  %v13386_v18 = vld [vmem:[%s18944_s1 + $0x60] ss:$16 sps:$4 sm:$0xff]   ;;  %vm658_vm0 = vcmask 261120  }
  0x1c   : > { %669 = vmatprep.subr.bf16.mxu0 %v13327_v8  ;;  %722 = vmatprep.subr.bf16.mxu1 %v13332_v9  ;;  %v13391_v19 = vld [vmem:[%s18944_s1 + $0x68] ss:$16 sps:$4 sm:$0xff]   ;;  %v13398_v20 = vld [vmem:[%s18944_s1 + $0x44] ss:$16 sps:$4 sm:$0xff]   ;;  %v13405_v21 = vld [vmem:[%s18944_s1 + $0x4c] ss:$16 sps:$4 sm:$0xff]  }
  0x1d   : > { %s19043_s24 = smov (!%p384_p10, %s9211_s24), 3  ;;  %v13410_v22 = vld [vmem:[%s18944_s1 + $0x40] ss:$16 sps:$4 sm:$0xff]   ;;  %v13417_v23 = vld [vmem:[%s18944_s1 + $0x48] ss:$16 sps:$4 sm:$0xff]   ;;  %vm1560_vm1 = vcmask 1043456  }
  0x1e   : > { %v13422_v24 = vld [vmem:[%s18944_s1 + $0x24] ss:$16 sps:$4 sm:$0xff]   ;;  %v13429_v25 = vld [vmem:[%s18944_s1 + $0x2c] ss:$16 sps:$4 sm:$0xff]   ;;  %s10963_s15 = sshll.u32 %s19043_s24, 5  ;;  %vm1563_vm3 = vcmask 1047556  }
  0x1f   : > { %670 = vmatpush1.bf16.msra.mxu0 %v13337_v10  ;;  %723 = vmatpush1.bf16.msra.mxu1 %v13342_v11  ;;  %v13434_v26 = vld [vmem:[%s18944_s1 + $0x20] ss:$16 sps:$4 sm:$0xff]   ;;  %v13439_v27 = vld [vmem:[%s18944_s1 + $0x28] ss:$16 sps:$4 sm:$0xff]   ;;  %v13446_v28 = vld [vmem:[%s18944_s1 + $0x4] ss:$16 sps:$4 sm:$0xff]   ;;  %s13451_s14 = scalar_lea.vmem %s18979_s0, %s10963_s15 }
  0x20   : > { %671 = vmatprep.subr.bf16.mxu0 %v13349_v12  ;;  %724 = vmatprep.subr.bf16.mxu1 %v13356_v13  ;;  %v13458_v29 = vld [vmem:[%s18944_s1 + $0xc] ss:$16 sps:$4 sm:$0xff]   ;;  %v13463_v30 = vld [vmem:[%s18944_s1] ss:$16 sps:$4 sm:$0xff]   ;;  %v13468_v31 = vld [vmem:[%s18944_s1 + $0x8] ss:$16 sps:$4 sm:$0xff]  }
  0x21   : > { %v13471_v32 = vld [vmem:[%s13451_s14 + $0x4] ss:$8 sps:$4 sm:$0xff]   ;;  %v13494_v35 = vld [vmem:[%s18944_s1 + $0x120] ss:$16 sps:$4 sm:$0xff]   ;;  %v13499_v36 = vld [vmem:[%s18944_s1 + $0x128] ss:$16 sps:$4 sm:$0xff]  }
  0x22   : > { %v13478_v33 = vld [vmem:[%s18944_s1 + $0x124] ss:$16 sps:$4 sm:$0xff]   ;;  %v13485_v34 = vld [vmem:[%s18944_s1 + $0x12c] ss:$16 sps:$4 sm:$0xff]   ;;  %9262 = vmatprep.mubr.msk.bf16.mxu0 %vm658_vm0, %v13471_v32  ;;  %9264 = vmatprep.mubr.msk.bf16.mxu1 %vm658_vm0, %v13471_v32  ;;  %v13518_v39 = vld [vmem:[%s18944_s1 + $0x100] ss:$16 sps:$4 sm:$0xff]  }
  0x23   : > { %672 = vmatpush1.bf16.msra.mxu0 %v13362_v14  ;;  %725 = vmatpush1.bf16.msra.mxu1 %v13369_v15  ;;  %v13506_v37 = vld [vmem:[%s18944_s1 + $0x104] ss:$16 sps:$4 sm:$0xff]   ;;  %v13513_v38 = vld [vmem:[%s18944_s1 + $0x10c] ss:$16 sps:$4 sm:$0xff]   ;;  %v13523_v40 = vld [vmem:[%s18944_s1 + $0x108] ss:$16 sps:$4 sm:$0xff]  }
  0x24   : > { %673 = vmatprep.subr.bf16.mxu0 %v13374_v16  ;;  %726 = vmatprep.subr.bf16.mxu1 %v13381_v17  ;;  %v13530_v41 = vld [vmem:[%s18944_s1 + $0x224] ss:$16 sps:$4 sm:$0xff]   ;;  %v13537_v42 = vld [vmem:[%s18944_s1 + $0x22c] ss:$16 sps:$4 sm:$0xff]   ;;  %v13540_v43 = vld [vmem:[%s13451_s14] ss:$8 sps:$4 sm:$0xff]  }
  0x25   : > { %v13545_v44 = vld [vmem:[%s18944_s1 + $0x220] ss:$16 sps:$4 sm:$0xff]   ;;  %v13550_v45 = vld [vmem:[%s18944_s1 + $0x228] ss:$16 sps:$4 sm:$0xff]   ;;  %v13557_v46 = vld [vmem:[%s18944_s1 + $0x204] ss:$16 sps:$4 sm:$0xff]  }
  0x26   : > { %v13564_v47 = vld [vmem:[%s18944_s1 + $0x20c] ss:$16 sps:$4 sm:$0xff]   ;;  %v13571_v48 = vld [vmem:[%s18944_s1 + $0x200] ss:$16 sps:$4 sm:$0xff]   ;;  %v13576_v49 = vld [vmem:[%s18944_s1 + $0x208] ss:$16 sps:$4 sm:$0xff]  }
  0x27   : > { %674 = vmatpush1.bf16.msra.mxu0 %v13386_v18  ;;  %727 = vmatpush1.bf16.msra.mxu1 %v13391_v19  ;;  %v13583_v50 = vld [vmem:[%s18944_s1 + $0x1e4] ss:$16 sps:$4 sm:$0xff]   ;;  %v13590_v51 = vld [vmem:[%s18944_s1 + $0x1ec] ss:$16 sps:$4 sm:$0xff]   ;;  %v13595_v52 = vld [vmem:[%s18944_s1 + $0x1e0] ss:$16 sps:$4 sm:$0xff]  }
  0x28   : > { %675 = vmatprep.subr.bf16.mxu0 %v13398_v20  ;;  %728 = vmatprep.subr.bf16.mxu1 %v13405_v21  ;;  %v13600_v53 = vld [vmem:[%s18944_s1 + $0x1e8] ss:$16 sps:$4 sm:$0xff]   ;;  %v13603_v54 = vld [vmem:[%s13451_s14 + $0x24] ss:$8 sps:$4 sm:$0xff]   ;;  %v13629_v58 = vld [vmem:[%s18944_s1 + $0x1c0] ss:$16 sps:$4 sm:$0xff]  }
  0x29   : > { %18980 = vst [vmem:[#allocation7_spill] sm:$0xff] %v13600_v53  ;;  %v13606_v55 = vld [vmem:[%s13451_s14 + $0x20] ss:$8 sps:$4 sm:$0xff]   ;;  %v13613_v56 = vld [vmem:[%s18944_s1 + $0x1c4] ss:$16 sps:$4 sm:$0xff]   ;;  %18983 = vst [vmem:[#allocation10_spill] sm:$0xff] %v13629_v58 }
  0x2a   : > { %18981 = vst [vmem:[#allocation8_spill] sm:$0xff] %v13613_v56  ;;  %v13620_v57 = vld [vmem:[%s18944_s1 + $0x1cc] ss:$16 sps:$4 sm:$0xff]   ;;  %v13634_v59 = vld [vmem:[%s18944_s1 + $0x1c8] ss:$16 sps:$4 sm:$0xff]   ;;  %vm1591_vm5 = vcmask 1040384  }
  0x2b   : > { %676 = vmatpush1.bf16.msra.mxu0 %v13410_v22  ;;  %729 = vmatpush1.bf16.msra.mxu1 %v13417_v23  ;;  %18982 = vst [vmem:[#allocation9_spill] sm:$0xff] %v13620_v57  ;;  %18984 = vst [vmem:[#allocation11_spill] sm:$0xff] %v13634_v59  ;;  %v13643_v60 = vld [vmem:[%s18944_s1 + $0x1a4] ss:$16 sps:$4 sm:$0xff]   ;;  %v13650_v61 = vld [vmem:[%s18944_s1 + $0x1ac] ss:$16 sps:$4 sm:$0xff]  }
  0x2c   : > { %677 = vmatprep.subr.bf16.mxu0 %v13422_v24  ;;  %730 = vmatprep.subr.bf16.mxu1 %v13429_v25  ;;  %18985 = vst [vmem:[#allocation12_spill] sm:$0xff] %v13643_v60  ;;  %18986 = vst [vmem:[#allocation13_spill] sm:$0xff] %v13650_v61  ;;  %v13659_v62 = vld [vmem:[%s18944_s1 + $0x1a0] ss:$16 sps:$4 sm:$0xff]   ;;  %v13664_v63 = vld [vmem:[%s18944_s1 + $0x1a8] ss:$16 sps:$4 sm:$0xff]  }
  0x2d   : > { %18987 = vst [vmem:[#allocation14_spill] sm:$0xff] %v13659_v62  ;;  %18988 = vst [vmem:[#allocation15_spill] sm:$0xff] %v13664_v63  ;;  %vm1561_vm2 = vsmask.f32 7938  ;;  %vm1564_vm4 = vsmask.f32 7954 }
  0x2e   : > { %vm1592_vm6 = vsmask.f32 256  ;;  %vm1594_vm7 = vcmask 1044484   ;;  %vm1595_vm8 = vsmask.f32 4352  ;;  %vm14223_vm9 = vmand %vm1560_vm1, %vm1561_vm2  ;;  %vm1774_vm15 = vcmask 1042432  }
  0x2f   : > { %678 = vmatpush1.bf16.msra.mxu0 %v13434_v26  ;;  %731 = vmatpush1.bf16.msra.mxu1 %v13439_v27  ;;  %vm1565_vm10 = vmand %vm1563_vm3, %vm1564_vm4  ;;  %vm1643_vm3 = vsmask.f32 3328  ;;  %vm1644_vm4 = vsmask.f32 7440  ;;  %s380_s25 = sand.u32 1, %s13156_s18   ;;  %s10960_s12 = sshll.u32 %s13251_s21, 5 }
  0x30   : > { %679 = vmatprep.subr.bf16.mxu0 %v13446_v28  ;;  %732 = vmatprep.subr.bf16.mxu1 %v13458_v29  ;;  %vm14235_vm11 = vmor %vm1565_vm10, %vm14223_vm9  ;;  %vm9084_vm9 = vcmask 687104   ;;  %s9210_s29 = sshll.u32 %s380_s25, 1  ;;  %s18902_s16 = scalar_lea.hbm %s18954_s11, %s10960_s12 }
  0x31   : > { %vm14245_vm12 = vmand %vm1591_vm5, %vm1592_vm6  ;;  %vm7670_vm6 = vcmask 1041409   ;;  %s382_s15 = scalar_lea.vmem [#allocation4], %s9210_s29  ;;  %s9134_s22 = scalar_lea.sflag [#allocation5], %s380_s25 }
  0x32   : > { %vm14253_vm13 = vmand %vm1594_vm7, %vm1595_vm8  ;;  %vm9088_vm7 = vcmask 1041408   ;;  %vm8983_vm8 = vcmask 982016   ;;  %s9147_s24 = sshll.u32 %s382_s15, 4  ;;  %s13169_s21 = smov [#allocation4]   ;;  %s18904_s24 = int_to_ptr.vmem [resolvable:$true] %s9147_s24 }
  0x33   : > { %680 = vmatpush1.bf16.msra.mxu0 %v13463_v30  ;;  %733 = vmatpush1.bf16.msra.mxu1 %v13468_v31  ;;  %vm14271_vm14 = vmor %vm14253_vm13, %vm14245_vm12  ;;  %s13104_s30 = scalar_lea.vmem %s18904_s24, 32  ;;  %s13108_s29 = sshll.u32 %s13169_s21, 4  ;;  %s13109_s29 = int_to_ptr.vmem [resolvable:$false] %s13108_s29 }
  0x34   : > { %693 = vmatprep.subr.bf16.mxu0 %v13478_v33  ;;  %746 = vmatprep.subr.bf16.mxu1 %v13485_v34  ;;  %vm14375_vm5 = vmor %vm1643_vm3, %vm1644_vm4  ;;  %p13105_p11 = scmp.ne.s32.totalorder %s18904_s24, %s13104_s30  ;;  %s13110_s0 = scalar_lea.vmem %s13109_s29, 64 }
  0x35   : > { %p13111_p0 = scmp.lt.s32.totalorder %s18904_s24, %s13109_s29  ;;  %p13112_p1 = scmp.lt.s32.totalorder %s13110_s0, %s13104_s30 }
  0x36   : > { %p13106_p12 = pnand %p13105_p11, %p13268_p5 }
  0x37   : > { %694 = vmatpush2.bf16.msra.mxu0 %v13494_v35  ;;  %747 = vmatpush2.bf16.msra.mxu1 %v13499_v36  ;;  %p13113_p2 = por %p13112_p1, %p13111_p0 }
  0x38   : > { %695 = vmatprep.subr.bf16.mxu0 %v13506_v37  ;;  %748 = vmatprep.subr.bf16.mxu1 %v13513_v38  ;;  %p13107_p13 = pneg %p13106_p12 }
  0x3a   : > { %p13114_p3 = pnand %p13113_p2, %p13107_p13 }
  0x3b   : > { %696 = vmatpush2.bf16.msra.mxu0 %v13518_v39  ;;  %749 = vmatpush2.bf16.msra.mxu1 %v13523_v40 }
  0x3c   : > { %1012 = vmatprep.subr.bf16.mxu0 %v13530_v41  ;;  %1065 = vmatprep.subr.bf16.mxu1 %v13537_v42 }
  0x3e   : > { %698 = vmatmul.mubr.bf16.vlgmr.msra.gmra.mxu0 %v13540_v43  ;;  %751 = vmatmul.mubr.bf16.vlgmr.msra.gmra.mxu1 %v13540_v43 }
  0x3f   : > { %1013 = vmatpush1.bf16.msra.mxu0 %v13545_v44  ;;  %1066 = vmatpush1.bf16.msra.mxu1 %v13550_v45 }
  0x40   : > { %1014 = vmatprep.subr.bf16.mxu0 %v13557_v46  ;;  %1067 = vmatprep.subr.bf16.mxu1 %v13564_v47 }
  0x41   : > { %9263 = vmatprep.mubr.msk.bf16.mxu0 %vm658_vm0, %v13603_v54  ;;  %9265 = vmatprep.mubr.msk.bf16.mxu1 %vm658_vm0, %v13603_v54 }
  0x43   : > { %1015 = vmatpush1.bf16.msra.mxu0 %v13571_v48  ;;  %1068 = vmatpush1.bf16.msra.mxu1 %v13576_v49 }
  0x44   : > { %1016 = vmatprep.subr.bf16.mxu0 %v13583_v50  ;;  %1069 = vmatprep.subr.bf16.mxu1 %v13590_v51 }
  0x46   : > { %708 = vmatmul.mubr.bf16.gmra.mxu0 %v13606_v55  ;;  %761 = vmatmul.mubr.bf16.gmra.mxu1 %v13606_v55 }
  0x47   : > { %1017 = vmatpush1.bf16.msra.mxu0 %v13595_v52  ;;  %1070 = vmatpush1.bf16.msra.mxu1 %v13600_v53  ;;  %v13712_v53 = vld [vmem:[%s18944_s1 + $0x168] ss:$16 sps:$4 sm:$0xff]  }
  0x48   : > { %1018 = vmatprep.subr.bf16.mxu0 %v13613_v56  ;;  %1071 = vmatprep.subr.bf16.mxu1 %v13620_v57  ;;  %v13671_v57 = vld [vmem:[%s18944_s1 + $0x184] ss:$16 sps:$4 sm:$0xff]   ;;  %v13707_v56 = vld [vmem:[%s18944_s1 + $0x160] ss:$16 sps:$4 sm:$0xff]   ;;  %18996 = vst [vmem:[#allocation23_spill] sm:$0xff] %v13712_v53 }
  0x49   : > { %9346 = vmatprep.mubr.msk.bf16.mxu0 %vm658_vm0, %v13471_v32  ;;  %9348 = vmatprep.mubr.msk.bf16.mxu1 %vm658_vm0, %v13471_v32  ;;  %18989 = vst [vmem:[#allocation16_spill] sm:$0xff] %v13671_v57  ;;  %v13678_v32 = vld [vmem:[%s18944_s1 + $0x18c] ss:$16 sps:$4 sm:$0xff]   ;;  %18995 = vst [vmem:[#allocation22_spill] sm:$0xff] %v13707_v56 }
  0x4a   : > { %18990 = vst [vmem:[#allocation17_spill] sm:$0xff] %v13678_v32 }
  0x4b   : > { %1019 = vmatpush1.bf16.msra.mxu0 %v13629_v58  ;;  %1072 = vmatpush1.bf16.msra.mxu1 %v13634_v59  ;;  %v13683_v58 = vld [vmem:[%s18944_s1 + $0x180] ss:$16 sps:$4 sm:$0xff]   ;;  %v13688_v59 = vld [vmem:[%s18944_s1 + $0x188] ss:$16 sps:$4 sm:$0xff]  }
  0x4c   : > { %1020 = vmatprep.subr.bf16.mxu0 %v13643_v60  ;;  %1073 = vmatprep.subr.bf16.mxu1 %v13650_v61  ;;  %18991 = vst [vmem:[#allocation18_spill] sm:$0xff] %v13683_v58  ;;  %18992 = vst [vmem:[#allocation19_spill] sm:$0xff] %v13688_v59  ;;  %v13693_v60 = vld [vmem:[%s18944_s1 + $0x164] ss:$16 sps:$4 sm:$0xff]   ;;  %v13698_v61 = vld [vmem:[%s18944_s1 + $0x16c] ss:$16 sps:$4 sm:$0xff]  }
  0x4d   : > { %18993 = vst [vmem:[#allocation20_spill] sm:$0xff] %v13693_v60  ;;  %18994 = vst [vmem:[#allocation21_spill] sm:$0xff] %v13698_v61 }
  0x4f   : > { %1021 = vmatpush1.bf16.msra.mxu0 %v13659_v62  ;;  %1074 = vmatpush1.bf16.msra.mxu1 %v13664_v63  ;;  %v13717_v62 = vld [vmem:[%s18944_s1 + $0x144] ss:$16 sps:$4 sm:$0xff]   ;;  %v13736_v63 = vld [vmem:[%s18944_s1 + $0x148] ss:$16 sps:$4 sm:$0xff]  }
  0x50   : > { %1022 = vmatprep.subr.bf16.mxu0 %v13671_v57  ;;  %1075 = vmatprep.subr.bf16.mxu1 %v13678_v32  ;;  %18997 = vst [vmem:[#allocation24_spill] sm:$0xff] %v13717_v62  ;;  %v13722_v57 = vld [vmem:[%s18944_s1 + $0x14c] ss:$16 sps:$4 sm:$0xff]   ;;  %v13731_v32 = vld [vmem:[%s18944_s1 + $0x140] ss:$16 sps:$4 sm:$0xff]  }
  0x51   : > { %18998 = vst [vmem:[#allocation25_spill] sm:$0xff] %v13722_v57 }
  0x53   : > { %1023 = vmatpush1.bf16.msra.mxu0 %v13683_v58  ;;  %1076 = vmatpush1.bf16.msra.mxu1 %v13688_v59  ;;  %v13741_v58 = vld [vmem:[%s18944_s1 + $0x264] ss:$16 sps:$4 sm:$0xff]   ;;  %v13760_v59 = vld [vmem:[%s18944_s1 + $0x268] ss:$16 sps:$4 sm:$0xff]  }
  0x54   : > { %1024 = vmatprep.subr.bf16.mxu0 %v13693_v60  ;;  %1077 = vmatprep.subr.bf16.mxu1 %v13698_v61  ;;  %v13746_v60 = vld [vmem:[%s18944_s1 + $0x26c] ss:$16 sps:$4 sm:$0xff]   ;;  %v13755_v61 = vld [vmem:[%s18944_s1 + $0x260] ss:$16 sps:$4 sm:$0xff]  }
  0x57   : > { %1025 = vmatpush1.bf16.msra.mxu0 %v13707_v56  ;;  %1078 = vmatpush1.bf16.msra.mxu1 %v13712_v53  ;;  %v13765_v56 = vld [vmem:[%s18944_s1 + $0x244] ss:$16 sps:$4 sm:$0xff]   ;;  %v13784_v53 = vld [vmem:[%s18944_s1 + $0x248] ss:$16 sps:$4 sm:$0xff]  }
  0x58   : > { %1026 = vmatprep.subr.bf16.mxu0 %v13717_v62  ;;  %1079 = vmatprep.subr.bf16.mxu1 %v13722_v57  ;;  %v13770_v62 = vld [vmem:[%s18944_s1 + $0x24c] ss:$16 sps:$4 sm:$0xff]   ;;  %v13779_v57 = vld [vmem:[%s18944_s1 + $0x240] ss:$16 sps:$4 sm:$0xff]  }
  0x5b   : > { %1027 = vmatpush1.bf16.msra.mxu0 %v13731_v32  ;;  %1080 = vmatpush1.bf16.msra.mxu1 %v13736_v63 }
  0x5c   : > { %1040 = vmatprep.subr.bf16.mxu0 %v13741_v58  ;;  %1093 = vmatprep.subr.bf16.mxu1 %v13746_v60 }
  0x5f   : > { %1041 = vmatpush2.bf16.msra.mxu0 %v13755_v61  ;;  %1094 = vmatpush2.bf16.msra.mxu1 %v13760_v59 }
  0x60   : > { %1042 = vmatprep.subr.bf16.mxu0 %v13765_v56  ;;  %1095 = vmatprep.subr.bf16.mxu1 %v13770_v62 }
  0x63   : > { %1043 = vmatpush2.bf16.msra.mxu0 %v13779_v57  ;;  %1096 = vmatpush2.bf16.msra.mxu1 %v13784_v53 }
  0x64   : > { %1158 = vmatprep.subr.bf16.mxu0 %v13281_v0  ;;  %1211 = vmatprep.subr.bf16.mxu1 %v13286_v1  ;;  %v11350_v0 = vld [vmem:[%s13451_s14 + $0x14] ss:$8 sps:$4 sm:$0xff]   ;;  %v11348_v1 = vld [vmem:[%s13451_s14 + $0x10] ss:$8 sps:$4 sm:$0xff]  }
  0x66   : > { %1045 = vmatmul.mubr.bf16.vlgmr.msra.gmra.mxu0 %v13540_v43  ;;  %1098 = vmatmul.mubr.bf16.vlgmr.msra.gmra.mxu1 %v13540_v43  ;;  %v11381_v43 = vld [vmem:[%s18946_s3 + $0x330] ss:$8 sps:$4 sm:$0xff]  }
  0x67   : > { %1159 = vmatpush1.bf16.msra.mxu0 %v13292_v2  ;;  %1212 = vmatpush1.bf16.msra.mxu1 %v13297_v3  ;;  %v11351_v2 = vld [vmem:[%s13451_s14 + $0x34] ss:$8 sps:$4 sm:$0xff]   ;;  %v11353_v3 = vld [vmem:[%s13451_s14 + $0x30] ss:$8 sps:$4 sm:$0xff]  }
  0x68   : > { %1160 = vmatprep.subr.bf16.mxu0 %v13303_v4  ;;  %1213 = vmatprep.subr.bf16.mxu1 %v13310_v5  ;;  %v18999_v4 = vld [vmem:[#allocation7_spill] sm:$0xff]  ;;  %v19000_v5 = vld [vmem:[#allocation8_spill] sm:$0xff] }
  0x69   : > { %9347 = vmatprep.mubr.msk.bf16.mxu0 %vm658_vm0, %v13603_v54  ;;  %9349 = vmatprep.mubr.msk.bf16.mxu1 %vm658_vm0, %v13603_v54  ;;  %v11399_v54 = vld [vmem:[%s18946_s3 + $0x300] ss:$8 sps:$4 sm:$0xff]  }
  0x6b   : > { %1161 = vmatpush1.bf16.msra.mxu0 %v13315_v6  ;;  %1214 = vmatpush1.bf16.msra.mxu1 %v13321_v7  ;;  %v19001_v6 = vld [vmem:[#allocation9_spill] sm:$0xff]  ;;  %v19002_v7 = vld [vmem:[#allocation10_spill] sm:$0xff] }
  0x6c   : > { %1162 = vmatprep.subr.bf16.mxu0 %v13327_v8  ;;  %1215 = vmatprep.subr.bf16.mxu1 %v13332_v9  ;;  %v19003_v8 = vld [vmem:[#allocation11_spill] sm:$0xff]  ;;  %v19004_v9 = vld [vmem:[#allocation12_spill] sm:$0xff] }
  0x6e   : > { %1055 = vmatmul.mubr.bf16.gmra.mxu0 %v13606_v55  ;;  %1108 = vmatmul.mubr.bf16.gmra.mxu1 %v13606_v55  ;;  %v11401_v55 = vld [vmem:[%s18946_s3 + $0x304] ss:$8 sps:$4 sm:$0xff]  }
  0x6f   : > { %1163 = vmatpush1.bf16.msra.mxu0 %v13337_v10  ;;  %1216 = vmatpush1.bf16.msra.mxu1 %v13342_v11  ;;  %v19005_v10 = vld [vmem:[#allocation13_spill] sm:$0xff]  ;;  %v19006_v11 = vld [vmem:[#allocation14_spill] sm:$0xff] }
  0x70   : > { %1164 = vmatprep.subr.bf16.mxu0 %v13349_v12  ;;  %1217 = vmatprep.subr.bf16.mxu1 %v13356_v13  ;;  %v19007_v12 = vld [vmem:[#allocation15_spill] sm:$0xff]  ;;  %v19008_v13 = vld [vmem:[#allocation16_spill] sm:$0xff] }
  0x71   : > { %9354 = vmatprep.mubr.msk.bf16.mxu0 %vm658_vm0, %v11350_v0  ;;  %9356 = vmatprep.mubr.msk.bf16.mxu1 %vm658_vm0, %v11350_v0 }
  0x73   : > { %1165 = vmatpush1.bf16.msra.mxu0 %v13362_v14  ;;  %1218 = vmatpush1.bf16.msra.mxu1 %v13369_v15  ;;  %v19009_v14 = vld [vmem:[#allocation17_spill] sm:$0xff]  ;;  %v19010_v15 = vld [vmem:[#allocation18_spill] sm:$0xff] }
  0x74   : > { %1166 = vmatprep.subr.bf16.mxu0 %v13374_v16  ;;  %1219 = vmatprep.subr.bf16.mxu1 %v13381_v17  ;;  %v19011_v16 = vld [vmem:[#allocation19_spill] sm:$0xff]  ;;  %v19012_v17 = vld [vmem:[#allocation20_spill] sm:$0xff] }
  0x77   : > { %1167 = vmatpush1.bf16.msra.mxu0 %v13386_v18  ;;  %1220 = vmatpush1.bf16.msra.mxu1 %v13391_v19  ;;  %v19013_v18 = vld [vmem:[#allocation21_spill] sm:$0xff]  ;;  %v19014_v19 = vld [vmem:[#allocation22_spill] sm:$0xff] }
  0x78   : > { %1168 = vmatprep.subr.bf16.mxu0 %v13398_v20  ;;  %1221 = vmatprep.subr.bf16.mxu1 %v13405_v21  ;;  %v19015_v20 = vld [vmem:[#allocation23_spill] sm:$0xff]  ;;  %v19016_v21 = vld [vmem:[#allocation24_spill] sm:$0xff] }
  0x7b   : > { %1169 = vmatpush1.bf16.msra.mxu0 %v13410_v22  ;;  %1222 = vmatpush1.bf16.msra.mxu1 %v13417_v23  ;;  %v19017_v22 = vld [vmem:[#allocation25_spill] sm:$0xff]  ;;  %v11354_v23 = vld [vmem:[%s18946_s3 + $0x270] ss:$8 sps:$4 sm:$0xff]  }
  0x7c   : > { %1170 = vmatprep.subr.bf16.mxu0 %v13422_v24  ;;  %1223 = vmatprep.subr.bf16.mxu1 %v13429_v25  ;;  %v11356_v24 = vld [vmem:[%s18946_s3 + $0x274] ss:$8 sps:$4 sm:$0xff]   ;;  %v11357_v25 = vld [vmem:[%s18946_s3 + $0x370] ss:$8 sps:$4 sm:$0xff]  }
  0x7f   : > { %1171 = vmatpush1.bf16.msra.mxu0 %v13434_v26  ;;  %1224 = vmatpush1.bf16.msra.mxu1 %v13439_v27  ;;  %v11359_v26 = vld [vmem:[%s18946_s3 + $0x374] ss:$8 sps:$4 sm:$0xff]   ;;  %v11362_v27 = vld [vmem:[%s18946_s3 + $0x264] ss:$8 sps:$4 sm:$0xff]  }
  0x80   : > { %1172 = vmatprep.subr.bf16.mxu0 %v13446_v28  ;;  %1225 = vmatprep.subr.bf16.mxu1 %v13458_v29  ;;  %v11365_v28 = vld [vmem:[%s18946_s3 + $0x364] ss:$8 sps:$4 sm:$0xff]   ;;  %v11360_v29 = vld [vmem:[%s18946_s3 + $0x260] ss:$8 sps:$4 sm:$0xff]  }
  0x83   : > { %1173 = vmatpush1.bf16.msra.mxu0 %v13463_v30  ;;  %1226 = vmatpush1.bf16.msra.mxu1 %v13468_v31  ;;  %v11363_v30 = vld [vmem:[%s18946_s3 + $0x360] ss:$8 sps:$4 sm:$0xff]   ;;  %v11368_v31 = vld [vmem:[%s18946_s3 + $0x254] ss:$8 sps:$4 sm:$0xff]  }
  0x84   : > { %1186 = vmatprep.subr.bf16.mxu0 %v13478_v33  ;;  %1239 = vmatprep.subr.bf16.mxu1 %v13485_v34  ;;  %v11366_v33 = vld [vmem:[%s18946_s3 + $0x250] ss:$8 sps:$4 sm:$0xff]   ;;  %v11371_v34 = vld [vmem:[%s18946_s3 + $0x354] ss:$8 sps:$4 sm:$0xff]  }
  0x87   : > { %1187 = vmatpush2.bf16.msra.mxu0 %v13494_v35  ;;  %1240 = vmatpush2.bf16.msra.mxu1 %v13499_v36  ;;  %v11369_v35 = vld [vmem:[%s18946_s3 + $0x350] ss:$8 sps:$4 sm:$0xff]   ;;  %v11374_v36 = vld [vmem:[%s18946_s3 + $0x244] ss:$8 sps:$4 sm:$0xff]  }
  0x88   : > { %1188 = vmatprep.subr.bf16.mxu0 %v13506_v37  ;;  %1241 = vmatprep.subr.bf16.mxu1 %v13513_v38  ;;  %v11377_v37 = vld [vmem:[%s18946_s3 + $0x344] ss:$8 sps:$4 sm:$0xff]   ;;  %v11372_v38 = vld [vmem:[%s18946_s3 + $0x240] ss:$8 sps:$4 sm:$0xff]  }
  0x8b   : > { %1189 = vmatpush2.bf16.msra.mxu0 %v13518_v39  ;;  %1242 = vmatpush2.bf16.msra.mxu1 %v13523_v40  ;;  %v11375_v39 = vld [vmem:[%s18946_s3 + $0x340] ss:$8 sps:$4 sm:$0xff]   ;;  %v11380_v40 = vld [vmem:[%s18946_s3 + $0x234] ss:$8 sps:$4 sm:$0xff]  }
  0x8c   : > { %1280 = vmatprep.subr.bf16.mxu0 %v13530_v41  ;;  %1333 = vmatprep.subr.bf16.mxu1 %v13537_v42  ;;  %v11383_v41 = vld [vmem:[%s18946_s3 + $0x334] ss:$8 sps:$4 sm:$0xff]   ;;  %v11378_v42 = vld [vmem:[%s18946_s3 + $0x230] ss:$8 sps:$4 sm:$0xff]  }
  0x8e   : > { %1191 = vmatmul.mubr.bf16.vlgmr.msra.gmra.mxu0 %v11348_v1  ;;  %1244 = vmatmul.mubr.bf16.vlgmr.msra.gmra.mxu1 %v11348_v1 }
  0x8f   : > { %1281 = vmatpush1.bf16.msra.mxu0 %v13545_v44  ;;  %1334 = vmatpush1.bf16.msra.mxu1 %v13550_v45  ;;  %v11386_v44 = vld [vmem:[%s18946_s3 + $0x224] ss:$8 sps:$4 sm:$0xff]  }
  0x90   : > { %1282 = vmatprep.subr.bf16.mxu0 %v13557_v46  ;;  %1335 = vmatprep.subr.bf16.mxu1 %v13564_v47  ;;  %v11389_v45 = vld [vmem:[%s18946_s3 + $0x324] ss:$8 sps:$4 sm:$0xff]   ;;  %v11384_v46 = vld [vmem:[%s18946_s3 + $0x220] ss:$8 sps:$4 sm:$0xff]  }
  0x91   : > { %9355 = vmatprep.mubr.msk.bf16.mxu0 %vm658_vm0, %v11351_v2  ;;  %9357 = vmatprep.mubr.msk.bf16.mxu1 %vm658_vm0, %v11351_v2  ;;  %v11387_v47 = vld [vmem:[%s18946_s3 + $0x320] ss:$8 sps:$4 sm:$0xff]  }
  0x93   : > { %1283 = vmatpush1.bf16.msra.mxu0 %v13571_v48  ;;  %1336 = vmatpush1.bf16.msra.mxu1 %v13576_v49  ;;  %v11392_v48 = vld [vmem:[%s18946_s3 + $0x214] ss:$8 sps:$4 sm:$0xff]  }
  0x94   : > { %1284 = vmatprep.subr.bf16.mxu0 %v13583_v50  ;;  %1337 = vmatprep.subr.bf16.mxu1 %v13590_v51  ;;  %v11395_v49 = vld [vmem:[%s18946_s3 + $0x314] ss:$8 sps:$4 sm:$0xff]   ;;  %v11390_v50 = vld [vmem:[%s18946_s3 + $0x210] ss:$8 sps:$4 sm:$0xff]  }
  0x95   : > { %v11393_v51 = vld [vmem:[%s18946_s3 + $0x310] ss:$8 sps:$4 sm:$0xff]  }
  0x96   : > { %1201 = vmatmul.mubr.bf16.gmra.mxu0 %v11353_v3  ;;  %1254 = vmatmul.mubr.bf16.gmra.mxu1 %v11353_v3 }
  0x97   : > { %1285 = vmatpush1.bf16.msra.mxu0 %v13595_v52  ;;  %1338 = vmatpush1.bf16.msra.mxu1 %v18999_v4  ;;  %v11398_v52 = vld [vmem:[%s18946_s3 + $0x204] ss:$8 sps:$4 sm:$0xff]  }
  0x98   : > { %1286 = vmatprep.subr.bf16.mxu0 %v19000_v5  ;;  %1339 = vmatprep.subr.bf16.mxu1 %v19001_v6  ;;  %v11422_v4 = vld [vmem:[%s18946_s3 + $0x2c4] ss:$8 sps:$4 sm:$0xff]   ;;  %v11420_v6 = vld [vmem:[%s18946_s3 + $0x2c0] ss:$8 sps:$4 sm:$0xff]  }
  0x99   : > { %9358 = vmatprep.mubr.msk.bf16.mxu0 %vm658_vm0, %v11350_v0  ;;  %9360 = vmatprep.mubr.msk.bf16.mxu1 %vm658_vm0, %v11350_v0  ;;  %v11416_v0 = vld [vmem:[%s18946_s3 + $0x2d4] ss:$8 sps:$4 sm:$0xff]   ;;  %v11425_v5 = vld [vmem:[%s18946_s3 + $0x3c4] ss:$8 sps:$4 sm:$0xff]  }
  0x9b   : > { %1287 = vmatpush1.bf16.msra.mxu0 %v19002_v7  ;;  %1340 = vmatpush1.bf16.msra.mxu1 %v19003_v8  ;;  %v11423_v7 = vld [vmem:[%s18946_s3 + $0x3c0] ss:$8 sps:$4 sm:$0xff]   ;;  %v11428_v8 = vld [vmem:[%s18946_s3 + $0x2b4] ss:$8 sps:$4 sm:$0xff]  }
  0x9c   : > { %1288 = vmatprep.subr.bf16.mxu0 %v19004_v9  ;;  %1341 = vmatprep.subr.bf16.mxu1 %v19005_v10  ;;  %v11431_v9 = vld [vmem:[%s18946_s3 + $0x3b4] ss:$8 sps:$4 sm:$0xff]   ;;  %v11426_v10 = vld [vmem:[%s18946_s3 + $0x2b0] ss:$8 sps:$4 sm:$0xff]  }
  0x9f   : > { %1289 = vmatpush1.bf16.msra.mxu0 %v19006_v11  ;;  %1342 = vmatpush1.bf16.msra.mxu1 %v19007_v12  ;;  %v11429_v11 = vld [vmem:[%s18946_s3 + $0x3b0] ss:$8 sps:$4 sm:$0xff]  }
  0xa0   : > { %1290 = vmatprep.subr.bf16.mxu0 %v19008_v13  ;;  %1343 = vmatprep.subr.bf16.mxu1 %v19009_v14  ;;  %v11434_v14 = vld [vmem:[%s18946_s3 + $0x2a4] ss:$8 sps:$4 sm:$0xff]  }
  0xa3   : > { %1291 = vmatpush1.bf16.msra.mxu0 %v19010_v15  ;;  %1344 = vmatpush1.bf16.msra.mxu1 %v19011_v16  ;;  %v11437_v15 = vld [vmem:[%s18946_s3 + $0x3a4] ss:$8 sps:$4 sm:$0xff]   ;;  %v11432_v16 = vld [vmem:[%s18946_s3 + $0x2a0] ss:$8 sps:$4 sm:$0xff]  }
  0xa4   : > { %1292 = vmatprep.subr.bf16.mxu0 %v19012_v17  ;;  %1345 = vmatprep.subr.bf16.mxu1 %v19013_v18  ;;  %v11435_v17 = vld [vmem:[%s18946_s3 + $0x3a0] ss:$8 sps:$4 sm:$0xff]  }
  0xa7   : > { %1293 = vmatpush1.bf16.msra.mxu0 %v19014_v19  ;;  %1346 = vmatpush1.bf16.msra.mxu1 %v19015_v20  ;;  %v11438_v20 = vld [vmem:[%s18946_s3 + $0x290] ss:$8 sps:$4 sm:$0xff]  }
  0xa8   : > { %1294 = vmatprep.subr.bf16.mxu0 %v19016_v21  ;;  %1347 = vmatprep.subr.bf16.mxu1 %v19017_v22  ;;  %v11440_v21 = vld [vmem:[%s18946_s3 + $0x294] ss:$8 sps:$4 sm:$0xff]   ;;  %v11441_v22 = vld [vmem:[%s18946_s3 + $0x390] ss:$8 sps:$4 sm:$0xff]  }
  0xab   : > { %1295 = vmatpush1.bf16.msra.mxu0 %v13731_v32  ;;  %1348 = vmatpush1.bf16.msra.mxu1 %v13736_v63  ;;  %v13166_v63 = vmov 0   ;;  %v11411_v32 = vld [vmem:[%s18946_s3 + $0x3e0] ss:$8 sps:$4 sm:$0xff]  }
  0xac   : > { %1308 = vmatprep.subr.bf16.mxu0 %v13741_v58  ;;  %1361 = vmatprep.subr.bf16.mxu1 %v13746_v60  ;;  %v11405_v58 = vld [vmem:[%s18946_s3 + $0x3f0] ss:$8 sps:$4 sm:$0xff]   ;;  %v11410_v60 = vld [vmem:[%s18946_s3 + $0x2e4] ss:$8 sps:$4 sm:$0xff]   ;;  %1622 = vst [vmem:[#allocation2 + $0x10] sm:$0x11] %v13166_v63 }
  0xad   : > { %1626 = vst [vmem:[#allocation2 + $0x50] sm:$0x11] %v13166_v63  ;;  %1623 = vst [vmem:[#allocation2 + $0x40] sm:$0x11] %v13166_v63 }
  0xae   : > { %1624 = vst [vmem:[#allocation2 + $0x20] sm:$0x11] %v13166_v63  ;;  %1625 = vst [vmem:[#allocation2 + $0x68] sm:$0x11] %v13166_v63 }
  0xaf   : > { %1309 = vmatpush2.bf16.msra.mxu0 %v13755_v61  ;;  %1362 = vmatpush2.bf16.msra.mxu1 %v13760_v59  ;;  %v11407_v59 = vld [vmem:[%s18946_s3 + $0x3f4] ss:$8 sps:$4 sm:$0xff]   ;;  %v11413_v61 = vld [vmem:[%s18946_s3 + $0x3e4] ss:$8 sps:$4 sm:$0xff]   ;;  %1627 = vst [vmem:[#allocation2 + $0x70] sm:$0x11] %v13166_v63 }
  0xb0   : > { %1310 = vmatprep.subr.bf16.mxu0 %v13765_v56  ;;  %1363 = vmatprep.subr.bf16.mxu1 %v13770_v62  ;;  %v11402_v56 = vld [vmem:[%s18946_s3 + $0x2f0] ss:$8 sps:$4 sm:$0xff]   ;;  %v11408_v62 = vld [vmem:[%s18946_s3 + $0x2e0] ss:$8 sps:$4 sm:$0xff]   ;;  %1628 = vst [vmem:[#allocation2 + $0x78] sm:$0x11] %v13166_v63 }
  0xb1   : > { %1629 = vst [vmem:[#allocation2 + $0x48] sm:$0x11] %v13166_v63 }
  0xb3   : > { %1311 = vmatpush2.bf16.msra.mxu0 %v13779_v57  ;;  %1364 = vmatpush2.bf16.msra.mxu1 %v13784_v53  ;;  %v11396_v53 = vld [vmem:[%s18946_s3 + $0x200] ss:$8 sps:$4 sm:$0xff]   ;;  %v11404_v57 = vld [vmem:[%s18946_s3 + $0x2f4] ss:$8 sps:$4 sm:$0xff]  }
  0xb4   : > { %2290 = vmatprep.subr.bf16.mxu0 %v11356_v24  ;;  %2333 = vmatprep.subr.bf16.mxu1 %v11359_v26  ;;  %v11446_v24 = vld [vmem:[%s18946_s3 + $0x284] ss:$8 sps:$4 sm:$0xff]  }
  0xb6   : > { %1313 = vmatmul.mubr.bf16.vlgmr.msra.gmra.mxu0 %v11348_v1  ;;  %1366 = vmatmul.mubr.bf16.vlgmr.msra.gmra.mxu1 %v11348_v1  ;;  %v11419_v1 = vld [vmem:[%s18946_s3 + $0x3d4] ss:$8 sps:$4 sm:$0xff]  }
  0xb7   : > { %9359 = vmatprep.mubr.msk.bf16.mxu0 %vm658_vm0, %v11351_v2  ;;  %9361 = vmatprep.mubr.msk.bf16.mxu1 %vm658_vm0, %v11351_v2  ;;  %v11414_v2 = vld [vmem:[%s18946_s3 + $0x2d0] ss:$8 sps:$4 sm:$0xff]   ;;  %vm1775_vm0 = vcmask 1046532  }
  0xb8   : > { %2291 = vmatpush1.bf16.msra.mxu0 %v11354_v23  ;;  %2334 = vmatpush1.bf16.msra.mxu1 %v11357_v25  ;;  %v11443_v23 = vld [vmem:[%s18946_s3 + $0x394] ss:$8 sps:$4 sm:$0xff]   ;;  %v11449_v25 = vld [vmem:[%s18946_s3 + $0x384] ss:$8 sps:$4 sm:$0xff]   ;;  %vm14305_vm2 = vmor %vm1774_vm15, %vm1775_vm0 }
  0xb9   : > { %2292 = vmatprep.subr.bf16.mxu0 %v11362_v27  ;;  %2335 = vmatprep.subr.bf16.mxu1 %v11365_v28  ;;  %v11444_v28 = vld [vmem:[%s18946_s3 + $0x280] ss:$8 sps:$4 sm:$0xff]  }
  0xbc   : > { %2293 = vmatpush1.bf16.msra.mxu0 %v11360_v29  ;;  %2336 = vmatpush1.bf16.msra.mxu1 %v11363_v30  ;;  %v11447_v29 = vld [vmem:[%s18946_s3 + $0x380] ss:$8 sps:$4 sm:$0xff]  }
  0xbd   : > { %2294 = vmatprep.subr.bf16.mxu0 %v11368_v31  ;;  %2337 = vmatprep.subr.bf16.mxu1 %v11371_v34 }
  0xbe   : > { %1323 = vmatmul.mubr.bf16.gmra.mxu0 %v11353_v3  ;;  %1376 = vmatmul.mubr.bf16.gmra.mxu1 %v11353_v3  ;;  %v11417_v3 = vld [vmem:[%s18946_s3 + $0x3d0] ss:$8 sps:$4 sm:$0xff]  }
  0xc0   : > { %2295 = vmatpush1.bf16.msra.mxu0 %v11366_v33  ;;  %2338 = vmatpush1.bf16.msra.mxu1 %v11369_v35  ;;  %v11454_v35 = vld [vmem:[%s18946_s3 + $0x74] ss:$8 sps:$4 sm:$0xff]  }
  0xc1   : > { %2296 = vmatprep.subr.bf16.mxu0 %v11374_v36  ;;  %2339 = vmatprep.subr.bf16.mxu1 %v11377_v37  ;;  %v11457_v36 = vld [vmem:[%s18946_s3 + $0x174] ss:$8 sps:$4 sm:$0xff]  }
  0xc4   : > { %2297 = vmatpush1.bf16.msra.mxu0 %v11372_v38  ;;  %2340 = vmatpush1.bf16.msra.mxu1 %v11375_v39 }
  0xc5   : > { %2298 = vmatprep.subr.bf16.mxu0 %v11380_v40  ;;  %2341 = vmatprep.subr.bf16.mxu1 %v11383_v41 }
  0xc8   : > { %2299 = vmatpush1.bf16.msra.mxu0 %v11378_v42  ;;  %2342 = vmatpush1.bf16.msra.mxu1 %v11381_v43 }
  0xc9   : > { %2300 = vmatprep.subr.bf16.mxu0 %v11386_v44  ;;  %2343 = vmatprep.subr.bf16.mxu1 %v11389_v45 }
  0xcc   : > { %2301 = vmatpush1.bf16.msra.mxu0 %v11384_v46  ;;  %2344 = vmatpush1.bf16.msra.mxu1 %v11387_v47 }
  0xcd   : > { %2302 = vmatprep.subr.bf16.mxu0 %v11392_v48  ;;  %2345 = vmatprep.subr.bf16.mxu1 %v11395_v49 }
  0xd0   : > { %2303 = vmatpush1.bf16.msra.mxu0 %v11390_v50  ;;  %2346 = vmatpush1.bf16.msra.mxu1 %v11393_v51 }
  0xd1   : > { %2304 = vmatprep.subr.bf16.mxu0 %v11398_v52  ;;  %2347 = vmatprep.subr.bf16.mxu1 %v11401_v55 }
  0xd4   : > { %2305 = vmatpush1.bf16.msra.mxu0 %v11396_v53  ;;  %2348 = vmatpush1.bf16.msra.mxu1 %v11399_v54 }
  0xd5   : > { %2306 = vmatprep.subr.bf16.mxu0 %v11404_v57  ;;  %2349 = vmatprep.subr.bf16.mxu1 %v11407_v59 }
  0xd8   : > { %2307 = vmatpush2.bf16.msra.mxu0 %v11402_v56  ;;  %2350 = vmatpush2.bf16.msra.mxu1 %v11405_v58 }
  0xd9   : > { %2308 = vmatprep.subr.bf16.mxu0 %v11410_v60  ;;  %2351 = vmatprep.subr.bf16.mxu1 %v11413_v61 }
  0xdc   : > { %2309 = vmatpush2.bf16.msra.mxu0 %v11408_v62  ;;  %2352 = vmatpush2.bf16.msra.mxu1 %v11411_v32 }
  0xdd   : > { %2310 = vmatprep.subr.bf16.mxu0 %v11416_v0  ;;  %2353 = vmatprep.subr.bf16.mxu1 %v11419_v1 }
  0xe0   : > { %2311 = vmatpush2.bf16.msra.mxu0 %v11414_v2  ;;  %2354 = vmatpush2.bf16.msra.mxu1 %v11417_v3  ;;  %v1404_v2 = vlaneseq }
  0xe1   : > { %2312 = vmatprep.subr.bf16.mxu0 %v11422_v4  ;;  %2355 = vmatprep.subr.bf16.mxu1 %v11425_v5 }
  0xe2   : > { %v14150_v5 = vshrl.u32 %v1404_v2, 7 }
  0xe4   : > { %2313 = vmatpush2.bf16.msra.mxu0 %v11420_v6  ;;  %2356 = vmatpush2.bf16.msra.mxu1 %v11423_v7 }
  0xe5   : > { %2314 = vmatprep.subr.bf16.mxu0 %v11428_v8  ;;  %2357 = vmatprep.subr.bf16.mxu1 %v11431_v9  ;;  %v18975_v8 = vsub.s32 0, %v14150_v5  ;;  %v1414_v9 = vsub.s32 2, %v14150_v5 }
  0xe8   : > { %2315 = vmatpush2.bf16.msra.mxu0 %v11426_v10  ;;  %2358 = vmatpush2.bf16.msra.mxu1 %v11429_v11  ;;  %v1402_v10 = vld [vmem:[%s18945_s2] sm:$0xf]  ;;  %v18974_v11 = vsub.s32 1, %v14150_v5 }
  0xe9   : > { %2316 = vmatprep.subr.bf16.mxu0 %v11434_v14  ;;  %2359 = vmatprep.subr.bf16.mxu1 %v11437_v15  ;;  %v1418_v14 = vsub.s32 3, %v14150_v5 }
  0xec   : > { %2317 = vmatpush2.bf16.msra.mxu0 %v11432_v16  ;;  %2360 = vmatpush2.bf16.msra.mxu1 %v11435_v17  ;;  %v14161_v17 = vrot.slane %v1402_v10, %v18975_v8 }
  0xed   : > { %2318 = vmatprep.subr.bf16.mxu0 %v11440_v21  ;;  %2361 = vmatprep.subr.bf16.mxu1 %v11443_v23  ;;  %v14169_v23 = vrot.slane %v1402_v10, %v18974_v11 }
  0xf0   : > { %2319 = vmatpush2.bf16.msra.mxu0 %v11438_v20  ;;  %2362 = vmatpush2.bf16.msra.mxu1 %v11441_v22  ;;  %v14163_v20 = vrot.slane %v1402_v10, %v1414_v9 }
  0xf1   : > { %2320 = vmatprep.subr.bf16.mxu0 %v11446_v24  ;;  %2363 = vmatprep.subr.bf16.mxu1 %v11449_v25  ;;  %v14171_v24 = vrot.slane %v1402_v10, %v1418_v14 }
  0xf4   : > { %2321 = vmatpush2.bf16.msra.mxu0 %v11444_v28  ;;  %2364 = vmatpush2.bf16.msra.mxu1 %v11447_v29 }
  0xf5   : > { %2716 = vmatprep.subr.bf16.mxu0 %v11454_v35  ;;  %2759 = vmatprep.subr.bf16.mxu1 %v11457_v36 }
  0xfe   : > { %v14048_v12 = vpop.f32.mrf.mxu0  ;;  %v14050_v13 = vpop.f32.mrf.mxu1 }
 0x100   : > { %v14064_v18 = vpop.f32.mrf.mxu0  ;;  %v14066_v19 = vpop.f32.mrf.mxu1 }
 0x102   : > { %v14086_v26 = vpop.f32.mrf.mxu0  ;;  %v14088_v27 = vpop.f32.mrf.mxu1 }
 0x104   : > { %v14096_v30 = vpop.f32.mrf.mxu0  ;;  %v14098_v31 = vpop.f32.mrf.mxu1 }
 0x106   : > { %v14100_v33 = vpop.f32.mrf.mxu0  ;;  %v14102_v34 = vpop.f32.mrf.mxu1 }
 0x108   : > { %v14110_v37 = vpop.f32.mrf.mxu0  ;;  %v14112_v38 = vpop.f32.mrf.mxu1 }
 0x10a   : > { %v14114_v39 = vpop.f32.mrf.mxu0  ;;  %v14116_v40 = vpop.f32.mrf.mxu1 }
 0x10c   : > { %v14118_v41 = vpop.f32.mrf.mxu0  ;;  %v14120_v42 = vpop.f32.mrf.mxu1 }
 0x126   : > { %v1046_v43 = vpop.f32.mrf.mxu0  ;;  %v1099_v44 = vpop.f32.mrf.mxu1 }
 0x127   : > { %v1118_v21 = vmax.f32 %v14048_v12, %v1046_v43  ;;  %v1120_v22 = vmax.f32 %v14050_v13, %v1099_v44 }
 0x128   : > { %v14122_v45 = vpop.f32.mrf.mxu0  ;;  %v14124_v46 = vpop.f32.mrf.mxu1 }
 0x129   : > { %v1119_v25 = vmax.f32 %v14064_v18, %v14122_v45  ;;  %v1121_v28 = vmax.f32 %v14066_v19, %v14124_v46 }
 0x12a   : > { %v14126_v47 = vpop.f32.mrf.mxu0  ;;  %v14128_v48 = vpop.f32.mrf.mxu1 }
 0x12b   : > { %v1122_v29 = vmax.f32 %v14086_v26, %v14126_v47  ;;  %v1124_v12 = vmax.f32 %v14088_v27, %v14128_v48 }
 0x12c   : > { %v14130_v49 = vpop.f32.mrf.mxu0  ;;  %v14132_v50 = vpop.f32.mrf.mxu1 }
 0x12d   : > { %v1123_v13 = vmax.f32 %v14096_v30, %v14130_v49  ;;  %v1125_v35 = vmax.f32 %v14098_v31, %v14132_v50 }
 0x12e   : > { %v14134_v51 = vpop.f32.mrf.mxu0  ;;  %v14136_v52 = vpop.f32.mrf.mxu1 }
 0x12f   : > { %v1126_v36 = vmax.f32 %v14100_v33, %v14134_v51  ;;  %v1128_v18 = vmax.f32 %v14102_v34, %v14136_v52 }
 0x130   : > { %v14138_v53 = vpop.f32.mrf.mxu0  ;;  %v14140_v54 = vpop.f32.mrf.mxu1 }
 0x131   : > { %v1127_v26 = vmax.f32 %v14110_v37, %v14138_v53  ;;  %v1129_v27 = vmax.f32 %v14112_v38, %v14140_v54 }
 0x132   : > { %v14142_v55 = vpop.f32.mrf.mxu0  ;;  %v14144_v56 = vpop.f32.mrf.mxu1 }
 0x133   : > { %v1130_v30 = vmax.f32 %v14114_v39, %v14142_v55  ;;  %v1132_v31 = vmax.f32 %v14116_v40, %v14144_v56 }
 0x134   : > { %v14146_v57 = vpop.f32.mrf.mxu0  ;;  %v14148_v58 = vpop.f32.mrf.mxu1 }
 0x135   : > { %v1131_v33 = vmax.f32 %v14118_v41, %v14146_v57  ;;  %v1133_v34 = vmax.f32 %v14120_v42, %v14148_v58 }
 0x14e   : > { %v1192_v59 = vpop.f32.mrf.mxu0  ;;  %v1245_v60 = vpop.f32.mrf.mxu1 }
 0x14f   : > { %v1264_v44 = vmax.f32 %v1118_v21, %v1192_v59  ;;  %v1266_v45 = vmax.f32 %v1120_v22, %v1245_v60 }
 0x150   : > { %v1194_v61 = vpop.f32.mrf.mxu0  ;;  %v1247_v62 = vpop.f32.mrf.mxu1 }
 0x151   : > { %v1265_v38 = vmax.f32 %v1119_v25, %v1194_v61  ;;  %v1267_v47 = vmax.f32 %v1121_v28, %v1247_v62 }
 0x152   : > { %v1196_v63 = vpop.f32.mrf.mxu0  ;;  %v1249_v32 = vpop.f32.mrf.mxu1 }
 0x153   : > { %v1268_v50 = vmax.f32 %v1122_v29, %v1196_v63  ;;  %v1270_v51 = vmax.f32 %v1124_v12, %v1249_v32 }
 0x154   : > { %v1198_v0 = vpop.f32.mrf.mxu0  ;;  %v1251_v1 = vpop.f32.mrf.mxu1 }
 0x155   : > { %v1269_v39 = vmax.f32 %v1123_v13, %v1198_v0  ;;  %v1271_v52 = vmax.f32 %v1125_v35, %v1251_v1 }
 0x156   : > { %v1202_v3 = vpop.f32.mrf.mxu0  ;;  %v1255_v4 = vpop.f32.mrf.mxu1 }
 0x157   : > { %v1272_v56 = vmax.f32 %v1126_v36, %v1202_v3  ;;  %v1274_v57 = vmax.f32 %v1128_v18, %v1255_v4 }
 0x158   : > { %v1204_v6 = vpop.f32.mrf.mxu0  ;;  %v1257_v7 = vpop.f32.mrf.mxu1 }
 0x159   : > { %v14203_v58 = vmax.f32 %v1127_v26, %v1204_v6  ;;  %v14205_v59 = vmax.f32 %v1129_v27, %v1257_v7 }
 0x15a   : > { %v1206_v15 = vpop.f32.mrf.mxu0  ;;  %v1259_v16 = vpop.f32.mrf.mxu1 }
 0x15b   : > { %v14207_v62 = vmax.f32 %v1130_v30, %v1206_v15  ;;  %v14209_v63 = vmax.f32 %v1132_v31, %v1259_v16 }
 0x15c   : > { %v1208_v43 = vpop.f32.mrf.mxu0  ;;  %v1261_v19 = vpop.f32.mrf.mxu1 }
 0x15d   : > { %v14213_v16 = vmax.f32 %v1131_v33, %v1208_v43  ;;  %v14215_v21 = vmax.f32 %v1133_v34, %v1261_v19 }
 0x176   : > { %v1314_v37 = vpop.f32.mrf.mxu0  ;;  %v1367_v46 = vpop.f32.mrf.mxu1 }
 0x177   : > { %v1386_v48 = vmax.f32 %v1264_v44, %v1314_v37  ;;  %v1388_v49 = vmax.f32 %v1266_v45, %v1367_v46 }
 0x178   : > { %v1316_v53 = vpop.f32.mrf.mxu0  ;;  %v1369_v40 = vpop.f32.mrf.mxu1 }
 0x179   : > { %v1424_v54 = vadd.f32 %v14161_v17, %v1386_v48  ;;  %v1426_v41 = vadd.f32 %v14163_v20, %v1388_v49  ;;  %v1387_v55 = vmax.f32 %v1265_v38, %v1316_v53  ;;  %v1389_v42 = vmax.f32 %v1267_v47, %v1369_v40  ;;  %v1567_v40 = vld [vmem:[#allocation2 + $0x60] sm:$0xff] }
 0x17a   : > { %v1318_v60 = vpop.f32.mrf.mxu0  ;;  %v1371_v61 = vpop.f32.mrf.mxu1 }
 0x17b   : > { %v1425_v32 = vadd.f32 %v14169_v23, %v1387_v55  ;;  %v1427_v0 = vadd.f32 %v14171_v24, %v1389_v42  ;;  %v1440_v1 = vmax.f32 %v1424_v54, 0.0  ;;  %v1442_v2 = vmax.f32 %v1426_v41, 0.0  ;;  %v1570_v54 = vld [vmem:[#allocation2] sm:$0xff] }
 0x17c   : > { %v1390_v3 = vmax.f32 %v1268_v50, %v1318_v60  ;;  %v1392_v4 = vmax.f32 %v1270_v51, %v1371_v61  ;;  %v1320_v6 = vpop.f32.mrf.mxu0  ;;  %v1373_v9 = vpop.f32.mrf.mxu1 }
 0x17d   : > { %v1441_v7 = vmax.f32 %v1425_v32, 0.0  ;;  %v1443_v10 = vmax.f32 %v1427_v0, 0.0  ;;  %v1391_v14 = vmax.f32 %v1269_v39, %v1320_v6  ;;  %v1393_v15 = vmax.f32 %v1271_v52, %v1373_v9 }
 0x17e   : > { %v1428_v22 = vadd.f32 %v14161_v17, %v1390_v3  ;;  %v1430_v25 = vadd.f32 %v14163_v20, %v1392_v4  ;;  %v1324_v28 = vpop.f32.mrf.mxu0  ;;  %v1377_v29 = vpop.f32.mrf.mxu1 }
 0x17f   : > { %v10964_v12 = vpack.c.bf16 %v1441_v7, %v1440_v1  ;;  %v10965_v13 = vpack.c.bf16 %v1443_v10, %v1442_v2  ;;  %v1429_v35 = vadd.f32 %v14169_v23, %v1391_v14  ;;  %v1431_v36 = vadd.f32 %v14171_v24, %v1393_v15 }
 0x180   : > { %v1444_v43 = vmax.f32 %v1428_v22, 0.0  ;;  %v1446_v19 = vmax.f32 %v1430_v25, 0.0  ;;  %v1394_v26 = vmax.f32 %v1272_v56, %v1324_v28  ;;  %v1396_v27 = vmax.f32 %v1274_v57, %v1377_v29  ;;  %v1326_v44 = vpop.f32.mrf.mxu0  ;;  %v1379_v45 = vpop.f32.mrf.mxu1  ;;  %v1573_v29 = vld [vmem:[#allocation2 + $0x38] sm:$0xff] }
 0x181   : > { %v1497_v30 = vshrl.u32 %v10964_v12, 16  ;;  %v1500_v31 = vshll.u32 %v10964_v12, 16  ;;  %v1504_v33 = vshrl.u32 %v10965_v13, 16  ;;  %v1507_v34 = vshll.u32 %v10965_v13, 16  ;;  %v1576_v12 = vld [vmem:[#allocation2 + $0x28] sm:$0xff] }
 0x182   : > { %v1445_v37 = vmax.f32 %v1429_v35, 0.0  ;;  %v1447_v46 = vmax.f32 %v1431_v36, 0.0  ;;  %v1432_v38 = vadd.f32 %v14161_v17, %v1394_v26  ;;  %v1434_v47 = vadd.f32 %v14163_v20, %v1396_v27  ;;  %v1328_v48 = vpop.f32.mrf.mxu0  ;;  %v1381_v49 = vpop.f32.mrf.mxu1 }
 0x183   : > { %v1499_v50 = vrot.slane %v1497_v30, 7  ;;  %v1506_v51 = vrot.slane %v1504_v33, 7  ;;  %v1395_v39 = vmax.f32 %v14203_v58, %v1326_v44  ;;  %v1397_v52 = vmax.f32 %v14205_v59, %v1379_v45 }
 0x184   : > { %v10966_v41 = vpack.c.bf16 %v1445_v37, %v1444_v43  ;;  %v10967_v55 = vpack.c.bf16 %v1447_v46, %v1446_v19  ;;  %v1448_v42 = vmax.f32 %v1432_v38, 0.0  ;;  %v1450_v56 = vmax.f32 %v1434_v47, 0.0  ;;  %v1330_v2 = vpop.f32.mrf.mxu0  ;;  %v1383_v3 = vpop.f32.mrf.mxu1  ;;  %v1582_v37 = vld [vmem:[#allocation2 + $0x58] sm:$0xff] }
 0x185   : > { %v1502_v57 = vor.u32 %v1500_v31, %v1499_v50  ;;  %v1509_v60 = vor.u32 %v1507_v34, %v1506_v51  ;;  %v1433_v61 = vadd.f32 %v14169_v23, %v1395_v39  ;;  %v1435_v58 = vadd.f32 %v14171_v24, %v1397_v52 }
 0x186   : > { %v1511_v32 = vshrl.u32 %v10966_v41, 16  ;;  %v1514_v59 = vshll.u32 %v10966_v41, 16  ;;  %v1518_v0 = vshrl.u32 %v10967_v55, 16  ;;  %v1521_v1 = vshll.u32 %v10967_v55, 16  ;;  %v14285_v55 = vld [vmem:[#allocation2 + $0x20] sm:$0x11] }
 0x187   : > { %v1568_v4 = vsel %vm14235_vm11, %v1502_v57, %v1567_v40  ;;  %v1571_v9 = vsel %vm14235_vm11, %v1509_v60, %v1570_v54  ;;  %v1449_v7 = vmax.f32 %v1433_v61, 0.0  ;;  %v1451_v10 = vmax.f32 %v1435_v58, 0.0  ;;  %v14287_v57 = vld [vmem:[#allocation2 + $0x68] sm:$0x11] }
 0x188   : > { %1569 = vst [vmem:[#allocation2 + $0x60] sm:$0xff] %v1568_v4  ;;  %1572 = vst [vmem:[#allocation2] sm:$0xff] %v1571_v9  ;;  %v1513_v15 = vrot.slane %v1511_v32, 7  ;;  %v1520_v22 = vrot.slane %v1518_v0, 7  ;;  %v1398_v25 = vmax.f32 %v14207_v62, %v1328_v48  ;;  %v1400_v28 = vmax.f32 %v14209_v63, %v1381_v49  ;;  %v1588_v4 = vld [vmem:[#allocation2 + $0x18] sm:$0xff] }
 0x189   : > { %v10968_v13 = vpack.c.bf16 %v1449_v7, %v1448_v42  ;;  %v10969_v35 = vpack.c.bf16 %v1451_v10, %v1450_v56  ;;  %v1399_v36 = vmax.f32 %v14213_v16, %v1330_v2  ;;  %v1401_v18 = vmax.f32 %v14215_v21, %v1383_v3  ;;  %v1579_v21 = vld [vmem:[#allocation2 + $0x30] sm:$0xff]  ;;  %v1585_v3 = vld [vmem:[#allocation2 + $0x8] sm:$0xff] }
 0x18a   : > { %v1516_v43 = vor.u32 %v1514_v59, %v1513_v15  ;;  %v1523_v19 = vor.u32 %v1521_v1, %v1520_v22  ;;  %v1436_v26 = vadd.f32 %v14161_v17, %v1398_v25  ;;  %v1438_v27 = vadd.f32 %v14163_v20, %v1400_v28  ;;  %v14343_v17 = vld [vmem:[#allocation2 + $0x48] sm:$0x11] }
 0x18b   : > { %v1525_v44 = vshrl.u32 %v10968_v13, 16  ;;  %v1528_v45 = vshll.u32 %v10968_v13, 16  ;;  %v1532_v30 = vshrl.u32 %v10969_v35, 16  ;;  %v1535_v62 = vshll.u32 %v10969_v35, 16 }
 0x18c   : > { %v1574_v63 = vsel %vm14235_vm11, %v1516_v43, %v1573_v29  ;;  %v1577_v31 = vsel %vm14235_vm11, %v1523_v19, %v1576_v12  ;;  %v1452_v33 = vmax.f32 %v1436_v26, 0.0  ;;  %v1454_v16 = vmax.f32 %v1438_v27, 0.0  ;;  %v14321_v27 = vld [vmem:[#allocation2 + $0x10] sm:$0x11] }
 0x18d   : > { %1575 = vst [vmem:[#allocation2 + $0x38] sm:$0xff] %v1574_v63  ;;  %1578 = vst [vmem:[#allocation2 + $0x28] sm:$0xff] %v1577_v31  ;;  %v1527_v20 = vrot.slane %v1525_v44, 7  ;;  %v1534_v34 = vrot.slane %v1532_v30, 7  ;;  %v1437_v46 = vadd.f32 %v14169_v23, %v1399_v36  ;;  %v1439_v38 = vadd.f32 %v14171_v24, %v1401_v18  ;;  %v14323_v44 = vld [vmem:[#allocation2 + $0x40] sm:$0x11] }
 0x18e   : > { %v1807_v6 = vrot.slane %v14285_v55, 5  ;;  %v1811_v9 = vrot.slane %v14287_v57, 5  ;;  %v14326_v30 = vld [vmem:[#allocation2 + $0x50] sm:$0x11]  ;;  %v14330_v63 = vld [vmem:[#allocation2 + $0x78] sm:$0x11] }
 0x18f   : > { %v1598_v47 = vld [vmem:[#allocation2 + $0x60] sm:$0x11]  ;;  %v1530_v49 = vor.u32 %v1528_v45, %v1527_v20  ;;  %v1537_v50 = vor.u32 %v1535_v62, %v1534_v34  ;;  %v1453_v51 = vmax.f32 %v1437_v46, 0.0  ;;  %v1455_v39 = vmax.f32 %v1439_v38, 0.0  ;;  %v14328_v62 = vld [vmem:[#allocation2 + $0x70] sm:$0x11] }
 0x190   : > { %v1601_v48 = vld [vmem:[#allocation2] sm:$0x11]  ;;  %v1599_v52 = vsel %vm14271_vm14, 0, %v1598_v47  ;;  %v1716_v20 = vshll.u32 %v14285_v55, 16  ;;  %v1762_v38 = vld [vmem:[#allocation2 + $0x60] sm:$0xee] }
 0x191   : > { %v1602_v40 = vsel %vm14271_vm14, 0, %v1601_v48  ;;  %1600 = vst [vmem:[#allocation2 + $0x60] sm:$0x11] %v1599_v52  ;;  %v1580_v54 = vsel %vm14235_vm11, %v1530_v49, %v1579_v21  ;;  %v1583_v23 = vsel %vm14235_vm11, %v1537_v50, %v1582_v37  ;;  %v10970_v24 = vpack.c.bf16 %v1453_v51, %v1452_v33 }
 0x192   : > { %1603 = vst [vmem:[#allocation2] sm:$0x11] %v1602_v40  ;;  %v10971_v41 = vpack.c.bf16 %v1455_v39, %v1454_v16  ;;  %1581 = vst [vmem:[#allocation2 + $0x30] sm:$0xff] %v1580_v54  ;;  %v1730_v47 = vshll.u32 %v14287_v57, 16  ;;  %v1779_v48 = vrot.slane %v14321_v27, 5  ;;  %v1783_v51 = vrot.slane %v14323_v44, 5 }
 0x193   : > { %1584 = vst [vmem:[#allocation2 + $0x58] sm:$0xff] %v1583_v23  ;;  %v1539_v42 = vshrl.u32 %v10970_v24, 16  ;;  %v1542_v58 = vshll.u32 %v10970_v24, 16  ;;  %v9370_v52 = vrot.slane %v1762_v38, 9  ;;  %v1787_v40 = vrot.slane %v14326_v30, 5 }
 0x194   : > { %v1546_v56 = vshrl.u32 %v10971_v41, 16  ;;  %v1604_v60 = vld [vmem:[#allocation2 + $0x38] sm:$0x11]  ;;  %v1607_v61 = vld [vmem:[#allocation2 + $0x28] sm:$0x11]  ;;  %v1549_v32 = vshll.u32 %v10971_v41, 16 }
 0x195   : > { %v1605_v59 = vsel %vm14271_vm14, 0, %v1604_v60  ;;  %v1608_v0 = vsel %vm14271_vm14, 0, %v1607_v61  ;;  %v1541_v1 = vrot.slane %v1539_v42, 7  ;;  %v1793_v14 = vld [vmem:[#allocation2 + $0x38] sm:$0xee]  ;;  %v1791_v54 = vrot.slane %v14328_v62, 5 }
 0x196   : > { %v1548_v2 = vrot.slane %v1546_v56, 7  ;;  %1606 = vst [vmem:[#allocation2 + $0x38] sm:$0x11] %v1605_v59  ;;  %1609 = vst [vmem:[#allocation2 + $0x28] sm:$0x11] %v1608_v0  ;;  %v9374_v22 = vrot.slane %v1793_v14, 9 }
 0x197   : > { %v1544_v7 = vor.u32 %v1542_v58, %v1541_v1  ;;  %v1794_v15 = vld [vmem:[#allocation2 + $0x28] sm:$0xee]  ;;  %v1815_v23 = vrot.slane %v14330_v63, 5  ;;  %v1718_v41 = vrot.slane %v1716_v20, 5  ;;  %v1744_v57 = vshll.u32 %v14330_v63, 16 }
 0x198   : > { %v1551_v10 = vor.u32 %v1549_v32, %v1548_v2  ;;  %v9375_v25 = vrot.slane %v1794_v15, 9  ;;  %v14311_v53 = vsel %vm14305_vm2, %v9374_v22, %v1807_v6  ;;  %v1732_v60 = vrot.slane %v1730_v47, 5  ;;  %v1763_v58 = vld [vmem:[#allocation2] sm:$0xee]  ;;  %v11455_v15 = vld [vmem:[%s18946_s3 + $0x170] ss:$8 sps:$4 sm:$0xff]  }
 0x199   : > { %v1610_v28 = vld [vmem:[#allocation2 + $0x30] sm:$0x11]  ;;  %v1586_v12 = vsel %vm14235_vm11, %v1544_v7, %v1585_v3  ;;  %v1764_v50 = vld [vmem:[#allocation2 + $0x30] sm:$0xee]  ;;  %v1758_v1 = vshll.u32 %v14343_v17, 16  ;;  %v1819_v2 = vrot.slane %v14343_v17, 5 }
 0x19a   : > { %v1613_v29 = vld [vmem:[#allocation2 + $0x58] sm:$0x11]  ;;  %v1589_v13 = vsel %vm14235_vm11, %v1551_v10, %v1588_v4  ;;  %v1611_v35 = vsel %vm14271_vm14, 0, %v1610_v28  ;;  %1587 = vst [vmem:[#allocation2 + $0x8] sm:$0xff] %v1586_v12  ;;  %v14315_v43 = vsel %vm14305_vm2, %v9375_v25, %v1811_v9  ;;  %v1765_v56 = vld [vmem:[#allocation2 + $0x58] sm:$0xee]  ;;  %v1780_v4 = vsel %vm14305_vm2, %v9370_v52, %v1779_v48 }
 0x19b   : > { %v1614_v36 = vsel %vm14271_vm14, 0, %v1613_v29  ;;  %1590 = vst [vmem:[#allocation2 + $0x18] sm:$0xff] %v1589_v13  ;;  %1612 = vst [vmem:[#allocation2 + $0x30] sm:$0x11] %v1611_v35  ;;  %v9372_v61 = vrot.slane %v1764_v50, 9  ;;  %v9373_v9 = vrot.slane %v1765_v56, 9 }
 0x19c   : > { %1615 = vst [vmem:[#allocation2 + $0x58] sm:$0x11] %v1614_v36  ;;  %v11452_v3 = vld [vmem:[%s18946_s3 + $0x70] ss:$8 sps:$4 sm:$0xff]   ;;  %v9371_v29 = vrot.slane %v1763_v58, 9  ;;  %v1746_v52 = vrot.slane %v1744_v57, 5 }
 0x19d   : > { %v14317_v19 = vld [vmem:[#allocation2 + $0x38] sm:$0xff]  ;;  %v14319_v26 = vld [vmem:[#allocation2 + $0x28] sm:$0xff]  ;;  %v1788_v6 = vsel %vm14305_vm2, %v9372_v61, %v1787_v40 }
 0x19e   : > { %v1707_v45 = vshrl.u32 %v14317_v19, 16  ;;  %v1710_v16 = vshll.u32 %v14317_v19, 16  ;;  %v1721_v37 = vshrl.u32 %v14319_v26, 16  ;;  %v1724_v46 = vshll.u32 %v14319_v26, 16  ;;  %v11464_v63 = vld [vmem:[%s18946_s3 + $0x64] ss:$8 sps:$4 sm:$0xff]  }
 0x19f   : > { %v14363_v28 = vcombine.high %v1780_v4, %v1788_v6  ;;  %v11462_v38 = vld [vmem:[%s18946_s3 + $0x60] ss:$8 sps:$4 sm:$0xff]   ;;  %v11467_v50 = vld [vmem:[%s18946_s3 + $0x164] ss:$8 sps:$4 sm:$0xff]   ;;  %v1784_v40 = vsel %vm14305_vm2, %v9371_v29, %v1783_v51  ;;  %v14429_v57 = vcombine.low %v1780_v4, %v1788_v6  ;;  %v11473_v58 = vld [vmem:[%s18946_s3 + $0x154] ss:$8 sps:$4 sm:$0xff]  }
 0x1a0   : > { %v1709_v49 = vrot.slane %v1707_v45, 4  ;;  %v1712_v24 = vrot.slane %v1710_v16, 5  ;;  %v1723_v55 = vrot.slane %v1721_v37, 4  ;;  %v1726_v42 = vrot.slane %v1724_v46, 5  ;;  %v14391_v46 = vld [vmem:[#allocation2 + $0x60] sm:$0xff] }
 0x1a1   : > { %v1616_v31 = vld [vmem:[#allocation2 + $0x8] sm:$0x11]  ;;  %v1795_v39 = vld [vmem:[#allocation2 + $0x8] sm:$0xee] }
 0x1a2   : > { %v1619_v33 = vld [vmem:[#allocation2 + $0x18] sm:$0x11]  ;;  %v1617_v21 = vsel %vm14271_vm14, 0, %v1616_v31  ;;  %v9376_v32 = vrot.slane %v1795_v39, 9  ;;  %v1713_v59 = vor.u32 %v1712_v24, %v1709_v49  ;;  %v1727_v0 = vor.u32 %v1726_v42, %v1723_v55  ;;  %v14368_v45 = vld [vmem:[#allocation2 + $0x30] sm:$0xff]  ;;  %v14406_v49 = vld [vmem:[#allocation2] sm:$0xff] }
 0x1a3   : > { %v1620_v34 = vsel %vm14271_vm14, 0, %v1619_v33  ;;  %1618 = vst [vmem:[#allocation2 + $0x8] sm:$0x11] %v1617_v21  ;;  %v1796_v33 = vld [vmem:[#allocation2 + $0x18] sm:$0xee] }
 0x1a4   : > { %1621 = vst [vmem:[#allocation2 + $0x18] sm:$0x11] %v1620_v34  ;;  %v1816_v7 = vsel %vm14305_vm2, %v9376_v32, %v1815_v23  ;;  %v1714_v22 = vrot.slane %v1713_v59, 4  ;;  %v1728_v25 = vrot.slane %v1727_v0, 4  ;;  %v14388_v37 = vld [vmem:[#allocation2 + $0x58] sm:$0xff]  ;;  %v9377_v61 = vrot.slane %v1796_v33, 9 }
 0x1a5   : > { %v11465_v23 = vld [vmem:[%s18946_s3 + $0x160] ss:$8 sps:$4 sm:$0xff]   ;;  %v11470_v24 = vld [vmem:[%s18946_s3 + $0x54] ss:$8 sps:$4 sm:$0xff]   ;;  %v14438_v0 = vcombine.low %v14311_v53, %v1816_v7  ;;  %v14444_v6 = vcombine.high %v14311_v53, %v1816_v7  ;;  %v11471_v53 = vld [vmem:[%s18946_s3 + $0x150] ss:$8 sps:$4 sm:$0xff]  }
 0x1a6   : > { %v1719_v47 = vsel %vm14375_vm5, %v1714_v22, %v1718_v41  ;;  %v1733_v41 = vsel %vm14375_vm5, %v1728_v25, %v1732_v60  ;;  %v1760_v60 = vrot.slane %v1758_v1, 5  ;;  %v11476_v17 = vld [vmem:[%s18946_s3 + $0x44] ss:$8 sps:$4 sm:$0xff]   ;;  %v11483_v33 = vld [vmem:[%s18946_s3 + $0x130] ss:$8 sps:$4 sm:$0xff]  }
 0x1a7   : > { %v11568_v31 = vld [vmem:[%s18946_s3 + $0x454] ss:$8 sps:$4 sm:$0xff]  }
 0x1aa   : > { %v1637_v10 = vld [vmem:[#allocation2 + $0x8] sm:$0xff] }
 0x1ab   : > { %v1638_v14 = vld [vmem:[#allocation2 + $0x18] sm:$0xff]  ;;  %v1735_v12 = vshrl.u32 %v1637_v10, 16  ;;  %v1738_v13 = vshll.u32 %v1637_v10, 16  ;;  %v14366_v35 = vcombine.high %v14317_v19, %v1637_v10  ;;  %v14383_v21 = vcombine.low %v14317_v19, %v1637_v10 }
 0x1ac   : > { %v1749_v36 = vshrl.u32 %v1638_v14, 16  ;;  %v1752_v16 = vshll.u32 %v1638_v14, 16  ;;  %v14380_v20 = vcombine.high %v14319_v26, %v1638_v14  ;;  %v14386_v34 = vcombine.low %v14319_v26, %v1638_v14 }
 0x1ad   : > { %2322 = vmatprep.mubr.bf16.mxu0 %v14366_v35  ;;  %v1737_v48 = vrot.slane %v1735_v12, 4  ;;  %v1792_v19 = vsel %vm14305_vm2, %v9373_v9, %v1791_v54  ;;  %v14404_v26 = vcombine.high %v14391_v46, %v14368_v45  ;;  %v1740_v39 = vrot.slane %v1738_v13, 5  ;;  %v11477_v12 = vld [vmem:[%s18946_s3 + $0x140] ss:$8 sps:$4 sm:$0xff]   ;;  %v11482_v13 = vld [vmem:[%s18946_s3 + $0x34] ss:$8 sps:$4 sm:$0xff]  }
 0x1ae   : > { %2365 = vmatprep.mubr.bf16.mxu1 %v14380_v20  ;;  %2323 = vmatmul.mubr.bf16.vlgmr.msra.gmra.mxu0 %v14383_v21  ;;  %v14416_v54 = vcombine.high %v14406_v49, %v14388_v37  ;;  %v1751_v55 = vrot.slane %v1749_v36, 4  ;;  %v1754_v51 = vrot.slane %v1752_v16, 5  ;;  %v14427_v56 = vcombine.high %v1784_v40, %v1792_v19  ;;  %v11480_v36 = vld [vmem:[%s18946_s3 + $0x30] ss:$8 sps:$4 sm:$0xff]   ;;  %v11488_v16 = vld [vmem:[%s18946_s3 + $0x24] ss:$8 sps:$4 sm:$0xff]  }
 0x1af   : > { %2366 = vmatmul.mubr.bf16.vlgmr.msra.gmra.mxu1 %v14386_v34  ;;  %2717 = vmatpush1.bf16.msra.mxu0 %v11452_v3  ;;  %v1741_v42 = vor.u32 %v1740_v39, %v1737_v48  ;;  %v14435_v59 = vcombine.low %v1784_v40, %v1792_v19  ;;  %v11468_v3 = vld [vmem:[%s18946_s3 + $0x50] ss:$8 sps:$4 sm:$0xff]   ;;  %v1820_v9 = vsel %vm14305_vm2, %v9377_v61, %v1819_v2  ;;  %v11474_v2 = vld [vmem:[%s18946_s3 + $0x40] ss:$8 sps:$4 sm:$0xff]   ;;  %v11494_v19 = vld [vmem:[%s18946_s3 + $0x14] ss:$8 sps:$4 sm:$0xff]  }
 0x1b0   : > { %2760 = vmatpush1.bf16.msra.mxu1 %v11455_v15  ;;  %2748 = vmatprep.mubr.bf16.mxu0 %v14404_v26  ;;  %v1755_v32 = vor.u32 %v1754_v51, %v1751_v55  ;;  %v14451_v10 = vcombine.low %v14315_v43, %v1820_v9  ;;  %v14454_v14 = vcombine.high %v14315_v43, %v1820_v9  ;;  %v11479_v43 = vld [vmem:[%s18946_s3 + $0x144] ss:$8 sps:$4 sm:$0xff]   ;;  %v11489_v48 = vld [vmem:[%s18946_s3 + $0x120] ss:$8 sps:$4 sm:$0xff]   ;;  %v11497_v39 = vld [vmem:[%s18946_s3 + $0x114] ss:$8 sps:$4 sm:$0xff]  }
 0x1b1   : > { %2791 = vmatprep.mubr.bf16.mxu1 %v14416_v54  ;;  %2718 = vmatprep.subr.bf16.mxu0 %v11464_v63  ;;  %v1742_v4 = vrot.slane %v1741_v42, 4  ;;  %v11485_v63 = vld [vmem:[%s18946_s3 + $0x134] ss:$8 sps:$4 sm:$0xff]   ;;  %v11500_v40 = vld [vmem:[%s18946_s3 + $0x4] ss:$8 sps:$4 sm:$0xff]  }
 0x1b2   : > { %2761 = vmatprep.subr.bf16.mxu1 %v11467_v50  ;;  %v1756_v1 = vrot.slane %v1755_v32, 4  ;;  %v11492_v50 = vld [vmem:[%s18946_s3 + $0x10] ss:$8 sps:$4 sm:$0xff]   ;;  %v11506_v55 = vld [vmem:[%s18946_s3 + $0xf4] ss:$8 sps:$4 sm:$0xff]   ;;  %v1656_v32 = vshll.u32 %v14321_v27, 16 }
 0x1b3   : > { %2719 = vmatpush1.bf16.msra.mxu0 %v11462_v38  ;;  %v1747_v18 = vsel %vm14375_vm5, %v1742_v4, %v1746_v52  ;;  %v11486_v38 = vld [vmem:[%s18946_s3 + $0x20] ss:$8 sps:$4 sm:$0xff]   ;;  %v11495_v52 = vld [vmem:[%s18946_s3 + $0x110] ss:$8 sps:$4 sm:$0xff]   ;;  %v11509_v42 = vld [vmem:[%s18946_s3 + $0x1f4] ss:$8 sps:$4 sm:$0xff]  }
 0x1b4   : > { %2762 = vmatpush1.bf16.msra.mxu1 %v11465_v23  ;;  %2720 = vmatprep.subr.bf16.mxu0 %v11470_v24  ;;  %v14470_v7 = vcombine.high %v1719_v47, %v1747_v18  ;;  %v1761_v15 = vsel %vm14375_vm5, %v1756_v1, %v1760_v60  ;;  %v14474_v22 = vcombine.low %v1719_v47, %v1747_v18  ;;  %v11491_v47 = vld [vmem:[%s18946_s3 + $0x124] ss:$8 sps:$4 sm:$0xff]   ;;  %v11498_v23 = vld [vmem:[%s18946_s3] ss:$8 sps:$4 sm:$0xff]   ;;  %v11504_v51 = vld [vmem:[%s18946_s3 + $0xf0] ss:$8 sps:$4 sm:$0xff]  }
 0x1b5   : > { %2763 = vmatprep.subr.bf16.mxu1 %v11473_v58  ;;  %v14476_v25 = vcombine.high %v1733_v41, %v1761_v15  ;;  %v14478_v29 = vcombine.low %v1733_v41, %v1761_v15  ;;  %v11503_v24 = vld [vmem:[%s18946_s3 + $0x104] ss:$8 sps:$4 sm:$0xff]   ;;  %v11501_v41 = vld [vmem:[%s18946_s3 + $0x100] ss:$8 sps:$4 sm:$0xff]   ;;  %v11507_v61 = vld [vmem:[%s18946_s3 + $0x1f0] ss:$8 sps:$4 sm:$0xff]  }
 0x1b6   : > { %v11512_v58 = vld [vmem:[%s18946_s3 + $0xe4] ss:$8 sps:$4 sm:$0xff]   ;;  %v1670_v60 = vshll.u32 %v14323_v44, 16  ;;  %v11513_v9 = vld [vmem:[%s18946_s3 + $0x1e0] ss:$8 sps:$4 sm:$0xff]   ;;  %v14560_v44 = vrot.slane %v1656_v32, 5 }
 0x1b7   : > { %2721 = vmatpush1.bf16.msra.mxu0 %v11468_v3  ;;  %v11510_v3 = vld [vmem:[%s18946_s3 + $0xe0] ss:$8 sps:$4 sm:$0xff]   ;;  %v11515_v4 = vld [vmem:[%s18946_s3 + $0x1e4] ss:$8 sps:$4 sm:$0xff]   ;;  %v11518_v27 = vld [vmem:[%s18946_s3 + $0xd4] ss:$8 sps:$4 sm:$0xff]  }
 0x1b8   : > { %2764 = vmatpush1.bf16.msra.mxu1 %v11471_v53  ;;  %2722 = vmatprep.subr.bf16.mxu0 %v11476_v17  ;;  %v14562_v1 = vrot.slane %v1670_v60, 5  ;;  %v11516_v53 = vld [vmem:[%s18946_s3 + $0xd0] ss:$8 sps:$4 sm:$0xff]   ;;  %v11521_v17 = vld [vmem:[%s18946_s3 + $0x1d4] ss:$8 sps:$4 sm:$0xff]   ;;  %v1698_v15 = vshll.u32 %v14328_v62, 16 }
 0x1b9   : > { %2765 = vmatprep.subr.bf16.mxu1 %v11479_v43  ;;  %v11519_v18 = vld [vmem:[%s18946_s3 + $0x1d0] ss:$8 sps:$4 sm:$0xff]   ;;  %v1684_v43 = vshll.u32 %v14326_v30, 16  ;;  %v1650_v30 = vshll.u32 %v14391_v46, 16  ;;  %v11562_v62 = vld [vmem:[%s18946_s3 + $0x464] ss:$8 sps:$4 sm:$0xff]  }
 0x1bb   : > { %2723 = vmatpush1.bf16.msra.mxu0 %v11474_v2  ;;  %v11524_v2 = vld [vmem:[%s18946_s3 + $0xc4] ss:$8 sps:$4 sm:$0xff]   ;;  %v1652_v32 = vrot.slane %v1650_v30, 5 }
 0x1bc   : > { %2766 = vmatpush1.bf16.msra.mxu1 %v11477_v12  ;;  %2724 = vmatprep.subr.bf16.mxu0 %v11482_v13  ;;  %v11522_v12 = vld [vmem:[%s18946_s3 + $0xc0] ss:$8 sps:$4 sm:$0xff]   ;;  %v11527_v13 = vld [vmem:[%s18946_s3 + $0x1c4] ss:$8 sps:$4 sm:$0xff]  }
 0x1bd   : > { %2767 = vmatprep.subr.bf16.mxu1 %v11485_v63  ;;  %v1647_v63 = vshrl.u32 %v14391_v46, 16 }
 0x1bf   : > { %2725 = vmatpush1.bf16.msra.mxu0 %v11480_v36  ;;  %v11525_v36 = vld [vmem:[%s18946_s3 + $0x1c0] ss:$8 sps:$4 sm:$0xff]  }
 0x1c0   : > { %2768 = vmatpush1.bf16.msra.mxu1 %v11483_v33  ;;  %2726 = vmatprep.subr.bf16.mxu0 %v11488_v16  ;;  %v11530_v33 = vld [vmem:[%s18946_s3 + $0xb4] ss:$8 sps:$4 sm:$0xff]  }
 0x1c1   : > { %2769 = vmatprep.subr.bf16.mxu1 %v11491_v47  ;;  %v11533_v16 = vld [vmem:[%s18946_s3 + $0x1b4] ss:$8 sps:$4 sm:$0xff]   ;;  %v1678_v47 = vshll.u32 %v14368_v45, 16 }
 0x1c3   : > { %2727 = vmatpush1.bf16.msra.mxu0 %v11486_v38  ;;  %v1675_v38 = vshrl.u32 %v14368_v45, 16 }
 0x1c4   : > { %2770 = vmatpush1.bf16.msra.mxu1 %v11489_v48  ;;  %2728 = vmatprep.subr.bf16.mxu0 %v11494_v19  ;;  %v11528_v48 = vld [vmem:[%s18946_s3 + $0xb0] ss:$8 sps:$4 sm:$0xff]  }
 0x1c5   : > { %2771 = vmatprep.subr.bf16.mxu1 %v11497_v39  ;;  %v11531_v19 = vld [vmem:[%s18946_s3 + $0x1b0] ss:$8 sps:$4 sm:$0xff]   ;;  %v1661_v39 = vshrl.u32 %v14406_v49, 16 }
 0x1c7   : > { %2729 = vmatpush1.bf16.msra.mxu0 %v11492_v50  ;;  %v11536_v50 = vld [vmem:[%s18946_s3 + $0xa4] ss:$8 sps:$4 sm:$0xff]  }
 0x1c8   : > { %2772 = vmatpush1.bf16.msra.mxu1 %v11495_v52  ;;  %2730 = vmatprep.subr.bf16.mxu0 %v11500_v40  ;;  %v1664_v52 = vshll.u32 %v14406_v49, 16  ;;  %v1689_v40 = vshrl.u32 %v14388_v37, 16 }
 0x1c9   : > { %2773 = vmatprep.subr.bf16.mxu1 %v11503_v24  ;;  %v11539_v24 = vld [vmem:[%s18946_s3 + $0x1a4] ss:$8 sps:$4 sm:$0xff]  }
 0x1ca   : > { %v1691_v60 = vrot.slane %v1689_v40, 4  ;;  %v11557_v40 = vld [vmem:[%s18946_s3 + $0x570] ss:$8 sps:$4 sm:$0xff]  }
 0x1cb   : > { %2731 = vmatpush1.bf16.msra.mxu0 %v11498_v23  ;;  %v1692_v23 = vshll.u32 %v14388_v37, 16 }
 0x1cc   : > { %2774 = vmatpush1.bf16.msra.mxu1 %v11501_v41  ;;  %2732 = vmatprep.subr.bf16.mxu0 %v11506_v55  ;;  %v1677_v41 = vrot.slane %v1675_v38, 4  ;;  %v1680_v55 = vrot.slane %v1678_v47, 5  ;;  %v11549_v38 = vld [vmem:[%s18946_s3 + $0x180] ss:$8 sps:$4 sm:$0xff]   ;;  %v11556_v47 = vld [vmem:[%s18946_s3 + $0x474] ss:$8 sps:$4 sm:$0xff]  }
 0x1cd   : > { %2775 = vmatprep.subr.bf16.mxu1 %v11509_v42  ;;  %v11537_v42 = vld [vmem:[%s18946_s3 + $0x1a0] ss:$8 sps:$4 sm:$0xff]  }
 0x1cf   : > { %2733 = vmatpush2.bf16.msra.mxu0 %v11504_v51  ;;  %v11534_v51 = vld [vmem:[%s18946_s3 + $0xa0] ss:$8 sps:$4 sm:$0xff]  }
 0x1d0   : > { %2776 = vmatpush2.bf16.msra.mxu1 %v11507_v61  ;;  %2734 = vmatprep.subr.bf16.mxu0 %v11512_v58  ;;  %v11542_v61 = vld [vmem:[%s18946_s3 + $0x94] ss:$8 sps:$4 sm:$0xff]   ;;  %v1649_v58 = vrot.slane %v1647_v63, 4 }
 0x1d1   : > { %2777 = vmatprep.subr.bf16.mxu1 %v11515_v4  ;;  %v11545_v4 = vld [vmem:[%s18946_s3 + $0x194] ss:$8 sps:$4 sm:$0xff]  }
 0x1d2   : > { %v1653_v63 = vor.u32 %v1652_v32, %v1649_v58  ;;  %v11574_v58 = vld [vmem:[%s18946_s3 + $0x444] ss:$8 sps:$4 sm:$0xff]  }
 0x1d3   : > { %2735 = vmatpush2.bf16.msra.mxu0 %v11510_v3  ;;  %v1694_v3 = vrot.slane %v1692_v23, 5  ;;  %v11577_v32 = vld [vmem:[%s18946_s3 + $0x544] ss:$8 sps:$4 sm:$0xff]  }
 0x1d4   : > { %2778 = vmatpush2.bf16.msra.mxu1 %v11513_v9  ;;  %2736 = vmatprep.subr.bf16.mxu0 %v11518_v27  ;;  %v1663_v9 = vrot.slane %v1661_v39, 4  ;;  %v1666_v27 = vrot.slane %v1664_v52, 5  ;;  %v1654_v39 = vrot.slane %v1653_v63, 4  ;;  %v11590_v63 = vld [vmem:[%s18946_s3 + $0x410] ss:$8 sps:$4 sm:$0xff]  }
 0x1d5   : > { %2779 = vmatprep.subr.bf16.mxu1 %v11521_v17  ;;  %v1681_v17 = vor.u32 %v1680_v55, %v1677_v41  ;;  %v11565_v41 = vld [vmem:[%s18946_s3 + $0x564] ss:$8 sps:$4 sm:$0xff]   ;;  %v14677_v55 = vcombine.low %v14406_v49, %v14388_v37  ;;  %v11560_v49 = vld [vmem:[%s18946_s3 + $0x460] ss:$8 sps:$4 sm:$0xff]  }
 0x1d7   : > { %2737 = vmatpush2.bf16.msra.mxu0 %v11516_v53  ;;  %v11540_v53 = vld [vmem:[%s18946_s3 + $0x90] ss:$8 sps:$4 sm:$0xff]   ;;  %v1682_v30 = vrot.slane %v1681_v17, 4  ;;  %v11586_v17 = vld [vmem:[%s18946_s3 + $0x424] ss:$8 sps:$4 sm:$0xff]  }
 0x1d8   : > { %2780 = vmatpush2.bf16.msra.mxu1 %v11519_v18  ;;  %2738 = vmatprep.subr.bf16.mxu0 %v11524_v2  ;;  %v11543_v18 = vld [vmem:[%s18946_s3 + $0x190] ss:$8 sps:$4 sm:$0xff]   ;;  %v11548_v2 = vld [vmem:[%s18946_s3 + $0x84] ss:$8 sps:$4 sm:$0xff]  }
 0x1d9   : > { %2781 = vmatprep.subr.bf16.mxu1 %v11527_v13  ;;  %v1695_v13 = vor.u32 %v1694_v3, %v1691_v60  ;;  %v11572_v60 = vld [vmem:[%s18946_s3 + $0x440] ss:$8 sps:$4 sm:$0xff]  }
 0x1da   : > { %v11575_v3 = vld [vmem:[%s18946_s3 + $0x540] ss:$8 sps:$4 sm:$0xff]  }
 0x1db   : > { %2739 = vmatpush2.bf16.msra.mxu0 %v11522_v12  ;;  %v11551_v12 = vld [vmem:[%s18946_s3 + $0x184] ss:$8 sps:$4 sm:$0xff]  }
 0x1dc   : > { %2782 = vmatpush2.bf16.msra.mxu1 %v11525_v36  ;;  %2740 = vmatprep.subr.bf16.mxu0 %v11530_v33  ;;  %v11546_v36 = vld [vmem:[%s18946_s3 + $0x80] ss:$8 sps:$4 sm:$0xff]   ;;  %v1686_v33 = vrot.slane %v1684_v43, 5  ;;  %v1700_v43 = vrot.slane %v1698_v15, 5  ;;  %v14666_v15 = vcombine.low %v14391_v46, %v14368_v45 }
 0x1dd   : > { %2783 = vmatprep.subr.bf16.mxu1 %v11533_v16  ;;  %v1667_v16 = vor.u32 %v1666_v27, %v1663_v9  ;;  %v11583_v9 = vld [vmem:[%s18946_s3 + $0x534] ss:$8 sps:$4 sm:$0xff]   ;;  %v11578_v27 = vld [vmem:[%s18946_s3 + $0x430] ss:$8 sps:$4 sm:$0xff]  }
 0x1de   : > { %v14659_v23 = vsel %vm14375_vm5, %v1682_v30, %v1686_v33  ;;  %v11593_v30 = vld [vmem:[%s18946_s3 + $0x510] ss:$8 sps:$4 sm:$0xff]   ;;  %v11598_v33 = vld [vmem:[%s18946_s3 + $0x404] ss:$8 sps:$4 sm:$0xff]  }
 0x1df   : > { %2741 = vmatpush2.bf16.msra.mxu0 %v11528_v48  ;;  %v11559_v48 = vld [vmem:[%s18946_s3 + $0x574] ss:$8 sps:$4 sm:$0xff]   ;;  %v1668_v52 = vrot.slane %v1667_v16, 4  ;;  %v11601_v16 = vld [vmem:[%s18946_s3 + $0x504] ss:$8 sps:$4 sm:$0xff]  }
 0x1e0   : > { %2784 = vmatpush2.bf16.msra.mxu1 %v11531_v19  ;;  %2742 = vmatprep.subr.bf16.mxu0 %v11536_v50  ;;  %v1696_v19 = vrot.slane %v1695_v13, 4  ;;  %v11554_v50 = vld [vmem:[%s18946_s3 + $0x470] ss:$8 sps:$4 sm:$0xff]   ;;  %v11592_v13 = vld [vmem:[%s18946_s3 + $0x414] ss:$8 sps:$4 sm:$0xff]  }
 0x1e1   : > { %2785 = vmatprep.subr.bf16.mxu1 %v11539_v24  ;;  %v14692_v46 = vsel %vm14375_vm5, %v1668_v52, %v14562_v1  ;;  %v11571_v1 = vld [vmem:[%s18946_s3 + $0x554] ss:$8 sps:$4 sm:$0xff]   ;;  %v11613_v52 = vld [vmem:[%s18946_s3 + $0x5e4] ss:$8 sps:$4 sm:$0xff]  }
 0x1e2   : > { %v14670_v24 = vsel %vm14375_vm5, %v1696_v19, %v1700_v43  ;;  %v11607_v19 = vld [vmem:[%s18946_s3 + $0x5f4] ss:$8 sps:$4 sm:$0xff]   ;;  %v11602_v43 = vld [vmem:[%s18946_s3 + $0x4f0] ss:$8 sps:$4 sm:$0xff]  }
 0x1e3   : > { %2743 = vmatpush2.bf16.msra.mxu0 %v11534_v51  ;;  %v14682_v51 = vsel %vm14375_vm5, %v1654_v39, %v14560_v44  ;;  %v14697_v37 = vcombine.high %v14692_v46, %v14670_v24  ;;  %v11563_v44 = vld [vmem:[%s18946_s3 + $0x560] ss:$8 sps:$4 sm:$0xff]   ;;  %v11610_v39 = vld [vmem:[%s18946_s3 + $0x4e4] ss:$8 sps:$4 sm:$0xff]  }
 0x1e4   : > { %2786 = vmatpush2.bf16.msra.mxu1 %v11537_v42  ;;  %2744 = vmatprep.subr.bf16.mxu0 %v11542_v61  ;;  %v14687_v45 = vcombine.high %v14682_v51, %v14659_v23  ;;  %v11566_v42 = vld [vmem:[%s18946_s3 + $0x450] ss:$8 sps:$4 sm:$0xff]  }
 0x1e5   : > { %2787 = vmatprep.subr.bf16.mxu1 %v11545_v4  ;;  %v11569_v61 = vld [vmem:[%s18946_s3 + $0x550] ss:$8 sps:$4 sm:$0xff]   ;;  %v11580_v4 = vld [vmem:[%s18946_s3 + $0x434] ss:$8 sps:$4 sm:$0xff]  }
 0x1e7   : > { %2745 = vmatpush2.bf16.msra.mxu0 %v11540_v53  ;;  %v11581_v53 = vld [vmem:[%s18946_s3 + $0x530] ss:$8 sps:$4 sm:$0xff]  }
 0x1e8   : > { %2788 = vmatpush2.bf16.msra.mxu1 %v11543_v18  ;;  %2746 = vmatprep.subr.bf16.mxu0 %v11548_v2  ;;  %v11589_v18 = vld [vmem:[%s18946_s3 + $0x524] ss:$8 sps:$4 sm:$0xff]   ;;  %v11584_v2 = vld [vmem:[%s18946_s3 + $0x420] ss:$8 sps:$4 sm:$0xff]  }
 0x1e9   : > { %2789 = vmatprep.subr.bf16.mxu1 %v11551_v12  ;;  %v11587_v12 = vld [vmem:[%s18946_s3 + $0x520] ss:$8 sps:$4 sm:$0xff]  }
 0x1eb   : > { %2747 = vmatpush2.bf16.msra.mxu0 %v11546_v36  ;;  %v11595_v36 = vld [vmem:[%s18946_s3 + $0x514] ss:$8 sps:$4 sm:$0xff]  }
 0x1ec   : > { %2790 = vmatpush2.bf16.msra.mxu1 %v11549_v38  ;;  %3203 = vmatprep.subr.bf16.mxu0 %v11556_v47  ;;  %v11596_v38 = vld [vmem:[%s18946_s3 + $0x400] ss:$8 sps:$4 sm:$0xff]  }
 0x1ed   : > { %3246 = vmatprep.subr.bf16.mxu1 %v11559_v48  ;;  %v11599_v47 = vld [vmem:[%s18946_s3 + $0x500] ss:$8 sps:$4 sm:$0xff]   ;;  %v11604_v48 = vld [vmem:[%s18946_s3 + $0x4f4] ss:$8 sps:$4 sm:$0xff]  }
 0x1ee   : > { %2749 = vmatmul.mubr.bf16.vlgmr.msra.gmra.mxu0 %v14666_v15 }
 0x1ef   : > { %2792 = vmatmul.mubr.bf16.vlgmr.msra.gmra.mxu1 %v14677_v55  ;;  %3204 = vmatpush1.bf16.msra.mxu0 %v11554_v50  ;;  %v11605_v50 = vld [vmem:[%s18946_s3 + $0x5f0] ss:$8 sps:$4 sm:$0xff]  }
 0x1f0   : > { %3235 = vmatprep.mubr.bf16.mxu0 %v14687_v45  ;;  %3247 = vmatpush1.bf16.msra.mxu1 %v11557_v40  ;;  %v11608_v40 = vld [vmem:[%s18946_s3 + $0x4e0] ss:$8 sps:$4 sm:$0xff]  }
 0x1f1   : > { %3278 = vmatprep.mubr.bf16.mxu1 %v14697_v37  ;;  %3205 = vmatprep.subr.bf16.mxu0 %v11562_v62  ;;  %v11611_v62 = vld [vmem:[%s18946_s3 + $0x5e0] ss:$8 sps:$4 sm:$0xff]  }
 0x1f2   : > { %3248 = vmatprep.subr.bf16.mxu1 %v11565_v41  ;;  %v11616_v41 = vld [vmem:[%s18946_s3 + $0x4d4] ss:$8 sps:$4 sm:$0xff]  }
 0x1f3   : > { %3206 = vmatpush1.bf16.msra.mxu0 %v11560_v49  ;;  %v11619_v49 = vld [vmem:[%s18946_s3 + $0x5d4] ss:$8 sps:$4 sm:$0xff]  }
 0x1f4   : > { %3249 = vmatpush1.bf16.msra.mxu1 %v11563_v44  ;;  %3207 = vmatprep.subr.bf16.mxu0 %v11568_v31  ;;  %v11614_v44 = vld [vmem:[%s18946_s3 + $0x4d0] ss:$8 sps:$4 sm:$0xff]  }
 0x1f5   : > { %3250 = vmatprep.subr.bf16.mxu1 %v11571_v1  ;;  %v11617_v31 = vld [vmem:[%s18946_s3 + $0x5d0] ss:$8 sps:$4 sm:$0xff]   ;;  %v11622_v1 = vld [vmem:[%s18946_s3 + $0x4c4] ss:$8 sps:$4 sm:$0xff]  }
 0x1f7   : > { %3208 = vmatpush1.bf16.msra.mxu0 %v11566_v42  ;;  %v11625_v42 = vld [vmem:[%s18946_s3 + $0x5c4] ss:$8 sps:$4 sm:$0xff]  }
 0x1f8   : > { %3251 = vmatpush1.bf16.msra.mxu1 %v11569_v61  ;;  %3209 = vmatprep.subr.bf16.mxu0 %v11574_v58  ;;  %v11620_v61 = vld [vmem:[%s18946_s3 + $0x4c0] ss:$8 sps:$4 sm:$0xff]  }
 0x1f9   : > { %3252 = vmatprep.subr.bf16.mxu1 %v11577_v32  ;;  %v11623_v58 = vld [vmem:[%s18946_s3 + $0x5c0] ss:$8 sps:$4 sm:$0xff]   ;;  %v11628_v32 = vld [vmem:[%s18946_s3 + $0x4b4] ss:$8 sps:$4 sm:$0xff]  }
 0x1fb   : > { %3210 = vmatpush1.bf16.msra.mxu0 %v11572_v60  ;;  %v11631_v60 = vld [vmem:[%s18946_s3 + $0x5b4] ss:$8 sps:$4 sm:$0xff]  }
 0x1fc   : > { %3253 = vmatpush1.bf16.msra.mxu1 %v11575_v3  ;;  %3211 = vmatprep.subr.bf16.mxu0 %v11580_v4  ;;  %v11626_v3 = vld [vmem:[%s18946_s3 + $0x4b0] ss:$8 sps:$4 sm:$0xff]  }
 0x1fd   : > { %3254 = vmatprep.subr.bf16.mxu1 %v11583_v9  ;;  %v11629_v4 = vld [vmem:[%s18946_s3 + $0x5b0] ss:$8 sps:$4 sm:$0xff]   ;;  %v11634_v9 = vld [vmem:[%s18946_s3 + $0x4a4] ss:$8 sps:$4 sm:$0xff]  }
 0x1ff   : > { %3212 = vmatpush1.bf16.msra.mxu0 %v11578_v27  ;;  %v11637_v27 = vld [vmem:[%s18946_s3 + $0x5a4] ss:$8 sps:$4 sm:$0xff]  }
 0x200   : > { %3255 = vmatpush1.bf16.msra.mxu1 %v11581_v53  ;;  %3213 = vmatprep.subr.bf16.mxu0 %v11586_v17  ;;  %v11632_v53 = vld [vmem:[%s18946_s3 + $0x4a0] ss:$8 sps:$4 sm:$0xff]  }
 0x201   : > { %3256 = vmatprep.subr.bf16.mxu1 %v11589_v18  ;;  %v11635_v17 = vld [vmem:[%s18946_s3 + $0x5a0] ss:$8 sps:$4 sm:$0xff]   ;;  %v11640_v18 = vld [vmem:[%s18946_s3 + $0x494] ss:$8 sps:$4 sm:$0xff]  }
 0x203   : > { %3214 = vmatpush1.bf16.msra.mxu0 %v11584_v2  ;;  %v11643_v2 = vld [vmem:[%s18946_s3 + $0x594] ss:$8 sps:$4 sm:$0xff]  }
 0x204   : > { %3257 = vmatpush1.bf16.msra.mxu1 %v11587_v12  ;;  %3215 = vmatprep.subr.bf16.mxu0 %v11592_v13  ;;  %v11638_v12 = vld [vmem:[%s18946_s3 + $0x490] ss:$8 sps:$4 sm:$0xff]  }
 0x205   : > { %3258 = vmatprep.subr.bf16.mxu1 %v11595_v36  ;;  %v11641_v13 = vld [vmem:[%s18946_s3 + $0x590] ss:$8 sps:$4 sm:$0xff]   ;;  %v11646_v36 = vld [vmem:[%s18946_s3 + $0x484] ss:$8 sps:$4 sm:$0xff]  }
 0x207   : > { %3216 = vmatpush1.bf16.msra.mxu0 %v11590_v63  ;;  %v11649_v63 = vld [vmem:[%s18946_s3 + $0x584] ss:$8 sps:$4 sm:$0xff]  }
 0x208   : > { %3259 = vmatpush1.bf16.msra.mxu1 %v11593_v30  ;;  %3217 = vmatprep.subr.bf16.mxu0 %v11598_v33  ;;  %v11644_v30 = vld [vmem:[%s18946_s3 + $0x480] ss:$8 sps:$4 sm:$0xff]  }
 0x209   : > { %3260 = vmatprep.subr.bf16.mxu1 %v11601_v16  ;;  %v11647_v33 = vld [vmem:[%s18946_s3 + $0x580] ss:$8 sps:$4 sm:$0xff]   ;;  %v11652_v16 = vld [vmem:[%s18946_s3 + $0x674] ss:$8 sps:$4 sm:$0xff]  }
 0x20b   : > { %3218 = vmatpush1.bf16.msra.mxu0 %v11596_v38  ;;  %v11655_v38 = vld [vmem:[%s18946_s3 + $0x774] ss:$8 sps:$4 sm:$0xff]  }
 0x20c   : > { %3261 = vmatpush1.bf16.msra.mxu1 %v11599_v47  ;;  %3219 = vmatprep.subr.bf16.mxu0 %v11604_v48  ;;  %v11650_v47 = vld [vmem:[%s18946_s3 + $0x670] ss:$8 sps:$4 sm:$0xff]   ;;  %v14886_v48 = vcombine.low %v14682_v51, %v14659_v23  ;;  %v11661_v23 = vld [vmem:[%s18946_s3 + $0x764] ss:$8 sps:$4 sm:$0xff]   ;;  %v11656_v51 = vld [vmem:[%s18946_s3 + $0x660] ss:$8 sps:$4 sm:$0xff]  }
 0x20d   : > { %3262 = vmatprep.subr.bf16.mxu1 %v11607_v19  ;;  %v11653_v19 = vld [vmem:[%s18946_s3 + $0x770] ss:$8 sps:$4 sm:$0xff]  }
 0x20f   : > { %3220 = vmatpush2.bf16.msra.mxu0 %v11602_v43  ;;  %v14893_v43 = vcombine.low %v14692_v46, %v14670_v24  ;;  %v11659_v24 = vld [vmem:[%s18946_s3 + $0x760] ss:$8 sps:$4 sm:$0xff]   ;;  %v11664_v46 = vld [vmem:[%s18946_s3 + $0x654] ss:$8 sps:$4 sm:$0xff]  }
 0x210   : > { %3263 = vmatpush2.bf16.msra.mxu1 %v11605_v50  ;;  %3221 = vmatprep.subr.bf16.mxu0 %v11610_v39  ;;  %v11658_v50 = vld [vmem:[%s18946_s3 + $0x664] ss:$8 sps:$4 sm:$0xff]   ;;  %v11667_v39 = vld [vmem:[%s18946_s3 + $0x754] ss:$8 sps:$4 sm:$0xff]  }
 0x211   : > { %3264 = vmatprep.subr.bf16.mxu1 %v11613_v52  ;;  %v11662_v52 = vld [vmem:[%s18946_s3 + $0x650] ss:$8 sps:$4 sm:$0xff]  }
 0x213   : > { %3222 = vmatpush2.bf16.msra.mxu0 %v11608_v40  ;;  %v11665_v40 = vld [vmem:[%s18946_s3 + $0x750] ss:$8 sps:$4 sm:$0xff]  }
 0x214   : > { %3265 = vmatpush2.bf16.msra.mxu1 %v11611_v62  ;;  %3223 = vmatprep.subr.bf16.mxu0 %v11616_v41  ;;  %v11670_v62 = vld [vmem:[%s18946_s3 + $0x644] ss:$8 sps:$4 sm:$0xff]  }
 0x215   : > { %3266 = vmatprep.subr.bf16.mxu1 %v11619_v49  ;;  %v11673_v41 = vld [vmem:[%s18946_s3 + $0x744] ss:$8 sps:$4 sm:$0xff]   ;;  %v11668_v49 = vld [vmem:[%s18946_s3 + $0x640] ss:$8 sps:$4 sm:$0xff]  }
 0x217   : > { %3224 = vmatpush2.bf16.msra.mxu0 %v11614_v44  ;;  %v11671_v44 = vld [vmem:[%s18946_s3 + $0x740] ss:$8 sps:$4 sm:$0xff]  }
 0x218   : > { %3267 = vmatpush2.bf16.msra.mxu1 %v11617_v31  ;;  %3225 = vmatprep.subr.bf16.mxu0 %v11622_v1  ;;  %v11676_v31 = vld [vmem:[%s18946_s3 + $0x634] ss:$8 sps:$4 sm:$0xff]  }
 0x219   : > { %3268 = vmatprep.subr.bf16.mxu1 %v11625_v42  ;;  %v11679_v1 = vld [vmem:[%s18946_s3 + $0x734] ss:$8 sps:$4 sm:$0xff]   ;;  %v11674_v42 = vld [vmem:[%s18946_s3 + $0x630] ss:$8 sps:$4 sm:$0xff]  }
 0x21b   : > { %3226 = vmatpush2.bf16.msra.mxu0 %v11620_v61  ;;  %v11677_v61 = vld [vmem:[%s18946_s3 + $0x730] ss:$8 sps:$4 sm:$0xff]  }
 0x21c   : > { %3269 = vmatpush2.bf16.msra.mxu1 %v11623_v58  ;;  %3227 = vmatprep.subr.bf16.mxu0 %v11628_v32  ;;  %v11682_v58 = vld [vmem:[%s18946_s3 + $0x624] ss:$8 sps:$4 sm:$0xff]  }
 0x21d   : > { %3270 = vmatprep.subr.bf16.mxu1 %v11631_v60  ;;  %v11685_v32 = vld [vmem:[%s18946_s3 + $0x724] ss:$8 sps:$4 sm:$0xff]   ;;  %v11680_v60 = vld [vmem:[%s18946_s3 + $0x620] ss:$8 sps:$4 sm:$0xff]  }
 0x21f   : > { %3228 = vmatpush2.bf16.msra.mxu0 %v11626_v3  ;;  %v11683_v3 = vld [vmem:[%s18946_s3 + $0x720] ss:$8 sps:$4 sm:$0xff]  }
 0x220   : > { %3271 = vmatpush2.bf16.msra.mxu1 %v11629_v4  ;;  %3229 = vmatprep.subr.bf16.mxu0 %v11634_v9  ;;  %v11688_v4 = vld [vmem:[%s18946_s3 + $0x614] ss:$8 sps:$4 sm:$0xff]  }
 0x221   : > { %3272 = vmatprep.subr.bf16.mxu1 %v11637_v27  ;;  %v11691_v9 = vld [vmem:[%s18946_s3 + $0x714] ss:$8 sps:$4 sm:$0xff]   ;;  %v11686_v27 = vld [vmem:[%s18946_s3 + $0x610] ss:$8 sps:$4 sm:$0xff]  }
 0x223   : > { %3230 = vmatpush2.bf16.msra.mxu0 %v11632_v53  ;;  %v11689_v53 = vld [vmem:[%s18946_s3 + $0x710] ss:$8 sps:$4 sm:$0xff]  }
 0x224   : > { %3273 = vmatpush2.bf16.msra.mxu1 %v11635_v17  ;;  %3231 = vmatprep.subr.bf16.mxu0 %v11640_v18  ;;  %v11694_v17 = vld [vmem:[%s18946_s3 + $0x604] ss:$8 sps:$4 sm:$0xff]  }
 0x225   : > { %3274 = vmatprep.subr.bf16.mxu1 %v11643_v2  ;;  %v11697_v18 = vld [vmem:[%s18946_s3 + $0x704] ss:$8 sps:$4 sm:$0xff]   ;;  %v11692_v2 = vld [vmem:[%s18946_s3 + $0x600] ss:$8 sps:$4 sm:$0xff]  }
 0x227   : > { %3232 = vmatpush2.bf16.msra.mxu0 %v11638_v12  ;;  %v11695_v12 = vld [vmem:[%s18946_s3 + $0x700] ss:$8 sps:$4 sm:$0xff]  }
 0x228   : > { %3275 = vmatpush2.bf16.msra.mxu1 %v11641_v13  ;;  %3233 = vmatprep.subr.bf16.mxu0 %v11646_v36  ;;  %v11700_v13 = vld [vmem:[%s18946_s3 + $0x6f4] ss:$8 sps:$4 sm:$0xff]  }
 0x229   : > { %3276 = vmatprep.subr.bf16.mxu1 %v11649_v63  ;;  %v11703_v36 = vld [vmem:[%s18946_s3 + $0x7f4] ss:$8 sps:$4 sm:$0xff]   ;;  %v11698_v63 = vld [vmem:[%s18946_s3 + $0x6f0] ss:$8 sps:$4 sm:$0xff]  }
 0x22b   : > { %3234 = vmatpush2.bf16.msra.mxu0 %v11644_v30  ;;  %v11701_v30 = vld [vmem:[%s18946_s3 + $0x7f0] ss:$8 sps:$4 sm:$0xff]  }
 0x22c   : > { %3277 = vmatpush2.bf16.msra.mxu1 %v11647_v33  ;;  %3694 = vmatprep.subr.bf16.mxu0 %v11652_v16  ;;  %v11706_v33 = vld [vmem:[%s18946_s3 + $0x6e4] ss:$8 sps:$4 sm:$0xff]  }
 0x22d   : > { %3737 = vmatprep.subr.bf16.mxu1 %v11655_v38  ;;  %v11709_v16 = vld [vmem:[%s18946_s3 + $0x7e4] ss:$8 sps:$4 sm:$0xff]   ;;  %v11704_v38 = vld [vmem:[%s18946_s3 + $0x6e0] ss:$8 sps:$4 sm:$0xff]  }
 0x22e   : > { %3236 = vmatmul.mubr.bf16.vlgmr.msra.gmra.mxu0 %v14886_v48 }
 0x22f   : > { %3279 = vmatmul.mubr.bf16.vlgmr.msra.gmra.mxu1 %v14893_v43  ;;  %3695 = vmatpush1.bf16.msra.mxu0 %v11650_v47  ;;  %v11707_v47 = vld [vmem:[%s18946_s3 + $0x7e0] ss:$8 sps:$4 sm:$0xff]  }
 0x230   : > { %3726 = vmatprep.mubr.bf16.mxu0 %v14470_v7  ;;  %3738 = vmatpush1.bf16.msra.mxu1 %v11653_v19  ;;  %v11712_v19 = vld [vmem:[%s18946_s3 + $0x6d4] ss:$8 sps:$4 sm:$0xff]  }
 0x231   : > { %3769 = vmatprep.mubr.bf16.mxu1 %v14476_v25  ;;  %3696 = vmatprep.subr.bf16.mxu0 %v11658_v50  ;;  %v11715_v50 = vld [vmem:[%s18946_s3 + $0x7d4] ss:$8 sps:$4 sm:$0xff]  }
 0x232   : > { %3739 = vmatprep.subr.bf16.mxu1 %v11661_v23  ;;  %v11710_v23 = vld [vmem:[%s18946_s3 + $0x6d0] ss:$8 sps:$4 sm:$0xff]  }
 0x233   : > { %3697 = vmatpush1.bf16.msra.mxu0 %v11656_v51  ;;  %v11713_v51 = vld [vmem:[%s18946_s3 + $0x7d0] ss:$8 sps:$4 sm:$0xff]  }
 0x234   : > { %3740 = vmatpush1.bf16.msra.mxu1 %v11659_v24  ;;  %3698 = vmatprep.subr.bf16.mxu0 %v11664_v46  ;;  %v11718_v24 = vld [vmem:[%s18946_s3 + $0x6c4] ss:$8 sps:$4 sm:$0xff]  }
 0x235   : > { %3741 = vmatprep.subr.bf16.mxu1 %v11667_v39  ;;  %v11721_v46 = vld [vmem:[%s18946_s3 + $0x7c4] ss:$8 sps:$4 sm:$0xff]   ;;  %v11716_v39 = vld [vmem:[%s18946_s3 + $0x6c0] ss:$8 sps:$4 sm:$0xff]  }
 0x237   : > { %3699 = vmatpush1.bf16.msra.mxu0 %v11662_v52  ;;  %v11719_v52 = vld [vmem:[%s18946_s3 + $0x7c0] ss:$8 sps:$4 sm:$0xff]  }
 0x238   : > { %3742 = vmatpush1.bf16.msra.mxu1 %v11665_v40  ;;  %3700 = vmatprep.subr.bf16.mxu0 %v11670_v62  ;;  %v11724_v40 = vld [vmem:[%s18946_s3 + $0x6b4] ss:$8 sps:$4 sm:$0xff]  }
 0x239   : > { %3743 = vmatprep.subr.bf16.mxu1 %v11673_v41  ;;  %v11727_v62 = vld [vmem:[%s18946_s3 + $0x7b4] ss:$8 sps:$4 sm:$0xff]   ;;  %v11722_v41 = vld [vmem:[%s18946_s3 + $0x6b0] ss:$8 sps:$4 sm:$0xff]  }
 0x23b   : > { %3701 = vmatpush1.bf16.msra.mxu0 %v11668_v49  ;;  %v11725_v49 = vld [vmem:[%s18946_s3 + $0x7b0] ss:$8 sps:$4 sm:$0xff]  }
 0x23c   : > { %3744 = vmatpush1.bf16.msra.mxu1 %v11671_v44  ;;  %3702 = vmatprep.subr.bf16.mxu0 %v11676_v31  ;;  %v11730_v44 = vld [vmem:[%s18946_s3 + $0x6a4] ss:$8 sps:$4 sm:$0xff]  }
 0x23d   : > { %3745 = vmatprep.subr.bf16.mxu1 %v11679_v1  ;;  %v11733_v31 = vld [vmem:[%s18946_s3 + $0x7a4] ss:$8 sps:$4 sm:$0xff]   ;;  %v11728_v1 = vld [vmem:[%s18946_s3 + $0x6a0] ss:$8 sps:$4 sm:$0xff]  }
 0x23f   : > { %3703 = vmatpush1.bf16.msra.mxu0 %v11674_v42  ;;  %v11731_v42 = vld [vmem:[%s18946_s3 + $0x7a0] ss:$8 sps:$4 sm:$0xff]  }
 0x240   : > { %3746 = vmatpush1.bf16.msra.mxu1 %v11677_v61  ;;  %3704 = vmatprep.subr.bf16.mxu0 %v11682_v58  ;;  %v11736_v61 = vld [vmem:[%s18946_s3 + $0x694] ss:$8 sps:$4 sm:$0xff]  }
 0x241   : > { %3747 = vmatprep.subr.bf16.mxu1 %v11685_v32  ;;  %v11739_v58 = vld [vmem:[%s18946_s3 + $0x794] ss:$8 sps:$4 sm:$0xff]   ;;  %v11734_v32 = vld [vmem:[%s18946_s3 + $0x690] ss:$8 sps:$4 sm:$0xff]  }
 0x243   : > { %3705 = vmatpush1.bf16.msra.mxu0 %v11680_v60  ;;  %v11737_v60 = vld [vmem:[%s18946_s3 + $0x790] ss:$8 sps:$4 sm:$0xff]  }
 0x244   : > { %3748 = vmatpush1.bf16.msra.mxu1 %v11683_v3  ;;  %3706 = vmatprep.subr.bf16.mxu0 %v11688_v4  ;;  %v11742_v3 = vld [vmem:[%s18946_s3 + $0x684] ss:$8 sps:$4 sm:$0xff]  }
 0x245   : > { %3749 = vmatprep.subr.bf16.mxu1 %v11691_v9  ;;  %v11745_v4 = vld [vmem:[%s18946_s3 + $0x784] ss:$8 sps:$4 sm:$0xff]   ;;  %v11740_v9 = vld [vmem:[%s18946_s3 + $0x680] ss:$8 sps:$4 sm:$0xff]  }
 0x247   : > { %3707 = vmatpush1.bf16.msra.mxu0 %v11686_v27  ;;  %v11743_v27 = vld [vmem:[%s18946_s3 + $0x780] ss:$8 sps:$4 sm:$0xff]  }
 0x248   : > { %3750 = vmatpush1.bf16.msra.mxu1 %v11689_v53  ;;  %3708 = vmatprep.subr.bf16.mxu0 %v11694_v17  ;;  %v11748_v53 = vld [vmem:[%s18946_s3 + $0x874] ss:$8 sps:$4 sm:$0xff]  }
 0x249   : > { %3751 = vmatprep.subr.bf16.mxu1 %v11697_v18  ;;  %v11751_v17 = vld [vmem:[%s18946_s3 + $0x974] ss:$8 sps:$4 sm:$0xff]   ;;  %v11746_v18 = vld [vmem:[%s18946_s3 + $0x870] ss:$8 sps:$4 sm:$0xff]  }
 0x24b   : > { %3709 = vmatpush1.bf16.msra.mxu0 %v11692_v2  ;;  %v11749_v2 = vld [vmem:[%s18946_s3 + $0x970] ss:$8 sps:$4 sm:$0xff]  }
 0x24c   : > { %3752 = vmatpush1.bf16.msra.mxu1 %v11695_v12  ;;  %3710 = vmatprep.subr.bf16.mxu0 %v11700_v13  ;;  %v11754_v12 = vld [vmem:[%s18946_s3 + $0x864] ss:$8 sps:$4 sm:$0xff]  }
 0x24d   : > { %3753 = vmatprep.subr.bf16.mxu1 %v11703_v36  ;;  %v11757_v36 = vld [vmem:[%s18946_s3 + $0x964] ss:$8 sps:$4 sm:$0xff]  }
 0x24f   : > { %3711 = vmatpush2.bf16.msra.mxu0 %v11698_v63 }
 0x250   : > { %3754 = vmatpush2.bf16.msra.mxu1 %v11701_v30  ;;  %3712 = vmatprep.subr.bf16.mxu0 %v11706_v33  ;;  %v11752_v30 = vld [vmem:[%s18946_s3 + $0x860] ss:$8 sps:$4 sm:$0xff]  }
 0x251   : > { %3755 = vmatprep.subr.bf16.mxu1 %v11709_v16 }
 0x253   : > { %3713 = vmatpush2.bf16.msra.mxu0 %v11704_v38  ;;  %v11755_v38 = vld [vmem:[%s18946_s3 + $0x960] ss:$8 sps:$4 sm:$0xff]  }
 0x254   : > { %3756 = vmatpush2.bf16.msra.mxu1 %v11707_v47  ;;  %3714 = vmatprep.subr.bf16.mxu0 %v11712_v19  ;;  %v11760_v47 = vld [vmem:[%s18946_s3 + $0x854] ss:$8 sps:$4 sm:$0xff]  }
 0x255   : > { %3757 = vmatprep.subr.bf16.mxu1 %v11715_v50  ;;  %v11763_v50 = vld [vmem:[%s18946_s3 + $0x954] ss:$8 sps:$4 sm:$0xff]  }
 0x257   : > { %3715 = vmatpush2.bf16.msra.mxu0 %v11710_v23 }
 0x258   : > { %3758 = vmatpush2.bf16.msra.mxu1 %v11713_v51  ;;  %3716 = vmatprep.subr.bf16.mxu0 %v11718_v24 }
 0x259   : > { %3759 = vmatprep.subr.bf16.mxu1 %v11721_v46  ;;  %v11758_v46 = vld [vmem:[%s18946_s3 + $0x850] ss:$8 sps:$4 sm:$0xff]  }
 0x25b   : > { %3717 = vmatpush2.bf16.msra.mxu0 %v11716_v39 }
 0x25c   : > { %3760 = vmatpush2.bf16.msra.mxu1 %v11719_v52  ;;  %3718 = vmatprep.subr.bf16.mxu0 %v11724_v40  ;;  %v11761_v40 = vld [vmem:[%s18946_s3 + $0x950] ss:$8 sps:$4 sm:$0xff]  }
 0x25d   : > { %3761 = vmatprep.subr.bf16.mxu1 %v11727_v62  ;;  %v11766_v62 = vld [vmem:[%s18946_s3 + $0x844] ss:$8 sps:$4 sm:$0xff]  }
 0x25f   : > { %3719 = vmatpush2.bf16.msra.mxu0 %v11722_v41 }
 0x260   : > { %3762 = vmatpush2.bf16.msra.mxu1 %v11725_v49  ;;  %3720 = vmatprep.subr.bf16.mxu0 %v11730_v44  ;;  %v11769_v49 = vld [vmem:[%s18946_s3 + $0x944] ss:$8 sps:$4 sm:$0xff]  }
 0x261   : > { %3763 = vmatprep.subr.bf16.mxu1 %v11733_v31  ;;  %v11764_v31 = vld [vmem:[%s18946_s3 + $0x840] ss:$8 sps:$4 sm:$0xff]  }
 0x263   : > { %3721 = vmatpush2.bf16.msra.mxu0 %v11728_v1  ;;  %v11767_v1 = vld [vmem:[%s18946_s3 + $0x940] ss:$8 sps:$4 sm:$0xff]  }
 0x264   : > { %3764 = vmatpush2.bf16.msra.mxu1 %v11731_v42  ;;  %3722 = vmatprep.subr.bf16.mxu0 %v11736_v61  ;;  %v11772_v42 = vld [vmem:[%s18946_s3 + $0x834] ss:$8 sps:$4 sm:$0xff]  }
 0x265   : > { %3765 = vmatprep.subr.bf16.mxu1 %v11739_v58  ;;  %v11775_v61 = vld [vmem:[%s18946_s3 + $0x934] ss:$8 sps:$4 sm:$0xff]   ;;  %v11770_v58 = vld [vmem:[%s18946_s3 + $0x830] ss:$8 sps:$4 sm:$0xff]  }
 0x267   : > { %3723 = vmatpush2.bf16.msra.mxu0 %v11734_v32  ;;  %v11773_v32 = vld [vmem:[%s18946_s3 + $0x930] ss:$8 sps:$4 sm:$0xff]  }
 0x268   : > { %3766 = vmatpush2.bf16.msra.mxu1 %v11737_v60  ;;  %3724 = vmatprep.subr.bf16.mxu0 %v11742_v3  ;;  %v11778_v60 = vld [vmem:[%s18946_s3 + $0x824] ss:$8 sps:$4 sm:$0xff]  }
 0x269   : > { %3767 = vmatprep.subr.bf16.mxu1 %v11745_v4  ;;  %v11781_v3 = vld [vmem:[%s18946_s3 + $0x924] ss:$8 sps:$4 sm:$0xff]   ;;  %v11776_v4 = vld [vmem:[%s18946_s3 + $0x820] ss:$8 sps:$4 sm:$0xff]  }
 0x26b   : > { %3725 = vmatpush2.bf16.msra.mxu0 %v11740_v9  ;;  %v11779_v9 = vld [vmem:[%s18946_s3 + $0x920] ss:$8 sps:$4 sm:$0xff]  }
 0x26c   : > { %3768 = vmatpush2.bf16.msra.mxu1 %v11743_v27  ;;  %4185 = vmatprep.subr.bf16.mxu0 %v11748_v53  ;;  %v11784_v27 = vld [vmem:[%s18946_s3 + $0x814] ss:$8 sps:$4 sm:$0xff]  }
 0x26d   : > { %4228 = vmatprep.subr.bf16.mxu1 %v11751_v17  ;;  %v11787_v53 = vld [vmem:[%s18946_s3 + $0x914] ss:$8 sps:$4 sm:$0xff]   ;;  %v11782_v17 = vld [vmem:[%s18946_s3 + $0x810] ss:$8 sps:$4 sm:$0xff]  }
 0x26e   : > { %3727 = vmatmul.mubr.bf16.vlgmr.msra.gmra.mxu0 %v14474_v22  ;;  %v2324_v13 = vpop.f32.mrf.mxu0 }
 0x26f   : > { %3770 = vmatmul.mubr.bf16.vlgmr.msra.gmra.mxu1 %v14478_v29  ;;  %v2367_v63 = vpop.f32.mrf.mxu1  ;;  %4186 = vmatpush1.bf16.msra.mxu0 %v11746_v18  ;;  %v11785_v18 = vld [vmem:[%s18946_s3 + $0x910] ss:$8 sps:$4 sm:$0xff]  }
 0x270   : > { %v15102_v33 = vadd.f32 %v2367_v63, %v2324_v13  ;;  %4217 = vmatprep.mubr.bf16.mxu0 %v14363_v28  ;;  %4229 = vmatpush1.bf16.msra.mxu1 %v11749_v2  ;;  %v2326_v16 = vpop.f32.mrf.mxu0  ;;  %v11790_v2 = vld [vmem:[%s18946_s3 + $0x804] ss:$8 sps:$4 sm:$0xff]   ;;  %v11788_v13 = vld [vmem:[%s18946_s3 + $0x800] ss:$8 sps:$4 sm:$0xff]   ;;  %v11796_v63 = vld [vmem:[%s18946_s3 + $0x8f4] ss:$8 sps:$4 sm:$0xff]  }
 0x271   : > { %4260 = vmatprep.mubr.bf16.mxu1 %v14427_v56  ;;  %v2369_v19 = vpop.f32.mrf.mxu1  ;;  %4187 = vmatprep.subr.bf16.mxu0 %v11754_v12  ;;  %v11793_v12 = vld [vmem:[%s18946_s3 + $0x904] ss:$8 sps:$4 sm:$0xff]  }
 0x272   : > { %v15115_v23 = vadd.f32 %v2369_v19, %v2326_v16  ;;  %4230 = vmatprep.subr.bf16.mxu1 %v11757_v36  ;;  %v2328_v51 = vpop.f32.mrf.mxu0  ;;  %v11791_v36 = vld [vmem:[%s18946_s3 + $0x900] ss:$8 sps:$4 sm:$0xff]   ;;  %v11794_v16 = vld [vmem:[%s18946_s3 + $0x8f0] ss:$8 sps:$4 sm:$0xff]   ;;  %v11805_v19 = vld [vmem:[%s18946_s3 + $0x9e4] ss:$8 sps:$4 sm:$0xff]  }
 0x273   : > { %v2371_v24 = vpop.f32.mrf.mxu1  ;;  %4188 = vmatpush1.bf16.msra.mxu0 %v11752_v30  ;;  %v11799_v30 = vld [vmem:[%s18946_s3 + $0x9f4] ss:$8 sps:$4 sm:$0xff]  }
 0x274   : > { %v15120_v39 = vadd.f32 %v2371_v24, %v2328_v51  ;;  %4231 = vmatpush1.bf16.msra.mxu1 %v11755_v38  ;;  %v2330_v52 = vpop.f32.mrf.mxu0  ;;  %4189 = vmatprep.subr.bf16.mxu0 %v11760_v47  ;;  %v11797_v38 = vld [vmem:[%s18946_s3 + $0x9f0] ss:$8 sps:$4 sm:$0xff]   ;;  %v11802_v47 = vld [vmem:[%s18946_s3 + $0x8e4] ss:$8 sps:$4 sm:$0xff]   ;;  %v11803_v51 = vld [vmem:[%s18946_s3 + $0x9e0] ss:$8 sps:$4 sm:$0xff]  }
 0x275   : > { %v2373_v41 = vpop.f32.mrf.mxu1  ;;  %4232 = vmatprep.subr.bf16.mxu1 %v11763_v50  ;;  %v11800_v50 = vld [vmem:[%s18946_s3 + $0x8e0] ss:$8 sps:$4 sm:$0xff]   ;;  %v11808_v24 = vld [vmem:[%s18946_s3 + $0x8d4] ss:$8 sps:$4 sm:$0xff]  }
 0x276   : > { %v15131_v44 = vadd.f32 %v2373_v41, %v2330_v52  ;;  %v11806_v52 = vld [vmem:[%s18946_s3 + $0x8d0] ss:$8 sps:$4 sm:$0xff]   ;;  %v11817_v41 = vld [vmem:[%s18946_s3 + $0x9c4] ss:$8 sps:$4 sm:$0xff]  }
 0x277   : > { %4190 = vmatpush1.bf16.msra.mxu0 %v11758_v46  ;;  %v11811_v46 = vld [vmem:[%s18946_s3 + $0x9d4] ss:$8 sps:$4 sm:$0xff]  }
 0x278   : > { %4233 = vmatpush1.bf16.msra.mxu1 %v11761_v40  ;;  %4191 = vmatprep.subr.bf16.mxu0 %v11766_v62  ;;  %v11809_v40 = vld [vmem:[%s18946_s3 + $0x9d0] ss:$8 sps:$4 sm:$0xff]   ;;  %v11814_v62 = vld [vmem:[%s18946_s3 + $0x8c4] ss:$8 sps:$4 sm:$0xff]  }
 0x279   : > { %4234 = vmatprep.subr.bf16.mxu1 %v11769_v49  ;;  %v11812_v49 = vld [vmem:[%s18946_s3 + $0x8c0] ss:$8 sps:$4 sm:$0xff]  }
 0x27b   : > { %4192 = vmatpush1.bf16.msra.mxu0 %v11764_v31  ;;  %v11815_v31 = vld [vmem:[%s18946_s3 + $0x9c0] ss:$8 sps:$4 sm:$0xff]  }
 0x27c   : > { %4235 = vmatpush1.bf16.msra.mxu1 %v11767_v1  ;;  %4193 = vmatprep.subr.bf16.mxu0 %v11772_v42  ;;  %v11820_v1 = vld [vmem:[%s18946_s3 + $0x8b4] ss:$8 sps:$4 sm:$0xff]  }
 0x27d   : > { %4236 = vmatprep.subr.bf16.mxu1 %v11775_v61  ;;  %v11823_v42 = vld [vmem:[%s18946_s3 + $0x9b4] ss:$8 sps:$4 sm:$0xff]   ;;  %v11818_v61 = vld [vmem:[%s18946_s3 + $0x8b0] ss:$8 sps:$4 sm:$0xff]  }
 0x27f   : > { %4194 = vmatpush1.bf16.msra.mxu0 %v11770_v58  ;;  %v11821_v58 = vld [vmem:[%s18946_s3 + $0x9b0] ss:$8 sps:$4 sm:$0xff]  }
 0x280   : > { %4237 = vmatpush1.bf16.msra.mxu1 %v11773_v32  ;;  %4195 = vmatprep.subr.bf16.mxu0 %v11778_v60  ;;  %v11826_v32 = vld [vmem:[%s18946_s3 + $0x8a4] ss:$8 sps:$4 sm:$0xff]  }
 0x281   : > { %4238 = vmatprep.subr.bf16.mxu1 %v11781_v3  ;;  %v11829_v60 = vld [vmem:[%s18946_s3 + $0x9a4] ss:$8 sps:$4 sm:$0xff]   ;;  %v11824_v3 = vld [vmem:[%s18946_s3 + $0x8a0] ss:$8 sps:$4 sm:$0xff]  }
 0x283   : > { %4196 = vmatpush1.bf16.msra.mxu0 %v11776_v4  ;;  %v11827_v4 = vld [vmem:[%s18946_s3 + $0x9a0] ss:$8 sps:$4 sm:$0xff]  }
 0x284   : > { %4239 = vmatpush1.bf16.msra.mxu1 %v11779_v9  ;;  %4197 = vmatprep.subr.bf16.mxu0 %v11784_v27  ;;  %v11832_v9 = vld [vmem:[%s18946_s3 + $0x894] ss:$8 sps:$4 sm:$0xff]  }
 0x285   : > { %4240 = vmatprep.subr.bf16.mxu1 %v11787_v53  ;;  %v11835_v27 = vld [vmem:[%s18946_s3 + $0x994] ss:$8 sps:$4 sm:$0xff]   ;;  %v11830_v53 = vld [vmem:[%s18946_s3 + $0x890] ss:$8 sps:$4 sm:$0xff]  }
 0x287   : > { %4198 = vmatpush1.bf16.msra.mxu0 %v11782_v17  ;;  %v11833_v17 = vld [vmem:[%s18946_s3 + $0x990] ss:$8 sps:$4 sm:$0xff]  }
 0x288   : > { %4241 = vmatpush1.bf16.msra.mxu1 %v11785_v18  ;;  %4199 = vmatprep.subr.bf16.mxu0 %v11790_v2  ;;  %v11838_v18 = vld [vmem:[%s18946_s3 + $0x884] ss:$8 sps:$4 sm:$0xff]  }
 0x289   : > { %4242 = vmatprep.subr.bf16.mxu1 %v11793_v12  ;;  %v11841_v2 = vld [vmem:[%s18946_s3 + $0x984] ss:$8 sps:$4 sm:$0xff]   ;;  %v11836_v12 = vld [vmem:[%s18946_s3 + $0x880] ss:$8 sps:$4 sm:$0xff]  }
 0x28b   : > { %4200 = vmatpush1.bf16.msra.mxu0 %v11788_v13  ;;  %v11839_v13 = vld [vmem:[%s18946_s3 + $0x980] ss:$8 sps:$4 sm:$0xff]  }
 0x28c   : > { %4243 = vmatpush1.bf16.msra.mxu1 %v11791_v36  ;;  %4201 = vmatprep.subr.bf16.mxu0 %v11796_v63  ;;  %v11844_v36 = vld [vmem:[%s18946_s3 + $0xc74] ss:$8 sps:$4 sm:$0xff]  }
 0x28d   : > { %4244 = vmatprep.subr.bf16.mxu1 %v11799_v30  ;;  %v11847_v63 = vld [vmem:[%s18946_s3 + $0xd74] ss:$8 sps:$4 sm:$0xff]   ;;  %v11842_v30 = vld [vmem:[%s18946_s3 + $0xc70] ss:$8 sps:$4 sm:$0xff]  }
 0x28f   : > { %4202 = vmatpush2.bf16.msra.mxu0 %v11794_v16  ;;  %v11845_v16 = vld [vmem:[%s18946_s3 + $0xd70] ss:$8 sps:$4 sm:$0xff]  }
 0x290   : > { %4245 = vmatpush2.bf16.msra.mxu1 %v11797_v38  ;;  %4203 = vmatprep.subr.bf16.mxu0 %v11802_v47  ;;  %v11850_v38 = vld [vmem:[%s18946_s3 + $0xc64] ss:$8 sps:$4 sm:$0xff]  }
 0x291   : > { %4246 = vmatprep.subr.bf16.mxu1 %v11805_v19  ;;  %v11853_v19 = vld [vmem:[%s18946_s3 + $0xd64] ss:$8 sps:$4 sm:$0xff]  }
 0x293   : > { %4204 = vmatpush2.bf16.msra.mxu0 %v11800_v50 }
 0x294   : > { %4247 = vmatpush2.bf16.msra.mxu1 %v11803_v51  ;;  %4205 = vmatprep.subr.bf16.mxu0 %v11808_v24  ;;  %v11848_v24 = vld [vmem:[%s18946_s3 + $0xc60] ss:$8 sps:$4 sm:$0xff]  }
 0x295   : > { %4248 = vmatprep.subr.bf16.mxu1 %v11811_v46 }
 0x297   : > { %4206 = vmatpush2.bf16.msra.mxu0 %v11806_v52  ;;  %v11851_v52 = vld [vmem:[%s18946_s3 + $0xd60] ss:$8 sps:$4 sm:$0xff]  }
 0x298   : > { %4249 = vmatpush2.bf16.msra.mxu1 %v11809_v40  ;;  %4207 = vmatprep.subr.bf16.mxu0 %v11814_v62 }
 0x299   : > { %4250 = vmatprep.subr.bf16.mxu1 %v11817_v41 }
 0x29b   : > { %4208 = vmatpush2.bf16.msra.mxu0 %v11812_v49  ;;  %v11859_v49 = vld [vmem:[%s18946_s3 + $0xd54] ss:$8 sps:$4 sm:$0xff]  }
 0x29c   : > { %4251 = vmatpush2.bf16.msra.mxu1 %v11815_v31  ;;  %4209 = vmatprep.subr.bf16.mxu0 %v11820_v1 }
 0x29d   : > { %4252 = vmatprep.subr.bf16.mxu1 %v11823_v42 }
 0x29f   : > { %4210 = vmatpush2.bf16.msra.mxu0 %v11818_v61 }
 0x2a0   : > { %4253 = vmatpush2.bf16.msra.mxu1 %v11821_v58  ;;  %4211 = vmatprep.subr.bf16.mxu0 %v11826_v32  ;;  %v11854_v58 = vld [vmem:[%s18946_s3 + $0xc50] ss:$8 sps:$4 sm:$0xff]  }
 0x2a1   : > { %4254 = vmatprep.subr.bf16.mxu1 %v11829_v60  ;;  %v11857_v32 = vld [vmem:[%s18946_s3 + $0xd50] ss:$8 sps:$4 sm:$0xff]   ;;  %v11862_v60 = vld [vmem:[%s18946_s3 + $0xc44] ss:$8 sps:$4 sm:$0xff]  }
 0x2a3   : > { %4212 = vmatpush2.bf16.msra.mxu0 %v11824_v3 }
 0x2a4   : > { %4255 = vmatpush2.bf16.msra.mxu1 %v11827_v4  ;;  %4213 = vmatprep.subr.bf16.mxu0 %v11832_v9  ;;  %v11865_v4 = vld [vmem:[%s18946_s3 + $0xd44] ss:$8 sps:$4 sm:$0xff]  }
 0x2a5   : > { %4256 = vmatprep.subr.bf16.mxu1 %v11835_v27 }
 0x2a7   : > { %4214 = vmatpush2.bf16.msra.mxu0 %v11830_v53  ;;  %v11860_v53 = vld [vmem:[%s18946_s3 + $0xc40] ss:$8 sps:$4 sm:$0xff]  }
 0x2a8   : > { %4257 = vmatpush2.bf16.msra.mxu1 %v11833_v17  ;;  %4215 = vmatprep.subr.bf16.mxu0 %v11838_v18  ;;  %v11863_v17 = vld [vmem:[%s18946_s3 + $0xd40] ss:$8 sps:$4 sm:$0xff]   ;;  %v11871_v18 = vld [vmem:[%s18946_s3 + $0xd34] ss:$8 sps:$4 sm:$0xff]  }
 0x2a9   : > { %4258 = vmatprep.subr.bf16.mxu1 %v11841_v2  ;;  %v11866_v2 = vld [vmem:[%s18946_s3 + $0xc30] ss:$8 sps:$4 sm:$0xff]  }
 0x2ab   : > { %4216 = vmatpush2.bf16.msra.mxu0 %v11836_v12  ;;  %v11869_v12 = vld [vmem:[%s18946_s3 + $0xd30] ss:$8 sps:$4 sm:$0xff]  }
 0x2ac   : > { %4259 = vmatpush2.bf16.msra.mxu1 %v11839_v13  ;;  %4725 = vmatprep.subr.bf16.mxu0 %v11844_v36  ;;  %v11874_v13 = vld [vmem:[%s18946_s3 + $0xc24] ss:$8 sps:$4 sm:$0xff]  }
 0x2ad   : > { %4768 = vmatprep.subr.bf16.mxu1 %v11847_v63  ;;  %v11877_v36 = vld [vmem:[%s18946_s3 + $0xd24] ss:$8 sps:$4 sm:$0xff]   ;;  %v11872_v63 = vld [vmem:[%s18946_s3 + $0xc20] ss:$8 sps:$4 sm:$0xff]  }
 0x2ae   : > { %v2750_v47 = vpop.f32.mrf.mxu0  ;;  %4218 = vmatmul.mubr.bf16.vlgmr.msra.gmra.mxu0 %v14429_v57 }
 0x2af   : > { %v2751_v50 = vadd.f32 %v2750_v47, %v15102_v33  ;;  %v2793_v51 = vpop.f32.mrf.mxu1  ;;  %4261 = vmatmul.mubr.bf16.vlgmr.msra.gmra.mxu1 %v14435_v59  ;;  %4726 = vmatpush1.bf16.msra.mxu0 %v11842_v30  ;;  %v11856_v33 = vld [vmem:[%s18946_s3 + $0xc54] ss:$8 sps:$4 sm:$0xff]   ;;  %v11875_v30 = vld [vmem:[%s18946_s3 + $0xd20] ss:$8 sps:$4 sm:$0xff]   ;;  %v11878_v47 = vld [vmem:[%s18946_s3 + $0xc10] ss:$8 sps:$4 sm:$0xff]  }
 0x2b0   : > { %4757 = vmatprep.mubr.bf16.mxu0 %v14366_v35  ;;  %4769 = vmatpush1.bf16.msra.mxu1 %v11845_v16  ;;  %v2752_v46 = vpop.f32.mrf.mxu0  ;;  %v11880_v16 = vld [vmem:[%s18946_s3 + $0xc14] ss:$8 sps:$4 sm:$0xff]  }
 0x2b1   : > { %v15314_v40 = vadd.f32 %v2793_v51, %v2751_v50  ;;  %4800 = vmatprep.mubr.bf16.mxu1 %v14380_v20  ;;  %v2753_v62 = vadd.f32 %v2752_v46, %v15115_v23  ;;  %v2795_v41 = vpop.f32.mrf.mxu1  ;;  %4727 = vmatprep.subr.bf16.mxu0 %v11850_v38  ;;  %v11883_v38 = vld [vmem:[%s18946_s3 + $0xd14] ss:$8 sps:$4 sm:$0xff]   ;;  %v11886_v50 = vld [vmem:[%s18946_s3 + $0xc04] ss:$8 sps:$4 sm:$0xff]   ;;  %v11887_v46 = vld [vmem:[%s18946_s3 + $0xd00] ss:$8 sps:$4 sm:$0xff]  }
 0x2b2   : > { %v2754_v31 = vpop.f32.mrf.mxu0  ;;  %4770 = vmatprep.subr.bf16.mxu1 %v11853_v19  ;;  %v11881_v19 = vld [vmem:[%s18946_s3 + $0xd10] ss:$8 sps:$4 sm:$0xff]   ;;  %v11889_v51 = vld [vmem:[%s18946_s3 + $0xd04] ss:$8 sps:$4 sm:$0xff]  }
 0x2b3   : > { %v15321_v1 = vadd.f32 %v2795_v41, %v2753_v62  ;;  %v2755_v42 = vadd.f32 %v2754_v31, %v15120_v39  ;;  %v2797_v61 = vpop.f32.mrf.mxu1  ;;  %4728 = vmatpush1.bf16.msra.mxu0 %v11848_v24  ;;  %v11884_v24 = vld [vmem:[%s18946_s3 + $0xc00] ss:$8 sps:$4 sm:$0xff]   ;;  %v11890_v62 = vld [vmem:[%s18946_s3 + $0xcf0] ss:$8 sps:$4 sm:$0xff]   ;;  %v11901_v31 = vld [vmem:[%s18946_s3 + $0xde4] ss:$8 sps:$4 sm:$0xff]  }
 0x2b4   : > { %4771 = vmatpush1.bf16.msra.mxu1 %v11851_v52  ;;  %v2756_v23 = vpop.f32.mrf.mxu0  ;;  %4729 = vmatprep.subr.bf16.mxu0 %v11856_v33  ;;  %v11892_v52 = vld [vmem:[%s18946_s3 + $0xcf4] ss:$8 sps:$4 sm:$0xff]   ;;  %v11893_v41 = vld [vmem:[%s18946_s3 + $0xdf0] ss:$8 sps:$4 sm:$0xff]  }
 0x2b5   : > { %v15333_v3 = vadd.f32 %v2797_v61, %v2755_v42  ;;  %v2757_v39 = vadd.f32 %v2756_v23, %v15131_v44  ;;  %4772 = vmatprep.subr.bf16.mxu1 %v11859_v49  ;;  %v2799_v9 = vpop.f32.mrf.mxu1  ;;  %v11868_v44 = vld [vmem:[%s18946_s3 + $0xc34] ss:$8 sps:$4 sm:$0xff]   ;;  %v11898_v49 = vld [vmem:[%s18946_s3 + $0xce4] ss:$8 sps:$4 sm:$0xff]   ;;  %v11896_v42 = vld [vmem:[%s18946_s3 + $0xce0] ss:$8 sps:$4 sm:$0xff]  }
 0x2b6   : > { %v11895_v33 = vld [vmem:[%s18946_s3 + $0xdf4] ss:$8 sps:$4 sm:$0xff]   ;;  %v11899_v61 = vld [vmem:[%s18946_s3 + $0xde0] ss:$8 sps:$4 sm:$0xff]  }
 0x2b7   : > { %v15339_v27 = vadd.f32 %v2799_v9, %v2757_v39  ;;  %4730 = vmatpush1.bf16.msra.mxu0 %v11854_v58  ;;  %v11904_v58 = vld [vmem:[%s18946_s3 + $0xcd4] ss:$8 sps:$4 sm:$0xff]   ;;  %v11910_v39 = vld [vmem:[%s18946_s3 + $0xcc4] ss:$8 sps:$4 sm:$0xff]   ;;  %v11908_v9 = vld [vmem:[%s18946_s3 + $0xcc0] ss:$8 sps:$4 sm:$0xff]  }
 0x2b8   : > { %4773 = vmatpush1.bf16.msra.mxu1 %v11857_v32  ;;  %4731 = vmatprep.subr.bf16.mxu0 %v11862_v60  ;;  %v11907_v23 = vld [vmem:[%s18946_s3 + $0xdd4] ss:$8 sps:$4 sm:$0xff]   ;;  %v11902_v32 = vld [vmem:[%s18946_s3 + $0xcd0] ss:$8 sps:$4 sm:$0xff]  }
 0x2b9   : > { %4774 = vmatprep.subr.bf16.mxu1 %v11865_v4  ;;  %v11905_v60 = vld [vmem:[%s18946_s3 + $0xdd0] ss:$8 sps:$4 sm:$0xff]   ;;  %v11913_v4 = vld [vmem:[%s18946_s3 + $0xdc4] ss:$8 sps:$4 sm:$0xff]  }
 0x2bb   : > { %4732 = vmatpush1.bf16.msra.mxu0 %v11860_v53  ;;  %v11911_v53 = vld [vmem:[%s18946_s3 + $0xdc0] ss:$8 sps:$4 sm:$0xff]  }
 0x2bc   : > { %4775 = vmatpush1.bf16.msra.mxu1 %v11863_v17  ;;  %4733 = vmatprep.subr.bf16.mxu0 %v11868_v44  ;;  %v11916_v17 = vld [vmem:[%s18946_s3 + $0xcb4] ss:$8 sps:$4 sm:$0xff]  }
 0x2bd   : > { %4776 = vmatprep.subr.bf16.mxu1 %v11871_v18  ;;  %v11919_v44 = vld [vmem:[%s18946_s3 + $0xdb4] ss:$8 sps:$4 sm:$0xff]   ;;  %v11914_v18 = vld [vmem:[%s18946_s3 + $0xcb0] ss:$8 sps:$4 sm:$0xff]  }
 0x2bf   : > { %4734 = vmatpush1.bf16.msra.mxu0 %v11866_v2  ;;  %v11917_v2 = vld [vmem:[%s18946_s3 + $0xdb0] ss:$8 sps:$4 sm:$0xff]  }
 0x2c0   : > { %4777 = vmatpush1.bf16.msra.mxu1 %v11869_v12  ;;  %4735 = vmatprep.subr.bf16.mxu0 %v11874_v13  ;;  %v11922_v12 = vld [vmem:[%s18946_s3 + $0xca4] ss:$8 sps:$4 sm:$0xff]  }
 0x2c1   : > { %4778 = vmatprep.subr.bf16.mxu1 %v11877_v36  ;;  %v11925_v13 = vld [vmem:[%s18946_s3 + $0xda4] ss:$8 sps:$4 sm:$0xff]   ;;  %v11920_v36 = vld [vmem:[%s18946_s3 + $0xca0] ss:$8 sps:$4 sm:$0xff]  }
 0x2c3   : > { %4736 = vmatpush1.bf16.msra.mxu0 %v11872_v63  ;;  %v11923_v63 = vld [vmem:[%s18946_s3 + $0xda0] ss:$8 sps:$4 sm:$0xff]  }
 0x2c4   : > { %4779 = vmatpush1.bf16.msra.mxu1 %v11875_v30  ;;  %4737 = vmatprep.subr.bf16.mxu0 %v11880_v16  ;;  %v11928_v30 = vld [vmem:[%s18946_s3 + $0xc94] ss:$8 sps:$4 sm:$0xff]  }
 0x2c5   : > { %4780 = vmatprep.subr.bf16.mxu1 %v11883_v38  ;;  %v11931_v16 = vld [vmem:[%s18946_s3 + $0xd94] ss:$8 sps:$4 sm:$0xff]   ;;  %v11926_v38 = vld [vmem:[%s18946_s3 + $0xc90] ss:$8 sps:$4 sm:$0xff]  }
 0x2c7   : > { %4738 = vmatpush1.bf16.msra.mxu0 %v11878_v47  ;;  %v11929_v47 = vld [vmem:[%s18946_s3 + $0xd90] ss:$8 sps:$4 sm:$0xff]  }
 0x2c8   : > { %4781 = vmatpush1.bf16.msra.mxu1 %v11881_v19  ;;  %4739 = vmatprep.subr.bf16.mxu0 %v11886_v50  ;;  %v11934_v19 = vld [vmem:[%s18946_s3 + $0xc84] ss:$8 sps:$4 sm:$0xff]  }
 0x2c9   : > { %4782 = vmatprep.subr.bf16.mxu1 %v11889_v51  ;;  %v11937_v50 = vld [vmem:[%s18946_s3 + $0xd84] ss:$8 sps:$4 sm:$0xff]   ;;  %v11932_v51 = vld [vmem:[%s18946_s3 + $0xc80] ss:$8 sps:$4 sm:$0xff]  }
 0x2cb   : > { %4740 = vmatpush1.bf16.msra.mxu0 %v11884_v24  ;;  %v11935_v24 = vld [vmem:[%s18946_s3 + $0xd80] ss:$8 sps:$4 sm:$0xff]  }
 0x2cc   : > { %4783 = vmatpush1.bf16.msra.mxu1 %v11887_v46  ;;  %4741 = vmatprep.subr.bf16.mxu0 %v11892_v52  ;;  %v11940_v46 = vld [vmem:[%s18946_s3 + $0xa74] ss:$8 sps:$4 sm:$0xff]  }
 0x2cd   : > { %4784 = vmatprep.subr.bf16.mxu1 %v11895_v33  ;;  %v11943_v52 = vld [vmem:[%s18946_s3 + $0xb74] ss:$8 sps:$4 sm:$0xff]   ;;  %v11938_v33 = vld [vmem:[%s18946_s3 + $0xa70] ss:$8 sps:$4 sm:$0xff]  }
 0x2cf   : > { %4742 = vmatpush2.bf16.msra.mxu0 %v11890_v62  ;;  %v11941_v62 = vld [vmem:[%s18946_s3 + $0xb70] ss:$8 sps:$4 sm:$0xff]  }
 0x2d0   : > { %4785 = vmatpush2.bf16.msra.mxu1 %v11893_v41  ;;  %4743 = vmatprep.subr.bf16.mxu0 %v11898_v49  ;;  %v11946_v41 = vld [vmem:[%s18946_s3 + $0xa64] ss:$8 sps:$4 sm:$0xff]  }
 0x2d1   : > { %4786 = vmatprep.subr.bf16.mxu1 %v11901_v31  ;;  %v11949_v31 = vld [vmem:[%s18946_s3 + $0xb64] ss:$8 sps:$4 sm:$0xff]  }
 0x2d3   : > { %4744 = vmatpush2.bf16.msra.mxu0 %v11896_v42 }
 0x2d4   : > { %4787 = vmatpush2.bf16.msra.mxu1 %v11899_v61  ;;  %4745 = vmatprep.subr.bf16.mxu0 %v11904_v58  ;;  %v11944_v61 = vld [vmem:[%s18946_s3 + $0xa60] ss:$8 sps:$4 sm:$0xff]  }
 0x2d5   : > { %4788 = vmatprep.subr.bf16.mxu1 %v11907_v23 }
 0x2d7   : > { %4746 = vmatpush2.bf16.msra.mxu0 %v11902_v32  ;;  %v11947_v32 = vld [vmem:[%s18946_s3 + $0xb60] ss:$8 sps:$4 sm:$0xff]  }
 0x2d8   : > { %4789 = vmatpush2.bf16.msra.mxu1 %v11905_v60  ;;  %4747 = vmatprep.subr.bf16.mxu0 %v11910_v39  ;;  %v11952_v60 = vld [vmem:[%s18946_s3 + $0xa54] ss:$8 sps:$4 sm:$0xff]  }
 0x2d9   : > { %4790 = vmatprep.subr.bf16.mxu1 %v11913_v4  ;;  %v11955_v4 = vld [vmem:[%s18946_s3 + $0xb54] ss:$8 sps:$4 sm:$0xff]  }
 0x2db   : > { %4748 = vmatpush2.bf16.msra.mxu0 %v11908_v9 }
 0x2dc   : > { %4791 = vmatpush2.bf16.msra.mxu1 %v11911_v53  ;;  %4749 = vmatprep.subr.bf16.mxu0 %v11916_v17 }
 0x2dd   : > { %4792 = vmatprep.subr.bf16.mxu1 %v11919_v44  ;;  %v11950_v44 = vld [vmem:[%s18946_s3 + $0xa50] ss:$8 sps:$4 sm:$0xff]  }
 0x2df   : > { %4750 = vmatpush2.bf16.msra.mxu0 %v11914_v18 }
 0x2e0   : > { %4793 = vmatpush2.bf16.msra.mxu1 %v11917_v2  ;;  %4751 = vmatprep.subr.bf16.mxu0 %v11922_v12  ;;  %v11958_v12 = vld [vmem:[%s18946_s3 + $0xa44] ss:$8 sps:$4 sm:$0xff]  }
 0x2e1   : > { %4794 = vmatprep.subr.bf16.mxu1 %v11925_v13 }
 0x2e3   : > { %4752 = vmatpush2.bf16.msra.mxu0 %v11920_v36  ;;  %v11961_v36 = vld [vmem:[%s18946_s3 + $0xb44] ss:$8 sps:$4 sm:$0xff]  }
 0x2e4   : > { %4795 = vmatpush2.bf16.msra.mxu1 %v11923_v63  ;;  %4753 = vmatprep.subr.bf16.mxu0 %v11928_v30  ;;  %v11956_v30 = vld [vmem:[%s18946_s3 + $0xa40] ss:$8 sps:$4 sm:$0xff]  }
 0x2e5   : > { %4796 = vmatprep.subr.bf16.mxu1 %v11931_v16 }
 0x2e7   : > { %4754 = vmatpush2.bf16.msra.mxu0 %v11926_v38  ;;  %v11959_v38 = vld [vmem:[%s18946_s3 + $0xb40] ss:$8 sps:$4 sm:$0xff]  }
 0x2e8   : > { %4797 = vmatpush2.bf16.msra.mxu1 %v11929_v47  ;;  %4755 = vmatprep.subr.bf16.mxu0 %v11934_v19  ;;  %v11967_v47 = vld [vmem:[%s18946_s3 + $0xb34] ss:$8 sps:$4 sm:$0xff]   ;;  %v11965_v19 = vld [vmem:[%s18946_s3 + $0xb30] ss:$8 sps:$4 sm:$0xff]  }
 0x2e9   : > { %4798 = vmatprep.subr.bf16.mxu1 %v11937_v50  ;;  %v11970_v50 = vld [vmem:[%s18946_s3 + $0xa24] ss:$8 sps:$4 sm:$0xff]  }
 0x2eb   : > { %4756 = vmatpush2.bf16.msra.mxu0 %v11932_v51  ;;  %v11973_v51 = vld [vmem:[%s18946_s3 + $0xb24] ss:$8 sps:$4 sm:$0xff]  }
 0x2ec   : > { %4799 = vmatpush2.bf16.msra.mxu1 %v11935_v24  ;;  %5131 = vmatprep.subr.bf16.mxu0 %v11940_v46  ;;  %v11968_v24 = vld [vmem:[%s18946_s3 + $0xa20] ss:$8 sps:$4 sm:$0xff]  }
 0x2ed   : > { %5174 = vmatprep.subr.bf16.mxu1 %v11943_v52  ;;  %v11971_v46 = vld [vmem:[%s18946_s3 + $0xb20] ss:$8 sps:$4 sm:$0xff]   ;;  %v11976_v52 = vld [vmem:[%s18946_s3 + $0xa14] ss:$8 sps:$4 sm:$0xff]  }
 0x2ee   : > { %v3237_v49 = vpop.f32.mrf.mxu0  ;;  %4758 = vmatmul.mubr.bf16.vlgmr.msra.gmra.mxu0 %v14383_v21 }
 0x2ef   : > { %v3280_v42 = vpop.f32.mrf.mxu1  ;;  %4801 = vmatmul.mubr.bf16.vlgmr.msra.gmra.mxu1 %v14386_v34  ;;  %5132 = vmatpush1.bf16.msra.mxu0 %v11938_v33  ;;  %v11979_v33 = vld [vmem:[%s18946_s3 + $0xb14] ss:$8 sps:$4 sm:$0xff]  }
 0x2f0   : > { %v3281_v58 = vadd.f32 %v3280_v42, %v3237_v49  ;;  %5163 = vmatprep.mubr.bf16.mxu0 %v14404_v26  ;;  %5175 = vmatpush1.bf16.msra.mxu1 %v11941_v62  ;;  %v3239_v23 = vpop.f32.mrf.mxu0  ;;  %v11974_v62 = vld [vmem:[%s18946_s3 + $0xa10] ss:$8 sps:$4 sm:$0xff]   ;;  %v11982_v49 = vld [vmem:[%s18946_s3 + $0xa04] ss:$8 sps:$4 sm:$0xff]   ;;  %v11980_v42 = vld [vmem:[%s18946_s3 + $0xa00] ss:$8 sps:$4 sm:$0xff]  }
 0x2f1   : > { %5206 = vmatprep.mubr.bf16.mxu1 %v14416_v54  ;;  %v3282_v39 = vpop.f32.mrf.mxu1  ;;  %5133 = vmatprep.subr.bf16.mxu0 %v11946_v41  ;;  %v11977_v41 = vld [vmem:[%s18946_s3 + $0xb10] ss:$8 sps:$4 sm:$0xff]  }
 0x2f2   : > { %v15526_v26 = vadd.f32 %v3281_v58, %v15314_v40  ;;  %v3283_v9 = vadd.f32 %v3282_v39, %v3239_v23  ;;  %v3241_v53 = vpop.f32.mrf.mxu0  ;;  %5176 = vmatprep.subr.bf16.mxu1 %v11949_v31  ;;  %v11953_v40 = vld [vmem:[%s18946_s3 + $0xb50] ss:$8 sps:$4 sm:$0xff]   ;;  %v11985_v31 = vld [vmem:[%s18946_s3 + $0xb04] ss:$8 sps:$4 sm:$0xff]   ;;  %v11988_v58 = vld [vmem:[%s18946_s3 + $0xaf4] ss:$8 sps:$4 sm:$0xff]  }
 0x2f3   : > { %v3284_v17 = vpop.f32.mrf.mxu1  ;;  %5134 = vmatpush1.bf16.msra.mxu0 %v11944_v61  ;;  %v11983_v61 = vld [vmem:[%s18946_s3 + $0xb00] ss:$8 sps:$4 sm:$0xff]   ;;  %v11991_v23 = vld [vmem:[%s18946_s3 + $0xbf4] ss:$8 sps:$4 sm:$0xff]   ;;  %v11994_v39 = vld [vmem:[%s18946_s3 + $0xae4] ss:$8 sps:$4 sm:$0xff]  }
 0x2f4   : > { %v15532_v54 = vadd.f32 %v3283_v9, %v15321_v1  ;;  %v3285_v18 = vadd.f32 %v3284_v17, %v3241_v53  ;;  %5177 = vmatpush1.bf16.msra.mxu1 %v11947_v32  ;;  %v3243_v2 = vpop.f32.mrf.mxu0  ;;  %5135 = vmatprep.subr.bf16.mxu0 %v11952_v60  ;;  %v11986_v32 = vld [vmem:[%s18946_s3 + $0xaf0] ss:$8 sps:$4 sm:$0xff]   ;;  %v11992_v9 = vld [vmem:[%s18946_s3 + $0xae0] ss:$8 sps:$4 sm:$0xff]   ;;  %v12000_v17 = vld [vmem:[%s18946_s3 + $0xad4] ss:$8 sps:$4 sm:$0xff]  }
 0x2f5   : > { %v3286_v13 = vpop.f32.mrf.mxu1  ;;  %5178 = vmatprep.subr.bf16.mxu1 %v11955_v4  ;;  %v11989_v60 = vld [vmem:[%s18946_s3 + $0xbf0] ss:$8 sps:$4 sm:$0xff]   ;;  %v11997_v4 = vld [vmem:[%s18946_s3 + $0xbe4] ss:$8 sps:$4 sm:$0xff]   ;;  %v11995_v53 = vld [vmem:[%s18946_s3 + $0xbe0] ss:$8 sps:$4 sm:$0xff]  }
 0x2f6   : > { %v15544_v1 = vadd.f32 %v3285_v18, %v15333_v3  ;;  %v3287_v63 = vadd.f32 %v3286_v13, %v3243_v2  ;;  %v11964_v3 = vld [vmem:[%s18946_s3 + $0xa34] ss:$8 sps:$4 sm:$0xff]   ;;  %v11998_v18 = vld [vmem:[%s18946_s3 + $0xad0] ss:$8 sps:$4 sm:$0xff]   ;;  %v12004_v13 = vld [vmem:[%s18946_s3 + $0xac0] ss:$8 sps:$4 sm:$0xff]  }
 0x2f7   : > { %5136 = vmatpush1.bf16.msra.mxu0 %v11950_v44  ;;  %v12003_v44 = vld [vmem:[%s18946_s3 + $0xbd4] ss:$8 sps:$4 sm:$0xff]   ;;  %v12001_v2 = vld [vmem:[%s18946_s3 + $0xbd0] ss:$8 sps:$4 sm:$0xff]  }
 0x2f8   : > { %v15550_v16 = vadd.f32 %v3287_v63, %v15339_v27  ;;  %5179 = vmatpush1.bf16.msra.mxu1 %v11953_v40  ;;  %5137 = vmatprep.subr.bf16.mxu0 %v11958_v12  ;;  %v11962_v27 = vld [vmem:[%s18946_s3 + $0xa30] ss:$8 sps:$4 sm:$0xff]   ;;  %v12006_v40 = vld [vmem:[%s18946_s3 + $0xac4] ss:$8 sps:$4 sm:$0xff]   ;;  %v12012_v63 = vld [vmem:[%s18946_s3 + $0xab4] ss:$8 sps:$4 sm:$0xff]  }
 0x2f9   : > { %5180 = vmatprep.subr.bf16.mxu1 %v11961_v36  ;;  %v12009_v12 = vld [vmem:[%s18946_s3 + $0xbc4] ss:$8 sps:$4 sm:$0xff]   ;;  %v12007_v36 = vld [vmem:[%s18946_s3 + $0xbc0] ss:$8 sps:$4 sm:$0xff]  }
 0x2fb   : > { %5138 = vmatpush1.bf16.msra.mxu0 %v11956_v30  ;;  %v12015_v30 = vld [vmem:[%s18946_s3 + $0xbb4] ss:$8 sps:$4 sm:$0xff]  }
 0x2fc   : > { %5181 = vmatpush1.bf16.msra.mxu1 %v11959_v38  ;;  %5139 = vmatprep.subr.bf16.mxu0 %v11964_v3  ;;  %v12010_v38 = vld [vmem:[%s18946_s3 + $0xab0] ss:$8 sps:$4 sm:$0xff]  }
 0x2fd   : > { %5182 = vmatprep.subr.bf16.mxu1 %v11967_v47  ;;  %v12013_v3 = vld [vmem:[%s18946_s3 + $0xbb0] ss:$8 sps:$4 sm:$0xff]   ;;  %v12018_v47 = vld [vmem:[%s18946_s3 + $0xaa4] ss:$8 sps:$4 sm:$0xff]  }
 0x2ff   : > { %5140 = vmatpush1.bf16.msra.mxu0 %v11962_v27  ;;  %v12021_v27 = vld [vmem:[%s18946_s3 + $0xba4] ss:$8 sps:$4 sm:$0xff]  }
 0x300   : > { %5183 = vmatpush1.bf16.msra.mxu1 %v11965_v19  ;;  %5141 = vmatprep.subr.bf16.mxu0 %v11970_v50  ;;  %v12016_v19 = vld [vmem:[%s18946_s3 + $0xaa0] ss:$8 sps:$4 sm:$0xff]  }
 0x301   : > { %5184 = vmatprep.subr.bf16.mxu1 %v11973_v51  ;;  %v12019_v50 = vld [vmem:[%s18946_s3 + $0xba0] ss:$8 sps:$4 sm:$0xff]   ;;  %v12024_v51 = vld [vmem:[%s18946_s3 + $0xa94] ss:$8 sps:$4 sm:$0xff]  }
 0x303   : > { %5142 = vmatpush1.bf16.msra.mxu0 %v11968_v24  ;;  %v12027_v24 = vld [vmem:[%s18946_s3 + $0xb94] ss:$8 sps:$4 sm:$0xff]  }
 0x304   : > { %5185 = vmatpush1.bf16.msra.mxu1 %v11971_v46  ;;  %5143 = vmatprep.subr.bf16.mxu0 %v11976_v52  ;;  %v12022_v46 = vld [vmem:[%s18946_s3 + $0xa90] ss:$8 sps:$4 sm:$0xff]  }
 0x305   : > { %5186 = vmatprep.subr.bf16.mxu1 %v11979_v33  ;;  %v12025_v52 = vld [vmem:[%s18946_s3 + $0xb90] ss:$8 sps:$4 sm:$0xff]   ;;  %v12030_v33 = vld [vmem:[%s18946_s3 + $0xa84] ss:$8 sps:$4 sm:$0xff]  }
 0x307   : > { %5144 = vmatpush1.bf16.msra.mxu0 %v11974_v62  ;;  %v12033_v62 = vld [vmem:[%s18946_s3 + $0xb84] ss:$8 sps:$4 sm:$0xff]  }
 0x308   : > { %5187 = vmatpush1.bf16.msra.mxu1 %v11977_v41  ;;  %5145 = vmatprep.subr.bf16.mxu0 %v11982_v49  ;;  %v12028_v41 = vld [vmem:[%s18946_s3 + $0xa80] ss:$8 sps:$4 sm:$0xff]  }
 0x309   : > { %5188 = vmatprep.subr.bf16.mxu1 %v11985_v31  ;;  %v12031_v49 = vld [vmem:[%s18946_s3 + $0xb80] ss:$8 sps:$4 sm:$0xff]   ;;  %v12036_v31 = vld [vmem:[%s18946_s3 + $0xe74] ss:$8 sps:$4 sm:$0xff]  }
 0x30b   : > { %5146 = vmatpush1.bf16.msra.mxu0 %v11980_v42  ;;  %v12039_v42 = vld [vmem:[%s18946_s3 + $0xf74] ss:$8 sps:$4 sm:$0xff]  }
 0x30c   : > { %5189 = vmatpush1.bf16.msra.mxu1 %v11983_v61  ;;  %5147 = vmatprep.subr.bf16.mxu0 %v11988_v58  ;;  %v12034_v61 = vld [vmem:[%s18946_s3 + $0xe70] ss:$8 sps:$4 sm:$0xff]  }
 0x30d   : > { %5190 = vmatprep.subr.bf16.mxu1 %v11991_v23  ;;  %v12037_v58 = vld [vmem:[%s18946_s3 + $0xf70] ss:$8 sps:$4 sm:$0xff]   ;;  %v12042_v23 = vld [vmem:[%s18946_s3 + $0xe64] ss:$8 sps:$4 sm:$0xff]  }
 0x30f   : > { %5148 = vmatpush2.bf16.msra.mxu0 %v11986_v32 }
 0x310   : > { %5191 = vmatpush2.bf16.msra.mxu1 %v11989_v60  ;;  %5149 = vmatprep.subr.bf16.mxu0 %v11994_v39  ;;  %v12045_v60 = vld [vmem:[%s18946_s3 + $0xf64] ss:$8 sps:$4 sm:$0xff]  }
 0x311   : > { %5192 = vmatprep.subr.bf16.mxu1 %v11997_v4  ;;  %v12040_v4 = vld [vmem:[%s18946_s3 + $0xe60] ss:$8 sps:$4 sm:$0xff]  }
 0x313   : > { %5150 = vmatpush2.bf16.msra.mxu0 %v11992_v9 }
 0x314   : > { %5193 = vmatpush2.bf16.msra.mxu1 %v11995_v53  ;;  %5151 = vmatprep.subr.bf16.mxu0 %v12000_v17  ;;  %v12048_v17 = vld [vmem:[%s18946_s3 + $0xe54] ss:$8 sps:$4 sm:$0xff]  }
 0x315   : > { %5194 = vmatprep.subr.bf16.mxu1 %v12003_v44  ;;  %v12051_v44 = vld [vmem:[%s18946_s3 + $0xf54] ss:$8 sps:$4 sm:$0xff]  }
 0x317   : > { %5152 = vmatpush2.bf16.msra.mxu0 %v11998_v18 }
 0x318   : > { %5195 = vmatpush2.bf16.msra.mxu1 %v12001_v2  ;;  %5153 = vmatprep.subr.bf16.mxu0 %v12006_v40 }
 0x319   : > { %5196 = vmatprep.subr.bf16.mxu1 %v12009_v12 }
 0x31b   : > { %5154 = vmatpush2.bf16.msra.mxu0 %v12004_v13  ;;  %v12046_v13 = vld [vmem:[%s18946_s3 + $0xe50] ss:$8 sps:$4 sm:$0xff]  }
 0x31c   : > { %5197 = vmatpush2.bf16.msra.mxu1 %v12007_v36  ;;  %5155 = vmatprep.subr.bf16.mxu0 %v12012_v63 }
 0x31d   : > { %5198 = vmatprep.subr.bf16.mxu1 %v12015_v30 }
 0x31f   : > { %5156 = vmatpush2.bf16.msra.mxu0 %v12010_v38  ;;  %v12054_v38 = vld [vmem:[%s18946_s3 + $0xe44] ss:$8 sps:$4 sm:$0xff]  }
 0x320   : > { %5199 = vmatpush2.bf16.msra.mxu1 %v12013_v3  ;;  %5157 = vmatprep.subr.bf16.mxu0 %v12018_v47  ;;  %v12057_v47 = vld [vmem:[%s18946_s3 + $0xf44] ss:$8 sps:$4 sm:$0xff]  }
 0x321   : > { %5200 = vmatprep.subr.bf16.mxu1 %v12021_v27 }
 0x323   : > { %5158 = vmatpush2.bf16.msra.mxu0 %v12016_v19  ;;  %v12052_v19 = vld [vmem:[%s18946_s3 + $0xe40] ss:$8 sps:$4 sm:$0xff]  }
 0x324   : > { %5201 = vmatpush2.bf16.msra.mxu1 %v12019_v50  ;;  %5159 = vmatprep.subr.bf16.mxu0 %v12024_v51  ;;  %v12055_v51 = vld [vmem:[%s18946_s3 + $0xf40] ss:$8 sps:$4 sm:$0xff]  }
 0x325   : > { %5202 = vmatprep.subr.bf16.mxu1 %v12027_v24  ;;  %v12063_v24 = vld [vmem:[%s18946_s3 + $0xf34] ss:$8 sps:$4 sm:$0xff]  }
 0x327   : > { %5160 = vmatpush2.bf16.msra.mxu0 %v12022_v46  ;;  %v12061_v46 = vld [vmem:[%s18946_s3 + $0xf30] ss:$8 sps:$4 sm:$0xff]  }
 0x328   : > { %5203 = vmatpush2.bf16.msra.mxu1 %v12025_v52  ;;  %5161 = vmatprep.subr.bf16.mxu0 %v12030_v33  ;;  %v12066_v52 = vld [vmem:[%s18946_s3 + $0xe24] ss:$8 sps:$4 sm:$0xff]  }
 0x329   : > { %5204 = vmatprep.subr.bf16.mxu1 %v12033_v62  ;;  %v12069_v33 = vld [vmem:[%s18946_s3 + $0xf24] ss:$8 sps:$4 sm:$0xff]   ;;  %v12064_v62 = vld [vmem:[%s18946_s3 + $0xe20] ss:$8 sps:$4 sm:$0xff]  }
 0x32b   : > { %5162 = vmatpush2.bf16.msra.mxu0 %v12028_v41  ;;  %v12067_v41 = vld [vmem:[%s18946_s3 + $0xf20] ss:$8 sps:$4 sm:$0xff]  }
 0x32c   : > { %5205 = vmatpush2.bf16.msra.mxu1 %v12031_v49  ;;  %5602 = vmatprep.subr.bf16.mxu0 %v12036_v31  ;;  %v12072_v49 = vld [vmem:[%s18946_s3 + $0xe14] ss:$8 sps:$4 sm:$0xff]  }
 0x32d   : > { %5645 = vmatprep.subr.bf16.mxu1 %v12039_v42  ;;  %v12075_v31 = vld [vmem:[%s18946_s3 + $0xf14] ss:$8 sps:$4 sm:$0xff]   ;;  %v12070_v42 = vld [vmem:[%s18946_s3 + $0xe10] ss:$8 sps:$4 sm:$0xff]  }
 0x32e   : > { %v3728_v32 = vpop.f32.mrf.mxu0  ;;  %5164 = vmatmul.mubr.bf16.vlgmr.msra.gmra.mxu0 %v14666_v15  ;;  %v12043_v15 = vld [vmem:[%s18946_s3 + $0xf60] ss:$8 sps:$4 sm:$0xff]  }
 0x32f   : > { %v3771_v39 = vpop.f32.mrf.mxu1  ;;  %5207 = vmatmul.mubr.bf16.vlgmr.msra.gmra.mxu1 %v14677_v55  ;;  %5603 = vmatpush1.bf16.msra.mxu0 %v12034_v61  ;;  %v12073_v61 = vld [vmem:[%s18946_s3 + $0xf10] ss:$8 sps:$4 sm:$0xff]  }
 0x330   : > { %v3772_v9 = vadd.f32 %v3771_v39, %v3728_v32  ;;  %5634 = vmatprep.mubr.bf16.mxu0 %v14687_v45  ;;  %5646 = vmatpush1.bf16.msra.mxu1 %v12037_v58  ;;  %v3730_v53 = vpop.f32.mrf.mxu0  ;;  %v12078_v58 = vld [vmem:[%s18946_s3 + $0xe04] ss:$8 sps:$4 sm:$0xff]   ;;  %v12076_v32 = vld [vmem:[%s18946_s3 + $0xe00] ss:$8 sps:$4 sm:$0xff]   ;;  %v12084_v39 = vld [vmem:[%s18946_s3 + $0xef4] ss:$8 sps:$4 sm:$0xff]  }
 0x331   : > { %5677 = vmatprep.mubr.bf16.mxu1 %v14697_v37  ;;  %v3773_v55 = vpop.f32.mrf.mxu1  ;;  %5604 = vmatprep.subr.bf16.mxu0 %v12042_v23  ;;  %v12081_v23 = vld [vmem:[%s18946_s3 + $0xf04] ss:$8 sps:$4 sm:$0xff]  }
 0x332   : > { %v15734_v18 = vadd.f32 %v3772_v9, %v15526_v26  ;;  %v3774_v2 = vadd.f32 %v3773_v55, %v3730_v53  ;;  %v3732_v40 = vpop.f32.mrf.mxu0  ;;  %5647 = vmatprep.subr.bf16.mxu1 %v12045_v60  ;;  %v12049_v26 = vld [vmem:[%s18946_s3 + $0xf50] ss:$8 sps:$4 sm:$0xff]   ;;  %v12079_v60 = vld [vmem:[%s18946_s3 + $0xf00] ss:$8 sps:$4 sm:$0xff]  }
 0x333   : > { %v3775_v12 = vpop.f32.mrf.mxu1  ;;  %5605 = vmatpush1.bf16.msra.mxu0 %v12040_v4  ;;  %v12087_v4 = vld [vmem:[%s18946_s3 + $0xff4] ss:$8 sps:$4 sm:$0xff]   ;;  %v12082_v9 = vld [vmem:[%s18946_s3 + $0xef0] ss:$8 sps:$4 sm:$0xff]   ;;  %v12088_v55 = vld [vmem:[%s18946_s3 + $0xee0] ss:$8 sps:$4 sm:$0xff]  }
 0x334   : > { %v15740_v36 = vadd.f32 %v3774_v2, %v15532_v54  ;;  %v3776_v63 = vadd.f32 %v3775_v12, %v3732_v40  ;;  %5648 = vmatpush1.bf16.msra.mxu1 %v12043_v15  ;;  %v3734_v30 = vpop.f32.mrf.mxu0  ;;  %5606 = vmatprep.subr.bf16.mxu0 %v12048_v17  ;;  %v12085_v53 = vld [vmem:[%s18946_s3 + $0xff0] ss:$8 sps:$4 sm:$0xff]   ;;  %v12090_v15 = vld [vmem:[%s18946_s3 + $0xee4] ss:$8 sps:$4 sm:$0xff]   ;;  %v12096_v2 = vld [vmem:[%s18946_s3 + $0xed4] ss:$8 sps:$4 sm:$0xff]  }
 0x335   : > { %v3777_v3 = vpop.f32.mrf.mxu1  ;;  %5649 = vmatprep.subr.bf16.mxu1 %v12051_v44  ;;  %v12093_v17 = vld [vmem:[%s18946_s3 + $0xfe4] ss:$8 sps:$4 sm:$0xff]   ;;  %v12091_v44 = vld [vmem:[%s18946_s3 + $0xfe0] ss:$8 sps:$4 sm:$0xff]   ;;  %v12099_v40 = vld [vmem:[%s18946_s3 + $0xfd4] ss:$8 sps:$4 sm:$0xff]  }
 0x336   : > { %v15752_v54 = vadd.f32 %v3776_v63, %v15544_v1  ;;  %v3778_v27 = vadd.f32 %v3777_v3, %v3734_v30  ;;  %v12060_v1 = vld [vmem:[%s18946_s3 + $0xe34] ss:$8 sps:$4 sm:$0xff]   ;;  %v12094_v12 = vld [vmem:[%s18946_s3 + $0xed0] ss:$8 sps:$4 sm:$0xff]   ;;  %v12102_v63 = vld [vmem:[%s18946_s3 + $0xec4] ss:$8 sps:$4 sm:$0xff]  }
 0x337   : > { %5607 = vmatpush1.bf16.msra.mxu0 %v12046_v13  ;;  %v12097_v13 = vld [vmem:[%s18946_s3 + $0xfd0] ss:$8 sps:$4 sm:$0xff]   ;;  %v12105_v30 = vld [vmem:[%s18946_s3 + $0xfc4] ss:$8 sps:$4 sm:$0xff]   ;;  %v12108_v3 = vld [vmem:[%s18946_s3 + $0xeb4] ss:$8 sps:$4 sm:$0xff]  }
 0x338   : > { %v15758_v50 = vadd.f32 %v3778_v27, %v15550_v16  ;;  %5650 = vmatpush1.bf16.msra.mxu1 %v12049_v26  ;;  %5608 = vmatprep.subr.bf16.mxu0 %v12054_v38  ;;  %v12058_v16 = vld [vmem:[%s18946_s3 + $0xe30] ss:$8 sps:$4 sm:$0xff]   ;;  %v12100_v26 = vld [vmem:[%s18946_s3 + $0xec0] ss:$8 sps:$4 sm:$0xff]  }
 0x339   : > { %5651 = vmatprep.subr.bf16.mxu1 %v12057_v47  ;;  %v12103_v38 = vld [vmem:[%s18946_s3 + $0xfc0] ss:$8 sps:$4 sm:$0xff]   ;;  %v12111_v47 = vld [vmem:[%s18946_s3 + $0xfb4] ss:$8 sps:$4 sm:$0xff]   ;;  %v12106_v27 = vld [vmem:[%s18946_s3 + $0xeb0] ss:$8 sps:$4 sm:$0xff]  }
 0x33b   : > { %5609 = vmatpush1.bf16.msra.mxu0 %v12052_v19  ;;  %v12109_v19 = vld [vmem:[%s18946_s3 + $0xfb0] ss:$8 sps:$4 sm:$0xff]  }
 0x33c   : > { %5652 = vmatpush1.bf16.msra.mxu1 %v12055_v51  ;;  %5610 = vmatprep.subr.bf16.mxu0 %v12060_v1  ;;  %v12114_v51 = vld [vmem:[%s18946_s3 + $0xea4] ss:$8 sps:$4 sm:$0xff]  }
 0x33d   : > { %5653 = vmatprep.subr.bf16.mxu1 %v12063_v24  ;;  %v12117_v1 = vld [vmem:[%s18946_s3 + $0xfa4] ss:$8 sps:$4 sm:$0xff]   ;;  %v12112_v24 = vld [vmem:[%s18946_s3 + $0xea0] ss:$8 sps:$4 sm:$0xff]  }
 0x33f   : > { %5611 = vmatpush1.bf16.msra.mxu0 %v12058_v16  ;;  %v12115_v16 = vld [vmem:[%s18946_s3 + $0xfa0] ss:$8 sps:$4 sm:$0xff]  }
 0x340   : > { %5654 = vmatpush1.bf16.msra.mxu1 %v12061_v46  ;;  %5612 = vmatprep.subr.bf16.mxu0 %v12066_v52  ;;  %v12120_v46 = vld [vmem:[%s18946_s3 + $0xe94] ss:$8 sps:$4 sm:$0xff]  }
 0x341   : > { %5655 = vmatprep.subr.bf16.mxu1 %v12069_v33  ;;  %v12123_v52 = vld [vmem:[%s18946_s3 + $0xf94] ss:$8 sps:$4 sm:$0xff]   ;;  %v12118_v33 = vld [vmem:[%s18946_s3 + $0xe90] ss:$8 sps:$4 sm:$0xff]  }
 0x343   : > { %5613 = vmatpush1.bf16.msra.mxu0 %v12064_v62  ;;  %v12121_v62 = vld [vmem:[%s18946_s3 + $0xf90] ss:$8 sps:$4 sm:$0xff]  }
 0x344   : > { %5656 = vmatpush1.bf16.msra.mxu1 %v12067_v41  ;;  %5614 = vmatprep.subr.bf16.mxu0 %v12072_v49  ;;  %v12126_v41 = vld [vmem:[%s18946_s3 + $0xe84] ss:$8 sps:$4 sm:$0xff]  }
 0x345   : > { %5657 = vmatprep.subr.bf16.mxu1 %v12075_v31  ;;  %v12129_v49 = vld [vmem:[%s18946_s3 + $0xf84] ss:$8 sps:$4 sm:$0xff]   ;;  %v12124_v31 = vld [vmem:[%s18946_s3 + $0xe80] ss:$8 sps:$4 sm:$0xff]  }
 0x347   : > { %5615 = vmatpush1.bf16.msra.mxu0 %v12070_v42  ;;  %v12127_v42 = vld [vmem:[%s18946_s3 + $0xf80] ss:$8 sps:$4 sm:$0xff]  }
 0x348   : > { %5658 = vmatpush1.bf16.msra.mxu1 %v12073_v61  ;;  %5616 = vmatprep.subr.bf16.mxu0 %v12078_v58  ;;  %v12132_v61 = vld [vmem:[%s18946_s3 + $0x1074] ss:$8 sps:$4 sm:$0xff]  }
 0x349   : > { %5659 = vmatprep.subr.bf16.mxu1 %v12081_v23  ;;  %v12135_v58 = vld [vmem:[%s18946_s3 + $0x1174] ss:$8 sps:$4 sm:$0xff]   ;;  %v12130_v23 = vld [vmem:[%s18946_s3 + $0x1070] ss:$8 sps:$4 sm:$0xff]  }
 0x34b   : > { %5617 = vmatpush1.bf16.msra.mxu0 %v12076_v32  ;;  %v12133_v32 = vld [vmem:[%s18946_s3 + $0x1170] ss:$8 sps:$4 sm:$0xff]  }
 0x34c   : > { %5660 = vmatpush1.bf16.msra.mxu1 %v12079_v60  ;;  %5618 = vmatprep.subr.bf16.mxu0 %v12084_v39  ;;  %v12138_v60 = vld [vmem:[%s18946_s3 + $0x1064] ss:$8 sps:$4 sm:$0xff]  }
 0x34d   : > { %5661 = vmatprep.subr.bf16.mxu1 %v12087_v4  ;;  %v12141_v4 = vld [vmem:[%s18946_s3 + $0x1164] ss:$8 sps:$4 sm:$0xff]  }
 0x34f   : > { %5619 = vmatpush2.bf16.msra.mxu0 %v12082_v9 }
 0x350   : > { %5662 = vmatpush2.bf16.msra.mxu1 %v12085_v53  ;;  %5620 = vmatprep.subr.bf16.mxu0 %v12090_v15  ;;  %v12136_v53 = vld [vmem:[%s18946_s3 + $0x1060] ss:$8 sps:$4 sm:$0xff]  }
 0x351   : > { %5663 = vmatprep.subr.bf16.mxu1 %v12093_v17 }
 0x353   : > { %5621 = vmatpush2.bf16.msra.mxu0 %v12088_v55  ;;  %v12139_v55 = vld [vmem:[%s18946_s3 + $0x1160] ss:$8 sps:$4 sm:$0xff]  }
 0x354   : > { %5664 = vmatpush2.bf16.msra.mxu1 %v12091_v44  ;;  %5622 = vmatprep.subr.bf16.mxu0 %v12096_v2  ;;  %v12144_v44 = vld [vmem:[%s18946_s3 + $0x1054] ss:$8 sps:$4 sm:$0xff]  }
 0x355   : > { %5665 = vmatprep.subr.bf16.mxu1 %v12099_v40  ;;  %v12147_v40 = vld [vmem:[%s18946_s3 + $0x1154] ss:$8 sps:$4 sm:$0xff]  }
 0x357   : > { %5623 = vmatpush2.bf16.msra.mxu0 %v12094_v12 }
 0x358   : > { %5666 = vmatpush2.bf16.msra.mxu1 %v12097_v13  ;;  %5624 = vmatprep.subr.bf16.mxu0 %v12102_v63 }
 0x359   : > { %5667 = vmatprep.subr.bf16.mxu1 %v12105_v30 }
 0x35b   : > { %5625 = vmatpush2.bf16.msra.mxu0 %v12100_v26  ;;  %v12142_v26 = vld [vmem:[%s18946_s3 + $0x1050] ss:$8 sps:$4 sm:$0xff]  }
 0x35c   : > { %5668 = vmatpush2.bf16.msra.mxu1 %v12103_v38  ;;  %5626 = vmatprep.subr.bf16.mxu0 %v12108_v3 }
 0x35d   : > { %5669 = vmatprep.subr.bf16.mxu1 %v12111_v47 }
 0x35f   : > { %5627 = vmatpush2.bf16.msra.mxu0 %v12106_v27  ;;  %v12150_v27 = vld [vmem:[%s18946_s3 + $0x1044] ss:$8 sps:$4 sm:$0xff]  }
 0x360   : > { %5670 = vmatpush2.bf16.msra.mxu1 %v12109_v19  ;;  %5628 = vmatprep.subr.bf16.mxu0 %v12114_v51  ;;  %v12153_v51 = vld [vmem:[%s18946_s3 + $0x1144] ss:$8 sps:$4 sm:$0xff]  }
 0x361   : > { %5671 = vmatprep.subr.bf16.mxu1 %v12117_v1 }
 0x363   : > { %5629 = vmatpush2.bf16.msra.mxu0 %v12112_v24  ;;  %v12148_v24 = vld [vmem:[%s18946_s3 + $0x1040] ss:$8 sps:$4 sm:$0xff]  }
 0x364   : > { %5672 = vmatpush2.bf16.msra.mxu1 %v12115_v16  ;;  %5630 = vmatprep.subr.bf16.mxu0 %v12120_v46  ;;  %v12151_v46 = vld [vmem:[%s18946_s3 + $0x1140] ss:$8 sps:$4 sm:$0xff]  }
 0x365   : > { %5673 = vmatprep.subr.bf16.mxu1 %v12123_v52  ;;  %v12159_v52 = vld [vmem:[%s18946_s3 + $0x1134] ss:$8 sps:$4 sm:$0xff]  }
 0x367   : > { %5631 = vmatpush2.bf16.msra.mxu0 %v12118_v33  ;;  %v12157_v33 = vld [vmem:[%s18946_s3 + $0x1130] ss:$8 sps:$4 sm:$0xff]  }
 0x368   : > { %5674 = vmatpush2.bf16.msra.mxu1 %v12121_v62  ;;  %5632 = vmatprep.subr.bf16.mxu0 %v12126_v41  ;;  %v12162_v62 = vld [vmem:[%s18946_s3 + $0x1024] ss:$8 sps:$4 sm:$0xff]  }
 0x369   : > { %5675 = vmatprep.subr.bf16.mxu1 %v12129_v49  ;;  %v12165_v41 = vld [vmem:[%s18946_s3 + $0x1124] ss:$8 sps:$4 sm:$0xff]   ;;  %v12160_v49 = vld [vmem:[%s18946_s3 + $0x1020] ss:$8 sps:$4 sm:$0xff]  }
 0x36b   : > { %5633 = vmatpush2.bf16.msra.mxu0 %v12124_v31  ;;  %v12163_v31 = vld [vmem:[%s18946_s3 + $0x1120] ss:$8 sps:$4 sm:$0xff]  }
 0x36c   : > { %5676 = vmatpush2.bf16.msra.mxu1 %v12127_v42  ;;  %6077 = vmatprep.subr.bf16.mxu0 %v12132_v61  ;;  %v12168_v42 = vld [vmem:[%s18946_s3 + $0x1014] ss:$8 sps:$4 sm:$0xff]  }
 0x36d   : > { %6120 = vmatprep.subr.bf16.mxu1 %v12135_v58  ;;  %v12171_v61 = vld [vmem:[%s18946_s3 + $0x1114] ss:$8 sps:$4 sm:$0xff]   ;;  %v12166_v58 = vld [vmem:[%s18946_s3 + $0x1010] ss:$8 sps:$4 sm:$0xff]  }
 0x36e   : > { %v4219_v39 = vpop.f32.mrf.mxu0  ;;  %5635 = vmatmul.mubr.bf16.vlgmr.msra.gmra.mxu0 %v14886_v48 }
 0x36f   : > { %v4262_v9 = vpop.f32.mrf.mxu1  ;;  %5678 = vmatmul.mubr.bf16.vlgmr.msra.gmra.mxu1 %v14893_v43  ;;  %6078 = vmatpush1.bf16.msra.mxu0 %v12130_v23  ;;  %v12169_v23 = vld [vmem:[%s18946_s3 + $0x1110] ss:$8 sps:$4 sm:$0xff]  }
 0x370   : > { %v4263_v15 = vadd.f32 %v4262_v9, %v4219_v39  ;;  %6109 = vmatprep.mubr.bf16.mxu0 %v14470_v7  ;;  %6121 = vmatpush1.bf16.msra.mxu1 %v12133_v32  ;;  %v4221_v17 = vpop.f32.mrf.mxu0  ;;  %v12174_v32 = vld [vmem:[%s18946_s3 + $0x1004] ss:$8 sps:$4 sm:$0xff]   ;;  %v12172_v39 = vld [vmem:[%s18946_s3 + $0x1000] ss:$8 sps:$4 sm:$0xff]   ;;  %v12180_v9 = vld [vmem:[%s18946_s3 + $0x10f4] ss:$8 sps:$4 sm:$0xff]  }
 0x371   : > { %6152 = vmatprep.mubr.bf16.mxu1 %v14476_v25  ;;  %v4264_v2 = vpop.f32.mrf.mxu1  ;;  %6079 = vmatprep.subr.bf16.mxu0 %v12138_v60  ;;  %v12177_v60 = vld [vmem:[%s18946_s3 + $0x1104] ss:$8 sps:$4 sm:$0xff]  }
 0x372   : > { %v15942_v12 = vadd.f32 %v4263_v15, %v15734_v18  ;;  %v4265_v13 = vadd.f32 %v4264_v2, %v4221_v17  ;;  %v4223_v63 = vpop.f32.mrf.mxu0  ;;  %6122 = vmatprep.subr.bf16.mxu1 %v12141_v4  ;;  %v12145_v18 = vld [vmem:[%s18946_s3 + $0x1150] ss:$8 sps:$4 sm:$0xff]   ;;  %v12175_v4 = vld [vmem:[%s18946_s3 + $0x1100] ss:$8 sps:$4 sm:$0xff]  }
 0x373   : > { %v4266_v30 = vpop.f32.mrf.mxu1  ;;  %6080 = vmatpush1.bf16.msra.mxu0 %v12136_v53  ;;  %v12183_v53 = vld [vmem:[%s18946_s3 + $0x11f4] ss:$8 sps:$4 sm:$0xff]   ;;  %v12178_v15 = vld [vmem:[%s18946_s3 + $0x10f0] ss:$8 sps:$4 sm:$0xff]   ;;  %v12184_v2 = vld [vmem:[%s18946_s3 + $0x10e0] ss:$8 sps:$4 sm:$0xff]  }
 0x374   : > { %v15948_v38 = vadd.f32 %v4265_v13, %v15740_v36  ;;  %v4267_v3 = vadd.f32 %v4266_v30, %v4223_v63  ;;  %6123 = vmatpush1.bf16.msra.mxu1 %v12139_v55  ;;  %v4225_v47 = vpop.f32.mrf.mxu0  ;;  %6081 = vmatprep.subr.bf16.mxu0 %v12144_v44  ;;  %v12181_v17 = vld [vmem:[%s18946_s3 + $0x11f0] ss:$8 sps:$4 sm:$0xff]   ;;  %v12186_v55 = vld [vmem:[%s18946_s3 + $0x10e4] ss:$8 sps:$4 sm:$0xff]   ;;  %v12192_v13 = vld [vmem:[%s18946_s3 + $0x10d4] ss:$8 sps:$4 sm:$0xff]  }
 0x375   : > { %v4268_v19 = vpop.f32.mrf.mxu1  ;;  %6124 = vmatprep.subr.bf16.mxu1 %v12147_v40  ;;  %v12189_v44 = vld [vmem:[%s18946_s3 + $0x11e4] ss:$8 sps:$4 sm:$0xff]   ;;  %v12187_v40 = vld [vmem:[%s18946_s3 + $0x11e0] ss:$8 sps:$4 sm:$0xff]   ;;  %v12195_v63 = vld [vmem:[%s18946_s3 + $0x11d4] ss:$8 sps:$4 sm:$0xff]  }
 0x376   : > { %v15960_v36 = vadd.f32 %v4267_v3, %v15752_v54  ;;  %v4269_v1 = vadd.f32 %v4268_v19, %v4225_v47  ;;  %v12156_v54 = vld [vmem:[%s18946_s3 + $0x1034] ss:$8 sps:$4 sm:$0xff]   ;;  %v12190_v30 = vld [vmem:[%s18946_s3 + $0x10d0] ss:$8 sps:$4 sm:$0xff]   ;;  %v12198_v3 = vld [vmem:[%s18946_s3 + $0x10c4] ss:$8 sps:$4 sm:$0xff]  }
 0x377   : > { %6082 = vmatpush1.bf16.msra.mxu0 %v12142_v26  ;;  %v12193_v26 = vld [vmem:[%s18946_s3 + $0x11d0] ss:$8 sps:$4 sm:$0xff]   ;;  %v12201_v47 = vld [vmem:[%s18946_s3 + $0x11c4] ss:$8 sps:$4 sm:$0xff]   ;;  %v12204_v19 = vld [vmem:[%s18946_s3 + $0x10b4] ss:$8 sps:$4 sm:$0xff]  }
 0x378   : > { %v15966_v16 = vadd.f32 %v4269_v1, %v15758_v50  ;;  %6125 = vmatpush1.bf16.msra.mxu1 %v12145_v18  ;;  %6083 = vmatprep.subr.bf16.mxu0 %v12150_v27  ;;  %v12154_v50 = vld [vmem:[%s18946_s3 + $0x1030] ss:$8 sps:$4 sm:$0xff]   ;;  %v12196_v18 = vld [vmem:[%s18946_s3 + $0x10c0] ss:$8 sps:$4 sm:$0xff]  }
 0x379   : > { %6126 = vmatprep.subr.bf16.mxu1 %v12153_v51  ;;  %v12199_v27 = vld [vmem:[%s18946_s3 + $0x11c0] ss:$8 sps:$4 sm:$0xff]   ;;  %v12207_v51 = vld [vmem:[%s18946_s3 + $0x11b4] ss:$8 sps:$4 sm:$0xff]   ;;  %v12202_v1 = vld [vmem:[%s18946_s3 + $0x10b0] ss:$8 sps:$4 sm:$0xff]  }
 0x37b   : > { %6084 = vmatpush1.bf16.msra.mxu0 %v12148_v24  ;;  %v12205_v24 = vld [vmem:[%s18946_s3 + $0x11b0] ss:$8 sps:$4 sm:$0xff]  }
 0x37c   : > { %6127 = vmatpush1.bf16.msra.mxu1 %v12151_v46  ;;  %6085 = vmatprep.subr.bf16.mxu0 %v12156_v54  ;;  %v12210_v46 = vld [vmem:[%s18946_s3 + $0x10a4] ss:$8 sps:$4 sm:$0xff]  }
 0x37d   : > { %6128 = vmatprep.subr.bf16.mxu1 %v12159_v52  ;;  %v12213_v54 = vld [vmem:[%s18946_s3 + $0x11a4] ss:$8 sps:$4 sm:$0xff]   ;;  %v12208_v52 = vld [vmem:[%s18946_s3 + $0x10a0] ss:$8 sps:$4 sm:$0xff]  }
 0x37f   : > { %6086 = vmatpush1.bf16.msra.mxu0 %v12154_v50  ;;  %v12211_v50 = vld [vmem:[%s18946_s3 + $0x11a0] ss:$8 sps:$4 sm:$0xff]  }
 0x380   : > { %6129 = vmatpush1.bf16.msra.mxu1 %v12157_v33  ;;  %6087 = vmatprep.subr.bf16.mxu0 %v12162_v62  ;;  %v12216_v33 = vld [vmem:[%s18946_s3 + $0x1094] ss:$8 sps:$4 sm:$0xff]  }
 0x381   : > { %6130 = vmatprep.subr.bf16.mxu1 %v12165_v41  ;;  %v12219_v62 = vld [vmem:[%s18946_s3 + $0x1194] ss:$8 sps:$4 sm:$0xff]   ;;  %v12214_v41 = vld [vmem:[%s18946_s3 + $0x1090] ss:$8 sps:$4 sm:$0xff]  }
 0x383   : > { %6088 = vmatpush1.bf16.msra.mxu0 %v12160_v49  ;;  %v12217_v49 = vld [vmem:[%s18946_s3 + $0x1190] ss:$8 sps:$4 sm:$0xff]  }
 0x384   : > { %6131 = vmatpush1.bf16.msra.mxu1 %v12163_v31  ;;  %6089 = vmatprep.subr.bf16.mxu0 %v12168_v42  ;;  %v12222_v31 = vld [vmem:[%s18946_s3 + $0x1084] ss:$8 sps:$4 sm:$0xff]  }
 0x385   : > { %6132 = vmatprep.subr.bf16.mxu1 %v12171_v61  ;;  %v12225_v42 = vld [vmem:[%s18946_s3 + $0x1184] ss:$8 sps:$4 sm:$0xff]   ;;  %v12220_v61 = vld [vmem:[%s18946_s3 + $0x1080] ss:$8 sps:$4 sm:$0xff]  }
 0x387   : > { %6090 = vmatpush1.bf16.msra.mxu0 %v12166_v58  ;;  %v12223_v58 = vld [vmem:[%s18946_s3 + $0x1180] ss:$8 sps:$4 sm:$0xff]  }
 0x388   : > { %6133 = vmatpush1.bf16.msra.mxu1 %v12169_v23  ;;  %6091 = vmatprep.subr.bf16.mxu0 %v12174_v32  ;;  %v12228_v23 = vld [vmem:[%s18946_s3 + $0x1274] ss:$8 sps:$4 sm:$0xff]  }
 0x389   : > { %6134 = vmatprep.subr.bf16.mxu1 %v12177_v60  ;;  %v12231_v32 = vld [vmem:[%s18946_s3 + $0x1374] ss:$8 sps:$4 sm:$0xff]   ;;  %v12226_v60 = vld [vmem:[%s18946_s3 + $0x1270] ss:$8 sps:$4 sm:$0xff]  }
 0x38b   : > { %6092 = vmatpush1.bf16.msra.mxu0 %v12172_v39  ;;  %v12229_v39 = vld [vmem:[%s18946_s3 + $0x1370] ss:$8 sps:$4 sm:$0xff]  }
 0x38c   : > { %6135 = vmatpush1.bf16.msra.mxu1 %v12175_v4  ;;  %6093 = vmatprep.subr.bf16.mxu0 %v12180_v9  ;;  %v12234_v4 = vld [vmem:[%s18946_s3 + $0x1264] ss:$8 sps:$4 sm:$0xff]  }
 0x38d   : > { %6136 = vmatprep.subr.bf16.mxu1 %v12183_v53  ;;  %v12237_v53 = vld [vmem:[%s18946_s3 + $0x1364] ss:$8 sps:$4 sm:$0xff]  }
 0x38f   : > { %6094 = vmatpush2.bf16.msra.mxu0 %v12178_v15 }
 0x390   : > { %6137 = vmatpush2.bf16.msra.mxu1 %v12181_v17  ;;  %6095 = vmatprep.subr.bf16.mxu0 %v12186_v55  ;;  %v12232_v17 = vld [vmem:[%s18946_s3 + $0x1260] ss:$8 sps:$4 sm:$0xff]  }
 0x391   : > { %6138 = vmatprep.subr.bf16.mxu1 %v12189_v44 }
 0x393   : > { %6096 = vmatpush2.bf16.msra.mxu0 %v12184_v2  ;;  %v12235_v2 = vld [vmem:[%s18946_s3 + $0x1360] ss:$8 sps:$4 sm:$0xff]  }
 0x394   : > { %6139 = vmatpush2.bf16.msra.mxu1 %v12187_v40  ;;  %6097 = vmatprep.subr.bf16.mxu0 %v12192_v13  ;;  %v12240_v40 = vld [vmem:[%s18946_s3 + $0x1254] ss:$8 sps:$4 sm:$0xff]  }
 0x395   : > { %6140 = vmatprep.subr.bf16.mxu1 %v12195_v63  ;;  %v12243_v63 = vld [vmem:[%s18946_s3 + $0x1354] ss:$8 sps:$4 sm:$0xff]  }
 0x397   : > { %6098 = vmatpush2.bf16.msra.mxu0 %v12190_v30 }
 0x398   : > { %6141 = vmatpush2.bf16.msra.mxu1 %v12193_v26  ;;  %6099 = vmatprep.subr.bf16.mxu0 %v12198_v3 }
 0x399   : > { %6142 = vmatprep.subr.bf16.mxu1 %v12201_v47  ;;  %v12238_v47 = vld [vmem:[%s18946_s3 + $0x1250] ss:$8 sps:$4 sm:$0xff]  }
 0x39b   : > { %6100 = vmatpush2.bf16.msra.mxu0 %v12196_v18 }
 0x39c   : > { %6143 = vmatpush2.bf16.msra.mxu1 %v12199_v27  ;;  %6101 = vmatprep.subr.bf16.mxu0 %v12204_v19  ;;  %v12241_v19 = vld [vmem:[%s18946_s3 + $0x1350] ss:$8 sps:$4 sm:$0xff]  }
 0x39d   : > { %6144 = vmatprep.subr.bf16.mxu1 %v12207_v51  ;;  %v12246_v51 = vld [vmem:[%s18946_s3 + $0x1244] ss:$8 sps:$4 sm:$0xff]  }
 0x39f   : > { %6102 = vmatpush2.bf16.msra.mxu0 %v12202_v1 }
 0x3a0   : > { %6145 = vmatpush2.bf16.msra.mxu1 %v12205_v24  ;;  %6103 = vmatprep.subr.bf16.mxu0 %v12210_v46  ;;  %v12249_v24 = vld [vmem:[%s18946_s3 + $0x1344] ss:$8 sps:$4 sm:$0xff]  }
 0x3a1   : > { %6146 = vmatprep.subr.bf16.mxu1 %v12213_v54  ;;  %v12244_v54 = vld [vmem:[%s18946_s3 + $0x1240] ss:$8 sps:$4 sm:$0xff]  }
 0x3a3   : > { %6104 = vmatpush2.bf16.msra.mxu0 %v12208_v52  ;;  %v12247_v52 = vld [vmem:[%s18946_s3 + $0x1340] ss:$8 sps:$4 sm:$0xff]  }
 0x3a4   : > { %6147 = vmatpush2.bf16.msra.mxu1 %v12211_v50  ;;  %6105 = vmatprep.subr.bf16.mxu0 %v12216_v33  ;;  %v12252_v50 = vld [vmem:[%s18946_s3 + $0x1234] ss:$8 sps:$4 sm:$0xff]  }
 0x3a5   : > { %6148 = vmatprep.subr.bf16.mxu1 %v12219_v62  ;;  %v12255_v33 = vld [vmem:[%s18946_s3 + $0x1334] ss:$8 sps:$4 sm:$0xff]   ;;  %v12250_v62 = vld [vmem:[%s18946_s3 + $0x1230] ss:$8 sps:$4 sm:$0xff]  }
 0x3a7   : > { %6106 = vmatpush2.bf16.msra.mxu0 %v12214_v41  ;;  %v12253_v41 = vld [vmem:[%s18946_s3 + $0x1330] ss:$8 sps:$4 sm:$0xff]  }
 0x3a8   : > { %6149 = vmatpush2.bf16.msra.mxu1 %v12217_v49  ;;  %6107 = vmatprep.subr.bf16.mxu0 %v12222_v31  ;;  %v12258_v49 = vld [vmem:[%s18946_s3 + $0x1224] ss:$8 sps:$4 sm:$0xff]  }
 0x3a9   : > { %6150 = vmatprep.subr.bf16.mxu1 %v12225_v42  ;;  %v12261_v31 = vld [vmem:[%s18946_s3 + $0x1324] ss:$8 sps:$4 sm:$0xff]   ;;  %v12256_v42 = vld [vmem:[%s18946_s3 + $0x1220] ss:$8 sps:$4 sm:$0xff]  }
 0x3ab   : > { %6108 = vmatpush2.bf16.msra.mxu0 %v12220_v61  ;;  %v12259_v61 = vld [vmem:[%s18946_s3 + $0x1320] ss:$8 sps:$4 sm:$0xff]  }
 0x3ac   : > { %6151 = vmatpush2.bf16.msra.mxu1 %v12223_v58  ;;  %6552 = vmatprep.subr.bf16.mxu0 %v12228_v23  ;;  %v12264_v58 = vld [vmem:[%s18946_s3 + $0x1214] ss:$8 sps:$4 sm:$0xff]  }
 0x3ad   : > { %6595 = vmatprep.subr.bf16.mxu1 %v12231_v32  ;;  %v12267_v23 = vld [vmem:[%s18946_s3 + $0x1314] ss:$8 sps:$4 sm:$0xff]   ;;  %v12262_v32 = vld [vmem:[%s18946_s3 + $0x1210] ss:$8 sps:$4 sm:$0xff]  }
 0x3ae   : > { %v4759_v9 = vpop.f32.mrf.mxu0  ;;  %6110 = vmatmul.mubr.bf16.vlgmr.msra.gmra.mxu0 %v14474_v22 }
 0x3af   : > { %v4802_v15 = vpop.f32.mrf.mxu1  ;;  %6153 = vmatmul.mubr.bf16.vlgmr.msra.gmra.mxu1 %v14478_v29  ;;  %6553 = vmatpush1.bf16.msra.mxu0 %v12226_v60  ;;  %v12265_v60 = vld [vmem:[%s18946_s3 + $0x1310] ss:$8 sps:$4 sm:$0xff]  }
 0x3b0   : > { %v16138_v55 = vadd.f32 %v4802_v15, %v4759_v9  ;;  %6584 = vmatprep.mubr.bf16.mxu0 %v14363_v28  ;;  %6596 = vmatpush1.bf16.msra.mxu1 %v12229_v39  ;;  %v4761_v44 = vpop.f32.mrf.mxu0  ;;  %v12270_v39 = vld [vmem:[%s18946_s3 + $0x1204] ss:$8 sps:$4 sm:$0xff]   ;;  %v12268_v9 = vld [vmem:[%s18946_s3 + $0x1200] ss:$8 sps:$4 sm:$0xff]   ;;  %v12276_v15 = vld [vmem:[%s18946_s3 + $0x12f4] ss:$8 sps:$4 sm:$0xff]  }
 0x3b1   : > { %6627 = vmatprep.mubr.bf16.mxu1 %v14427_v56  ;;  %v4804_v13 = vpop.f32.mrf.mxu1  ;;  %6554 = vmatprep.subr.bf16.mxu0 %v12234_v4  ;;  %v12273_v4 = vld [vmem:[%s18946_s3 + $0x1304] ss:$8 sps:$4 sm:$0xff]  }
 0x3b2   : > { %v16151_v30 = vadd.f32 %v4804_v13, %v4761_v44  ;;  %v4763_v26 = vpop.f32.mrf.mxu0  ;;  %6597 = vmatprep.subr.bf16.mxu1 %v12237_v53  ;;  %v12271_v53 = vld [vmem:[%s18946_s3 + $0x1300] ss:$8 sps:$4 sm:$0xff]   ;;  %v12274_v44 = vld [vmem:[%s18946_s3 + $0x12f0] ss:$8 sps:$4 sm:$0xff]   ;;  %v12285_v13 = vld [vmem:[%s18946_s3 + $0x13e4] ss:$8 sps:$4 sm:$0xff]  }
 0x3b3   : > { %v4806_v3 = vpop.f32.mrf.mxu1  ;;  %6555 = vmatpush1.bf16.msra.mxu0 %v12232_v17  ;;  %v12279_v17 = vld [vmem:[%s18946_s3 + $0x13f4] ss:$8 sps:$4 sm:$0xff]  }
 0x3b4   : > { %v16156_v18 = vadd.f32 %v4806_v3, %v4763_v26  ;;  %6598 = vmatpush1.bf16.msra.mxu1 %v12235_v2  ;;  %v4765_v27 = vpop.f32.mrf.mxu0  ;;  %6556 = vmatprep.subr.bf16.mxu0 %v12240_v40  ;;  %v12277_v2 = vld [vmem:[%s18946_s3 + $0x13f0] ss:$8 sps:$4 sm:$0xff]   ;;  %v12282_v40 = vld [vmem:[%s18946_s3 + $0x12e4] ss:$8 sps:$4 sm:$0xff]   ;;  %v12283_v26 = vld [vmem:[%s18946_s3 + $0x13e0] ss:$8 sps:$4 sm:$0xff]  }
 0x3b5   : > { %v4808_v1 = vpop.f32.mrf.mxu1  ;;  %6599 = vmatprep.subr.bf16.mxu1 %v12243_v63  ;;  %v12280_v63 = vld [vmem:[%s18946_s3 + $0x12e0] ss:$8 sps:$4 sm:$0xff]   ;;  %v12288_v3 = vld [vmem:[%s18946_s3 + $0x12d4] ss:$8 sps:$4 sm:$0xff]  }
 0x3b6   : > { %v16167_v46 = vadd.f32 %v4808_v1, %v4765_v27  ;;  %v12286_v27 = vld [vmem:[%s18946_s3 + $0x12d0] ss:$8 sps:$4 sm:$0xff]   ;;  %v12297_v1 = vld [vmem:[%s18946_s3 + $0x13c4] ss:$8 sps:$4 sm:$0xff]  }
 0x3b7   : > { %6557 = vmatpush1.bf16.msra.mxu0 %v12238_v47  ;;  %v12291_v47 = vld [vmem:[%s18946_s3 + $0x13d4] ss:$8 sps:$4 sm:$0xff]  }
 0x3b8   : > { %6600 = vmatpush1.bf16.msra.mxu1 %v12241_v19  ;;  %6558 = vmatprep.subr.bf16.mxu0 %v12246_v51  ;;  %v12289_v19 = vld [vmem:[%s18946_s3 + $0x13d0] ss:$8 sps:$4 sm:$0xff]   ;;  %v12294_v51 = vld [vmem:[%s18946_s3 + $0x12c4] ss:$8 sps:$4 sm:$0xff]  }
 0x3b9   : > { %6601 = vmatprep.subr.bf16.mxu1 %v12249_v24  ;;  %v12292_v24 = vld [vmem:[%s18946_s3 + $0x12c0] ss:$8 sps:$4 sm:$0xff]  }
 0x3bb   : > { %6559 = vmatpush1.bf16.msra.mxu0 %v12244_v54  ;;  %v12295_v54 = vld [vmem:[%s18946_s3 + $0x13c0] ss:$8 sps:$4 sm:$0xff]  }
 0x3bc   : > { %6602 = vmatpush1.bf16.msra.mxu1 %v12247_v52  ;;  %6560 = vmatprep.subr.bf16.mxu0 %v12252_v50  ;;  %v12300_v52 = vld [vmem:[%s18946_s3 + $0x12b4] ss:$8 sps:$4 sm:$0xff]  }
 0x3bd   : > { %6603 = vmatprep.subr.bf16.mxu1 %v12255_v33  ;;  %v12303_v50 = vld [vmem:[%s18946_s3 + $0x13b4] ss:$8 sps:$4 sm:$0xff]   ;;  %v12298_v33 = vld [vmem:[%s18946_s3 + $0x12b0] ss:$8 sps:$4 sm:$0xff]  }
 0x3bf   : > { %6561 = vmatpush1.bf16.msra.mxu0 %v12250_v62  ;;  %v12301_v62 = vld [vmem:[%s18946_s3 + $0x13b0] ss:$8 sps:$4 sm:$0xff]  }
 0x3c0   : > { %6604 = vmatpush1.bf16.msra.mxu1 %v12253_v41  ;;  %6562 = vmatprep.subr.bf16.mxu0 %v12258_v49  ;;  %v12306_v41 = vld [vmem:[%s18946_s3 + $0x12a4] ss:$8 sps:$4 sm:$0xff]  }
 0x3c1   : > { %6605 = vmatprep.subr.bf16.mxu1 %v12261_v31  ;;  %v12309_v49 = vld [vmem:[%s18946_s3 + $0x13a4] ss:$8 sps:$4 sm:$0xff]   ;;  %v12304_v31 = vld [vmem:[%s18946_s3 + $0x12a0] ss:$8 sps:$4 sm:$0xff]  }
 0x3c3   : > { %6563 = vmatpush1.bf16.msra.mxu0 %v12256_v42  ;;  %v12307_v42 = vld [vmem:[%s18946_s3 + $0x13a0] ss:$8 sps:$4 sm:$0xff]  }
 0x3c4   : > { %6606 = vmatpush1.bf16.msra.mxu1 %v12259_v61  ;;  %6564 = vmatprep.subr.bf16.mxu0 %v12264_v58  ;;  %v12312_v61 = vld [vmem:[%s18946_s3 + $0x1294] ss:$8 sps:$4 sm:$0xff]  }
 0x3c5   : > { %6607 = vmatprep.subr.bf16.mxu1 %v12267_v23  ;;  %v12315_v58 = vld [vmem:[%s18946_s3 + $0x1394] ss:$8 sps:$4 sm:$0xff]   ;;  %v12310_v23 = vld [vmem:[%s18946_s3 + $0x1290] ss:$8 sps:$4 sm:$0xff]  }
 0x3c7   : > { %6565 = vmatpush1.bf16.msra.mxu0 %v12262_v32  ;;  %v12313_v32 = vld [vmem:[%s18946_s3 + $0x1390] ss:$8 sps:$4 sm:$0xff]  }
 0x3c8   : > { %6608 = vmatpush1.bf16.msra.mxu1 %v12265_v60  ;;  %6566 = vmatprep.subr.bf16.mxu0 %v12270_v39  ;;  %v12318_v60 = vld [vmem:[%s18946_s3 + $0x1284] ss:$8 sps:$4 sm:$0xff]  }
 0x3c9   : > { %6609 = vmatprep.subr.bf16.mxu1 %v12273_v4  ;;  %v12321_v39 = vld [vmem:[%s18946_s3 + $0x1384] ss:$8 sps:$4 sm:$0xff]   ;;  %v12316_v4 = vld [vmem:[%s18946_s3 + $0x1280] ss:$8 sps:$4 sm:$0xff]  }
 0x3cb   : > { %6567 = vmatpush1.bf16.msra.mxu0 %v12268_v9  ;;  %v12319_v9 = vld [vmem:[%s18946_s3 + $0x1380] ss:$8 sps:$4 sm:$0xff]  }
 0x3cc   : > { %6610 = vmatpush1.bf16.msra.mxu1 %v12271_v53  ;;  %6568 = vmatprep.subr.bf16.mxu0 %v12276_v15  ;;  %v12464_v53 = vld [vmem:[%s18946_s3 + $0x274] ss:$8 sps:$4 sm:$0xff]  }
 0x3cd   : > { %6611 = vmatprep.subr.bf16.mxu1 %v12279_v17  ;;  %v12465_v15 = vld [vmem:[%s18946_s3 + $0x374] ss:$8 sps:$4 sm:$0xff]  }
 0x3cf   : > { %6569 = vmatpush2.bf16.msra.mxu0 %v12274_v44 }
 0x3d0   : > { %6612 = vmatpush2.bf16.msra.mxu1 %v12277_v2  ;;  %6570 = vmatprep.subr.bf16.mxu0 %v12282_v40  ;;  %v12466_v40 = vld [vmem:[%s18946_s3 + $0x270] ss:$8 sps:$4 sm:$0xff]  }
 0x3d1   : > { %6613 = vmatprep.subr.bf16.mxu1 %v12285_v13  ;;  %v12467_v13 = vld [vmem:[%s18946_s3 + $0x370] ss:$8 sps:$4 sm:$0xff]  }
 0x3d3   : > { %6571 = vmatpush2.bf16.msra.mxu0 %v12280_v63 }
 0x3d4   : > { %6614 = vmatpush2.bf16.msra.mxu1 %v12283_v26  ;;  %6572 = vmatprep.subr.bf16.mxu0 %v12288_v3 }
 0x3d5   : > { %6615 = vmatprep.subr.bf16.mxu1 %v12291_v47  ;;  %v12468_v47 = vld [vmem:[%s18946_s3 + $0x264] ss:$8 sps:$4 sm:$0xff]  }
 0x3d7   : > { %6573 = vmatpush2.bf16.msra.mxu0 %v12286_v27 }
 0x3d8   : > { %6616 = vmatpush2.bf16.msra.mxu1 %v12289_v19  ;;  %6574 = vmatprep.subr.bf16.mxu0 %v12294_v51  ;;  %v12469_v19 = vld [vmem:[%s18946_s3 + $0x364] ss:$8 sps:$4 sm:$0xff]  }
 0x3d9   : > { %6617 = vmatprep.subr.bf16.mxu1 %v12297_v1 }
 0x3db   : > { %6575 = vmatpush2.bf16.msra.mxu0 %v12292_v24 }
 0x3dc   : > { %6618 = vmatpush2.bf16.msra.mxu1 %v12295_v54  ;;  %6576 = vmatprep.subr.bf16.mxu0 %v12300_v52  ;;  %v12471_v54 = vld [vmem:[%s18946_s3 + $0x360] ss:$8 sps:$4 sm:$0xff]  }
 0x3dd   : > { %6619 = vmatprep.subr.bf16.mxu1 %v12303_v50  ;;  %v12472_v50 = vld [vmem:[%s18946_s3 + $0x254] ss:$8 sps:$4 sm:$0xff]  }
 0x3df   : > { %6577 = vmatpush2.bf16.msra.mxu0 %v12298_v33 }
 0x3e0   : > { %6620 = vmatpush2.bf16.msra.mxu1 %v12301_v62  ;;  %6578 = vmatprep.subr.bf16.mxu0 %v12306_v41  ;;  %v12473_v62 = vld [vmem:[%s18946_s3 + $0x354] ss:$8 sps:$4 sm:$0xff]  }
 0x3e1   : > { %6621 = vmatprep.subr.bf16.mxu1 %v12309_v49 }
 0x3e3   : > { %6579 = vmatpush2.bf16.msra.mxu0 %v12304_v31  ;;  %v12474_v31 = vld [vmem:[%s18946_s3 + $0x250] ss:$8 sps:$4 sm:$0xff]  }
 0x3e4   : > { %6622 = vmatpush2.bf16.msra.mxu1 %v12307_v42  ;;  %6580 = vmatprep.subr.bf16.mxu0 %v12312_v61  ;;  %v12475_v42 = vld [vmem:[%s18946_s3 + $0x350] ss:$8 sps:$4 sm:$0xff]   ;;  %v12477_v61 = vld [vmem:[%s18946_s3 + $0x344] ss:$8 sps:$4 sm:$0xff]  }
 0x3e5   : > { %6623 = vmatprep.subr.bf16.mxu1 %v12315_v58  ;;  %v12478_v58 = vld [vmem:[%s18946_s3 + $0x240] ss:$8 sps:$4 sm:$0xff]  }
 0x3e7   : > { %6581 = vmatpush2.bf16.msra.mxu0 %v12310_v23  ;;  %v12479_v23 = vld [vmem:[%s18946_s3 + $0x340] ss:$8 sps:$4 sm:$0xff]  }
 0x3e8   : > { %6624 = vmatpush2.bf16.msra.mxu1 %v12313_v32  ;;  %6582 = vmatprep.subr.bf16.mxu0 %v12318_v60  ;;  %v12480_v32 = vld [vmem:[%s18946_s3 + $0x234] ss:$8 sps:$4 sm:$0xff]  }
 0x3e9   : > { %6625 = vmatprep.subr.bf16.mxu1 %v12321_v39  ;;  %v12481_v60 = vld [vmem:[%s18946_s3 + $0x334] ss:$8 sps:$4 sm:$0xff]   ;;  %v12482_v39 = vld [vmem:[%s18946_s3 + $0x230] ss:$8 sps:$4 sm:$0xff]  }
 0x3eb   : > { %6583 = vmatpush2.bf16.msra.mxu0 %v12316_v4  ;;  %v12483_v4 = vld [vmem:[%s18946_s3 + $0x330] ss:$8 sps:$4 sm:$0xff]  }
 0x3ec   : > { %6626 = vmatpush2.bf16.msra.mxu1 %v12319_v9  ;;  %6646 = vmatprep.subr.bf16.mxu0 %v12464_v53  ;;  %v12484_v9 = vld [vmem:[%s18946_s3 + $0x224] ss:$8 sps:$4 sm:$0xff]  }
 0x3ed   : > { %6689 = vmatprep.subr.bf16.mxu1 %v12465_v15  ;;  %v12485_v53 = vld [vmem:[%s18946_s3 + $0x324] ss:$8 sps:$4 sm:$0xff]   ;;  %v12486_v15 = vld [vmem:[%s18946_s3 + $0x220] ss:$8 sps:$4 sm:$0xff]  }
 0x3ee   : > { %v5165_v17 = vpop.f32.mrf.mxu0  ;;  %6585 = vmatmul.mubr.bf16.vlgmr.msra.gmra.mxu0 %v14429_v57 }
 0x3ef   : > { %v5166_v44 = vadd.f32 %v5165_v17, %v16138_v55  ;;  %v5208_v2 = vpop.f32.mrf.mxu1  ;;  %6628 = vmatmul.mubr.bf16.vlgmr.msra.gmra.mxu1 %v14435_v59  ;;  %6647 = vmatpush1.bf16.msra.mxu0 %v12466_v40  ;;  %v12487_v17 = vld [vmem:[%s18946_s3 + $0x320] ss:$8 sps:$4 sm:$0xff]   ;;  %v12490_v40 = vld [vmem:[%s18946_s3 + $0x210] ss:$8 sps:$4 sm:$0xff]  }
 0x3f0   : > { %6678 = vmatprep.mubr.bf16.mxu0 %v14687_v45  ;;  %6690 = vmatpush1.bf16.msra.mxu1 %v12467_v13  ;;  %v5167_v63 = vpop.f32.mrf.mxu0  ;;  %v12491_v13 = vld [vmem:[%s18946_s3 + $0x310] ss:$8 sps:$4 sm:$0xff]  }
 0x3f1   : > { %v16335_v26 = vadd.f32 %v5208_v2, %v5166_v44  ;;  %6721 = vmatprep.mubr.bf16.mxu1 %v14697_v37  ;;  %v5168_v55 = vadd.f32 %v5167_v63, %v16151_v30  ;;  %v5210_v3 = vpop.f32.mrf.mxu1  ;;  %6648 = vmatprep.subr.bf16.mxu0 %v12468_v47  ;;  %v12470_v30 = vld [vmem:[%s18946_s3 + $0x260] ss:$8 sps:$4 sm:$0xff]   ;;  %v12488_v44 = vld [vmem:[%s18946_s3 + $0x214] ss:$8 sps:$4 sm:$0xff]   ;;  %v12492_v63 = vld [vmem:[%s18946_s3 + $0x204] ss:$8 sps:$4 sm:$0xff]  }
 0x3f2   : > { %v5169_v27 = vpop.f32.mrf.mxu0  ;;  %6691 = vmatprep.subr.bf16.mxu1 %v12469_v19  ;;  %v12489_v2 = vld [vmem:[%s18946_s3 + $0x314] ss:$8 sps:$4 sm:$0xff]   ;;  %v12495_v47 = vld [vmem:[%s18946_s3 + $0x300] ss:$8 sps:$4 sm:$0xff]  }
 0x3f3   : > { %v16345_v51 = vadd.f32 %v5210_v3, %v5168_v55  ;;  %v5170_v1 = vadd.f32 %v5169_v27, %v16156_v18  ;;  %v5212_v24 = vpop.f32.mrf.mxu1  ;;  %6649 = vmatpush1.bf16.msra.mxu0 %v12470_v30  ;;  %v12493_v55 = vld [vmem:[%s18946_s3 + $0x304] ss:$8 sps:$4 sm:$0xff]   ;;  %v12494_v3 = vld [vmem:[%s18946_s3 + $0x200] ss:$8 sps:$4 sm:$0xff]   ;;  %v12496_v27 = vld [vmem:[%s18946_s3 + $0x2f4] ss:$8 sps:$4 sm:$0xff]  }
 0x3f4   : > { %6692 = vmatpush1.bf16.msra.mxu1 %v12471_v54  ;;  %v5171_v52 = vpop.f32.mrf.mxu0  ;;  %6650 = vmatprep.subr.bf16.mxu0 %v12472_v50  ;;  %v12497_v19 = vld [vmem:[%s18946_s3 + $0x3f4] ss:$8 sps:$4 sm:$0xff]   ;;  %v12500_v30 = vld [vmem:[%s18946_s3 + $0x2e4] ss:$8 sps:$4 sm:$0xff]   ;;  %v12503_v50 = vld [vmem:[%s18946_s3 + $0x3e0] ss:$8 sps:$4 sm:$0xff]  }
 0x3f5   : > { %v16357_v33 = vadd.f32 %v5212_v24, %v5170_v1  ;;  %v5172_v18 = vadd.f32 %v5171_v52, %v16167_v46  ;;  %6693 = vmatprep.subr.bf16.mxu1 %v12473_v62  ;;  %v5214_v41 = vpop.f32.mrf.mxu1  ;;  %v12476_v46 = vld [vmem:[%s18946_s3 + $0x244] ss:$8 sps:$4 sm:$0xff]   ;;  %v12498_v1 = vld [vmem:[%s18946_s3 + $0x2f0] ss:$8 sps:$4 sm:$0xff]   ;;  %v12502_v52 = vld [vmem:[%s18946_s3 + $0x2e0] ss:$8 sps:$4 sm:$0xff]  }
 0x3f6   : > { %v12499_v24 = vld [vmem:[%s18946_s3 + $0x3f0] ss:$8 sps:$4 sm:$0xff]   ;;  %v12501_v54 = vld [vmem:[%s18946_s3 + $0x3e4] ss:$8 sps:$4 sm:$0xff]   ;;  %v12505_v62 = vld [vmem:[%s18946_s3 + $0x3d4] ss:$8 sps:$4 sm:$0xff]  }
 0x3f7   : > { %v16363_v49 = vadd.f32 %v5214_v41, %v5172_v18  ;;  %6651 = vmatpush1.bf16.msra.mxu0 %v12474_v31  ;;  %v12504_v18 = vld [vmem:[%s18946_s3 + $0x2d4] ss:$8 sps:$4 sm:$0xff]   ;;  %v12506_v41 = vld [vmem:[%s18946_s3 + $0x2d0] ss:$8 sps:$4 sm:$0xff]  }
 0x3f8   : > { %6694 = vmatpush1.bf16.msra.mxu1 %v12475_v42  ;;  %6652 = vmatprep.subr.bf16.mxu0 %v12476_v46  ;;  %v12507_v31 = vld [vmem:[%s18946_s3 + $0x3d0] ss:$8 sps:$4 sm:$0xff]   ;;  %v12508_v42 = vld [vmem:[%s18946_s3 + $0x2c4] ss:$8 sps:$4 sm:$0xff]  }
 0x3f9   : > { %6695 = vmatprep.subr.bf16.mxu1 %v12477_v61  ;;  %v12509_v46 = vld [vmem:[%s18946_s3 + $0x3c4] ss:$8 sps:$4 sm:$0xff]   ;;  %v12510_v61 = vld [vmem:[%s18946_s3 + $0x2c0] ss:$8 sps:$4 sm:$0xff]  }
 0x3fb   : > { %6653 = vmatpush1.bf16.msra.mxu0 %v12478_v58  ;;  %v12511_v58 = vld [vmem:[%s18946_s3 + $0x3c0] ss:$8 sps:$4 sm:$0xff]  }
 0x3fc   : > { %6696 = vmatpush1.bf16.msra.mxu1 %v12479_v23  ;;  %6654 = vmatprep.subr.bf16.mxu0 %v12480_v32  ;;  %v12512_v23 = vld [vmem:[%s18946_s3 + $0x2b4] ss:$8 sps:$4 sm:$0xff]  }
 0x3fd   : > { %6697 = vmatprep.subr.bf16.mxu1 %v12481_v60  ;;  %v12513_v32 = vld [vmem:[%s18946_s3 + $0x3b4] ss:$8 sps:$4 sm:$0xff]   ;;  %v12514_v60 = vld [vmem:[%s18946_s3 + $0x2b0] ss:$8 sps:$4 sm:$0xff]  }
 0x3ff   : > { %6655 = vmatpush1.bf16.msra.mxu0 %v12482_v39  ;;  %v12515_v39 = vld [vmem:[%s18946_s3 + $0x3b0] ss:$8 sps:$4 sm:$0xff]  }
 0x400   : > { %6698 = vmatpush1.bf16.msra.mxu1 %v12483_v4  ;;  %6656 = vmatprep.subr.bf16.mxu0 %v12484_v9  ;;  %v12516_v4 = vld [vmem:[%s18946_s3 + $0x2a4] ss:$8 sps:$4 sm:$0xff]  }
 0x401   : > { %6699 = vmatprep.subr.bf16.mxu1 %v12485_v53  ;;  %v12517_v9 = vld [vmem:[%s18946_s3 + $0x3a4] ss:$8 sps:$4 sm:$0xff]   ;;  %v12518_v53 = vld [vmem:[%s18946_s3 + $0x2a0] ss:$8 sps:$4 sm:$0xff]  }
 0x403   : > { %6657 = vmatpush1.bf16.msra.mxu0 %v12486_v15  ;;  %v12519_v15 = vld [vmem:[%s18946_s3 + $0x3a0] ss:$8 sps:$4 sm:$0xff]  }
 0x404   : > { %6700 = vmatpush1.bf16.msra.mxu1 %v12487_v17  ;;  %6658 = vmatprep.subr.bf16.mxu0 %v12488_v44  ;;  %v12520_v17 = vld [vmem:[%s18946_s3 + $0x294] ss:$8 sps:$4 sm:$0xff]  }
 0x405   : > { %6701 = vmatprep.subr.bf16.mxu1 %v12489_v2  ;;  %v12521_v44 = vld [vmem:[%s18946_s3 + $0x394] ss:$8 sps:$4 sm:$0xff]   ;;  %v12522_v2 = vld [vmem:[%s18946_s3 + $0x290] ss:$8 sps:$4 sm:$0xff]  }
 0x407   : > { %6659 = vmatpush1.bf16.msra.mxu0 %v12490_v40  ;;  %v12523_v40 = vld [vmem:[%s18946_s3 + $0x390] ss:$8 sps:$4 sm:$0xff]  }
 0x408   : > { %6702 = vmatpush1.bf16.msra.mxu1 %v12491_v13  ;;  %6660 = vmatprep.subr.bf16.mxu0 %v12492_v63  ;;  %v12524_v13 = vld [vmem:[%s18946_s3 + $0x284] ss:$8 sps:$4 sm:$0xff]  }
 0x409   : > { %6703 = vmatprep.subr.bf16.mxu1 %v12493_v55  ;;  %v12525_v63 = vld [vmem:[%s18946_s3 + $0x384] ss:$8 sps:$4 sm:$0xff]   ;;  %v12526_v55 = vld [vmem:[%s18946_s3 + $0x280] ss:$8 sps:$4 sm:$0xff]  }
 0x40b   : > { %6661 = vmatpush1.bf16.msra.mxu0 %v12494_v3  ;;  %v12527_v3 = vld [vmem:[%s18946_s3 + $0x380] ss:$8 sps:$4 sm:$0xff]  }
 0x40c   : > { %6704 = vmatpush1.bf16.msra.mxu1 %v12495_v47  ;;  %6662 = vmatprep.subr.bf16.mxu0 %v12496_v27  ;;  %v12528_v47 = vld [vmem:[%s18946_s3 + $0x74] ss:$8 sps:$4 sm:$0xff]  }
 0x40d   : > { %6705 = vmatprep.subr.bf16.mxu1 %v12497_v19  ;;  %v12529_v27 = vld [vmem:[%s18946_s3 + $0x174] ss:$8 sps:$4 sm:$0xff]  }
 0x40f   : > { %6663 = vmatpush2.bf16.msra.mxu0 %v12498_v1 }
 0x410   : > { %6706 = vmatpush2.bf16.msra.mxu1 %v12499_v24  ;;  %6664 = vmatprep.subr.bf16.mxu0 %v12500_v30  ;;  %v12530_v24 = vld [vmem:[%s18946_s3 + $0x70] ss:$8 sps:$4 sm:$0xff]  }
 0x411   : > { %6707 = vmatprep.subr.bf16.mxu1 %v12501_v54  ;;  %v12531_v54 = vld [vmem:[%s18946_s3 + $0x170] ss:$8 sps:$4 sm:$0xff]  }
 0x413   : > { %6665 = vmatpush2.bf16.msra.mxu0 %v12502_v52 }
 0x414   : > { %6708 = vmatpush2.bf16.msra.mxu1 %v12503_v50  ;;  %6666 = vmatprep.subr.bf16.mxu0 %v12504_v18  ;;  %v12532_v18 = vld [vmem:[%s18946_s3 + $0x64] ss:$8 sps:$4 sm:$0xff]  }
 0x415   : > { %6709 = vmatprep.subr.bf16.mxu1 %v12505_v62 }
 0x417   : > { %6667 = vmatpush2.bf16.msra.mxu0 %v12506_v41 }
 0x418   : > { %6710 = vmatpush2.bf16.msra.mxu1 %v12507_v31  ;;  %6668 = vmatprep.subr.bf16.mxu0 %v12508_v42  ;;  %v12533_v42 = vld [vmem:[%s18946_s3 + $0x164] ss:$8 sps:$4 sm:$0xff]  }
 0x419   : > { %6711 = vmatprep.subr.bf16.mxu1 %v12509_v46 }
 0x41b   : > { %6669 = vmatpush2.bf16.msra.mxu0 %v12510_v61  ;;  %v12534_v61 = vld [vmem:[%s18946_s3 + $0x60] ss:$8 sps:$4 sm:$0xff]  }
 0x41c   : > { %6712 = vmatpush2.bf16.msra.mxu1 %v12511_v58  ;;  %6670 = vmatprep.subr.bf16.mxu0 %v12512_v23 }
 0x41d   : > { %6713 = vmatprep.subr.bf16.mxu1 %v12513_v32 }
 0x41f   : > { %6671 = vmatpush2.bf16.msra.mxu0 %v12514_v60  ;;  %v12536_v60 = vld [vmem:[%s18946_s3 + $0x54] ss:$8 sps:$4 sm:$0xff]  }
 0x420   : > { %6714 = vmatpush2.bf16.msra.mxu1 %v12515_v39  ;;  %6672 = vmatprep.subr.bf16.mxu0 %v12516_v4  ;;  %v12537_v4 = vld [vmem:[%s18946_s3 + $0x154] ss:$8 sps:$4 sm:$0xff]  }
 0x421   : > { %6715 = vmatprep.subr.bf16.mxu1 %v12517_v9 }
 0x423   : > { %6673 = vmatpush2.bf16.msra.mxu0 %v12518_v53  ;;  %v12538_v53 = vld [vmem:[%s18946_s3 + $0x50] ss:$8 sps:$4 sm:$0xff]  }
 0x424   : > { %6716 = vmatpush2.bf16.msra.mxu1 %v12519_v15  ;;  %6674 = vmatprep.subr.bf16.mxu0 %v12520_v17  ;;  %v12539_v17 = vld [vmem:[%s18946_s3 + $0x150] ss:$8 sps:$4 sm:$0xff]  }
 0x425   : > { %6717 = vmatprep.subr.bf16.mxu1 %v12521_v44  ;;  %v12540_v44 = vld [vmem:[%s18946_s3 + $0x44] ss:$8 sps:$4 sm:$0xff]  }
 0x427   : > { %6675 = vmatpush2.bf16.msra.mxu0 %v12522_v2  ;;  %v12543_v2 = vld [vmem:[%s18946_s3 + $0x140] ss:$8 sps:$4 sm:$0xff]  }
 0x428   : > { %6718 = vmatpush2.bf16.msra.mxu1 %v12523_v40  ;;  %6676 = vmatprep.subr.bf16.mxu0 %v12524_v13  ;;  %v12544_v40 = vld [vmem:[%s18946_s3 + $0x34] ss:$8 sps:$4 sm:$0xff]  }
 0x429   : > { %6719 = vmatprep.subr.bf16.mxu1 %v12525_v63  ;;  %v12545_v13 = vld [vmem:[%s18946_s3 + $0x134] ss:$8 sps:$4 sm:$0xff]   ;;  %v12546_v63 = vld [vmem:[%s18946_s3 + $0x30] ss:$8 sps:$4 sm:$0xff]  }
 0x42b   : > { %6677 = vmatpush2.bf16.msra.mxu0 %v12526_v55  ;;  %v12547_v55 = vld [vmem:[%s18946_s3 + $0x130] ss:$8 sps:$4 sm:$0xff]  }
 0x42c   : > { %6720 = vmatpush2.bf16.msra.mxu1 %v12527_v3  ;;  %6732 = vmatprep.subr.bf16.mxu0 %v12528_v47  ;;  %v12548_v3 = vld [vmem:[%s18946_s3 + $0x24] ss:$8 sps:$4 sm:$0xff]  }
 0x42d   : > { %6775 = vmatprep.subr.bf16.mxu1 %v12529_v27  ;;  %v12549_v47 = vld [vmem:[%s18946_s3 + $0x124] ss:$8 sps:$4 sm:$0xff]   ;;  %v12550_v27 = vld [vmem:[%s18946_s3 + $0x20] ss:$8 sps:$4 sm:$0xff]  }
 0x42e   : > { %v5636_v19 = vpop.f32.mrf.mxu0  ;;  %6679 = vmatmul.mubr.bf16.vlgmr.msra.gmra.mxu0 %v14886_v48 }
 0x42f   : > { %v5679_v1 = vpop.f32.mrf.mxu1  ;;  %6722 = vmatmul.mubr.bf16.vlgmr.msra.gmra.mxu1 %v14893_v43  ;;  %6733 = vmatpush1.bf16.msra.mxu0 %v12530_v24  ;;  %v12553_v24 = vld [vmem:[%s18946_s3 + $0x114] ss:$8 sps:$4 sm:$0xff]  }
 0x430   : > { %v5680_v30 = vadd.f32 %v5679_v1, %v5636_v19  ;;  %6764 = vmatprep.mubr.bf16.mxu0 %v14366_v35  ;;  %6776 = vmatpush1.bf16.msra.mxu1 %v12531_v54  ;;  %v5638_v52 = vpop.f32.mrf.mxu0  ;;  %v12551_v19 = vld [vmem:[%s18946_s3 + $0x120] ss:$8 sps:$4 sm:$0xff]   ;;  %v12552_v1 = vld [vmem:[%s18946_s3 + $0x14] ss:$8 sps:$4 sm:$0xff]   ;;  %v12555_v54 = vld [vmem:[%s18946_s3 + $0x110] ss:$8 sps:$4 sm:$0xff]  }
 0x431   : > { %6807 = vmatprep.mubr.bf16.mxu1 %v14380_v20  ;;  %v5681_v50 = vpop.f32.mrf.mxu1  ;;  %6734 = vmatprep.subr.bf16.mxu0 %v12532_v18  ;;  %v12558_v18 = vld [vmem:[%s18946_s3] ss:$8 sps:$4 sm:$0xff]  }
 0x432   : > { %v16547_v62 = vadd.f32 %v5680_v30, %v16335_v26  ;;  %v5682_v41 = vadd.f32 %v5681_v50, %v5638_v52  ;;  %v5640_v31 = vpop.f32.mrf.mxu0  ;;  %6777 = vmatprep.subr.bf16.mxu1 %v12533_v42  ;;  %v12535_v26 = vld [vmem:[%s18946_s3 + $0x160] ss:$8 sps:$4 sm:$0xff]   ;;  %v12554_v30 = vld [vmem:[%s18946_s3 + $0x10] ss:$8 sps:$4 sm:$0xff]   ;;  %v12556_v52 = vld [vmem:[%s18946_s3 + $0x4] ss:$8 sps:$4 sm:$0xff]  }
 0x433   : > { %v5683_v46 = vpop.f32.mrf.mxu1  ;;  %6735 = vmatpush1.bf16.msra.mxu0 %v12534_v61  ;;  %v12557_v50 = vld [vmem:[%s18946_s3 + $0x104] ss:$8 sps:$4 sm:$0xff]   ;;  %v12561_v42 = vld [vmem:[%s18946_s3 + $0x1f4] ss:$8 sps:$4 sm:$0xff]   ;;  %v12563_v61 = vld [vmem:[%s18946_s3 + $0x1f0] ss:$8 sps:$4 sm:$0xff]  }
 0x434   : > { %v16556_v58 = vadd.f32 %v5682_v41, %v16345_v51  ;;  %v5684_v23 = vadd.f32 %v5683_v46, %v5640_v31  ;;  %6778 = vmatpush1.bf16.msra.mxu1 %v12535_v26  ;;  %v5642_v32 = vpop.f32.mrf.mxu0  ;;  %6736 = vmatprep.subr.bf16.mxu0 %v12536_v60  ;;  %v12559_v41 = vld [vmem:[%s18946_s3 + $0x100] ss:$8 sps:$4 sm:$0xff]   ;;  %v12560_v31 = vld [vmem:[%s18946_s3 + $0xf4] ss:$8 sps:$4 sm:$0xff]   ;;  %v12562_v46 = vld [vmem:[%s18946_s3 + $0xf0] ss:$8 sps:$4 sm:$0xff]  }
 0x435   : > { %v5685_v39 = vpop.f32.mrf.mxu1  ;;  %6779 = vmatprep.subr.bf16.mxu1 %v12537_v4  ;;  %v12565_v26 = vld [vmem:[%s18946_s3 + $0x1e4] ss:$8 sps:$4 sm:$0xff]   ;;  %v12567_v60 = vld [vmem:[%s18946_s3 + $0x1e0] ss:$8 sps:$4 sm:$0xff]   ;;  %v12569_v4 = vld [vmem:[%s18946_s3 + $0x1d4] ss:$8 sps:$4 sm:$0xff]  }
 0x436   : > { %v16568_v51 = vadd.f32 %v5684_v23, %v16357_v33  ;;  %v5686_v9 = vadd.f32 %v5685_v39, %v5642_v32  ;;  %v12541_v33 = vld [vmem:[%s18946_s3 + $0x144] ss:$8 sps:$4 sm:$0xff]   ;;  %v12566_v32 = vld [vmem:[%s18946_s3 + $0xe0] ss:$8 sps:$4 sm:$0xff]   ;;  %v12568_v39 = vld [vmem:[%s18946_s3 + $0xd4] ss:$8 sps:$4 sm:$0xff]  }
 0x437   : > { %6737 = vmatpush1.bf16.msra.mxu0 %v12538_v53  ;;  %v12564_v23 = vld [vmem:[%s18946_s3 + $0xe4] ss:$8 sps:$4 sm:$0xff]   ;;  %v12571_v53 = vld [vmem:[%s18946_s3 + $0x1d0] ss:$8 sps:$4 sm:$0xff]  }
 0x438   : > { %v16574_v15 = vadd.f32 %v5686_v9, %v16363_v49  ;;  %6780 = vmatpush1.bf16.msra.mxu1 %v12539_v17  ;;  %6738 = vmatprep.subr.bf16.mxu0 %v12540_v44  ;;  %v12542_v49 = vld [vmem:[%s18946_s3 + $0x40] ss:$8 sps:$4 sm:$0xff]   ;;  %v12570_v9 = vld [vmem:[%s18946_s3 + $0xd0] ss:$8 sps:$4 sm:$0xff]   ;;  %v12572_v17 = vld [vmem:[%s18946_s3 + $0xc4] ss:$8 sps:$4 sm:$0xff]  }
 0x439   : > { %6781 = vmatprep.subr.bf16.mxu1 %v12541_v33  ;;  %v12573_v44 = vld [vmem:[%s18946_s3 + $0x1c4] ss:$8 sps:$4 sm:$0xff]   ;;  %v12574_v33 = vld [vmem:[%s18946_s3 + $0xc0] ss:$8 sps:$4 sm:$0xff]  }
 0x43b   : > { %6739 = vmatpush1.bf16.msra.mxu0 %v12542_v49  ;;  %v12575_v49 = vld [vmem:[%s18946_s3 + $0x1c0] ss:$8 sps:$4 sm:$0xff]  }
 0x43c   : > { %6782 = vmatpush1.bf16.msra.mxu1 %v12543_v2  ;;  %6740 = vmatprep.subr.bf16.mxu0 %v12544_v40  ;;  %v12576_v2 = vld [vmem:[%s18946_s3 + $0xb4] ss:$8 sps:$4 sm:$0xff]  }
 0x43d   : > { %6783 = vmatprep.subr.bf16.mxu1 %v12545_v13  ;;  %v12577_v40 = vld [vmem:[%s18946_s3 + $0x1b4] ss:$8 sps:$4 sm:$0xff]   ;;  %v12578_v13 = vld [vmem:[%s18946_s3 + $0xb0] ss:$8 sps:$4 sm:$0xff]  }
 0x43f   : > { %6741 = vmatpush1.bf16.msra.mxu0 %v12546_v63  ;;  %v12579_v63 = vld [vmem:[%s18946_s3 + $0x1b0] ss:$8 sps:$4 sm:$0xff]  }
 0x440   : > { %6784 = vmatpush1.bf16.msra.mxu1 %v12547_v55  ;;  %6742 = vmatprep.subr.bf16.mxu0 %v12548_v3  ;;  %v12580_v55 = vld [vmem:[%s18946_s3 + $0xa4] ss:$8 sps:$4 sm:$0xff]  }
 0x441   : > { %6785 = vmatprep.subr.bf16.mxu1 %v12549_v47  ;;  %v12581_v3 = vld [vmem:[%s18946_s3 + $0x1a4] ss:$8 sps:$4 sm:$0xff]   ;;  %v12582_v47 = vld [vmem:[%s18946_s3 + $0xa0] ss:$8 sps:$4 sm:$0xff]  }
 0x443   : > { %6743 = vmatpush1.bf16.msra.mxu0 %v12550_v27  ;;  %v12583_v27 = vld [vmem:[%s18946_s3 + $0x1a0] ss:$8 sps:$4 sm:$0xff]  }
 0x444   : > { %6786 = vmatpush1.bf16.msra.mxu1 %v12551_v19  ;;  %6744 = vmatprep.subr.bf16.mxu0 %v12552_v1  ;;  %v12584_v19 = vld [vmem:[%s18946_s3 + $0x94] ss:$8 sps:$4 sm:$0xff]  }
 0x445   : > { %6787 = vmatprep.subr.bf16.mxu1 %v12553_v24  ;;  %v12585_v1 = vld [vmem:[%s18946_s3 + $0x194] ss:$8 sps:$4 sm:$0xff]   ;;  %v12586_v24 = vld [vmem:[%s18946_s3 + $0x90] ss:$8 sps:$4 sm:$0xff]  }
 0x447   : > { %6745 = vmatpush1.bf16.msra.mxu0 %v12554_v30  ;;  %v12587_v30 = vld [vmem:[%s18946_s3 + $0x190] ss:$8 sps:$4 sm:$0xff]  }
 0x448   : > { %6788 = vmatpush1.bf16.msra.mxu1 %v12555_v54  ;;  %6746 = vmatprep.subr.bf16.mxu0 %v12556_v52  ;;  %v12588_v54 = vld [vmem:[%s18946_s3 + $0x84] ss:$8 sps:$4 sm:$0xff]  }
 0x449   : > { %6789 = vmatprep.subr.bf16.mxu1 %v12557_v50  ;;  %v12589_v52 = vld [vmem:[%s18946_s3 + $0x184] ss:$8 sps:$4 sm:$0xff]   ;;  %v12590_v50 = vld [vmem:[%s18946_s3 + $0x80] ss:$8 sps:$4 sm:$0xff]  }
 0x44b   : > { %6747 = vmatpush1.bf16.msra.mxu0 %v12558_v18  ;;  %v12591_v18 = vld [vmem:[%s18946_s3 + $0x180] ss:$8 sps:$4 sm:$0xff]  }
 0x44c   : > { %6790 = vmatpush1.bf16.msra.mxu1 %v12559_v41  ;;  %6748 = vmatprep.subr.bf16.mxu0 %v12560_v31  ;;  %v12592_v41 = vld [vmem:[%s18946_s3 + $0x474] ss:$8 sps:$4 sm:$0xff]  }
 0x44d   : > { %6791 = vmatprep.subr.bf16.mxu1 %v12561_v42  ;;  %v12593_v31 = vld [vmem:[%s18946_s3 + $0x574] ss:$8 sps:$4 sm:$0xff]  }
 0x44f   : > { %6749 = vmatpush2.bf16.msra.mxu0 %v12562_v46 }
 0x450   : > { %6792 = vmatpush2.bf16.msra.mxu1 %v12563_v61  ;;  %6750 = vmatprep.subr.bf16.mxu0 %v12564_v23  ;;  %v12594_v61 = vld [vmem:[%s18946_s3 + $0x470] ss:$8 sps:$4 sm:$0xff]  }
 0x451   : > { %6793 = vmatprep.subr.bf16.mxu1 %v12565_v26  ;;  %v12595_v26 = vld [vmem:[%s18946_s3 + $0x570] ss:$8 sps:$4 sm:$0xff]  }
 0x453   : > { %6751 = vmatpush2.bf16.msra.mxu0 %v12566_v32 }
 0x454   : > { %6794 = vmatpush2.bf16.msra.mxu1 %v12567_v60  ;;  %6752 = vmatprep.subr.bf16.mxu0 %v12568_v39  ;;  %v12596_v39 = vld [vmem:[%s18946_s3 + $0x464] ss:$8 sps:$4 sm:$0xff]  }
 0x455   : > { %6795 = vmatprep.subr.bf16.mxu1 %v12569_v4 }
 0x457   : > { %6753 = vmatpush2.bf16.msra.mxu0 %v12570_v9 }
 0x458   : > { %6796 = vmatpush2.bf16.msra.mxu1 %v12571_v53  ;;  %6754 = vmatprep.subr.bf16.mxu0 %v12572_v17  ;;  %v12597_v17 = vld [vmem:[%s18946_s3 + $0x564] ss:$8 sps:$4 sm:$0xff]  }
 0x459   : > { %6797 = vmatprep.subr.bf16.mxu1 %v12573_v44 }
 0x45b   : > { %6755 = vmatpush2.bf16.msra.mxu0 %v12574_v33  ;;  %v12598_v33 = vld [vmem:[%s18946_s3 + $0x460] ss:$8 sps:$4 sm:$0xff]  }
 0x45c   : > { %6798 = vmatpush2.bf16.msra.mxu1 %v12575_v49  ;;  %6756 = vmatprep.subr.bf16.mxu0 %v12576_v2 }
 0x45d   : > { %6799 = vmatprep.subr.bf16.mxu1 %v12577_v40 }
 0x45f   : > { %6757 = vmatpush2.bf16.msra.mxu0 %v12578_v13  ;;  %v12600_v13 = vld [vmem:[%s18946_s3 + $0x454] ss:$8 sps:$4 sm:$0xff]  }
 0x460   : > { %6800 = vmatpush2.bf16.msra.mxu1 %v12579_v63  ;;  %6758 = vmatprep.subr.bf16.mxu0 %v12580_v55  ;;  %v12601_v55 = vld [vmem:[%s18946_s3 + $0x554] ss:$8 sps:$4 sm:$0xff]  }
 0x461   : > { %6801 = vmatprep.subr.bf16.mxu1 %v12581_v3 }
 0x463   : > { %6759 = vmatpush2.bf16.msra.mxu0 %v12582_v47  ;;  %v12602_v47 = vld [vmem:[%s18946_s3 + $0x450] ss:$8 sps:$4 sm:$0xff]  }
 0x464   : > { %6802 = vmatpush2.bf16.msra.mxu1 %v12583_v27  ;;  %6760 = vmatprep.subr.bf16.mxu0 %v12584_v19  ;;  %v12603_v19 = vld [vmem:[%s18946_s3 + $0x550] ss:$8 sps:$4 sm:$0xff]  }
 0x465   : > { %6803 = vmatprep.subr.bf16.mxu1 %v12585_v1  ;;  %v12604_v1 = vld [vmem:[%s18946_s3 + $0x444] ss:$8 sps:$4 sm:$0xff]  }
 0x467   : > { %6761 = vmatpush2.bf16.msra.mxu0 %v12586_v24  ;;  %v12607_v24 = vld [vmem:[%s18946_s3 + $0x540] ss:$8 sps:$4 sm:$0xff]  }
 0x468   : > { %6804 = vmatpush2.bf16.msra.mxu1 %v12587_v30  ;;  %6762 = vmatprep.subr.bf16.mxu0 %v12588_v54  ;;  %v12608_v30 = vld [vmem:[%s18946_s3 + $0x434] ss:$8 sps:$4 sm:$0xff]  }
 0x469   : > { %6805 = vmatprep.subr.bf16.mxu1 %v12589_v52  ;;  %v12609_v54 = vld [vmem:[%s18946_s3 + $0x534] ss:$8 sps:$4 sm:$0xff]   ;;  %v12610_v52 = vld [vmem:[%s18946_s3 + $0x430] ss:$8 sps:$4 sm:$0xff]  }
 0x46b   : > { %6763 = vmatpush2.bf16.msra.mxu0 %v12590_v50  ;;  %v12611_v50 = vld [vmem:[%s18946_s3 + $0x530] ss:$8 sps:$4 sm:$0xff]  }
 0x46c   : > { %6806 = vmatpush2.bf16.msra.mxu1 %v12591_v18  ;;  %6818 = vmatprep.subr.bf16.mxu0 %v12592_v41  ;;  %v12612_v18 = vld [vmem:[%s18946_s3 + $0x424] ss:$8 sps:$4 sm:$0xff]  }
 0x46d   : > { %6861 = vmatprep.subr.bf16.mxu1 %v12593_v31  ;;  %v12613_v41 = vld [vmem:[%s18946_s3 + $0x524] ss:$8 sps:$4 sm:$0xff]   ;;  %v12614_v31 = vld [vmem:[%s18946_s3 + $0x420] ss:$8 sps:$4 sm:$0xff]  }
 0x46e   : > { %v6111_v42 = vpop.f32.mrf.mxu0  ;;  %6765 = vmatmul.mubr.bf16.vlgmr.msra.gmra.mxu0 %v14383_v21 }
 0x46f   : > { %v6154_v46 = vpop.f32.mrf.mxu1  ;;  %6808 = vmatmul.mubr.bf16.vlgmr.msra.gmra.mxu1 %v14386_v34  ;;  %6819 = vmatpush1.bf16.msra.mxu0 %v12594_v61  ;;  %v12617_v61 = vld [vmem:[%s18946_s3 + $0x514] ss:$8 sps:$4 sm:$0xff]  }
 0x470   : > { %v6155_v23 = vadd.f32 %v6154_v46, %v6111_v42  ;;  %6850 = vmatprep.mubr.bf16.mxu0 %v14470_v7  ;;  %6862 = vmatpush1.bf16.msra.mxu1 %v12595_v26  ;;  %v6113_v32 = vpop.f32.mrf.mxu0  ;;  %v12615_v42 = vld [vmem:[%s18946_s3 + $0x520] ss:$8 sps:$4 sm:$0xff]   ;;  %v12616_v46 = vld [vmem:[%s18946_s3 + $0x414] ss:$8 sps:$4 sm:$0xff]   ;;  %v12619_v26 = vld [vmem:[%s18946_s3 + $0x510] ss:$8 sps:$4 sm:$0xff]  }
 0x471   : > { %6893 = vmatprep.mubr.bf16.mxu1 %v14476_v25  ;;  %v6156_v60 = vpop.f32.mrf.mxu1  ;;  %6820 = vmatprep.subr.bf16.mxu0 %v12596_v39  ;;  %v12622_v39 = vld [vmem:[%s18946_s3 + $0x400] ss:$8 sps:$4 sm:$0xff]  }
 0x472   : > { %v16755_v4 = vadd.f32 %v6155_v23, %v16547_v62  ;;  %v6157_v9 = vadd.f32 %v6156_v60, %v6113_v32  ;;  %v6115_v53 = vpop.f32.mrf.mxu0  ;;  %6863 = vmatprep.subr.bf16.mxu1 %v12597_v17  ;;  %v12599_v62 = vld [vmem:[%s18946_s3 + $0x560] ss:$8 sps:$4 sm:$0xff]   ;;  %v12618_v23 = vld [vmem:[%s18946_s3 + $0x410] ss:$8 sps:$4 sm:$0xff]   ;;  %v12620_v32 = vld [vmem:[%s18946_s3 + $0x404] ss:$8 sps:$4 sm:$0xff]  }
 0x473   : > { %v6158_v44 = vpop.f32.mrf.mxu1  ;;  %6821 = vmatpush1.bf16.msra.mxu0 %v12598_v33  ;;  %v12621_v60 = vld [vmem:[%s18946_s3 + $0x504] ss:$8 sps:$4 sm:$0xff]   ;;  %v12625_v17 = vld [vmem:[%s18946_s3 + $0x5f4] ss:$8 sps:$4 sm:$0xff]   ;;  %v12627_v33 = vld [vmem:[%s18946_s3 + $0x5f0] ss:$8 sps:$4 sm:$0xff]  }
 0x474   : > { %v16764_v49 = vadd.f32 %v6157_v9, %v16556_v58  ;;  %v6159_v2 = vadd.f32 %v6158_v44, %v6115_v53  ;;  %6864 = vmatpush1.bf16.msra.mxu1 %v12599_v62  ;;  %v6117_v40 = vpop.f32.mrf.mxu0  ;;  %6822 = vmatprep.subr.bf16.mxu0 %v12600_v13  ;;  %v12623_v9 = vld [vmem:[%s18946_s3 + $0x500] ss:$8 sps:$4 sm:$0xff]   ;;  %v12624_v53 = vld [vmem:[%s18946_s3 + $0x4f4] ss:$8 sps:$4 sm:$0xff]   ;;  %v12626_v44 = vld [vmem:[%s18946_s3 + $0x4f0] ss:$8 sps:$4 sm:$0xff]  }
 0x475   : > { %v6160_v63 = vpop.f32.mrf.mxu1  ;;  %6865 = vmatprep.subr.bf16.mxu1 %v12601_v55  ;;  %v12629_v62 = vld [vmem:[%s18946_s3 + $0x5e4] ss:$8 sps:$4 sm:$0xff]   ;;  %v12631_v13 = vld [vmem:[%s18946_s3 + $0x5e0] ss:$8 sps:$4 sm:$0xff]   ;;  %v12633_v55 = vld [vmem:[%s18946_s3 + $0x5d4] ss:$8 sps:$4 sm:$0xff]  }
 0x476   : > { %v16776_v58 = vadd.f32 %v6159_v2, %v16568_v51  ;;  %v6161_v3 = vadd.f32 %v6160_v63, %v6117_v40  ;;  %v12605_v51 = vld [vmem:[%s18946_s3 + $0x544] ss:$8 sps:$4 sm:$0xff]   ;;  %v12630_v40 = vld [vmem:[%s18946_s3 + $0x4e0] ss:$8 sps:$4 sm:$0xff]   ;;  %v12632_v63 = vld [vmem:[%s18946_s3 + $0x4d4] ss:$8 sps:$4 sm:$0xff]  }
 0x477   : > { %6823 = vmatpush1.bf16.msra.mxu0 %v12602_v47  ;;  %v12628_v2 = vld [vmem:[%s18946_s3 + $0x4e4] ss:$8 sps:$4 sm:$0xff]   ;;  %v12635_v47 = vld [vmem:[%s18946_s3 + $0x5d0] ss:$8 sps:$4 sm:$0xff]  }
 0x478   : > { %v16782_v27 = vadd.f32 %v6161_v3, %v16574_v15  ;;  %6866 = vmatpush1.bf16.msra.mxu1 %v12603_v19  ;;  %6824 = vmatprep.subr.bf16.mxu0 %v12604_v1  ;;  %v12606_v15 = vld [vmem:[%s18946_s3 + $0x440] ss:$8 sps:$4 sm:$0xff]   ;;  %v12634_v3 = vld [vmem:[%s18946_s3 + $0x4d0] ss:$8 sps:$4 sm:$0xff]   ;;  %v12636_v19 = vld [vmem:[%s18946_s3 + $0x4c4] ss:$8 sps:$4 sm:$0xff]  }
 0x479   : > { %6867 = vmatprep.subr.bf16.mxu1 %v12605_v51  ;;  %v12637_v1 = vld [vmem:[%s18946_s3 + $0x5c4] ss:$8 sps:$4 sm:$0xff]   ;;  %v12638_v51 = vld [vmem:[%s18946_s3 + $0x4c0] ss:$8 sps:$4 sm:$0xff]  }
 0x47b   : > { %6825 = vmatpush1.bf16.msra.mxu0 %v12606_v15  ;;  %v12639_v15 = vld [vmem:[%s18946_s3 + $0x5c0] ss:$8 sps:$4 sm:$0xff]  }
 0x47c   : > { %6868 = vmatpush1.bf16.msra.mxu1 %v12607_v24  ;;  %6826 = vmatprep.subr.bf16.mxu0 %v12608_v30  ;;  %v12640_v24 = vld [vmem:[%s18946_s3 + $0x4b4] ss:$8 sps:$4 sm:$0xff]  }
 0x47d   : > { %6869 = vmatprep.subr.bf16.mxu1 %v12609_v54  ;;  %v12641_v30 = vld [vmem:[%s18946_s3 + $0x5b4] ss:$8 sps:$4 sm:$0xff]   ;;  %v12642_v54 = vld [vmem:[%s18946_s3 + $0x4b0] ss:$8 sps:$4 sm:$0xff]  }
 0x47f   : > { %6827 = vmatpush1.bf16.msra.mxu0 %v12610_v52  ;;  %v12643_v52 = vld [vmem:[%s18946_s3 + $0x5b0] ss:$8 sps:$4 sm:$0xff]  }
 0x480   : > { %6870 = vmatpush1.bf16.msra.mxu1 %v12611_v50  ;;  %6828 = vmatprep.subr.bf16.mxu0 %v12612_v18  ;;  %v12644_v50 = vld [vmem:[%s18946_s3 + $0x4a4] ss:$8 sps:$4 sm:$0xff]  }
 0x481   : > { %6871 = vmatprep.subr.bf16.mxu1 %v12613_v41  ;;  %v12645_v18 = vld [vmem:[%s18946_s3 + $0x5a4] ss:$8 sps:$4 sm:$0xff]   ;;  %v12646_v41 = vld [vmem:[%s18946_s3 + $0x4a0] ss:$8 sps:$4 sm:$0xff]  }
 0x483   : > { %6829 = vmatpush1.bf16.msra.mxu0 %v12614_v31  ;;  %v12647_v31 = vld [vmem:[%s18946_s3 + $0x5a0] ss:$8 sps:$4 sm:$0xff]  }
 0x484   : > { %6872 = vmatpush1.bf16.msra.mxu1 %v12615_v42  ;;  %6830 = vmatprep.subr.bf16.mxu0 %v12616_v46  ;;  %v12648_v42 = vld [vmem:[%s18946_s3 + $0x494] ss:$8 sps:$4 sm:$0xff]  }
 0x485   : > { %6873 = vmatprep.subr.bf16.mxu1 %v12617_v61  ;;  %v12649_v46 = vld [vmem:[%s18946_s3 + $0x594] ss:$8 sps:$4 sm:$0xff]   ;;  %v12650_v61 = vld [vmem:[%s18946_s3 + $0x490] ss:$8 sps:$4 sm:$0xff]  }
 0x487   : > { %6831 = vmatpush1.bf16.msra.mxu0 %v12618_v23  ;;  %v12651_v23 = vld [vmem:[%s18946_s3 + $0x590] ss:$8 sps:$4 sm:$0xff]  }
 0x488   : > { %6874 = vmatpush1.bf16.msra.mxu1 %v12619_v26  ;;  %6832 = vmatprep.subr.bf16.mxu0 %v12620_v32  ;;  %v12652_v26 = vld [vmem:[%s18946_s3 + $0x484] ss:$8 sps:$4 sm:$0xff]  }
 0x489   : > { %6875 = vmatprep.subr.bf16.mxu1 %v12621_v60  ;;  %v12653_v32 = vld [vmem:[%s18946_s3 + $0x584] ss:$8 sps:$4 sm:$0xff]   ;;  %v12654_v60 = vld [vmem:[%s18946_s3 + $0x480] ss:$8 sps:$4 sm:$0xff]  }
 0x48b   : > { %6833 = vmatpush1.bf16.msra.mxu0 %v12622_v39  ;;  %v12655_v39 = vld [vmem:[%s18946_s3 + $0x580] ss:$8 sps:$4 sm:$0xff]  }
 0x48c   : > { %6876 = vmatpush1.bf16.msra.mxu1 %v12623_v9  ;;  %6834 = vmatprep.subr.bf16.mxu0 %v12624_v53  ;;  %v12656_v9 = vld [vmem:[%s18946_s3 + $0x674] ss:$8 sps:$4 sm:$0xff]  }
 0x48d   : > { %6877 = vmatprep.subr.bf16.mxu1 %v12625_v17  ;;  %v12657_v53 = vld [vmem:[%s18946_s3 + $0x774] ss:$8 sps:$4 sm:$0xff]  }
 0x48f   : > { %6835 = vmatpush2.bf16.msra.mxu0 %v12626_v44 }
 0x490   : > { %6878 = vmatpush2.bf16.msra.mxu1 %v12627_v33  ;;  %6836 = vmatprep.subr.bf16.mxu0 %v12628_v2  ;;  %v12658_v33 = vld [vmem:[%s18946_s3 + $0x670] ss:$8 sps:$4 sm:$0xff]  }
 0x491   : > { %6879 = vmatprep.subr.bf16.mxu1 %v12629_v62  ;;  %v12659_v62 = vld [vmem:[%s18946_s3 + $0x770] ss:$8 sps:$4 sm:$0xff]  }
 0x493   : > { %6837 = vmatpush2.bf16.msra.mxu0 %v12630_v40 }
 0x494   : > { %6880 = vmatpush2.bf16.msra.mxu1 %v12631_v13  ;;  %6838 = vmatprep.subr.bf16.mxu0 %v12632_v63  ;;  %v12660_v63 = vld [vmem:[%s18946_s3 + $0x664] ss:$8 sps:$4 sm:$0xff]  }
 0x495   : > { %6881 = vmatprep.subr.bf16.mxu1 %v12633_v55 }
 0x497   : > { %6839 = vmatpush2.bf16.msra.mxu0 %v12634_v3 }
 0x498   : > { %6882 = vmatpush2.bf16.msra.mxu1 %v12635_v47  ;;  %6840 = vmatprep.subr.bf16.mxu0 %v12636_v19  ;;  %v12661_v19 = vld [vmem:[%s18946_s3 + $0x764] ss:$8 sps:$4 sm:$0xff]  }
 0x499   : > { %6883 = vmatprep.subr.bf16.mxu1 %v12637_v1 }
 0x49b   : > { %6841 = vmatpush2.bf16.msra.mxu0 %v12638_v51  ;;  %v12662_v51 = vld [vmem:[%s18946_s3 + $0x660] ss:$8 sps:$4 sm:$0xff]  }
 0x49c   : > { %6884 = vmatpush2.bf16.msra.mxu1 %v12639_v15  ;;  %6842 = vmatprep.subr.bf16.mxu0 %v12640_v24 }
 0x49d   : > { %6885 = vmatprep.subr.bf16.mxu1 %v12641_v30  ;;  %v12663_v30 = vld [vmem:[%s18946_s3 + $0x760] ss:$8 sps:$4 sm:$0xff]  }
 0x49f   : > { %6843 = vmatpush2.bf16.msra.mxu0 %v12642_v54 }
 0x4a0   : > { %6886 = vmatpush2.bf16.msra.mxu1 %v12643_v52  ;;  %6844 = vmatprep.subr.bf16.mxu0 %v12644_v50  ;;  %v12664_v52 = vld [vmem:[%s18946_s3 + $0x654] ss:$8 sps:$4 sm:$0xff]  }
 0x4a1   : > { %6887 = vmatprep.subr.bf16.mxu1 %v12645_v18  ;;  %v12665_v18 = vld [vmem:[%s18946_s3 + $0x754] ss:$8 sps:$4 sm:$0xff]  }
 0x4a3   : > { %6845 = vmatpush2.bf16.msra.mxu0 %v12646_v41 }
 0x4a4   : > { %6888 = vmatpush2.bf16.msra.mxu1 %v12647_v31  ;;  %6846 = vmatprep.subr.bf16.mxu0 %v12648_v42  ;;  %v12666_v42 = vld [vmem:[%s18946_s3 + $0x650] ss:$8 sps:$4 sm:$0xff]  }
 0x4a5   : > { %6889 = vmatprep.subr.bf16.mxu1 %v12649_v46 }
 0x4a7   : > { %6847 = vmatpush2.bf16.msra.mxu0 %v12650_v61 }
 0x4a8   : > { %6890 = vmatpush2.bf16.msra.mxu1 %v12651_v23  ;;  %6848 = vmatprep.subr.bf16.mxu0 %v12652_v26  ;;  %v12667_v23 = vld [vmem:[%s18946_s3 + $0x750] ss:$8 sps:$4 sm:$0xff]   ;;  %v12669_v26 = vld [vmem:[%s18946_s3 + $0x744] ss:$8 sps:$4 sm:$0xff]  }
 0x4a9   : > { %6891 = vmatprep.subr.bf16.mxu1 %v12653_v32 }
 0x4ab   : > { %6849 = vmatpush2.bf16.msra.mxu0 %v12654_v60  ;;  %v12671_v60 = vld [vmem:[%s18946_s3 + $0x740] ss:$8 sps:$4 sm:$0xff]  }
 0x4ac   : > { %6892 = vmatpush2.bf16.msra.mxu1 %v12655_v39  ;;  %6908 = vmatprep.subr.bf16.mxu0 %v12656_v9  ;;  %v12672_v39 = vld [vmem:[%s18946_s3 + $0x634] ss:$8 sps:$4 sm:$0xff]  }
 0x4ad   : > { %6951 = vmatprep.subr.bf16.mxu1 %v12657_v53  ;;  %v12673_v9 = vld [vmem:[%s18946_s3 + $0x734] ss:$8 sps:$4 sm:$0xff]   ;;  %v12674_v53 = vld [vmem:[%s18946_s3 + $0x630] ss:$8 sps:$4 sm:$0xff]  }
 0x4ae   : > { %v6586_v17 = vpop.f32.mrf.mxu0  ;;  %6851 = vmatmul.mubr.bf16.vlgmr.msra.gmra.mxu0 %v14474_v22 }
 0x4af   : > { %v6629_v44 = vpop.f32.mrf.mxu1  ;;  %6894 = vmatmul.mubr.bf16.vlgmr.msra.gmra.mxu1 %v14478_v29  ;;  %6909 = vmatpush1.bf16.msra.mxu0 %v12658_v33  ;;  %v12677_v33 = vld [vmem:[%s18946_s3 + $0x724] ss:$8 sps:$4 sm:$0xff]  }
 0x4b0   : > { %v6630_v2 = vadd.f32 %v6629_v44, %v6586_v17  ;;  %6940 = vmatprep.mubr.bf16.mxu0 %v14363_v28  ;;  %6952 = vmatpush1.bf16.msra.mxu1 %v12659_v62  ;;  %v6588_v40 = vpop.f32.mrf.mxu0  ;;  %v12675_v17 = vld [vmem:[%s18946_s3 + $0x730] ss:$8 sps:$4 sm:$0xff]   ;;  %v12676_v44 = vld [vmem:[%s18946_s3 + $0x624] ss:$8 sps:$4 sm:$0xff]   ;;  %v12679_v62 = vld [vmem:[%s18946_s3 + $0x720] ss:$8 sps:$4 sm:$0xff]  }
 0x4b1   : > { %6983 = vmatprep.mubr.bf16.mxu1 %v14427_v56  ;;  %v6631_v13 = vpop.f32.mrf.mxu1  ;;  %6910 = vmatprep.subr.bf16.mxu0 %v12660_v63  ;;  %v12682_v63 = vld [vmem:[%s18946_s3 + $0x610] ss:$8 sps:$4 sm:$0xff]  }
 0x4b2   : > { %v16963_v55 = vadd.f32 %v6630_v2, %v16755_v4  ;;  %v6632_v3 = vadd.f32 %v6631_v13, %v6588_v40  ;;  %v6590_v47 = vpop.f32.mrf.mxu0  ;;  %6953 = vmatprep.subr.bf16.mxu1 %v12661_v19  ;;  %v12678_v2 = vld [vmem:[%s18946_s3 + $0x620] ss:$8 sps:$4 sm:$0xff]   ;;  %v12680_v40 = vld [vmem:[%s18946_s3 + $0x614] ss:$8 sps:$4 sm:$0xff]   ;;  %v12685_v19 = vld [vmem:[%s18946_s3 + $0x704] ss:$8 sps:$4 sm:$0xff]  }
 0x4b3   : > { %v6633_v1 = vpop.f32.mrf.mxu1  ;;  %6911 = vmatpush1.bf16.msra.mxu0 %v12662_v51  ;;  %v12681_v13 = vld [vmem:[%s18946_s3 + $0x714] ss:$8 sps:$4 sm:$0xff]   ;;  %v12687_v51 = vld [vmem:[%s18946_s3 + $0x700] ss:$8 sps:$4 sm:$0xff]  }
 0x4b4   : > { %v6642_v15 = vmax.f32 %v15942_v12, %v16963_v55  ;;  %v16974_v24 = vadd.f32 %v6632_v3, %v16764_v49  ;;  %v6634_v4 = vadd.f32 %v6633_v1, %v6590_v47  ;;  %6954 = vmatpush1.bf16.msra.mxu1 %v12663_v30  ;;  %v6592_v54 = vpop.f32.mrf.mxu0  ;;  %6912 = vmatprep.subr.bf16.mxu0 %v12664_v52  ;;  %v12683_v3 = vld [vmem:[%s18946_s3 + $0x710] ss:$8 sps:$4 sm:$0xff]   ;;  %v12684_v47 = vld [vmem:[%s18946_s3 + $0x604] ss:$8 sps:$4 sm:$0xff]   ;;  %v12686_v1 = vld [vmem:[%s18946_s3 + $0x600] ss:$8 sps:$4 sm:$0xff]  }
 0x4b5   : > { %v6635_v50 = vpop.f32.mrf.mxu1  ;;  %6955 = vmatprep.subr.bf16.mxu1 %v12665_v18  ;;  %v12689_v30 = vld [vmem:[%s18946_s3 + $0x7f4] ss:$8 sps:$4 sm:$0xff]   ;;  %v12691_v52 = vld [vmem:[%s18946_s3 + $0x7f0] ss:$8 sps:$4 sm:$0xff]   ;;  %v12693_v18 = vld [vmem:[%s18946_s3 + $0x7e4] ss:$8 sps:$4 sm:$0xff]  }
 0x4b6   : > { %v16988_v41 = vadd.f32 %v6634_v4, %v16776_v58  ;;  %v6636_v31 = vadd.f32 %v6635_v50, %v6592_v54  ;;  %v12668_v58 = vld [vmem:[%s18946_s3 + $0x644] ss:$8 sps:$4 sm:$0xff]   ;;  %v12688_v4 = vld [vmem:[%s18946_s3 + $0x6f4] ss:$8 sps:$4 sm:$0xff]   ;;  %v12690_v54 = vld [vmem:[%s18946_s3 + $0x6f0] ss:$8 sps:$4 sm:$0xff]  }
 0x4b7   : > { %6913 = vmatpush1.bf16.msra.mxu0 %v12666_v42  ;;  %v12692_v50 = vld [vmem:[%s18946_s3 + $0x6e4] ss:$8 sps:$4 sm:$0xff]   ;;  %v12695_v42 = vld [vmem:[%s18946_s3 + $0x7e0] ss:$8 sps:$4 sm:$0xff]   ;;  %v12986_v12 = vld [vmem:[%s18946_s3 + $0x1050] ss:$8 sps:$4 sm:$0xff]  }
 0x4b8   : > { %v6644_v46 = vmax.f32 %v15960_v36, %v16988_v41  ;;  %v16996_v61 = vadd.f32 %v6636_v31, %v16782_v27  ;;  %6956 = vmatpush1.bf16.msra.mxu1 %v12667_v23  ;;  %6914 = vmatprep.subr.bf16.mxu0 %v12668_v58  ;;  %v12670_v27 = vld [vmem:[%s18946_s3 + $0x640] ss:$8 sps:$4 sm:$0xff]   ;;  %v12696_v23 = vld [vmem:[%s18946_s3 + $0x6d4] ss:$8 sps:$4 sm:$0xff]  }
 0x4b9   : > { %6957 = vmatprep.subr.bf16.mxu1 %v12669_v26  ;;  %v12694_v31 = vld [vmem:[%s18946_s3 + $0x6e0] ss:$8 sps:$4 sm:$0xff]   ;;  %v12697_v58 = vld [vmem:[%s18946_s3 + $0x7d4] ss:$8 sps:$4 sm:$0xff]   ;;  %v12698_v26 = vld [vmem:[%s18946_s3 + $0x6d0] ss:$8 sps:$4 sm:$0xff]  }
 0x4ba   : > { %v12990_v36 = vld [vmem:[%s18946_s3 + $0x1040] ss:$8 sps:$4 sm:$0xff]  }
 0x4bb   : > { %6915 = vmatpush1.bf16.msra.mxu0 %v12670_v27  ;;  %v12699_v27 = vld [vmem:[%s18946_s3 + $0x7d0] ss:$8 sps:$4 sm:$0xff]   ;;  %v12991_v41 = vld [vmem:[%s18946_s3 + $0x1140] ss:$8 sps:$4 sm:$0xff]  }
 0x4bc   : > { %6958 = vmatpush1.bf16.msra.mxu1 %v12671_v60  ;;  %6916 = vmatprep.subr.bf16.mxu0 %v12672_v39  ;;  %v12700_v60 = vld [vmem:[%s18946_s3 + $0x6c4] ss:$8 sps:$4 sm:$0xff]  }
 0x4bd   : > { %6959 = vmatprep.subr.bf16.mxu1 %v12673_v9  ;;  %v12701_v39 = vld [vmem:[%s18946_s3 + $0x7c4] ss:$8 sps:$4 sm:$0xff]   ;;  %v12702_v9 = vld [vmem:[%s18946_s3 + $0x6c0] ss:$8 sps:$4 sm:$0xff]  }
 0x4bf   : > { %6917 = vmatpush1.bf16.msra.mxu0 %v12674_v53  ;;  %v12703_v53 = vld [vmem:[%s18946_s3 + $0x7c0] ss:$8 sps:$4 sm:$0xff]  }
 0x4c0   : > { %6960 = vmatpush1.bf16.msra.mxu1 %v12675_v17  ;;  %6918 = vmatprep.subr.bf16.mxu0 %v12676_v44  ;;  %v12704_v17 = vld [vmem:[%s18946_s3 + $0x6b4] ss:$8 sps:$4 sm:$0xff]  }
 0x4c1   : > { %6961 = vmatprep.subr.bf16.mxu1 %v12677_v33  ;;  %v12705_v44 = vld [vmem:[%s18946_s3 + $0x7b4] ss:$8 sps:$4 sm:$0xff]   ;;  %v12706_v33 = vld [vmem:[%s18946_s3 + $0x6b0] ss:$8 sps:$4 sm:$0xff]  }
 0x4c3   : > { %6919 = vmatpush1.bf16.msra.mxu0 %v12678_v2  ;;  %v12707_v2 = vld [vmem:[%s18946_s3 + $0x7b0] ss:$8 sps:$4 sm:$0xff]  }
 0x4c4   : > { %6962 = vmatpush1.bf16.msra.mxu1 %v12679_v62  ;;  %6920 = vmatprep.subr.bf16.mxu0 %v12680_v40  ;;  %v12708_v62 = vld [vmem:[%s18946_s3 + $0x6a4] ss:$8 sps:$4 sm:$0xff]  }
 0x4c5   : > { %6963 = vmatprep.subr.bf16.mxu1 %v12681_v13  ;;  %v12709_v40 = vld [vmem:[%s18946_s3 + $0x7a4] ss:$8 sps:$4 sm:$0xff]   ;;  %v12710_v13 = vld [vmem:[%s18946_s3 + $0x6a0] ss:$8 sps:$4 sm:$0xff]  }
 0x4c7   : > { %6921 = vmatpush1.bf16.msra.mxu0 %v12682_v63  ;;  %v12711_v63 = vld [vmem:[%s18946_s3 + $0x7a0] ss:$8 sps:$4 sm:$0xff]  }
 0x4c8   : > { %6964 = vmatpush1.bf16.msra.mxu1 %v12683_v3  ;;  %6922 = vmatprep.subr.bf16.mxu0 %v12684_v47  ;;  %v12712_v3 = vld [vmem:[%s18946_s3 + $0x694] ss:$8 sps:$4 sm:$0xff]  }
 0x4c9   : > { %6965 = vmatprep.subr.bf16.mxu1 %v12685_v19  ;;  %v12713_v47 = vld [vmem:[%s18946_s3 + $0x794] ss:$8 sps:$4 sm:$0xff]   ;;  %v12714_v19 = vld [vmem:[%s18946_s3 + $0x690] ss:$8 sps:$4 sm:$0xff]  }
 0x4cb   : > { %6923 = vmatpush1.bf16.msra.mxu0 %v12686_v1  ;;  %v12715_v1 = vld [vmem:[%s18946_s3 + $0x790] ss:$8 sps:$4 sm:$0xff]  }
 0x4cc   : > { %6966 = vmatpush1.bf16.msra.mxu1 %v12687_v51  ;;  %6924 = vmatprep.subr.bf16.mxu0 %v12688_v4  ;;  %v12716_v51 = vld [vmem:[%s18946_s3 + $0x684] ss:$8 sps:$4 sm:$0xff]  }
 0x4cd   : > { %6967 = vmatprep.subr.bf16.mxu1 %v12689_v30  ;;  %v12717_v4 = vld [vmem:[%s18946_s3 + $0x784] ss:$8 sps:$4 sm:$0xff]   ;;  %v12718_v30 = vld [vmem:[%s18946_s3 + $0x680] ss:$8 sps:$4 sm:$0xff]  }
 0x4cf   : > { %6925 = vmatpush2.bf16.msra.mxu0 %v12690_v54  ;;  %v12719_v54 = vld [vmem:[%s18946_s3 + $0x780] ss:$8 sps:$4 sm:$0xff]  }
 0x4d0   : > { %6968 = vmatpush2.bf16.msra.mxu1 %v12691_v52  ;;  %6926 = vmatprep.subr.bf16.mxu0 %v12692_v50  ;;  %v12720_v52 = vld [vmem:[%s18946_s3 + $0x874] ss:$8 sps:$4 sm:$0xff]  }
 0x4d1   : > { %6969 = vmatprep.subr.bf16.mxu1 %v12693_v18  ;;  %v12721_v50 = vld [vmem:[%s18946_s3 + $0x974] ss:$8 sps:$4 sm:$0xff]  }
 0x4d3   : > { %6927 = vmatpush2.bf16.msra.mxu0 %v12694_v31 }
 0x4d4   : > { %6970 = vmatpush2.bf16.msra.mxu1 %v12695_v42  ;;  %6928 = vmatprep.subr.bf16.mxu0 %v12696_v23  ;;  %v12722_v42 = vld [vmem:[%s18946_s3 + $0x870] ss:$8 sps:$4 sm:$0xff]  }
 0x4d5   : > { %6971 = vmatprep.subr.bf16.mxu1 %v12697_v58  ;;  %v12723_v58 = vld [vmem:[%s18946_s3 + $0x970] ss:$8 sps:$4 sm:$0xff]  }
 0x4d7   : > { %6929 = vmatpush2.bf16.msra.mxu0 %v12698_v26 }
 0x4d8   : > { %6972 = vmatpush2.bf16.msra.mxu1 %v12699_v27  ;;  %6930 = vmatprep.subr.bf16.mxu0 %v12700_v60  ;;  %v12724_v60 = vld [vmem:[%s18946_s3 + $0x864] ss:$8 sps:$4 sm:$0xff]  }
 0x4d9   : > { %6973 = vmatprep.subr.bf16.mxu1 %v12701_v39 }
 0x4db   : > { %6931 = vmatpush2.bf16.msra.mxu0 %v12702_v9  ;;  %v12725_v9 = vld [vmem:[%s18946_s3 + $0x964] ss:$8 sps:$4 sm:$0xff]  }
 0x4dc   : > { %6974 = vmatpush2.bf16.msra.mxu1 %v12703_v53  ;;  %6932 = vmatprep.subr.bf16.mxu0 %v12704_v17  ;;  %v12726_v17 = vld [vmem:[%s18946_s3 + $0x860] ss:$8 sps:$4 sm:$0xff]  }
 0x4dd   : > { %6975 = vmatprep.subr.bf16.mxu1 %v12705_v44 }
 0x4df   : > { %6933 = vmatpush2.bf16.msra.mxu0 %v12706_v33  ;;  %v12727_v33 = vld [vmem:[%s18946_s3 + $0x960] ss:$8 sps:$4 sm:$0xff]  }
 0x4e0   : > { %6976 = vmatpush2.bf16.msra.mxu1 %v12707_v2  ;;  %6934 = vmatprep.subr.bf16.mxu0 %v12708_v62  ;;  %v12728_v2 = vld [vmem:[%s18946_s3 + $0x854] ss:$8 sps:$4 sm:$0xff]  }
 0x4e1   : > { %6977 = vmatprep.subr.bf16.mxu1 %v12709_v40  ;;  %v12729_v62 = vld [vmem:[%s18946_s3 + $0x954] ss:$8 sps:$4 sm:$0xff]   ;;  %v12730_v40 = vld [vmem:[%s18946_s3 + $0x850] ss:$8 sps:$4 sm:$0xff]  }
 0x4e3   : > { %6935 = vmatpush2.bf16.msra.mxu0 %v12710_v13  ;;  %v12731_v13 = vld [vmem:[%s18946_s3 + $0x950] ss:$8 sps:$4 sm:$0xff]  }
 0x4e4   : > { %6978 = vmatpush2.bf16.msra.mxu1 %v12711_v63  ;;  %6936 = vmatprep.subr.bf16.mxu0 %v12712_v3  ;;  %v12732_v63 = vld [vmem:[%s18946_s3 + $0x844] ss:$8 sps:$4 sm:$0xff]  }
 0x4e5   : > { %6979 = vmatprep.subr.bf16.mxu1 %v12713_v47  ;;  %v12733_v3 = vld [vmem:[%s18946_s3 + $0x944] ss:$8 sps:$4 sm:$0xff]   ;;  %v12734_v47 = vld [vmem:[%s18946_s3 + $0x840] ss:$8 sps:$4 sm:$0xff]  }
 0x4e7   : > { %6937 = vmatpush2.bf16.msra.mxu0 %v12714_v19  ;;  %v12735_v19 = vld [vmem:[%s18946_s3 + $0x940] ss:$8 sps:$4 sm:$0xff]  }
 0x4e8   : > { %6980 = vmatpush2.bf16.msra.mxu1 %v12715_v1  ;;  %6938 = vmatprep.subr.bf16.mxu0 %v12716_v51  ;;  %v12736_v1 = vld [vmem:[%s18946_s3 + $0x834] ss:$8 sps:$4 sm:$0xff]  }
 0x4e9   : > { %6981 = vmatprep.subr.bf16.mxu1 %v12717_v4  ;;  %v12737_v51 = vld [vmem:[%s18946_s3 + $0x934] ss:$8 sps:$4 sm:$0xff]   ;;  %v12738_v4 = vld [vmem:[%s18946_s3 + $0x830] ss:$8 sps:$4 sm:$0xff]  }
 0x4eb   : > { %6939 = vmatpush2.bf16.msra.mxu0 %v12718_v30  ;;  %v12739_v30 = vld [vmem:[%s18946_s3 + $0x930] ss:$8 sps:$4 sm:$0xff]  }
 0x4ec   : > { %6982 = vmatpush2.bf16.msra.mxu1 %v12719_v54  ;;  %7014 = vmatprep.subr.bf16.mxu0 %v12720_v52  ;;  %v12740_v54 = vld [vmem:[%s18946_s3 + $0x824] ss:$8 sps:$4 sm:$0xff]  }
 0x4ed   : > { %7057 = vmatprep.subr.bf16.mxu1 %v12721_v50  ;;  %v12741_v52 = vld [vmem:[%s18946_s3 + $0x924] ss:$8 sps:$4 sm:$0xff]   ;;  %v12742_v50 = vld [vmem:[%s18946_s3 + $0x820] ss:$8 sps:$4 sm:$0xff]  }
 0x4ee   : > { %v6680_v18 = vpop.f32.mrf.mxu0  ;;  %6941 = vmatmul.mubr.bf16.vlgmr.msra.gmra.mxu0 %v14429_v57 }
 0x4ef   : > { %v6723_v31 = vpop.f32.mrf.mxu1  ;;  %6984 = vmatmul.mubr.bf16.vlgmr.msra.gmra.mxu1 %v14435_v59  ;;  %7015 = vmatpush1.bf16.msra.mxu0 %v12722_v42  ;;  %v12745_v42 = vld [vmem:[%s18946_s3 + $0x914] ss:$8 sps:$4 sm:$0xff]  }
 0x4f0   : > { %v17170_v23 = vadd.f32 %v6723_v31, %v6680_v18  ;;  %7046 = vmatprep.mubr.bf16.mxu0 %v14444_v6  ;;  %7058 = vmatpush1.bf16.msra.mxu1 %v12723_v58  ;;  %v17176_v26 = vpop.f32.mrf.mxu0  ;;  %v12743_v18 = vld [vmem:[%s18946_s3 + $0x920] ss:$8 sps:$4 sm:$0xff]   ;;  %v12744_v31 = vld [vmem:[%s18946_s3 + $0x814] ss:$8 sps:$4 sm:$0xff]   ;;  %v12746_v58 = vld [vmem:[%s18946_s3 + $0x810] ss:$8 sps:$4 sm:$0xff]  }
 0x4f1   : > { %7089 = vmatprep.mubr.bf16.mxu1 %v14454_v14  ;;  %v17179_v27 = vpop.f32.mrf.mxu1  ;;  %7016 = vmatprep.subr.bf16.mxu0 %v12724_v60  ;;  %v12747_v60 = vld [vmem:[%s18946_s3 + $0x910] ss:$8 sps:$4 sm:$0xff]  }
 0x4f2   : > { %v6684_v39 = vpop.f32.mrf.mxu0  ;;  %7059 = vmatprep.subr.bf16.mxu1 %v12725_v9  ;;  %v12749_v9 = vld [vmem:[%s18946_s3 + $0x904] ss:$8 sps:$4 sm:$0xff]  }
 0x4f3   : > { %v6727_v53 = vpop.f32.mrf.mxu1  ;;  %7017 = vmatpush1.bf16.msra.mxu0 %v12726_v17  ;;  %v12751_v17 = vld [vmem:[%s18946_s3 + $0x900] ss:$8 sps:$4 sm:$0xff]  }
 0x4f4   : > { %v17190_v44 = vadd.f32 %v6727_v53, %v6684_v39  ;;  %7060 = vmatpush1.bf16.msra.mxu1 %v12727_v33  ;;  %7018 = vmatprep.subr.bf16.mxu0 %v12728_v2  ;;  %v12748_v39 = vld [vmem:[%s18946_s3 + $0x804] ss:$8 sps:$4 sm:$0xff]   ;;  %v12750_v53 = vld [vmem:[%s18946_s3 + $0x800] ss:$8 sps:$4 sm:$0xff]   ;;  %v12752_v33 = vld [vmem:[%s18946_s3 + $0x8f4] ss:$8 sps:$4 sm:$0xff]  }
 0x4f5   : > { %7061 = vmatprep.subr.bf16.mxu1 %v12729_v62  ;;  %v12753_v2 = vld [vmem:[%s18946_s3 + $0x9f4] ss:$8 sps:$4 sm:$0xff]   ;;  %v12754_v62 = vld [vmem:[%s18946_s3 + $0x8f0] ss:$8 sps:$4 sm:$0xff]  }
 0x4f7   : > { %7019 = vmatpush1.bf16.msra.mxu0 %v12730_v40  ;;  %v12755_v40 = vld [vmem:[%s18946_s3 + $0x9f0] ss:$8 sps:$4 sm:$0xff]  }
 0x4f8   : > { %7062 = vmatpush1.bf16.msra.mxu1 %v12731_v13  ;;  %7020 = vmatprep.subr.bf16.mxu0 %v12732_v63  ;;  %v12756_v13 = vld [vmem:[%s18946_s3 + $0x8e4] ss:$8 sps:$4 sm:$0xff]  }
 0x4f9   : > { %7063 = vmatprep.subr.bf16.mxu1 %v12733_v3  ;;  %v12757_v63 = vld [vmem:[%s18946_s3 + $0x9e4] ss:$8 sps:$4 sm:$0xff]   ;;  %v12758_v3 = vld [vmem:[%s18946_s3 + $0x8e0] ss:$8 sps:$4 sm:$0xff]  }
 0x4fb   : > { %7021 = vmatpush1.bf16.msra.mxu0 %v12734_v47  ;;  %v12759_v47 = vld [vmem:[%s18946_s3 + $0x9e0] ss:$8 sps:$4 sm:$0xff]  }
 0x4fc   : > { %7064 = vmatpush1.bf16.msra.mxu1 %v12735_v19  ;;  %7022 = vmatprep.subr.bf16.mxu0 %v12736_v1  ;;  %v12760_v19 = vld [vmem:[%s18946_s3 + $0x8d4] ss:$8 sps:$4 sm:$0xff]  }
 0x4fd   : > { %7065 = vmatprep.subr.bf16.mxu1 %v12737_v51  ;;  %v12761_v1 = vld [vmem:[%s18946_s3 + $0x9d4] ss:$8 sps:$4 sm:$0xff]   ;;  %v12762_v51 = vld [vmem:[%s18946_s3 + $0x8d0] ss:$8 sps:$4 sm:$0xff]  }
 0x4ff   : > { %7023 = vmatpush1.bf16.msra.mxu0 %v12738_v4  ;;  %v12763_v4 = vld [vmem:[%s18946_s3 + $0x9d0] ss:$8 sps:$4 sm:$0xff]  }
 0x500   : > { %7066 = vmatpush1.bf16.msra.mxu1 %v12739_v30  ;;  %7024 = vmatprep.subr.bf16.mxu0 %v12740_v54  ;;  %v12764_v30 = vld [vmem:[%s18946_s3 + $0x8c4] ss:$8 sps:$4 sm:$0xff]  }
 0x501   : > { %7067 = vmatprep.subr.bf16.mxu1 %v12741_v52  ;;  %v12765_v54 = vld [vmem:[%s18946_s3 + $0x9c4] ss:$8 sps:$4 sm:$0xff]   ;;  %v12766_v52 = vld [vmem:[%s18946_s3 + $0x8c0] ss:$8 sps:$4 sm:$0xff]  }
 0x503   : > { %7025 = vmatpush1.bf16.msra.mxu0 %v12742_v50  ;;  %v12767_v50 = vld [vmem:[%s18946_s3 + $0x9c0] ss:$8 sps:$4 sm:$0xff]  }
 0x504   : > { %7068 = vmatpush1.bf16.msra.mxu1 %v12743_v18  ;;  %7026 = vmatprep.subr.bf16.mxu0 %v12744_v31  ;;  %v12768_v18 = vld [vmem:[%s18946_s3 + $0x8b4] ss:$8 sps:$4 sm:$0xff]  }
 0x505   : > { %7069 = vmatprep.subr.bf16.mxu1 %v12745_v42  ;;  %v12769_v31 = vld [vmem:[%s18946_s3 + $0x9b4] ss:$8 sps:$4 sm:$0xff]   ;;  %v12770_v42 = vld [vmem:[%s18946_s3 + $0x8b0] ss:$8 sps:$4 sm:$0xff]  }
 0x507   : > { %7027 = vmatpush1.bf16.msra.mxu0 %v12746_v58  ;;  %v12771_v58 = vld [vmem:[%s18946_s3 + $0x9b0] ss:$8 sps:$4 sm:$0xff]  }
 0x508   : > { %7070 = vmatpush1.bf16.msra.mxu1 %v12747_v60  ;;  %7028 = vmatprep.subr.bf16.mxu0 %v12748_v39  ;;  %v12772_v60 = vld [vmem:[%s18946_s3 + $0x8a4] ss:$8 sps:$4 sm:$0xff]  }
 0x509   : > { %7071 = vmatprep.subr.bf16.mxu1 %v12749_v9  ;;  %v12773_v39 = vld [vmem:[%s18946_s3 + $0x9a4] ss:$8 sps:$4 sm:$0xff]   ;;  %v12774_v9 = vld [vmem:[%s18946_s3 + $0x8a0] ss:$8 sps:$4 sm:$0xff]  }
 0x50b   : > { %7029 = vmatpush1.bf16.msra.mxu0 %v12750_v53  ;;  %v12775_v53 = vld [vmem:[%s18946_s3 + $0x9a0] ss:$8 sps:$4 sm:$0xff]  }
 0x50c   : > { %7072 = vmatpush1.bf16.msra.mxu1 %v12751_v17  ;;  %7030 = vmatprep.subr.bf16.mxu0 %v12752_v33  ;;  %v12776_v17 = vld [vmem:[%s18946_s3 + $0x894] ss:$8 sps:$4 sm:$0xff]  }
 0x50d   : > { %7073 = vmatprep.subr.bf16.mxu1 %v12753_v2  ;;  %v12777_v33 = vld [vmem:[%s18946_s3 + $0x994] ss:$8 sps:$4 sm:$0xff]   ;;  %v12778_v2 = vld [vmem:[%s18946_s3 + $0x890] ss:$8 sps:$4 sm:$0xff]  }
 0x50f   : > { %7031 = vmatpush2.bf16.msra.mxu0 %v12754_v62  ;;  %v12779_v62 = vld [vmem:[%s18946_s3 + $0x990] ss:$8 sps:$4 sm:$0xff]  }
 0x510   : > { %7074 = vmatpush2.bf16.msra.mxu1 %v12755_v40  ;;  %7032 = vmatprep.subr.bf16.mxu0 %v12756_v13  ;;  %v12780_v40 = vld [vmem:[%s18946_s3 + $0x884] ss:$8 sps:$4 sm:$0xff]  }
 0x511   : > { %7075 = vmatprep.subr.bf16.mxu1 %v12757_v63  ;;  %v12781_v13 = vld [vmem:[%s18946_s3 + $0x984] ss:$8 sps:$4 sm:$0xff]   ;;  %v12782_v63 = vld [vmem:[%s18946_s3 + $0x880] ss:$8 sps:$4 sm:$0xff]  }
 0x513   : > { %7033 = vmatpush2.bf16.msra.mxu0 %v12758_v3  ;;  %v12783_v3 = vld [vmem:[%s18946_s3 + $0x980] ss:$8 sps:$4 sm:$0xff]  }
 0x514   : > { %7076 = vmatpush2.bf16.msra.mxu1 %v12759_v47  ;;  %7034 = vmatprep.subr.bf16.mxu0 %v12760_v19  ;;  %v12784_v47 = vld [vmem:[%s18946_s3 + $0xc74] ss:$8 sps:$4 sm:$0xff]  }
 0x515   : > { %7077 = vmatprep.subr.bf16.mxu1 %v12761_v1  ;;  %v12785_v19 = vld [vmem:[%s18946_s3 + $0xd74] ss:$8 sps:$4 sm:$0xff]   ;;  %v12786_v1 = vld [vmem:[%s18946_s3 + $0xc70] ss:$8 sps:$4 sm:$0xff]  }
 0x517   : > { %7035 = vmatpush2.bf16.msra.mxu0 %v12762_v51  ;;  %v12787_v51 = vld [vmem:[%s18946_s3 + $0xd70] ss:$8 sps:$4 sm:$0xff]  }
 0x518   : > { %7078 = vmatpush2.bf16.msra.mxu1 %v12763_v4  ;;  %7036 = vmatprep.subr.bf16.mxu0 %v12764_v30  ;;  %v12788_v4 = vld [vmem:[%s18946_s3 + $0xc64] ss:$8 sps:$4 sm:$0xff]  }
 0x519   : > { %7079 = vmatprep.subr.bf16.mxu1 %v12765_v54  ;;  %v12789_v30 = vld [vmem:[%s18946_s3 + $0xd64] ss:$8 sps:$4 sm:$0xff]   ;;  %v12791_v54 = vld [vmem:[%s18946_s3 + $0xd60] ss:$8 sps:$4 sm:$0xff]  }
 0x51b   : > { %7037 = vmatpush2.bf16.msra.mxu0 %v12766_v52  ;;  %v12793_v52 = vld [vmem:[%s18946_s3 + $0xd54] ss:$8 sps:$4 sm:$0xff]  }
 0x51c   : > { %7080 = vmatpush2.bf16.msra.mxu1 %v12767_v50  ;;  %7038 = vmatprep.subr.bf16.mxu0 %v12768_v18  ;;  %v12794_v50 = vld [vmem:[%s18946_s3 + $0xc50] ss:$8 sps:$4 sm:$0xff]  }
 0x51d   : > { %7081 = vmatprep.subr.bf16.mxu1 %v12769_v31  ;;  %v12795_v18 = vld [vmem:[%s18946_s3 + $0xd50] ss:$8 sps:$4 sm:$0xff]   ;;  %v12796_v31 = vld [vmem:[%s18946_s3 + $0xc44] ss:$8 sps:$4 sm:$0xff]  }
 0x51f   : > { %7039 = vmatpush2.bf16.msra.mxu0 %v12770_v42  ;;  %v12797_v42 = vld [vmem:[%s18946_s3 + $0xd44] ss:$8 sps:$4 sm:$0xff]  }
 0x520   : > { %7082 = vmatpush2.bf16.msra.mxu1 %v12771_v58  ;;  %7040 = vmatprep.subr.bf16.mxu0 %v12772_v60  ;;  %v12798_v58 = vld [vmem:[%s18946_s3 + $0xc40] ss:$8 sps:$4 sm:$0xff]  }
 0x521   : > { %7083 = vmatprep.subr.bf16.mxu1 %v12773_v39  ;;  %v12799_v60 = vld [vmem:[%s18946_s3 + $0xd40] ss:$8 sps:$4 sm:$0xff]   ;;  %v12800_v39 = vld [vmem:[%s18946_s3 + $0xc34] ss:$8 sps:$4 sm:$0xff]  }
 0x523   : > { %7041 = vmatpush2.bf16.msra.mxu0 %v12774_v9  ;;  %v12801_v9 = vld [vmem:[%s18946_s3 + $0xd34] ss:$8 sps:$4 sm:$0xff]  }
 0x524   : > { %7084 = vmatpush2.bf16.msra.mxu1 %v12775_v53  ;;  %7042 = vmatprep.subr.bf16.mxu0 %v12776_v17  ;;  %v12802_v53 = vld [vmem:[%s18946_s3 + $0xc30] ss:$8 sps:$4 sm:$0xff]  }
 0x525   : > { %7085 = vmatprep.subr.bf16.mxu1 %v12777_v33  ;;  %v12803_v17 = vld [vmem:[%s18946_s3 + $0xd30] ss:$8 sps:$4 sm:$0xff]   ;;  %v12804_v33 = vld [vmem:[%s18946_s3 + $0xc24] ss:$8 sps:$4 sm:$0xff]  }
 0x527   : > { %7043 = vmatpush2.bf16.msra.mxu0 %v12778_v2  ;;  %v12805_v2 = vld [vmem:[%s18946_s3 + $0xd24] ss:$8 sps:$4 sm:$0xff]  }
 0x528   : > { %7086 = vmatpush2.bf16.msra.mxu1 %v12779_v62  ;;  %7044 = vmatprep.subr.bf16.mxu0 %v12780_v40  ;;  %v12806_v62 = vld [vmem:[%s18946_s3 + $0xc20] ss:$8 sps:$4 sm:$0xff]  }
 0x529   : > { %7087 = vmatprep.subr.bf16.mxu1 %v12781_v13  ;;  %v12807_v40 = vld [vmem:[%s18946_s3 + $0xd20] ss:$8 sps:$4 sm:$0xff]   ;;  %v12808_v13 = vld [vmem:[%s18946_s3 + $0xc14] ss:$8 sps:$4 sm:$0xff]  }
 0x52b   : > { %7045 = vmatpush2.bf16.msra.mxu0 %v12782_v63  ;;  %v12809_v63 = vld [vmem:[%s18946_s3 + $0xd14] ss:$8 sps:$4 sm:$0xff]  }
 0x52c   : > { %7088 = vmatpush2.bf16.msra.mxu1 %v12783_v3  ;;  %7108 = vmatprep.subr.bf16.mxu0 %v12784_v47  ;;  %v12810_v3 = vld [vmem:[%s18946_s3 + $0xc10] ss:$8 sps:$4 sm:$0xff]  }
 0x52d   : > { %7151 = vmatprep.subr.bf16.mxu1 %v12785_v19  ;;  %v12811_v47 = vld [vmem:[%s18946_s3 + $0xd10] ss:$8 sps:$4 sm:$0xff]   ;;  %v12812_v19 = vld [vmem:[%s18946_s3 + $0xc04] ss:$8 sps:$4 sm:$0xff]  }
 0x52e   : > { %7047 = vmatmul.mubr.bf16.vlgmr.msra.gmra.mxu0 %v14438_v0 }
 0x52f   : > { %7090 = vmatmul.mubr.bf16.vlgmr.msra.gmra.mxu1 %v14451_v10  ;;  %7109 = vmatpush1.bf16.msra.mxu0 %v12786_v1  ;;  %v12813_v1 = vld [vmem:[%s18946_s3 + $0xd04] ss:$8 sps:$4 sm:$0xff]  }
 0x530   : > { %7140 = vmatprep.mubr.bf16.mxu0 %v14687_v45  ;;  %7152 = vmatpush1.bf16.msra.mxu1 %v12787_v51  ;;  %v12790_v45 = vld [vmem:[%s18946_s3 + $0xc60] ss:$8 sps:$4 sm:$0xff]  }
 0x531   : > { %7183 = vmatprep.mubr.bf16.mxu1 %v14697_v37  ;;  %7110 = vmatprep.subr.bf16.mxu0 %v12788_v4  ;;  %v12792_v37 = vld [vmem:[%s18946_s3 + $0xc54] ss:$8 sps:$4 sm:$0xff]   ;;  %v12814_v51 = vld [vmem:[%s18946_s3 + $0xc00] ss:$8 sps:$4 sm:$0xff]  }
 0x532   : > { %7153 = vmatprep.subr.bf16.mxu1 %v12789_v30  ;;  %v12815_v4 = vld [vmem:[%s18946_s3 + $0xd00] ss:$8 sps:$4 sm:$0xff]   ;;  %v12816_v30 = vld [vmem:[%s18946_s3 + $0xcf4] ss:$8 sps:$4 sm:$0xff]  }
 0x533   : > { %7111 = vmatpush1.bf16.msra.mxu0 %v12790_v45  ;;  %v12817_v45 = vld [vmem:[%s18946_s3 + $0xdf4] ss:$8 sps:$4 sm:$0xff]  }
 0x534   : > { %7154 = vmatpush1.bf16.msra.mxu1 %v12791_v54  ;;  %7112 = vmatprep.subr.bf16.mxu0 %v12792_v37  ;;  %v12818_v54 = vld [vmem:[%s18946_s3 + $0xcf0] ss:$8 sps:$4 sm:$0xff]  }
 0x535   : > { %7155 = vmatprep.subr.bf16.mxu1 %v12793_v52  ;;  %v12819_v37 = vld [vmem:[%s18946_s3 + $0xdf0] ss:$8 sps:$4 sm:$0xff]   ;;  %v12820_v52 = vld [vmem:[%s18946_s3 + $0xce4] ss:$8 sps:$4 sm:$0xff]  }
 0x537   : > { %7113 = vmatpush1.bf16.msra.mxu0 %v12794_v50  ;;  %v12821_v50 = vld [vmem:[%s18946_s3 + $0xde4] ss:$8 sps:$4 sm:$0xff]  }
 0x538   : > { %7156 = vmatpush1.bf16.msra.mxu1 %v12795_v18  ;;  %7114 = vmatprep.subr.bf16.mxu0 %v12796_v31  ;;  %v12822_v18 = vld [vmem:[%s18946_s3 + $0xce0] ss:$8 sps:$4 sm:$0xff]  }
 0x539   : > { %7157 = vmatprep.subr.bf16.mxu1 %v12797_v42  ;;  %v12823_v31 = vld [vmem:[%s18946_s3 + $0xde0] ss:$8 sps:$4 sm:$0xff]   ;;  %v12824_v42 = vld [vmem:[%s18946_s3 + $0xcd4] ss:$8 sps:$4 sm:$0xff]  }
 0x53b   : > { %7115 = vmatpush1.bf16.msra.mxu0 %v12798_v58  ;;  %v12825_v58 = vld [vmem:[%s18946_s3 + $0xdd4] ss:$8 sps:$4 sm:$0xff]  }
 0x53c   : > { %7158 = vmatpush1.bf16.msra.mxu1 %v12799_v60  ;;  %7116 = vmatprep.subr.bf16.mxu0 %v12800_v39  ;;  %v12826_v60 = vld [vmem:[%s18946_s3 + $0xcd0] ss:$8 sps:$4 sm:$0xff]  }
 0x53d   : > { %7159 = vmatprep.subr.bf16.mxu1 %v12801_v9  ;;  %v12827_v39 = vld [vmem:[%s18946_s3 + $0xdd0] ss:$8 sps:$4 sm:$0xff]   ;;  %v12828_v9 = vld [vmem:[%s18946_s3 + $0xcc4] ss:$8 sps:$4 sm:$0xff]  }
 0x53f   : > { %7117 = vmatpush1.bf16.msra.mxu0 %v12802_v53  ;;  %v12829_v53 = vld [vmem:[%s18946_s3 + $0xdc4] ss:$8 sps:$4 sm:$0xff]  }
 0x540   : > { %7160 = vmatpush1.bf16.msra.mxu1 %v12803_v17  ;;  %7118 = vmatprep.subr.bf16.mxu0 %v12804_v33  ;;  %v12830_v17 = vld [vmem:[%s18946_s3 + $0xcc0] ss:$8 sps:$4 sm:$0xff]  }
 0x541   : > { %7161 = vmatprep.subr.bf16.mxu1 %v12805_v2  ;;  %v12831_v33 = vld [vmem:[%s18946_s3 + $0xdc0] ss:$8 sps:$4 sm:$0xff]   ;;  %v12832_v2 = vld [vmem:[%s18946_s3 + $0xcb4] ss:$8 sps:$4 sm:$0xff]  }
 0x543   : > { %7119 = vmatpush1.bf16.msra.mxu0 %v12806_v62  ;;  %v12833_v62 = vld [vmem:[%s18946_s3 + $0xdb4] ss:$8 sps:$4 sm:$0xff]  }
 0x544   : > { %7162 = vmatpush1.bf16.msra.mxu1 %v12807_v40  ;;  %7120 = vmatprep.subr.bf16.mxu0 %v12808_v13  ;;  %v12834_v40 = vld [vmem:[%s18946_s3 + $0xcb0] ss:$8 sps:$4 sm:$0xff]  }
 0x545   : > { %7163 = vmatprep.subr.bf16.mxu1 %v12809_v63  ;;  %v12835_v13 = vld [vmem:[%s18946_s3 + $0xdb0] ss:$8 sps:$4 sm:$0xff]   ;;  %v12836_v63 = vld [vmem:[%s18946_s3 + $0xca4] ss:$8 sps:$4 sm:$0xff]  }
 0x547   : > { %7121 = vmatpush1.bf16.msra.mxu0 %v12810_v3  ;;  %v12837_v3 = vld [vmem:[%s18946_s3 + $0xda4] ss:$8 sps:$4 sm:$0xff]  }
 0x548   : > { %7164 = vmatpush1.bf16.msra.mxu1 %v12811_v47  ;;  %7122 = vmatprep.subr.bf16.mxu0 %v12812_v19  ;;  %v12838_v47 = vld [vmem:[%s18946_s3 + $0xca0] ss:$8 sps:$4 sm:$0xff]  }
 0x549   : > { %7165 = vmatprep.subr.bf16.mxu1 %v12813_v1  ;;  %v12839_v19 = vld [vmem:[%s18946_s3 + $0xda0] ss:$8 sps:$4 sm:$0xff]   ;;  %v12840_v1 = vld [vmem:[%s18946_s3 + $0xc94] ss:$8 sps:$4 sm:$0xff]  }
 0x54b   : > { %7123 = vmatpush1.bf16.msra.mxu0 %v12814_v51  ;;  %v12841_v51 = vld [vmem:[%s18946_s3 + $0xd94] ss:$8 sps:$4 sm:$0xff]  }
 0x54c   : > { %7166 = vmatpush1.bf16.msra.mxu1 %v12815_v4  ;;  %7124 = vmatprep.subr.bf16.mxu0 %v12816_v30  ;;  %v12842_v4 = vld [vmem:[%s18946_s3 + $0xc90] ss:$8 sps:$4 sm:$0xff]  }
 0x54d   : > { %7167 = vmatprep.subr.bf16.mxu1 %v12817_v45  ;;  %v12843_v30 = vld [vmem:[%s18946_s3 + $0xd90] ss:$8 sps:$4 sm:$0xff]   ;;  %v12844_v45 = vld [vmem:[%s18946_s3 + $0xc84] ss:$8 sps:$4 sm:$0xff]  }
 0x54f   : > { %7125 = vmatpush2.bf16.msra.mxu0 %v12818_v54  ;;  %v12845_v54 = vld [vmem:[%s18946_s3 + $0xd84] ss:$8 sps:$4 sm:$0xff]  }
 0x550   : > { %7168 = vmatpush2.bf16.msra.mxu1 %v12819_v37  ;;  %7126 = vmatprep.subr.bf16.mxu0 %v12820_v52  ;;  %v12846_v37 = vld [vmem:[%s18946_s3 + $0xc80] ss:$8 sps:$4 sm:$0xff]  }
 0x551   : > { %7169 = vmatprep.subr.bf16.mxu1 %v12821_v50  ;;  %v12847_v52 = vld [vmem:[%s18946_s3 + $0xd80] ss:$8 sps:$4 sm:$0xff]   ;;  %v12848_v50 = vld [vmem:[%s18946_s3 + $0xa74] ss:$8 sps:$4 sm:$0xff]  }
 0x553   : > { %7127 = vmatpush2.bf16.msra.mxu0 %v12822_v18  ;;  %v12849_v18 = vld [vmem:[%s18946_s3 + $0xb74] ss:$8 sps:$4 sm:$0xff]  }
 0x554   : > { %7170 = vmatpush2.bf16.msra.mxu1 %v12823_v31  ;;  %7128 = vmatprep.subr.bf16.mxu0 %v12824_v42  ;;  %v12850_v31 = vld [vmem:[%s18946_s3 + $0xa70] ss:$8 sps:$4 sm:$0xff]  }
 0x555   : > { %7171 = vmatprep.subr.bf16.mxu1 %v12825_v58  ;;  %v12851_v42 = vld [vmem:[%s18946_s3 + $0xb70] ss:$8 sps:$4 sm:$0xff]   ;;  %v12855_v58 = vld [vmem:[%s18946_s3 + $0xb60] ss:$8 sps:$4 sm:$0xff]  }
 0x557   : > { %7129 = vmatpush2.bf16.msra.mxu0 %v12826_v60  ;;  %v12857_v60 = vld [vmem:[%s18946_s3 + $0xb54] ss:$8 sps:$4 sm:$0xff]  }
 0x558   : > { %7172 = vmatpush2.bf16.msra.mxu1 %v12827_v39  ;;  %7130 = vmatprep.subr.bf16.mxu0 %v12828_v9  ;;  %v12858_v39 = vld [vmem:[%s18946_s3 + $0xa50] ss:$8 sps:$4 sm:$0xff]  }
 0x559   : > { %7173 = vmatprep.subr.bf16.mxu1 %v12829_v53  ;;  %v12859_v9 = vld [vmem:[%s18946_s3 + $0xb50] ss:$8 sps:$4 sm:$0xff]   ;;  %v12860_v53 = vld [vmem:[%s18946_s3 + $0xa44] ss:$8 sps:$4 sm:$0xff]  }
 0x55b   : > { %7131 = vmatpush2.bf16.msra.mxu0 %v12830_v17  ;;  %v12861_v17 = vld [vmem:[%s18946_s3 + $0xb44] ss:$8 sps:$4 sm:$0xff]  }
 0x55c   : > { %7174 = vmatpush2.bf16.msra.mxu1 %v12831_v33  ;;  %7132 = vmatprep.subr.bf16.mxu0 %v12832_v2  ;;  %v12862_v33 = vld [vmem:[%s18946_s3 + $0xa40] ss:$8 sps:$4 sm:$0xff]  }
 0x55d   : > { %7175 = vmatprep.subr.bf16.mxu1 %v12833_v62  ;;  %v12863_v2 = vld [vmem:[%s18946_s3 + $0xb40] ss:$8 sps:$4 sm:$0xff]   ;;  %v12864_v62 = vld [vmem:[%s18946_s3 + $0xa34] ss:$8 sps:$4 sm:$0xff]  }
 0x55f   : > { %7133 = vmatpush2.bf16.msra.mxu0 %v12834_v40  ;;  %v12865_v40 = vld [vmem:[%s18946_s3 + $0xb34] ss:$8 sps:$4 sm:$0xff]  }
 0x560   : > { %7176 = vmatpush2.bf16.msra.mxu1 %v12835_v13  ;;  %7134 = vmatprep.subr.bf16.mxu0 %v12836_v63  ;;  %v12866_v13 = vld [vmem:[%s18946_s3 + $0xa30] ss:$8 sps:$4 sm:$0xff]  }
 0x561   : > { %7177 = vmatprep.subr.bf16.mxu1 %v12837_v3  ;;  %v12867_v63 = vld [vmem:[%s18946_s3 + $0xb30] ss:$8 sps:$4 sm:$0xff]   ;;  %v12868_v3 = vld [vmem:[%s18946_s3 + $0xa24] ss:$8 sps:$4 sm:$0xff]  }
 0x563   : > { %7135 = vmatpush2.bf16.msra.mxu0 %v12838_v47  ;;  %v12869_v47 = vld [vmem:[%s18946_s3 + $0xb24] ss:$8 sps:$4 sm:$0xff]  }
 0x564   : > { %7178 = vmatpush2.bf16.msra.mxu1 %v12839_v19  ;;  %7136 = vmatprep.subr.bf16.mxu0 %v12840_v1  ;;  %v12870_v19 = vld [vmem:[%s18946_s3 + $0xa20] ss:$8 sps:$4 sm:$0xff]  }
 0x565   : > { %7179 = vmatprep.subr.bf16.mxu1 %v12841_v51  ;;  %v12871_v1 = vld [vmem:[%s18946_s3 + $0xb20] ss:$8 sps:$4 sm:$0xff]   ;;  %v12872_v51 = vld [vmem:[%s18946_s3 + $0xa14] ss:$8 sps:$4 sm:$0xff]  }
 0x567   : > { %7137 = vmatpush2.bf16.msra.mxu0 %v12842_v4  ;;  %v12873_v4 = vld [vmem:[%s18946_s3 + $0xb14] ss:$8 sps:$4 sm:$0xff]  }
 0x568   : > { %7180 = vmatpush2.bf16.msra.mxu1 %v12843_v30  ;;  %7138 = vmatprep.subr.bf16.mxu0 %v12844_v45  ;;  %v12874_v30 = vld [vmem:[%s18946_s3 + $0xa10] ss:$8 sps:$4 sm:$0xff]  }
 0x569   : > { %7181 = vmatprep.subr.bf16.mxu1 %v12845_v54  ;;  %v12875_v45 = vld [vmem:[%s18946_s3 + $0xb10] ss:$8 sps:$4 sm:$0xff]   ;;  %v12876_v54 = vld [vmem:[%s18946_s3 + $0xa04] ss:$8 sps:$4 sm:$0xff]  }
 0x56b   : > { %7139 = vmatpush2.bf16.msra.mxu0 %v12846_v37  ;;  %v12877_v37 = vld [vmem:[%s18946_s3 + $0xb04] ss:$8 sps:$4 sm:$0xff]  }
 0x56c   : > { %7182 = vmatpush2.bf16.msra.mxu1 %v12847_v52  ;;  %7194 = vmatprep.subr.bf16.mxu0 %v12848_v50  ;;  %v12878_v52 = vld [vmem:[%s18946_s3 + $0xa00] ss:$8 sps:$4 sm:$0xff]  }
 0x56d   : > { %7237 = vmatprep.subr.bf16.mxu1 %v12849_v18  ;;  %v12879_v50 = vld [vmem:[%s18946_s3 + $0xb00] ss:$8 sps:$4 sm:$0xff]   ;;  %v12880_v18 = vld [vmem:[%s18946_s3 + $0xaf4] ss:$8 sps:$4 sm:$0xff]  }
 0x56e   : > { %7141 = vmatmul.mubr.bf16.vlgmr.msra.gmra.mxu0 %v14886_v48  ;;  %v12852_v48 = vld [vmem:[%s18946_s3 + $0xa64] ss:$8 sps:$4 sm:$0xff]  }
 0x56f   : > { %7184 = vmatmul.mubr.bf16.vlgmr.msra.gmra.mxu1 %v14893_v43  ;;  %7195 = vmatpush1.bf16.msra.mxu0 %v12850_v31  ;;  %v12853_v43 = vld [vmem:[%s18946_s3 + $0xb64] ss:$8 sps:$4 sm:$0xff]   ;;  %v12881_v31 = vld [vmem:[%s18946_s3 + $0xbf4] ss:$8 sps:$4 sm:$0xff]  }
 0x570   : > { %7226 = vmatprep.mubr.bf16.mxu0 %v14366_v35  ;;  %7238 = vmatpush1.bf16.msra.mxu1 %v12851_v42  ;;  %v12854_v35 = vld [vmem:[%s18946_s3 + $0xa60] ss:$8 sps:$4 sm:$0xff]   ;;  %v12882_v42 = vld [vmem:[%s18946_s3 + $0xaf0] ss:$8 sps:$4 sm:$0xff]  }
 0x571   : > { %7269 = vmatprep.mubr.bf16.mxu1 %v14380_v20  ;;  %7196 = vmatprep.subr.bf16.mxu0 %v12852_v48  ;;  %v12856_v20 = vld [vmem:[%s18946_s3 + $0xa54] ss:$8 sps:$4 sm:$0xff]   ;;  %v12883_v48 = vld [vmem:[%s18946_s3 + $0xbf0] ss:$8 sps:$4 sm:$0xff]  }
 0x572   : > { %7239 = vmatprep.subr.bf16.mxu1 %v12853_v43  ;;  %v12884_v43 = vld [vmem:[%s18946_s3 + $0xae4] ss:$8 sps:$4 sm:$0xff]  }
 0x573   : > { %7197 = vmatpush1.bf16.msra.mxu0 %v12854_v35  ;;  %v12885_v35 = vld [vmem:[%s18946_s3 + $0xbe4] ss:$8 sps:$4 sm:$0xff]  }
 0x574   : > { %7240 = vmatpush1.bf16.msra.mxu1 %v12855_v58  ;;  %7198 = vmatprep.subr.bf16.mxu0 %v12856_v20  ;;  %v12886_v58 = vld [vmem:[%s18946_s3 + $0xae0] ss:$8 sps:$4 sm:$0xff]  }
 0x575   : > { %7241 = vmatprep.subr.bf16.mxu1 %v12857_v60  ;;  %v12887_v20 = vld [vmem:[%s18946_s3 + $0xbe0] ss:$8 sps:$4 sm:$0xff]   ;;  %v12888_v60 = vld [vmem:[%s18946_s3 + $0xad4] ss:$8 sps:$4 sm:$0xff]  }
 0x577   : > { %7199 = vmatpush1.bf16.msra.mxu0 %v12858_v39  ;;  %v12889_v39 = vld [vmem:[%s18946_s3 + $0xbd4] ss:$8 sps:$4 sm:$0xff]  }
 0x578   : > { %7242 = vmatpush1.bf16.msra.mxu1 %v12859_v9  ;;  %7200 = vmatprep.subr.bf16.mxu0 %v12860_v53  ;;  %v12890_v9 = vld [vmem:[%s18946_s3 + $0xad0] ss:$8 sps:$4 sm:$0xff]  }
 0x579   : > { %7243 = vmatprep.subr.bf16.mxu1 %v12861_v17  ;;  %v12891_v53 = vld [vmem:[%s18946_s3 + $0xbd0] ss:$8 sps:$4 sm:$0xff]   ;;  %v12892_v17 = vld [vmem:[%s18946_s3 + $0xac4] ss:$8 sps:$4 sm:$0xff]  }
 0x57b   : > { %7201 = vmatpush1.bf16.msra.mxu0 %v12862_v33  ;;  %v12893_v33 = vld [vmem:[%s18946_s3 + $0xbc4] ss:$8 sps:$4 sm:$0xff]  }
 0x57c   : > { %7244 = vmatpush1.bf16.msra.mxu1 %v12863_v2  ;;  %7202 = vmatprep.subr.bf16.mxu0 %v12864_v62  ;;  %v12894_v2 = vld [vmem:[%s18946_s3 + $0xac0] ss:$8 sps:$4 sm:$0xff]  }
 0x57d   : > { %7245 = vmatprep.subr.bf16.mxu1 %v12865_v40  ;;  %v12895_v62 = vld [vmem:[%s18946_s3 + $0xbc0] ss:$8 sps:$4 sm:$0xff]   ;;  %v12896_v40 = vld [vmem:[%s18946_s3 + $0xab4] ss:$8 sps:$4 sm:$0xff]  }
 0x57f   : > { %7203 = vmatpush1.bf16.msra.mxu0 %v12866_v13  ;;  %v12897_v13 = vld [vmem:[%s18946_s3 + $0xbb4] ss:$8 sps:$4 sm:$0xff]  }
 0x580   : > { %7246 = vmatpush1.bf16.msra.mxu1 %v12867_v63  ;;  %7204 = vmatprep.subr.bf16.mxu0 %v12868_v3  ;;  %v12898_v63 = vld [vmem:[%s18946_s3 + $0xab0] ss:$8 sps:$4 sm:$0xff]  }
 0x581   : > { %7247 = vmatprep.subr.bf16.mxu1 %v12869_v47  ;;  %v12899_v3 = vld [vmem:[%s18946_s3 + $0xbb0] ss:$8 sps:$4 sm:$0xff]   ;;  %v12900_v47 = vld [vmem:[%s18946_s3 + $0xaa4] ss:$8 sps:$4 sm:$0xff]  }
 0x583   : > { %7205 = vmatpush1.bf16.msra.mxu0 %v12870_v19  ;;  %v12901_v19 = vld [vmem:[%s18946_s3 + $0xba4] ss:$8 sps:$4 sm:$0xff]  }
 0x584   : > { %7248 = vmatpush1.bf16.msra.mxu1 %v12871_v1  ;;  %7206 = vmatprep.subr.bf16.mxu0 %v12872_v51  ;;  %v12902_v1 = vld [vmem:[%s18946_s3 + $0xaa0] ss:$8 sps:$4 sm:$0xff]  }
 0x585   : > { %7249 = vmatprep.subr.bf16.mxu1 %v12873_v4  ;;  %v12903_v51 = vld [vmem:[%s18946_s3 + $0xba0] ss:$8 sps:$4 sm:$0xff]   ;;  %v12904_v4 = vld [vmem:[%s18946_s3 + $0xa94] ss:$8 sps:$4 sm:$0xff]  }
 0x587   : > { %7207 = vmatpush1.bf16.msra.mxu0 %v12874_v30  ;;  %v12905_v30 = vld [vmem:[%s18946_s3 + $0xb94] ss:$8 sps:$4 sm:$0xff]  }
 0x588   : > { %7250 = vmatpush1.bf16.msra.mxu1 %v12875_v45  ;;  %7208 = vmatprep.subr.bf16.mxu0 %v12876_v54  ;;  %v12906_v45 = vld [vmem:[%s18946_s3 + $0xa90] ss:$8 sps:$4 sm:$0xff]  }
 0x589   : > { %7251 = vmatprep.subr.bf16.mxu1 %v12877_v37  ;;  %v12907_v54 = vld [vmem:[%s18946_s3 + $0xb90] ss:$8 sps:$4 sm:$0xff]   ;;  %v12908_v37 = vld [vmem:[%s18946_s3 + $0xa84] ss:$8 sps:$4 sm:$0xff]  }
 0x58b   : > { %7209 = vmatpush1.bf16.msra.mxu0 %v12878_v52  ;;  %v12909_v52 = vld [vmem:[%s18946_s3 + $0xb84] ss:$8 sps:$4 sm:$0xff]  }
 0x58c   : > { %7252 = vmatpush1.bf16.msra.mxu1 %v12879_v50  ;;  %7210 = vmatprep.subr.bf16.mxu0 %v12880_v18  ;;  %v12910_v50 = vld [vmem:[%s18946_s3 + $0xa80] ss:$8 sps:$4 sm:$0xff]  }
 0x58d   : > { %7253 = vmatprep.subr.bf16.mxu1 %v12881_v31  ;;  %v12911_v18 = vld [vmem:[%s18946_s3 + $0xb80] ss:$8 sps:$4 sm:$0xff]   ;;  %v12912_v31 = vld [vmem:[%s18946_s3 + $0xe74] ss:$8 sps:$4 sm:$0xff]  }
 0x58f   : > { %7211 = vmatpush2.bf16.msra.mxu0 %v12882_v42  ;;  %v12913_v42 = vld [vmem:[%s18946_s3 + $0xf74] ss:$8 sps:$4 sm:$0xff]  }
 0x590   : > { %7254 = vmatpush2.bf16.msra.mxu1 %v12883_v48  ;;  %7212 = vmatprep.subr.bf16.mxu0 %v12884_v43  ;;  %v12914_v48 = vld [vmem:[%s18946_s3 + $0xe70] ss:$8 sps:$4 sm:$0xff]  }
 0x591   : > { %7255 = vmatprep.subr.bf16.mxu1 %v12885_v35  ;;  %v12915_v43 = vld [vmem:[%s18946_s3 + $0xf70] ss:$8 sps:$4 sm:$0xff]   ;;  %v12919_v35 = vld [vmem:[%s18946_s3 + $0xf60] ss:$8 sps:$4 sm:$0xff]  }
 0x593   : > { %7213 = vmatpush2.bf16.msra.mxu0 %v12886_v58  ;;  %v12921_v58 = vld [vmem:[%s18946_s3 + $0xf54] ss:$8 sps:$4 sm:$0xff]  }
 0x594   : > { %7256 = vmatpush2.bf16.msra.mxu1 %v12887_v20  ;;  %7214 = vmatprep.subr.bf16.mxu0 %v12888_v60  ;;  %v12922_v20 = vld [vmem:[%s18946_s3 + $0xe50] ss:$8 sps:$4 sm:$0xff]  }
 0x595   : > { %7257 = vmatprep.subr.bf16.mxu1 %v12889_v39  ;;  %v12923_v60 = vld [vmem:[%s18946_s3 + $0xf50] ss:$8 sps:$4 sm:$0xff]   ;;  %v12924_v39 = vld [vmem:[%s18946_s3 + $0xe44] ss:$8 sps:$4 sm:$0xff]  }
 0x597   : > { %7215 = vmatpush2.bf16.msra.mxu0 %v12890_v9  ;;  %v12925_v9 = vld [vmem:[%s18946_s3 + $0xf44] ss:$8 sps:$4 sm:$0xff]  }
 0x598   : > { %7258 = vmatpush2.bf16.msra.mxu1 %v12891_v53  ;;  %7216 = vmatprep.subr.bf16.mxu0 %v12892_v17  ;;  %v12926_v53 = vld [vmem:[%s18946_s3 + $0xe40] ss:$8 sps:$4 sm:$0xff]  }
 0x599   : > { %7259 = vmatprep.subr.bf16.mxu1 %v12893_v33  ;;  %v12927_v17 = vld [vmem:[%s18946_s3 + $0xf40] ss:$8 sps:$4 sm:$0xff]   ;;  %v12928_v33 = vld [vmem:[%s18946_s3 + $0xe34] ss:$8 sps:$4 sm:$0xff]  }
 0x59b   : > { %7217 = vmatpush2.bf16.msra.mxu0 %v12894_v2  ;;  %v12929_v2 = vld [vmem:[%s18946_s3 + $0xf34] ss:$8 sps:$4 sm:$0xff]  }
 0x59c   : > { %7260 = vmatpush2.bf16.msra.mxu1 %v12895_v62  ;;  %7218 = vmatprep.subr.bf16.mxu0 %v12896_v40  ;;  %v12930_v62 = vld [vmem:[%s18946_s3 + $0xe30] ss:$8 sps:$4 sm:$0xff]  }
 0x59d   : > { %7261 = vmatprep.subr.bf16.mxu1 %v12897_v13  ;;  %v12931_v40 = vld [vmem:[%s18946_s3 + $0xf30] ss:$8 sps:$4 sm:$0xff]   ;;  %v12932_v13 = vld [vmem:[%s18946_s3 + $0xe24] ss:$8 sps:$4 sm:$0xff]  }
 0x59f   : > { %7219 = vmatpush2.bf16.msra.mxu0 %v12898_v63  ;;  %v12933_v63 = vld [vmem:[%s18946_s3 + $0xf24] ss:$8 sps:$4 sm:$0xff]  }
 0x5a0   : > { %7262 = vmatpush2.bf16.msra.mxu1 %v12899_v3  ;;  %7220 = vmatprep.subr.bf16.mxu0 %v12900_v47  ;;  %v17825_v3 = vpop.f32.mrf.mxu0  ;;  %v17827_v47 = vpop.f32.mrf.mxu1 }
 0x5a1   : > { %7263 = vmatprep.subr.bf16.mxu1 %v12901_v19  ;;  %v12934_v19 = vld [vmem:[%s18946_s3 + $0xe20] ss:$8 sps:$4 sm:$0xff]  }
 0x5a3   : > { %7221 = vmatpush2.bf16.msra.mxu0 %v12902_v1  ;;  %v17832_v1 = vpop.f32.mrf.mxu0 }
 0x5a4   : > { %7264 = vmatpush2.bf16.msra.mxu1 %v12903_v51  ;;  %7222 = vmatprep.subr.bf16.mxu0 %v12904_v4  ;;  %v12935_v51 = vld [vmem:[%s18946_s3 + $0xf20] ss:$8 sps:$4 sm:$0xff]   ;;  %v12936_v4 = vld [vmem:[%s18946_s3 + $0xe14] ss:$8 sps:$4 sm:$0xff]  }
 0x5a5   : > { %7265 = vmatprep.subr.bf16.mxu1 %v12905_v30  ;;  %v17840_v30 = vpop.f32.mrf.mxu1 }
 0x5a7   : > { %7223 = vmatpush2.bf16.msra.mxu0 %v12906_v45  ;;  %v12937_v45 = vld [vmem:[%s18946_s3 + $0xf14] ss:$8 sps:$4 sm:$0xff]  }
 0x5a8   : > { %7266 = vmatpush2.bf16.msra.mxu1 %v12907_v54  ;;  %7224 = vmatprep.subr.bf16.mxu0 %v12908_v37  ;;  %v12938_v54 = vld [vmem:[%s18946_s3 + $0xe10] ss:$8 sps:$4 sm:$0xff]   ;;  %v17848_v37 = vpop.f32.mrf.mxu0 }
 0x5a9   : > { %7267 = vmatprep.subr.bf16.mxu1 %v12909_v52  ;;  %v12939_v52 = vld [vmem:[%s18946_s3 + $0xf10] ss:$8 sps:$4 sm:$0xff]  }
 0x5ab   : > { %7225 = vmatpush2.bf16.msra.mxu0 %v12910_v50  ;;  %v12940_v50 = vld [vmem:[%s18946_s3 + $0xe04] ss:$8 sps:$4 sm:$0xff]  }
 0x5ac   : > { %7268 = vmatpush2.bf16.msra.mxu1 %v12911_v18  ;;  %7280 = vmatprep.subr.bf16.mxu0 %v12912_v31  ;;  %v17856_v18 = vpop.f32.mrf.mxu1  ;;  %v12941_v31 = vld [vmem:[%s18946_s3 + $0xf04] ss:$8 sps:$4 sm:$0xff]  }
 0x5ad   : > { %7323 = vmatprep.subr.bf16.mxu1 %v12913_v42  ;;  %v12942_v42 = vld [vmem:[%s18946_s3 + $0xe00] ss:$8 sps:$4 sm:$0xff]  }
 0x5ae   : > { %7227 = vmatmul.mubr.bf16.vlgmr.msra.gmra.mxu0 %v14383_v21  ;;  %v12916_v21 = vld [vmem:[%s18946_s3 + $0xe64] ss:$8 sps:$4 sm:$0xff]  }
 0x5af   : > { %7270 = vmatmul.mubr.bf16.vlgmr.msra.gmra.mxu1 %v14386_v34  ;;  %7281 = vmatpush1.bf16.msra.mxu0 %v12914_v48  ;;  %v12917_v34 = vld [vmem:[%s18946_s3 + $0xf64] ss:$8 sps:$4 sm:$0xff]   ;;  %v17864_v48 = vpop.f32.mrf.mxu0 }
 0x5b0   : > { %7312 = vmatprep.mubr.bf16.mxu0 %v14470_v7  ;;  %7324 = vmatpush1.bf16.msra.mxu1 %v12915_v43  ;;  %v12918_v7 = vld [vmem:[%s18946_s3 + $0xe60] ss:$8 sps:$4 sm:$0xff]  }
 0x5b1   : > { %7355 = vmatprep.mubr.bf16.mxu1 %v14476_v25  ;;  %7282 = vmatprep.subr.bf16.mxu0 %v12916_v21  ;;  %v12920_v25 = vld [vmem:[%s18946_s3 + $0xe54] ss:$8 sps:$4 sm:$0xff]   ;;  %v12943_v43 = vld [vmem:[%s18946_s3 + $0xf00] ss:$8 sps:$4 sm:$0xff]  }
 0x5b2   : > { %7325 = vmatprep.subr.bf16.mxu1 %v12917_v34  ;;  %v12944_v21 = vld [vmem:[%s18946_s3 + $0xef4] ss:$8 sps:$4 sm:$0xff]   ;;  %v17872_v34 = vpop.f32.mrf.mxu1 }
 0x5b3   : > { %7283 = vmatpush1.bf16.msra.mxu0 %v12918_v7  ;;  %v12945_v7 = vld [vmem:[%s18946_s3 + $0xff4] ss:$8 sps:$4 sm:$0xff]  }
 0x5b4   : > { %7326 = vmatpush1.bf16.msra.mxu1 %v12919_v35  ;;  %7284 = vmatprep.subr.bf16.mxu0 %v12920_v25  ;;  %v12946_v35 = vld [vmem:[%s18946_s3 + $0xef0] ss:$8 sps:$4 sm:$0xff]   ;;  %v17880_v25 = vpop.f32.mrf.mxu0 }
 0x5b5   : > { %7327 = vmatprep.subr.bf16.mxu1 %v12921_v58  ;;  %v12947_v58 = vld [vmem:[%s18946_s3 + $0xff0] ss:$8 sps:$4 sm:$0xff]  }
 0x5b7   : > { %7285 = vmatpush1.bf16.msra.mxu0 %v12922_v20  ;;  %v12948_v20 = vld [vmem:[%s18946_s3 + $0xee4] ss:$8 sps:$4 sm:$0xff]  }
 0x5b8   : > { %7328 = vmatpush1.bf16.msra.mxu1 %v12923_v60  ;;  %7286 = vmatprep.subr.bf16.mxu0 %v12924_v39  ;;  %v17888_v60 = vpop.f32.mrf.mxu1  ;;  %v12949_v39 = vld [vmem:[%s18946_s3 + $0xfe4] ss:$8 sps:$4 sm:$0xff]  }
 0x5b9   : > { %7329 = vmatprep.subr.bf16.mxu1 %v12925_v9  ;;  %v17893_v9 = vpop.f32.mrf.mxu0 }
 0x5bb   : > { %7287 = vmatpush1.bf16.msra.mxu0 %v12926_v53  ;;  %v6895_v53 = vpop.f32.mrf.mxu1 }
 0x5bc   : > { %7330 = vmatpush1.bf16.msra.mxu1 %v12927_v17  ;;  %7288 = vmatprep.subr.bf16.mxu0 %v12928_v33  ;;  %v12950_v17 = vld [vmem:[%s18946_s3 + $0xee0] ss:$8 sps:$4 sm:$0xff]  }
 0x5bd   : > { %7331 = vmatprep.subr.bf16.mxu1 %v12929_v2  ;;  %v12951_v33 = vld [vmem:[%s18946_s3 + $0xfe0] ss:$8 sps:$4 sm:$0xff]   ;;  %v12952_v2 = vld [vmem:[%s18946_s3 + $0xed4] ss:$8 sps:$4 sm:$0xff]  }
 0x5bf   : > { %7289 = vmatpush1.bf16.msra.mxu0 %v12930_v62  ;;  %v12953_v62 = vld [vmem:[%s18946_s3 + $0xfd4] ss:$8 sps:$4 sm:$0xff]  }
 0x5c0   : > { %7332 = vmatpush1.bf16.msra.mxu1 %v12931_v40  ;;  %7290 = vmatprep.subr.bf16.mxu0 %v12932_v13  ;;  %v17907_v40 = vpop.f32.mrf.mxu0  ;;  %v17909_v13 = vpop.f32.mrf.mxu1 }
 0x5c1   : > { %7333 = vmatprep.subr.bf16.mxu1 %v12933_v63  ;;  %v12954_v63 = vld [vmem:[%s18946_s3 + $0xed0] ss:$8 sps:$4 sm:$0xff]   ;;  %v6898_v32 = vadd.f32 %v17909_v13, %v17907_v40 }
 0x5c3   : > { %7291 = vmatpush1.bf16.msra.mxu0 %v12934_v19  ;;  %v12955_v19 = vld [vmem:[%s18946_s3 + $0xfd0] ss:$8 sps:$4 sm:$0xff]  }
 0x5c4   : > { %7334 = vmatpush1.bf16.msra.mxu1 %v12935_v51  ;;  %7292 = vmatprep.subr.bf16.mxu0 %v12936_v4  ;;  %v12956_v51 = vld [vmem:[%s18946_s3 + $0xec4] ss:$8 sps:$4 sm:$0xff]  }
 0x5c5   : > { %7335 = vmatprep.subr.bf16.mxu1 %v12937_v45  ;;  %v12957_v4 = vld [vmem:[%s18946_s3 + $0xfc4] ss:$8 sps:$4 sm:$0xff]   ;;  %v6856_v45 = vpop.f32.mrf.mxu0 }
 0x5c7   : > { %7293 = vmatpush1.bf16.msra.mxu0 %v12938_v54  ;;  %v6899_v54 = vpop.f32.mrf.mxu1 }
 0x5c8   : > { %7336 = vmatpush1.bf16.msra.mxu1 %v12939_v52  ;;  %7294 = vmatprep.subr.bf16.mxu0 %v12940_v50  ;;  %v12958_v52 = vld [vmem:[%s18946_s3 + $0xec0] ss:$8 sps:$4 sm:$0xff]  }
 0x5c9   : > { %7337 = vmatprep.subr.bf16.mxu1 %v12941_v31  ;;  %v12959_v50 = vld [vmem:[%s18946_s3 + $0xfc0] ss:$8 sps:$4 sm:$0xff]   ;;  %v12960_v31 = vld [vmem:[%s18946_s3 + $0xeb4] ss:$8 sps:$4 sm:$0xff]  }
 0x5cb   : > { %7295 = vmatpush1.bf16.msra.mxu0 %v12942_v42  ;;  %v12961_v42 = vld [vmem:[%s18946_s3 + $0xfb4] ss:$8 sps:$4 sm:$0xff]  }
 0x5cc   : > { %7338 = vmatpush1.bf16.msra.mxu1 %v12943_v43  ;;  %7296 = vmatprep.subr.bf16.mxu0 %v12944_v21  ;;  %v17935_v43 = vpop.f32.mrf.mxu0  ;;  %v17937_v21 = vpop.f32.mrf.mxu1 }
 0x5cd   : > { %7339 = vmatprep.subr.bf16.mxu1 %v12945_v7  ;;  %v12962_v7 = vld [vmem:[%s18946_s3 + $0xeb0] ss:$8 sps:$4 sm:$0xff]  }
 0x5cf   : > { %7297 = vmatpush2.bf16.msra.mxu0 %v12946_v35  ;;  %v6942_v35 = vpop.f32.mrf.mxu0 }
 0x5d0   : > { %7340 = vmatpush2.bf16.msra.mxu1 %v12947_v58  ;;  %7298 = vmatprep.subr.bf16.mxu0 %v12948_v20  ;;  %v12963_v58 = vld [vmem:[%s18946_s3 + $0xfb0] ss:$8 sps:$4 sm:$0xff]   ;;  %v12964_v20 = vld [vmem:[%s18946_s3 + $0xea4] ss:$8 sps:$4 sm:$0xff]  }
 0x5d1   : > { %7341 = vmatprep.subr.bf16.mxu1 %v12949_v39  ;;  %v6985_v39 = vpop.f32.mrf.mxu1 }
 0x5d3   : > { %7299 = vmatpush2.bf16.msra.mxu0 %v12950_v17  ;;  %v12965_v17 = vld [vmem:[%s18946_s3 + $0xfa4] ss:$8 sps:$4 sm:$0xff]  }
 0x5d4   : > { %7342 = vmatpush2.bf16.msra.mxu1 %v12951_v33  ;;  %7300 = vmatprep.subr.bf16.mxu0 %v12952_v2  ;;  %v12966_v33 = vld [vmem:[%s18946_s3 + $0xea0] ss:$8 sps:$4 sm:$0xff]   ;;  %v17954_v2 = vpop.f32.mrf.mxu0 }
 0x5d5   : > { %7343 = vmatprep.subr.bf16.mxu1 %v12953_v62  ;;  %v12967_v62 = vld [vmem:[%s18946_s3 + $0xfa0] ss:$8 sps:$4 sm:$0xff]  }
 0x5d7   : > { %7301 = vmatpush2.bf16.msra.mxu0 %v12954_v63  ;;  %v12968_v63 = vld [vmem:[%s18946_s3 + $0xe94] ss:$8 sps:$4 sm:$0xff]  }
 0x5d8   : > { %7344 = vmatpush2.bf16.msra.mxu1 %v12955_v19  ;;  %7302 = vmatprep.subr.bf16.mxu0 %v12956_v51  ;;  %v17962_v19 = vpop.f32.mrf.mxu1  ;;  %v12969_v51 = vld [vmem:[%s18946_s3 + $0xf94] ss:$8 sps:$4 sm:$0xff]  }
 0x5d9   : > { %7345 = vmatprep.subr.bf16.mxu1 %v12957_v4  ;;  %v12970_v4 = vld [vmem:[%s18946_s3 + $0xe90] ss:$8 sps:$4 sm:$0xff]  }
 0x5db   : > { %7303 = vmatpush2.bf16.msra.mxu0 %v12958_v52  ;;  %v6767_v52 = vadd.f32 %v17832_v1, %v17170_v23  ;;  %v6771_v23 = vadd.f32 %v17864_v48, %v17190_v44  ;;  %v12974_v1 = vld [vmem:[%s18946_s3 + $0xe80] ss:$8 sps:$4 sm:$0xff]   ;;  %v12977_v48 = vld [vmem:[%s18946_s3 + $0x1174] ss:$8 sps:$4 sm:$0xff]  }
 0x5dc   : > { %7346 = vmatpush2.bf16.msra.mxu1 %v12959_v50  ;;  %7304 = vmatprep.subr.bf16.mxu0 %v12960_v31  ;;  %v6946_v50 = vpop.f32.mrf.mxu0  ;;  %v12971_v31 = vld [vmem:[%s18946_s3 + $0xf90] ss:$8 sps:$4 sm:$0xff]  }
 0x5dd   : > { %7347 = vmatprep.subr.bf16.mxu1 %v12961_v42  ;;  %v12972_v42 = vld [vmem:[%s18946_s3 + $0xe84] ss:$8 sps:$4 sm:$0xff]  }
 0x5df   : > { %7305 = vmatpush2.bf16.msra.mxu0 %v12962_v7  ;;  %v6989_v7 = vpop.f32.mrf.mxu1 }
 0x5e0   : > { %7348 = vmatpush2.bf16.msra.mxu1 %v12963_v58  ;;  %7306 = vmatprep.subr.bf16.mxu0 %v12964_v20  ;;  %v12973_v58 = vld [vmem:[%s18946_s3 + $0xf84] ss:$8 sps:$4 sm:$0xff]   ;;  %v6896_v20 = vadd.f32 %v6895_v53, %v17893_v9  ;;  %v12976_v9 = vld [vmem:[%s18946_s3 + $0x1074] ss:$8 sps:$4 sm:$0xff]   ;;  %v6900_v53 = vadd.f32 %v6899_v54, %v6856_v45  ;;  %v12979_v45 = vld [vmem:[%s18946_s3 + $0x1170] ss:$8 sps:$4 sm:$0xff]  }
 0x5e1   : > { %7349 = vmatprep.subr.bf16.mxu1 %v12965_v17  ;;  %v6810_v17 = vadd.f32 %v17840_v30, %v6767_v52  ;;  %v17996_v44 = vpop.f32.mrf.mxu1 }
 0x5e3   : > { %7307 = vmatpush2.bf16.msra.mxu0 %v12966_v33  ;;  %v6986_v33 = vadd.f32 %v6985_v39, %v6942_v35  ;;  %v6904_v30 = vadd.f32 %v6896_v20, %v6810_v17  ;;  %v6814_v39 = vadd.f32 %v17872_v34, %v6771_v23  ;;  %v12980_v34 = vld [vmem:[%s18946_s3 + $0x1064] ss:$8 sps:$4 sm:$0xff]   ;;  %v12983_v17 = vld [vmem:[%s18946_s3 + $0x1160] ss:$8 sps:$4 sm:$0xff]  }
 0x5e4   : > { %7350 = vmatpush2.bf16.msra.mxu1 %v12967_v62  ;;  %7308 = vmatprep.subr.bf16.mxu0 %v12968_v63  ;;  %v17988_v62 = vpop.f32.mrf.mxu0  ;;  %v12975_v63 = vld [vmem:[%s18946_s3 + $0xf80] ss:$8 sps:$4 sm:$0xff]  }
 0x5e5   : > { %7351 = vmatprep.subr.bf16.mxu1 %v12969_v51  ;;  %v6994_v52 = vadd.f32 %v6986_v33, %v6904_v30  ;;  %v6906_v54 = vadd.f32 %v6900_v53, %v6814_v39  ;;  %v12984_v33 = vld [vmem:[%s18946_s3 + $0x1054] ss:$8 sps:$4 sm:$0xff]   ;;  %v12989_v30 = vld [vmem:[%s18946_s3 + $0x1144] ss:$8 sps:$4 sm:$0xff]   ;;  %v12995_v39 = vld [vmem:[%s18946_s3 + $0x1130] ss:$8 sps:$4 sm:$0xff]  }
 0x5e6   : > { %v12993_v53 = vld [vmem:[%s18946_s3 + $0x1134] ss:$8 sps:$4 sm:$0xff]  }
 0x5e7   : > { %7309 = vmatpush2.bf16.msra.mxu0 %v12970_v4  ;;  %v12978_v4 = vld [vmem:[%s18946_s3 + $0x1070] ss:$8 sps:$4 sm:$0xff]  }
 0x5e8   : > { %7352 = vmatpush2.bf16.msra.mxu1 %v12971_v31  ;;  %7310 = vmatprep.subr.bf16.mxu0 %v12972_v42  ;;  %v6990_v31 = vadd.f32 %v6989_v7, %v6946_v50 }
 0x5e9   : > { %7353 = vmatprep.subr.bf16.mxu1 %v12973_v58 }
 0x5ea   : > { %v6996_v20 = vadd.f32 %v6990_v31, %v6906_v54  ;;  %v12999_v31 = vld [vmem:[%s18946_s3 + $0x1120] ss:$8 sps:$4 sm:$0xff]   ;;  %v13003_v54 = vld [vmem:[%s18946_s3 + $0x1110] ss:$8 sps:$4 sm:$0xff]  }
 0x5eb   : > { %7311 = vmatpush2.bf16.msra.mxu0 %v12974_v1 }
 0x5ec   : > { %7354 = vmatpush2.bf16.msra.mxu1 %v12975_v63  ;;  %7370 = vmatprep.subr.bf16.mxu0 %v12976_v9  ;;  %v12985_v63 = vld [vmem:[%s18946_s3 + $0x1154] ss:$8 sps:$4 sm:$0xff]  }
 0x5ed   : > { %7413 = vmatprep.subr.bf16.mxu1 %v12977_v48  ;;  %v12988_v48 = vld [vmem:[%s18946_s3 + $0x1044] ss:$8 sps:$4 sm:$0xff]  }
 0x5ee   : > { %v7048_v35 = vpop.f32.mrf.mxu0  ;;  %7313 = vmatmul.mubr.bf16.vlgmr.msra.gmra.mxu0 %v14474_v22 }
 0x5ef   : > { %v7091_v51 = vpop.f32.mrf.mxu1  ;;  %7356 = vmatmul.mubr.bf16.vlgmr.msra.gmra.mxu1 %v14478_v29  ;;  %7371 = vmatpush1.bf16.msra.mxu0 %v12978_v4  ;;  %v12997_v4 = vld [vmem:[%s18946_s3 + $0x1124] ss:$8 sps:$4 sm:$0xff]  }
 0x5f0   : > { %v7092_v42 = vadd.f32 %v7091_v51, %v7048_v35  ;;  %7402 = vmatprep.mubr.bf16.mxu0 %v14363_v28  ;;  %7414 = vmatpush1.bf16.msra.mxu1 %v12979_v45  ;;  %v18011_v22 = vpop.f32.mrf.mxu0  ;;  %v12981_v28 = vld [vmem:[%s18946_s3 + $0x1164] ss:$8 sps:$4 sm:$0xff]   ;;  %v12994_v35 = vld [vmem:[%s18946_s3 + $0x1030] ss:$8 sps:$4 sm:$0xff]   ;;  %v13001_v45 = vld [vmem:[%s18946_s3 + $0x1114] ss:$8 sps:$4 sm:$0xff]  }
 0x5f1   : > { %7445 = vmatprep.mubr.bf16.mxu1 %v14427_v56  ;;  %v18014_v29 = vpop.f32.mrf.mxu1  ;;  %7372 = vmatprep.subr.bf16.mxu0 %v12980_v34  ;;  %v12982_v56 = vld [vmem:[%s18946_s3 + $0x1060] ss:$8 sps:$4 sm:$0xff]   ;;  %v12996_v51 = vld [vmem:[%s18946_s3 + $0x1024] ss:$8 sps:$4 sm:$0xff]   ;;  %v13002_v34 = vld [vmem:[%s18946_s3 + $0x1010] ss:$8 sps:$4 sm:$0xff]  }
 0x5f2   : > { %v7100_v50 = vadd.f32 %v7092_v42, %v6994_v52  ;;  %v7052_v7 = vpop.f32.mrf.mxu0  ;;  %7415 = vmatprep.subr.bf16.mxu1 %v12981_v28  ;;  %v12998_v52 = vld [vmem:[%s18946_s3 + $0x1020] ss:$8 sps:$4 sm:$0xff]   ;;  %v13000_v42 = vld [vmem:[%s18946_s3 + $0x1014] ss:$8 sps:$4 sm:$0xff]   ;;  %v7094_v40 = vadd.f32 %v18014_v29, %v18011_v22 }
 0x5f3   : > { %v7095_v58 = vpop.f32.mrf.mxu1  ;;  %7373 = vmatpush1.bf16.msra.mxu0 %v12982_v56  ;;  %v13006_v28 = vld [vmem:[%s18946_s3 + $0x1000] ss:$8 sps:$4 sm:$0xff]   ;;  %v13008_v56 = vld [vmem:[%s18946_s3 + $0x10f4] ss:$8 sps:$4 sm:$0xff]  }
 0x5f4   : > { %v18028_v23 = vmax.f32 %v6642_v15, %v7100_v50  ;;  %v7096_v1 = vadd.f32 %v7095_v58, %v7052_v7  ;;  %7416 = vmatpush1.bf16.msra.mxu1 %v12983_v17  ;;  %7374 = vmatprep.subr.bf16.mxu0 %v12984_v33  ;;  %v12987_v15 = vld [vmem:[%s18946_s3 + $0x1150] ss:$8 sps:$4 sm:$0xff]   ;;  %v13004_v50 = vld [vmem:[%s18946_s3 + $0x1004] ss:$8 sps:$4 sm:$0xff]   ;;  %v13007_v58 = vld [vmem:[%s18946_s3 + $0x1100] ss:$8 sps:$4 sm:$0xff]  }
 0x5f5   : > { %7417 = vmatprep.subr.bf16.mxu1 %v12985_v63  ;;  %v13005_v7 = vld [vmem:[%s18946_s3 + $0x1104] ss:$8 sps:$4 sm:$0xff]   ;;  %v13011_v17 = vld [vmem:[%s18946_s3 + $0x11f0] ss:$8 sps:$4 sm:$0xff]   ;;  %v7554_v22 = vld [vmem:[%s18947_s4] sm:$0x3] }
 0x5f6   : > { %v7102_v9 = vadd.f32 %v7096_v1, %v6996_v20  ;;  %v13009_v20 = vld [vmem:[%s18946_s3 + $0x11f4] ss:$8 sps:$4 sm:$0xff]   ;;  %v13010_v1 = vld [vmem:[%s18946_s3 + $0x10f0] ss:$8 sps:$4 sm:$0xff]   ;;  %v13012_v33 = vld [vmem:[%s18946_s3 + $0x10e4] ss:$8 sps:$4 sm:$0xff]  }
 0x5f7   : > { %7375 = vmatpush1.bf16.msra.mxu0 %v12986_v12  ;;  %v13013_v63 = vld [vmem:[%s18946_s3 + $0x11e4] ss:$8 sps:$4 sm:$0xff]   ;;  %v13015_v12 = vld [vmem:[%s18946_s3 + $0x11e0] ss:$8 sps:$4 sm:$0xff]  }
 0x5f8   : > { %v18045_v55 = vmax.f32 %v6644_v46, %v7102_v9  ;;  %7418 = vmatpush1.bf16.msra.mxu1 %v12987_v15  ;;  %7376 = vmatprep.subr.bf16.mxu0 %v12988_v48  ;;  %v12992_v46 = vld [vmem:[%s18946_s3 + $0x1034] ss:$8 sps:$4 sm:$0xff]   ;;  %v13014_v9 = vld [vmem:[%s18946_s3 + $0x10e0] ss:$8 sps:$4 sm:$0xff]  }
 0x5f9   : > { %7419 = vmatprep.subr.bf16.mxu1 %v12989_v30  ;;  %v13016_v15 = vld [vmem:[%s18946_s3 + $0x10d4] ss:$8 sps:$4 sm:$0xff]   ;;  %v13018_v30 = vld [vmem:[%s18946_s3 + $0x10d0] ss:$8 sps:$4 sm:$0xff]  }
 0x5fa   : > { %19032 = vst [vmem:[#allocation7_spill] sm:$0xff] %v18045_v55  ;;  %v13017_v48 = vld [vmem:[%s18946_s3 + $0x11d4] ss:$8 sps:$4 sm:$0xff]  }
 0x5fb   : > { %7377 = vmatpush1.bf16.msra.mxu0 %v12990_v36  ;;  %v13019_v36 = vld [vmem:[%s18946_s3 + $0x11d0] ss:$8 sps:$4 sm:$0xff]  }
 0x5fc   : > { %7420 = vmatpush1.bf16.msra.mxu1 %v12991_v41  ;;  %7378 = vmatprep.subr.bf16.mxu0 %v12992_v46  ;;  %v13020_v41 = vld [vmem:[%s18946_s3 + $0x10c4] ss:$8 sps:$4 sm:$0xff]  }
 0x5fd   : > { %7421 = vmatprep.subr.bf16.mxu1 %v12993_v53  ;;  %v13021_v46 = vld [vmem:[%s18946_s3 + $0x11c4] ss:$8 sps:$4 sm:$0xff]   ;;  %v13022_v53 = vld [vmem:[%s18946_s3 + $0x10c0] ss:$8 sps:$4 sm:$0xff]  }
 0x5ff   : > { %7379 = vmatpush1.bf16.msra.mxu0 %v12994_v35  ;;  %v13023_v35 = vld [vmem:[%s18946_s3 + $0x11c0] ss:$8 sps:$4 sm:$0xff]  }
 0x600   : > { %7422 = vmatpush1.bf16.msra.mxu1 %v12995_v39  ;;  %7380 = vmatprep.subr.bf16.mxu0 %v12996_v51  ;;  %v13024_v39 = vld [vmem:[%s18946_s3 + $0x10b4] ss:$8 sps:$4 sm:$0xff]  }
 0x601   : > { %7423 = vmatprep.subr.bf16.mxu1 %v12997_v4  ;;  %v13025_v51 = vld [vmem:[%s18946_s3 + $0x11b4] ss:$8 sps:$4 sm:$0xff]   ;;  %v13026_v4 = vld [vmem:[%s18946_s3 + $0x10b0] ss:$8 sps:$4 sm:$0xff]  }
 0x603   : > { %7381 = vmatpush1.bf16.msra.mxu0 %v12998_v52  ;;  %v13027_v52 = vld [vmem:[%s18946_s3 + $0x11b0] ss:$8 sps:$4 sm:$0xff]  }
 0x604   : > { %7424 = vmatpush1.bf16.msra.mxu1 %v12999_v31  ;;  %7382 = vmatprep.subr.bf16.mxu0 %v13000_v42  ;;  %v13028_v31 = vld [vmem:[%s18946_s3 + $0x10a4] ss:$8 sps:$4 sm:$0xff]  }
 0x605   : > { %7425 = vmatprep.subr.bf16.mxu1 %v13001_v45  ;;  %v13029_v42 = vld [vmem:[%s18946_s3 + $0x11a4] ss:$8 sps:$4 sm:$0xff]   ;;  %v13030_v45 = vld [vmem:[%s18946_s3 + $0x10a0] ss:$8 sps:$4 sm:$0xff]  }
 0x607   : > { %7383 = vmatpush1.bf16.msra.mxu0 %v13002_v34  ;;  %v13031_v34 = vld [vmem:[%s18946_s3 + $0x11a0] ss:$8 sps:$4 sm:$0xff]  }
 0x608   : > { %7426 = vmatpush1.bf16.msra.mxu1 %v13003_v54  ;;  %7384 = vmatprep.subr.bf16.mxu0 %v13004_v50  ;;  %v13032_v54 = vld [vmem:[%s18946_s3 + $0x1094] ss:$8 sps:$4 sm:$0xff]  }
 0x609   : > { %7427 = vmatprep.subr.bf16.mxu1 %v13005_v7  ;;  %v13033_v50 = vld [vmem:[%s18946_s3 + $0x1194] ss:$8 sps:$4 sm:$0xff]   ;;  %v13034_v7 = vld [vmem:[%s18946_s3 + $0x1090] ss:$8 sps:$4 sm:$0xff]  }
 0x60b   : > { %7385 = vmatpush1.bf16.msra.mxu0 %v13006_v28  ;;  %v13035_v28 = vld [vmem:[%s18946_s3 + $0x1190] ss:$8 sps:$4 sm:$0xff]  }
 0x60c   : > { %7428 = vmatpush1.bf16.msra.mxu1 %v13007_v58  ;;  %7386 = vmatprep.subr.bf16.mxu0 %v13008_v56  ;;  %v13036_v58 = vld [vmem:[%s18946_s3 + $0x1084] ss:$8 sps:$4 sm:$0xff]  }
 0x60d   : > { %7429 = vmatprep.subr.bf16.mxu1 %v13009_v20  ;;  %v13037_v56 = vld [vmem:[%s18946_s3 + $0x1184] ss:$8 sps:$4 sm:$0xff]   ;;  %v13038_v20 = vld [vmem:[%s18946_s3 + $0x1080] ss:$8 sps:$4 sm:$0xff]  }
 0x60f   : > { %7387 = vmatpush2.bf16.msra.mxu0 %v13010_v1  ;;  %v13039_v1 = vld [vmem:[%s18946_s3 + $0x1180] ss:$8 sps:$4 sm:$0xff]  }
 0x610   : > { %7430 = vmatpush2.bf16.msra.mxu1 %v13011_v17  ;;  %7388 = vmatprep.subr.bf16.mxu0 %v13012_v33  ;;  %v13040_v17 = vld [vmem:[%s18946_s3 + $0x1274] ss:$8 sps:$4 sm:$0xff]  }
 0x611   : > { %7431 = vmatprep.subr.bf16.mxu1 %v13013_v63  ;;  %v13041_v33 = vld [vmem:[%s18946_s3 + $0x1374] ss:$8 sps:$4 sm:$0xff]   ;;  %v13042_v63 = vld [vmem:[%s18946_s3 + $0x1270] ss:$8 sps:$4 sm:$0xff]  }
 0x613   : > { %7389 = vmatpush2.bf16.msra.mxu0 %v13014_v9  ;;  %v13043_v9 = vld [vmem:[%s18946_s3 + $0x1370] ss:$8 sps:$4 sm:$0xff]  }
 0x614   : > { %7432 = vmatpush2.bf16.msra.mxu1 %v13015_v12  ;;  %7390 = vmatprep.subr.bf16.mxu0 %v13016_v15  ;;  %v13047_v12 = vld [vmem:[%s18946_s3 + $0x1360] ss:$8 sps:$4 sm:$0xff]   ;;  %v13049_v15 = vld [vmem:[%s18946_s3 + $0x1354] ss:$8 sps:$4 sm:$0xff]  }
 0x615   : > { %7433 = vmatprep.subr.bf16.mxu1 %v13017_v48  ;;  %v13050_v48 = vld [vmem:[%s18946_s3 + $0x1250] ss:$8 sps:$4 sm:$0xff]  }
 0x617   : > { %7391 = vmatpush2.bf16.msra.mxu0 %v13018_v30  ;;  %v13051_v30 = vld [vmem:[%s18946_s3 + $0x1350] ss:$8 sps:$4 sm:$0xff]  }
 0x618   : > { %7434 = vmatpush2.bf16.msra.mxu1 %v13019_v36  ;;  %7392 = vmatprep.subr.bf16.mxu0 %v13020_v41  ;;  %v13052_v36 = vld [vmem:[%s18946_s3 + $0x1244] ss:$8 sps:$4 sm:$0xff]  }
 0x619   : > { %7435 = vmatprep.subr.bf16.mxu1 %v13021_v46  ;;  %v13053_v41 = vld [vmem:[%s18946_s3 + $0x1344] ss:$8 sps:$4 sm:$0xff]   ;;  %v13054_v46 = vld [vmem:[%s18946_s3 + $0x1240] ss:$8 sps:$4 sm:$0xff]  }
 0x61b   : > { %7393 = vmatpush2.bf16.msra.mxu0 %v13022_v53  ;;  %v13055_v53 = vld [vmem:[%s18946_s3 + $0x1340] ss:$8 sps:$4 sm:$0xff]  }
 0x61c   : > { %7436 = vmatpush2.bf16.msra.mxu1 %v13023_v35  ;;  %7394 = vmatprep.subr.bf16.mxu0 %v13024_v39  ;;  %v13056_v35 = vld [vmem:[%s18946_s3 + $0x1234] ss:$8 sps:$4 sm:$0xff]  }
 0x61d   : > { %7437 = vmatprep.subr.bf16.mxu1 %v13025_v51  ;;  %v13057_v39 = vld [vmem:[%s18946_s3 + $0x1334] ss:$8 sps:$4 sm:$0xff]   ;;  %v13058_v51 = vld [vmem:[%s18946_s3 + $0x1230] ss:$8 sps:$4 sm:$0xff]  }
 0x61f   : > { %7395 = vmatpush2.bf16.msra.mxu0 %v13026_v4  ;;  %v13059_v4 = vld [vmem:[%s18946_s3 + $0x1330] ss:$8 sps:$4 sm:$0xff]  }
 0x620   : > { %7438 = vmatpush2.bf16.msra.mxu1 %v13027_v52  ;;  %7396 = vmatprep.subr.bf16.mxu0 %v13028_v31  ;;  %v13060_v52 = vld [vmem:[%s18946_s3 + $0x1224] ss:$8 sps:$4 sm:$0xff]  }
 0x621   : > { %7439 = vmatprep.subr.bf16.mxu1 %v13029_v42  ;;  %v13061_v31 = vld [vmem:[%s18946_s3 + $0x1324] ss:$8 sps:$4 sm:$0xff]   ;;  %v13062_v42 = vld [vmem:[%s18946_s3 + $0x1220] ss:$8 sps:$4 sm:$0xff]  }
 0x623   : > { %7397 = vmatpush2.bf16.msra.mxu0 %v13030_v45  ;;  %v13063_v45 = vld [vmem:[%s18946_s3 + $0x1320] ss:$8 sps:$4 sm:$0xff]  }
 0x624   : > { %7440 = vmatpush2.bf16.msra.mxu1 %v13031_v34  ;;  %7398 = vmatprep.subr.bf16.mxu0 %v13032_v54  ;;  %v13064_v34 = vld [vmem:[%s18946_s3 + $0x1214] ss:$8 sps:$4 sm:$0xff]  }
 0x625   : > { %7441 = vmatprep.subr.bf16.mxu1 %v13033_v50  ;;  %v13065_v54 = vld [vmem:[%s18946_s3 + $0x1314] ss:$8 sps:$4 sm:$0xff]   ;;  %v13066_v50 = vld [vmem:[%s18946_s3 + $0x1210] ss:$8 sps:$4 sm:$0xff]  }
 0x627   : > { %7399 = vmatpush2.bf16.msra.mxu0 %v13034_v7  ;;  %v13067_v7 = vld [vmem:[%s18946_s3 + $0x1310] ss:$8 sps:$4 sm:$0xff]  }
 0x628   : > { %7442 = vmatpush2.bf16.msra.mxu1 %v13035_v28  ;;  %7400 = vmatprep.subr.bf16.mxu0 %v13036_v58  ;;  %v13068_v28 = vld [vmem:[%s18946_s3 + $0x1204] ss:$8 sps:$4 sm:$0xff]  }
 0x629   : > { %7443 = vmatprep.subr.bf16.mxu1 %v13037_v56  ;;  %v13069_v58 = vld [vmem:[%s18946_s3 + $0x1304] ss:$8 sps:$4 sm:$0xff]   ;;  %v13070_v56 = vld [vmem:[%s18946_s3 + $0x1200] ss:$8 sps:$4 sm:$0xff]  }
 0x62b   : > { %7401 = vmatpush2.bf16.msra.mxu0 %v13038_v20  ;;  %v13071_v20 = vld [vmem:[%s18946_s3 + $0x1300] ss:$8 sps:$4 sm:$0xff]  }
 0x62c   : > { %7444 = vmatpush2.bf16.msra.mxu1 %v13039_v1  ;;  %7460 = vmatprep.subr.bf16.mxu0 %v13040_v17  ;;  %v13072_v1 = vld [vmem:[%s18946_s3 + $0x12f4] ss:$8 sps:$4 sm:$0xff]  }
 0x62d   : > { %7503 = vmatprep.subr.bf16.mxu1 %v13041_v33  ;;  %v13073_v17 = vld [vmem:[%s18946_s3 + $0x13f4] ss:$8 sps:$4 sm:$0xff]   ;;  %v13074_v33 = vld [vmem:[%s18946_s3 + $0x12f0] ss:$8 sps:$4 sm:$0xff]  }
 0x62e   : > { %7403 = vmatmul.mubr.bf16.vlgmr.msra.gmra.mxu0 %v14429_v57  ;;  %v13044_v57 = vld [vmem:[%s18946_s3 + $0x1264] ss:$8 sps:$4 sm:$0xff]  }
 0x62f   : > { %7446 = vmatmul.mubr.bf16.vlgmr.msra.gmra.mxu1 %v14435_v59  ;;  %7461 = vmatpush1.bf16.msra.mxu0 %v13042_v63  ;;  %v13045_v59 = vld [vmem:[%s18946_s3 + $0x1364] ss:$8 sps:$4 sm:$0xff]   ;;  %v13075_v63 = vld [vmem:[%s18946_s3 + $0x13f0] ss:$8 sps:$4 sm:$0xff]  }
 0x630   : > { %7492 = vmatprep.mubr.bf16.mxu0 %v14444_v6  ;;  %7504 = vmatpush1.bf16.msra.mxu1 %v13043_v9  ;;  %v13046_v6 = vld [vmem:[%s18946_s3 + $0x1260] ss:$8 sps:$4 sm:$0xff]   ;;  %v13076_v9 = vld [vmem:[%s18946_s3 + $0x12e4] ss:$8 sps:$4 sm:$0xff]  }
 0x631   : > { %7535 = vmatprep.mubr.bf16.mxu1 %v14454_v14  ;;  %7462 = vmatprep.subr.bf16.mxu0 %v13044_v57  ;;  %v13048_v14 = vld [vmem:[%s18946_s3 + $0x1254] ss:$8 sps:$4 sm:$0xff]   ;;  %v13077_v57 = vld [vmem:[%s18946_s3 + $0x13e4] ss:$8 sps:$4 sm:$0xff]  }
 0x632   : > { %7505 = vmatprep.subr.bf16.mxu1 %v13045_v59  ;;  %v13078_v59 = vld [vmem:[%s18946_s3 + $0x12e0] ss:$8 sps:$4 sm:$0xff]  }
 0x633   : > { %7463 = vmatpush1.bf16.msra.mxu0 %v13046_v6  ;;  %v13079_v6 = vld [vmem:[%s18946_s3 + $0x13e0] ss:$8 sps:$4 sm:$0xff]  }
 0x634   : > { %7506 = vmatpush1.bf16.msra.mxu1 %v13047_v12  ;;  %7464 = vmatprep.subr.bf16.mxu0 %v13048_v14  ;;  %v13080_v12 = vld [vmem:[%s18946_s3 + $0x12d4] ss:$8 sps:$4 sm:$0xff]  }
 0x635   : > { %7507 = vmatprep.subr.bf16.mxu1 %v13049_v15  ;;  %v13081_v14 = vld [vmem:[%s18946_s3 + $0x13d4] ss:$8 sps:$4 sm:$0xff]   ;;  %v13082_v15 = vld [vmem:[%s18946_s3 + $0x12d0] ss:$8 sps:$4 sm:$0xff]  }
 0x637   : > { %7465 = vmatpush1.bf16.msra.mxu0 %v13050_v48  ;;  %v13083_v48 = vld [vmem:[%s18946_s3 + $0x13d0] ss:$8 sps:$4 sm:$0xff]  }
 0x638   : > { %7508 = vmatpush1.bf16.msra.mxu1 %v13051_v30  ;;  %7466 = vmatprep.subr.bf16.mxu0 %v13052_v36  ;;  %v13084_v30 = vld [vmem:[%s18946_s3 + $0x12c4] ss:$8 sps:$4 sm:$0xff]  }
 0x639   : > { %7509 = vmatprep.subr.bf16.mxu1 %v13053_v41  ;;  %v13085_v36 = vld [vmem:[%s18946_s3 + $0x13c4] ss:$8 sps:$4 sm:$0xff]   ;;  %v13086_v41 = vld [vmem:[%s18946_s3 + $0x12c0] ss:$8 sps:$4 sm:$0xff]  }
 0x63b   : > { %7467 = vmatpush1.bf16.msra.mxu0 %v13054_v46  ;;  %v13087_v46 = vld [vmem:[%s18946_s3 + $0x13c0] ss:$8 sps:$4 sm:$0xff]  }
 0x63c   : > { %7510 = vmatpush1.bf16.msra.mxu1 %v13055_v53  ;;  %7468 = vmatprep.subr.bf16.mxu0 %v13056_v35  ;;  %v13088_v53 = vld [vmem:[%s18946_s3 + $0x12b4] ss:$8 sps:$4 sm:$0xff]  }
 0x63d   : > { %7511 = vmatprep.subr.bf16.mxu1 %v13057_v39  ;;  %v13089_v35 = vld [vmem:[%s18946_s3 + $0x13b4] ss:$8 sps:$4 sm:$0xff]   ;;  %v13090_v39 = vld [vmem:[%s18946_s3 + $0x12b0] ss:$8 sps:$4 sm:$0xff]  }
 0x63f   : > { %7469 = vmatpush1.bf16.msra.mxu0 %v13058_v51  ;;  %v13091_v51 = vld [vmem:[%s18946_s3 + $0x13b0] ss:$8 sps:$4 sm:$0xff]  }
 0x640   : > { %7512 = vmatpush1.bf16.msra.mxu1 %v13059_v4  ;;  %7470 = vmatprep.subr.bf16.mxu0 %v13060_v52  ;;  %v13092_v4 = vld [vmem:[%s18946_s3 + $0x12a4] ss:$8 sps:$4 sm:$0xff]  }
 0x641   : > { %7513 = vmatprep.subr.bf16.mxu1 %v13061_v31  ;;  %v13093_v52 = vld [vmem:[%s18946_s3 + $0x13a4] ss:$8 sps:$4 sm:$0xff]   ;;  %v13094_v31 = vld [vmem:[%s18946_s3 + $0x12a0] ss:$8 sps:$4 sm:$0xff]  }
 0x643   : > { %7471 = vmatpush1.bf16.msra.mxu0 %v13062_v42  ;;  %v13095_v42 = vld [vmem:[%s18946_s3 + $0x13a0] ss:$8 sps:$4 sm:$0xff]  }
 0x644   : > { %7514 = vmatpush1.bf16.msra.mxu1 %v13063_v45  ;;  %7472 = vmatprep.subr.bf16.mxu0 %v13064_v34  ;;  %v13096_v45 = vld [vmem:[%s18946_s3 + $0x1294] ss:$8 sps:$4 sm:$0xff]  }
 0x645   : > { %7515 = vmatprep.subr.bf16.mxu1 %v13065_v54  ;;  %v13097_v34 = vld [vmem:[%s18946_s3 + $0x1394] ss:$8 sps:$4 sm:$0xff]   ;;  %v13098_v54 = vld [vmem:[%s18946_s3 + $0x1290] ss:$8 sps:$4 sm:$0xff]  }
 0x647   : > { %7473 = vmatpush1.bf16.msra.mxu0 %v13066_v50  ;;  %v13099_v50 = vld [vmem:[%s18946_s3 + $0x1390] ss:$8 sps:$4 sm:$0xff]  }
 0x648   : > { %7516 = vmatpush1.bf16.msra.mxu1 %v13067_v7  ;;  %7474 = vmatprep.subr.bf16.mxu0 %v13068_v28  ;;  %v13100_v7 = vld [vmem:[%s18946_s3 + $0x1284] ss:$8 sps:$4 sm:$0xff]  }
 0x649   : > { %7517 = vmatprep.subr.bf16.mxu1 %v13069_v58  ;;  %v13101_v28 = vld [vmem:[%s18946_s3 + $0x1384] ss:$8 sps:$4 sm:$0xff]   ;;  %v13102_v58 = vld [vmem:[%s18946_s3 + $0x1280] ss:$8 sps:$4 sm:$0xff]  }
 0x64b   : > { %7475 = vmatpush1.bf16.msra.mxu0 %v13070_v56  ;;  %v13103_v56 = vld [vmem:[%s18946_s3 + $0x1380] ss:$8 sps:$4 sm:$0xff]  }
 0x64c   : > { %7518 = vmatpush1.bf16.msra.mxu1 %v13071_v20  ;;  %7476 = vmatprep.subr.bf16.mxu0 %v13072_v1  ;;  %v12322_v20 = vld [vmem:[%s18948_s5 + $0xf8] sm:$0xff]  }
 0x64d   : > { %7519 = vmatprep.subr.bf16.mxu1 %v13073_v17  ;;  %v12323_v1 = vld [vmem:[%s18948_s5 + $0xb8] sm:$0xff]  }
 0x64e   : > { %v12324_v17 = vld [vmem:[%s18948_s5 + $0x78] sm:$0xff]  }
 0x64f   : > { %7477 = vmatpush2.bf16.msra.mxu0 %v13074_v33  ;;  %v12325_v33 = vld [vmem:[%s18948_s5 + $0x38] sm:$0xff]  }
 0x650   : > { %7520 = vmatpush2.bf16.msra.mxu1 %v13075_v63  ;;  %7478 = vmatprep.subr.bf16.mxu0 %v13076_v9  ;;  %v12328_v63 = vld [vmem:[%s18948_s5 + $0x70] sm:$0xff]  }
 0x651   : > { %7521 = vmatprep.subr.bf16.mxu1 %v13077_v57  ;;  %v12329_v9 = vld [vmem:[%s18948_s5 + $0x30] sm:$0xff]   ;;  %v12330_v57 = vld [vmem:[%s18948_s5 + $0xe8] sm:$0xff]  }
 0x653   : > { %7479 = vmatpush2.bf16.msra.mxu0 %v13078_v59  ;;  %v12332_v59 = vld [vmem:[%s18948_s5 + $0x68] sm:$0xff]  }
 0x654   : > { %7522 = vmatpush2.bf16.msra.mxu1 %v13079_v6  ;;  %7480 = vmatprep.subr.bf16.mxu0 %v13080_v12  ;;  %v12331_v6 = vld [vmem:[%s18948_s5 + $0xa8] sm:$0xff]  }
 0x655   : > { %7523 = vmatprep.subr.bf16.mxu1 %v13081_v14  ;;  %v12333_v12 = vld [vmem:[%s18948_s5 + $0x28] sm:$0xff]   ;;  %v12334_v14 = vld [vmem:[%s18948_s5 + $0xe0] sm:$0xff]  }
 0x657   : > { %7481 = vmatpush2.bf16.msra.mxu0 %v13082_v15  ;;  %v12336_v15 = vld [vmem:[%s18948_s5 + $0x60] sm:$0xff]  }
 0x658   : > { %7524 = vmatpush2.bf16.msra.mxu1 %v13083_v48  ;;  %7482 = vmatprep.subr.bf16.mxu0 %v13084_v30  ;;  %v12335_v48 = vld [vmem:[%s18948_s5 + $0xa0] sm:$0xff]  }
 0x659   : > { %7525 = vmatprep.subr.bf16.mxu1 %v13085_v36  ;;  %v12337_v30 = vld [vmem:[%s18948_s5 + $0x20] sm:$0xff]   ;;  %v12338_v36 = vld [vmem:[%s18948_s5 + $0xd8] sm:$0xff]  }
 0x65b   : > { %7483 = vmatpush2.bf16.msra.mxu0 %v13086_v41  ;;  %v12340_v41 = vld [vmem:[%s18948_s5 + $0x58] sm:$0xff]  }
 0x65c   : > { %7526 = vmatpush2.bf16.msra.mxu1 %v13087_v46  ;;  %7484 = vmatprep.subr.bf16.mxu0 %v13088_v53  ;;  %v12339_v46 = vld [vmem:[%s18948_s5 + $0x98] sm:$0xff]  }
 0x65d   : > { %7527 = vmatprep.subr.bf16.mxu1 %v13089_v35  ;;  %v12341_v53 = vld [vmem:[%s18948_s5 + $0x18] sm:$0xff]   ;;  %v12342_v35 = vld [vmem:[%s18948_s5 + $0xd0] sm:$0xff]  }
 0x65f   : > { %7485 = vmatpush2.bf16.msra.mxu0 %v13090_v39  ;;  %v12344_v39 = vld [vmem:[%s18948_s5 + $0x50] sm:$0xff]  }
 0x660   : > { %7528 = vmatpush2.bf16.msra.mxu1 %v13091_v51  ;;  %7486 = vmatprep.subr.bf16.mxu0 %v13092_v4  ;;  %v12343_v51 = vld [vmem:[%s18948_s5 + $0x90] sm:$0xff]  }
 0x661   : > { %7529 = vmatprep.subr.bf16.mxu1 %v13093_v52  ;;  %v12345_v4 = vld [vmem:[%s18948_s5 + $0x10] sm:$0xff]   ;;  %v12346_v52 = vld [vmem:[%s18948_s5 + $0xc8] sm:$0xff]  }
 0x663   : > { %7487 = vmatpush2.bf16.msra.mxu0 %v13094_v31  ;;  %v12348_v31 = vld [vmem:[%s18948_s5 + $0x48] sm:$0xff]  }
 0x664   : > { %7530 = vmatpush2.bf16.msra.mxu1 %v13095_v42  ;;  %7488 = vmatprep.subr.bf16.mxu0 %v13096_v45  ;;  %v12347_v42 = vld [vmem:[%s18948_s5 + $0x88] sm:$0xff]  }
 0x665   : > { %7531 = vmatprep.subr.bf16.mxu1 %v13097_v34  ;;  %v12349_v45 = vld [vmem:[%s18948_s5 + $0x8] sm:$0xff]   ;;  %v12350_v34 = vld [vmem:[%s18948_s5 + $0xc0] sm:$0xff]  }
 0x667   : > { %7489 = vmatpush2.bf16.msra.mxu0 %v13098_v54  ;;  %v12352_v54 = vld [vmem:[%s18948_s5 + $0x40] sm:$0xff]  }
 0x668   : > { %7532 = vmatpush2.bf16.msra.mxu1 %v13099_v50  ;;  %7490 = vmatprep.subr.bf16.mxu0 %v13100_v7  ;;  %v12351_v50 = vld [vmem:[%s18948_s5 + $0x80] sm:$0xff]  }
 0x669   : > { %7533 = vmatprep.subr.bf16.mxu1 %v13101_v28  ;;  %v12353_v7 = vld [vmem:[%s18948_s5] sm:$0xff]   ;;  %v12358_v28 = vld [vmem:[%s18948_s5 + $0x178] sm:$0xff]  }
 0x66b   : > { %7491 = vmatpush2.bf16.msra.mxu0 %v13102_v58  ;;  %v12364_v58 = vld [vmem:[%s18948_s5 + $0x1f8] sm:$0xff]  }
 0x66c   : > { %7534 = vmatpush2.bf16.msra.mxu1 %v13103_v56  ;;  %10974 = vmatprep.subr.bf16.mxu0 %v12322_v20  ;;  %v18506_v56 = vpop.f32.mrf.mxu0  ;;  %v18508_v20 = vpop.f32.mrf.mxu1 }
 0x66d   : > { %10996 = vmatprep.subr.bf16.mxu1 %v12324_v17  ;;  %v7098_v29 = vadd.f32 %v18508_v20, %v18506_v56  ;;  %v19034_v20 = vmax.f32 %v15948_v38, %v16974_v24  ;;  %v19036_v38 = vmax.f32 %v15966_v16, %v16996_v61 }
 0x66e   : > { %7493 = vmatmul.mubr.bf16.vlgmr.msra.gmra.mxu0 %v14438_v0  ;;  %v12326_v0 = vld [vmem:[%s18948_s5 + $0xf0] sm:$0xff]   ;;  %v7185_v17 = vpop.f32.mrf.mxu1 }
 0x66f   : > { %7536 = vmatmul.mubr.bf16.vlgmr.msra.gmra.mxu1 %v14451_v10  ;;  %10975 = vmatpush3.bf16.msra.mxu0 %v12323_v1  ;;  %v12327_v10 = vld [vmem:[%s18948_s5 + $0xb0] sm:$0xff]   ;;  %v7142_v1 = vpop.f32.mrf.mxu0 }
 0x670   : > { %10997 = vmatpush3.bf16.msra.mxu1 %v12325_v33  ;;  %10976 = vmatprep.subr.bf16.mxu0 %v12326_v0  ;;  %v7187_v0 = vpop.f32.mrf.mxu1 }
 0x671   : > { %10998 = vmatprep.subr.bf16.mxu1 %v12328_v63  ;;  %v7144_v33 = vpop.f32.mrf.mxu0 }
 0x672   : > { %v7189_v63 = vpop.f32.mrf.mxu1  ;;  %v7188_v11 = vadd.f32 %v7187_v0, %v7144_v33 }
 0x673   : > { %10977 = vmatpush3.bf16.msra.mxu0 %v12327_v10  ;;  %v7146_v10 = vpop.f32.mrf.mxu0 }
 0x674   : > { %10999 = vmatpush3.bf16.msra.mxu1 %v12329_v9  ;;  %10978 = vmatprep.subr.bf16.mxu0 %v12330_v57  ;;  %v7191_v57 = vpop.f32.mrf.mxu1 }
 0x675   : > { %11000 = vmatprep.subr.bf16.mxu1 %v12332_v59  ;;  %v7148_v9 = vpop.f32.mrf.mxu0 }
 0x676   : > { %v7192_v13 = vadd.f32 %v7191_v57, %v7148_v9 }
 0x677   : > { %10979 = vmatpush3.bf16.msra.mxu0 %v12331_v6  ;;  %v7228_v59 = vpop.f32.mrf.mxu0  ;;  %v7271_v6 = vpop.f32.mrf.mxu1 }
 0x678   : > { %11001 = vmatpush3.bf16.msra.mxu1 %v12333_v12  ;;  %10980 = vmatprep.subr.bf16.mxu0 %v12334_v14 }
 0x679   : > { %11002 = vmatprep.subr.bf16.mxu1 %v12336_v15  ;;  %v7230_v12 = vpop.f32.mrf.mxu0  ;;  %v7273_v14 = vpop.f32.mrf.mxu1 }
 0x67b   : > { %10981 = vmatpush3.bf16.msra.mxu0 %v12335_v48  ;;  %v7232_v15 = vpop.f32.mrf.mxu0  ;;  %v7275_v48 = vpop.f32.mrf.mxu1 }
 0x67c   : > { %11003 = vmatpush3.bf16.msra.mxu1 %v12337_v30  ;;  %10982 = vmatprep.subr.bf16.mxu0 %v12338_v36 }
 0x67d   : > { %11004 = vmatprep.subr.bf16.mxu1 %v12340_v41  ;;  %v7234_v30 = vpop.f32.mrf.mxu0  ;;  %v7277_v36 = vpop.f32.mrf.mxu1 }
 0x67f   : > { %10983 = vmatpush3.bf16.msra.mxu0 %v12339_v46 }
 0x680   : > { %11005 = vmatpush3.bf16.msra.mxu1 %v12341_v53  ;;  %10984 = vmatprep.subr.bf16.mxu0 %v12342_v35 }
 0x681   : > { %11006 = vmatprep.subr.bf16.mxu1 %v12344_v39 }
 0x683   : > { %10985 = vmatpush3.bf16.msra.mxu0 %v12343_v51 }
 0x684   : > { %11007 = vmatpush3.bf16.msra.mxu1 %v12345_v4  ;;  %10986 = vmatprep.subr.bf16.mxu0 %v12346_v52 }
 0x685   : > { %11008 = vmatprep.subr.bf16.mxu1 %v12348_v31 }
 0x687   : > { %10987 = vmatpush3.bf16.msra.mxu0 %v12347_v42 }
 0x688   : > { %11009 = vmatpush3.bf16.msra.mxu1 %v12349_v45  ;;  %10988 = vmatprep.subr.bf16.mxu0 %v12350_v34  ;;  %v6726_v45 = vadd.f32 %v17179_v27, %v17176_v26  ;;  %v6730_v34 = vadd.f32 %v17827_v47, %v17825_v3  ;;  %v6902_v26 = vadd.f32 %v17937_v21, %v17935_v43 }
 0x689   : > { %11010 = vmatprep.subr.bf16.mxu1 %v12352_v54  ;;  %v6988_v27 = vadd.f32 %v17962_v19, %v17954_v2  ;;  %v7190_v3 = vadd.f32 %v7189_v63, %v7146_v10  ;;  %v6992_v2 = vadd.f32 %v17996_v44, %v17988_v62  ;;  %v7235_v19 = vadd.f32 %v7234_v30, %v7192_v13 }
 0x68b   : > { %10989 = vmatpush3.bf16.msra.mxu0 %v12351_v50  ;;  %v6769_v50 = vadd.f32 %v17848_v37, %v6726_v45  ;;  %v7233_v33 = vadd.f32 %v7232_v15, %v7190_v3 }
 0x68c   : > { %11011 = vmatpush3.bf16.msra.mxu1 %v12353_v7  ;;  %11018 = vmatprep.subr.bf16.mxu0 %v12358_v28  ;;  %v6773_v28 = vadd.f32 %v17880_v25, %v6730_v34  ;;  %v7231_v25 = vadd.f32 %v7230_v12, %v7188_v11 }
 0x68d   : > { %11040 = vmatprep.subr.bf16.mxu1 %v12364_v58  ;;  %v7186_v58 = vadd.f32 %v7185_v17, %v7142_v1  ;;  %v6812_v55 = vadd.f32 %v17856_v18, %v6769_v50  ;;  %v7276_v9 = vadd.f32 %v7275_v48, %v7233_v33 }
 0x68e   : > { %v6816_v37 = vadd.f32 %v17888_v60, %v6773_v28  ;;  %v7274_v60 = vadd.f32 %v7273_v14, %v7231_v25 }
 0x68f   : > { %v7229_v49 = vadd.f32 %v7228_v59, %v7186_v58  ;;  %v6905_v17 = vadd.f32 %v6898_v32, %v6812_v55 }
 0x690   : > { %v6907_v43 = vadd.f32 %v6902_v26, %v6816_v37 }
 0x691   : > { %v7272_v0 = vadd.f32 %v7271_v6, %v7229_v49  ;;  %v6995_v21 = vadd.f32 %v6988_v27, %v6905_v17 }
 0x692   : > { %v6997_v30 = vadd.f32 %v6992_v2, %v6907_v43 }
 0x693   : > { %v7101_v49 = vadd.f32 %v7094_v40, %v6995_v21 }
 0x695   : > { %v7105_v48 = vmax.f32 %v19034_v20, %v7101_v49 }
 0x6ae   : > { %v7314_v41 = vpop.f32.mrf.mxu0 }
 0x6af   : > { %v7357_v46 = vpop.f32.mrf.mxu1 }
 0x6b0   : > { %v7316_v53 = vpop.f32.mrf.mxu0  ;;  %v7358_v1 = vadd.f32 %v7357_v46, %v7314_v41  ;;  %v7278_v41 = vadd.f32 %v7277_v36, %v7235_v19 }
 0x6b1   : > { %v7359_v35 = vpop.f32.mrf.mxu1 }
 0x6b2   : > { %v7318_v39 = vpop.f32.mrf.mxu0  ;;  %v7360_v18 = vadd.f32 %v7359_v35, %v7316_v53  ;;  %v7366_v11 = vadd.f32 %v7358_v1, %v7272_v0  ;;  %v19033_v53 = vsub.s32 0, %v14150_v5 }
 0x6b3   : > { %v7361_v51 = vpop.f32.mrf.mxu1 }
 0x6b4   : > { %v7320_v4 = vpop.f32.mrf.mxu0  ;;  %v7362_v63 = vadd.f32 %v7361_v51, %v7318_v39  ;;  %v7367_v12 = vadd.f32 %v7360_v18, %v7274_v60  ;;  %v7559_v35 = vrot.slane %v7554_v22, %v19033_v53 }
 0x6b5   : > { %v7363_v52 = vpop.f32.mrf.mxu1 }
 0x6b6   : > { %v7364_v57 = vadd.f32 %v7363_v52, %v7320_v4  ;;  %v7368_v51 = vadd.f32 %v7362_v63, %v7276_v9  ;;  %v7103_v4 = vadd.f32 %v7098_v29, %v6997_v30  ;;  %v19035_v52 = vsub.s32 1, %v14150_v5  ;;  %v19037_v5 = vld [vmem:[#allocation7_spill] sm:$0xff] }
 0x6b8   : > { %v7107_v24 = vmax.f32 %v19036_v38, %v7103_v4  ;;  %v12378_v38 = vld [vmem:[%s18948_s5 + $0x158] sm:$0xff]  }
 0x6ee   : > { %v7404_v31 = vpop.f32.mrf.mxu0 }
 0x6ef   : > { %v7447_v42 = vpop.f32.mrf.mxu1 }
 0x6f0   : > { %v7406_v54 = vpop.f32.mrf.mxu0  ;;  %v7448_v59 = vadd.f32 %v7447_v42, %v7404_v31 }
 0x6f1   : > { %v7449_v7 = vpop.f32.mrf.mxu1 }
 0x6f2   : > { %v7408_v8 = vpop.f32.mrf.mxu0  ;;  %v7450_v32 = vadd.f32 %v7449_v7, %v7406_v54  ;;  %v7456_v62 = vadd.f32 %v7448_v59, %v7366_v11  ;;  %v7563_v54 = vrot.slane %v7554_v22, %v19035_v52  ;;  %v12366_v52 = vld [vmem:[%s18948_s5 + $0x170] sm:$0xff]  }
 0x6f3   : > { %v7451_v47 = vpop.f32.mrf.mxu1 }
 0x6f4   : > { %v7410_v45 = vpop.f32.mrf.mxu0  ;;  %v7452_v44 = vadd.f32 %v7451_v47, %v7408_v8  ;;  %v7457_v31 = vadd.f32 %v7450_v32, %v7367_v12  ;;  %v7369_v8 = vadd.f32 %v7364_v57, %v7278_v41 }
 0x6f5   : > { %v7453_v10 = vpop.f32.mrf.mxu1 }
 0x6f6   : > { %v7454_v46 = vadd.f32 %v7453_v10, %v7410_v45  ;;  %v7458_v50 = vadd.f32 %v7452_v44, %v7368_v51 }
 0x6f8   : > { %v7459_v27 = vadd.f32 %v7454_v46, %v7369_v8  ;;  %v12365_v8 = vld [vmem:[%s18948_s5 + $0x1b8] sm:$0xff]  }
 0x72e   : > { %v7494_v55 = vpop.f32.mrf.mxu0 }
 0x72f   : > { %v7537_v6 = vpop.f32.mrf.mxu1 }
 0x730   : > { %v7538_v15 = vadd.f32 %v7537_v6, %v7494_v55  ;;  %v7496_v14 = vpop.f32.mrf.mxu0 }
 0x731   : > { %v7539_v39 = vpop.f32.mrf.mxu1 }
 0x732   : > { %v7546_v42 = vadd.f32 %v7538_v15, %v7456_v62  ;;  %v7540_v34 = vadd.f32 %v7539_v39, %v7496_v14  ;;  %v7498_v56 = vpop.f32.mrf.mxu0 }
 0x733   : > { %v7541_v36 = vpop.f32.mrf.mxu1 }
 0x734   : > { %v7550_v7 = vmax.f32 %v18028_v23, %v7546_v42  ;;  %v7547_v28 = vadd.f32 %v7540_v34, %v7457_v31  ;;  %v7542_v58 = vadd.f32 %v7541_v36, %v7498_v56  ;;  %v7500_v26 = vpop.f32.mrf.mxu0 }
 0x735   : > { %v7543_v3 = vpop.f32.mrf.mxu1 }
 0x736   : > { %v7566_v47 = vadd.f32 %v7559_v35, %v7550_v7  ;;  %v7551_v37 = vmax.f32 %v7105_v48, %v7547_v28  ;;  %v7548_v25 = vadd.f32 %v7542_v58, %v7458_v50  ;;  %v7544_v1 = vadd.f32 %v7543_v3, %v7500_v26  ;;  %v12368_v50 = vld [vmem:[%s18948_s5 + $0x1f0] sm:$0xff]   ;;  %v12370_v58 = vld [vmem:[%s18948_s5 + $0x168] sm:$0xff]  }
 0x737   : > { %v12367_v7 = vld [vmem:[%s18948_s5 + $0x130] sm:$0xff]   ;;  %v12371_v3 = vld [vmem:[%s18948_s5 + $0x128] sm:$0xff]  }
 0x738   : > { %v7567_v17 = vadd.f32 %v7563_v54, %v7551_v37  ;;  %v7552_v40 = vmax.f32 %v19037_v5, %v7548_v25  ;;  %v7549_v13 = vadd.f32 %v7544_v1, %v7459_v27  ;;  %v7570_v33 = vmax.f32 %v7566_v47, 0.0  ;;  %v12369_v26 = vld [vmem:[%s18948_s5 + $0x1b0] sm:$0xff]   ;;  %v12372_v27 = vld [vmem:[%s18948_s5 + $0x1e8] sm:$0xff]   ;;  %v12374_v47 = vld [vmem:[%s18948_s5 + $0x160] sm:$0xff]  }
 0x739   : > { %v12373_v37 = vld [vmem:[%s18948_s5 + $0x1a8] sm:$0xff]   ;;  %v12376_v25 = vld [vmem:[%s18948_s5 + $0x1e0] sm:$0xff]   ;;  %v12379_v5 = vld [vmem:[%s18948_s5 + $0x118] sm:$0xff]  }
 0x73a   : > { %v7571_v0 = vmax.f32 %v7567_v17, 0.0  ;;  %v7568_v23 = vadd.f32 %v7559_v35, %v7552_v40  ;;  %v7553_v18 = vmax.f32 %v7107_v24, %v7549_v13  ;;  %v12359_v35 = vld [vmem:[%s18948_s5 + $0x138] sm:$0xff]   ;;  %v12375_v1 = vld [vmem:[%s18948_s5 + $0x120] sm:$0xff]   ;;  %v12382_v13 = vld [vmem:[%s18948_s5 + $0x150] sm:$0xff]  }
 0x73b   : > { %v12377_v24 = vld [vmem:[%s18948_s5 + $0x1a0] sm:$0xff]   ;;  %v12380_v17 = vld [vmem:[%s18948_s5 + $0x1d8] sm:$0xff]  }
 0x73c   : > { %v10972_v59 = vpack.c.bf16 %v7571_v0, %v7570_v33  ;;  %v7569_v45 = vadd.f32 %v7563_v54, %v7553_v18  ;;  %v7572_v43 = vmax.f32 %v7568_v23, 0.0  ;;  %v12381_v0 = vld [vmem:[%s18948_s5 + $0x198] sm:$0xff]   ;;  %v12384_v18 = vld [vmem:[%s18948_s5 + $0x1d0] sm:$0xff]  }
 0x73e   : > { %7586 = vst [vmem:[#allocation3 + $0x8] sm:$0xff] %v10972_v59  ;;  %v7573_v21 = vmax.f32 %v7569_v45, 0.0 }
 0x740   : > { %v10973_v2 = vpack.c.bf16 %v7573_v21, %v7572_v43  ;;  %v12383_v43 = vld [vmem:[%s18948_s5 + $0x110] sm:$0xff]   ;;  %v12386_v21 = vld [vmem:[%s18948_s5 + $0x148] sm:$0xff]  }
 0x742   : > { %7587 = vst [vmem:[#allocation3] sm:$0xff] %v10973_v2 }
 0x745   : > { %v7588_v19 = vld [vmem:[#allocation3 + $0x8] sm:$0x11]  ;;  %v18545_v10 = vld [vmem:[#allocation3 + $0x8] sm:$0x22]  ;;  %v18620_v23 = vld [vmem:[#allocation3 + $0x8] sm:$0x44] }
 0x746   : > { %v10652_v16 = vcombine.low %v7588_v19, %v7588_v19  ;;  %v10653_v61 = vcombine.high %v7588_v19, %v7588_v19  ;;  %v10721_v60 = vcombine.high %v18545_v10, %v18545_v10  ;;  %v10720_v45 = vcombine.low %v18545_v10, %v18545_v10  ;;  %v12388_v10 = vld [vmem:[%s18948_s5 + $0x1c8] sm:$0xff]  }
 0x747   : > { %v10821_v2 = vcombine.high %v18620_v23, %v18620_v23 }
 0x748   : > { %v7665_v11 = vunpack.c.l.b16 %v10652_v16  ;;  %v7666_v63 = vunpack.c.l.b16 %v10653_v61  ;;  %v8004_v9 = vunpack.c.l.b16 %v10721_v60  ;;  %v12385_v16 = vld [vmem:[%s18948_s5 + $0x190] sm:$0xff]   ;;  %v8003_v60 = vunpack.c.l.b16 %v10720_v45 }
 0x749   : > { %v7589_v32 = vld [vmem:[#allocation3] sm:$0x11]  ;;  %v18549_v55 = vld [vmem:[#allocation3] sm:$0x22]  ;;  %v18610_v40 = vld [vmem:[#allocation3] sm:$0x44] }
 0x74a   : > { %v10654_v22 = vcombine.low %v7589_v32, %v7589_v32  ;;  %v10655_v49 = vcombine.high %v7589_v32, %v7589_v32  ;;  %v10723_v29 = vcombine.high %v18549_v55, %v18549_v55  ;;  %v7669_v12 = vrot.slane %v7665_v11, 1  ;;  %v12421_v45 = vld [vmem:[%s18948_s5 + $0x290] sm:$0xff]  }
 0x74b   : > { %v7672_v62 = vrot.slane %v7666_v63, 1  ;;  %v8010_v39 = vrot.slane %v8004_v9, 2  ;;  %v8190_v34 = vrot.slane %v8004_v9, 3  ;;  %v10722_v33 = vcombine.low %v18549_v55, %v18549_v55 }
 0x74c   : > { %v7667_v57 = vunpack.c.l.b16 %v10654_v22  ;;  %v7668_v6 = vunpack.c.l.b16 %v10655_v49  ;;  %v8006_v44 = vunpack.c.l.b16 %v10723_v29  ;;  %v10823_v59 = vcombine.high %v18610_v40, %v18610_v40  ;;  %v12389_v22 = vld [vmem:[%s18948_s5 + $0x188] sm:$0xff]   ;;  %v12392_v49 = vld [vmem:[%s18948_s5 + $0x1c0] sm:$0xff]  }
 0x74d   : > { %v8005_v19 = vunpack.c.l.b16 %v10722_v33  ;;  %v8380_v32 = vunpack.c.l.b16 %v10821_v2  ;;  %v8007_v9 = vrot.slane %v8003_v60, 2  ;;  %v10820_v33 = vcombine.low %v18620_v23, %v18620_v23  ;;  %v12424_v23 = vld [vmem:[%s18948_s5 + $0x2c8] sm:$0xff]  }
 0x74e   : > { %v7673_v15 = vsel %vm7670_vm6, %v7668_v6, %v7672_v62  ;;  %v7814_v14 = vrot.slane %v7667_v57, 7  ;;  %v7671_v30 = vsel %vm7670_vm6, %v7667_v57, %v7669_v12  ;;  %v7816_v41 = vrot.slane %v7668_v6, 7  ;;  %v12391_v6 = vld [vmem:[%s18948_s5 + $0x100] sm:$0xff]   ;;  %v12394_v12 = vld [vmem:[%s18948_s5 + $0x278] sm:$0xff]   ;;  %v12423_v2 = vld [vmem:[%s18948_s5 + $0x208] sm:$0xff]  }
 0x74f   : > { %v7675_v46 = vpack.c.b16 %v7673_v15, %v7673_v15  ;;  %v7674_v53 = vpack.c.b16 %v7671_v30, %v7671_v30  ;;  %v8011_v51 = vrot.slane %v8006_v44, 1  ;;  %v8191_v56 = vrot.slane %v8006_v44, 2 }
 0x750   : > { %v7817_v31 = vsel %vm7670_vm6, %v7816_v41, %v7666_v63  ;;  %v7815_v42 = vsel %vm7670_vm6, %v7814_v14, %v7665_v11  ;;  %v8382_v61 = vunpack.c.l.b16 %v10823_v59  ;;  %v12387_v11 = vld [vmem:[%s18948_s5 + $0x108] sm:$0xff]   ;;  %v12390_v63 = vld [vmem:[%s18948_s5 + $0x140] sm:$0xff]   ;;  %v8008_v55 = vrot.slane %v8005_v19, 1 }
 0x751   : > { %7806 = vmatprep.mubr.bf16.mxu0 %v7675_v46  ;;  %v7819_v20 = vpack.c.b16 %v7817_v31, %v7817_v31  ;;  %v8012_v48 = vsel %vm7670_vm6, %v8011_v51, %v8010_v39  ;;  %v7818_v4 = vpack.c.b16 %v7815_v42, %v7815_v42  ;;  %v8192_v36 = vsel %vm7670_vm6, %v8191_v56, %v8190_v34  ;;  %v12393_v14 = vld [vmem:[%s18948_s5 + $0x180] sm:$0xff]   ;;  %v12400_v46 = vld [vmem:[%s18948_s5 + $0x2f8] sm:$0xff]   ;;  %v12402_v42 = vld [vmem:[%s18948_s5 + $0x270] sm:$0xff]  }
 0x752   : > { %7807 = vmatmul.mubr.bf16.vlgmr.msra.gmra.mxu0 %v7674_v53  ;;  %v8014_v54 = vpack.c.b16 %v8012_v48, %v8012_v48  ;;  %v8194_v28 = vpack.c.b16 %v8192_v36, %v8192_v36  ;;  %v8387_v29 = vrot.slane %v8382_v61, 3  ;;  %v8188_v57 = vrot.slane %v8005_v19, 2  ;;  %v12401_v56 = vld [vmem:[%s18948_s5 + $0x2b8] sm:$0xff]   ;;  %v12404_v48 = vld [vmem:[%s18948_s5 + $0x2f0] sm:$0xff]   ;;  %v12408_v36 = vld [vmem:[%s18948_s5 + $0x2e8] sm:$0xff]  }
 0x753   : > { %11019 = vmatpush3.bf16.msra.mxu0 %v12359_v35  ;;  %7950 = vmatprep.mubr.bf16.mxu1 %v7819_v20  ;;  %v8386_v62 = vrot.slane %v8380_v32, 4  ;;  %v8567_v44 = vrot.slane %v8382_v61, 4  ;;  %v8187_v15 = vrot.slane %v8003_v60, 3  ;;  %v8009_v30 = vsel %vm7670_vm6, %v8008_v55, %v8007_v9  ;;  %v12395_v35 = vld [vmem:[%s18948_s5 + $0x238] sm:$0xff]   ;;  %v12426_v19 = vld [vmem:[%s18948_s5 + $0x240] sm:$0xff]   ;;  %v12425_v61 = vld [vmem:[%s18948_s5 + $0x288] sm:$0xff]  }
 0x754   : > { %8145 = vmatprep.mubr.bf16.mxu0 %v8014_v54  ;;  %7951 = vmatmul.mubr.bf16.vlgmr.msra.gmra.mxu1 %v7818_v4  ;;  %v8566_v53 = vrot.slane %v8380_v32, 5  ;;  %v8013_v51 = vpack.c.b16 %v8009_v30, %v8009_v30  ;;  %v12405_v54 = vld [vmem:[%s18948_s5 + $0x2b0] sm:$0xff]   ;;  %v12428_v60 = vld [vmem:[%s18948_s5 + $0x2c0] sm:$0xff]  }
 0x755   : > { %11041 = vmatpush3.bf16.msra.mxu1 %v12365_v8  ;;  %11020 = vmatprep.subr.bf16.mxu0 %v12366_v52  ;;  %v8388_v41 = vsel %vm7670_vm6, %v8387_v29, %v8386_v62  ;;  %v8189_v39 = vsel %vm7670_vm6, %v8188_v57, %v8187_v15  ;;  %v12403_v8 = vld [vmem:[%s18948_s5 + $0x230] sm:$0xff]   ;;  %v12406_v52 = vld [vmem:[%s18948_s5 + $0x268] sm:$0xff]   ;;  %v12427_v55 = vld [vmem:[%s18948_s5 + $0x200] sm:$0xff]  }
 0x756   : > { %8325 = vmatprep.mubr.bf16.mxu1 %v8194_v28  ;;  %11042 = vmatprep.subr.bf16.mxu1 %v12368_v50  ;;  %v8568_v31 = vsel %vm7670_vm6, %v8567_v44, %v8566_v53  ;;  %v8390_v34 = vpack.c.b16 %v8388_v41, %v8388_v41  ;;  %v8193_v20 = vpack.c.b16 %v8189_v39, %v8189_v39  ;;  %v12407_v50 = vld [vmem:[%s18948_s5 + $0x228] sm:$0xff]   ;;  %v12429_v9 = vld [vmem:[%s18948_s5 + $0x280] sm:$0xff]   ;;  %v12436_v15 = vld [vmem:[%s18948_s5 + $0x370] sm:$0xff]  }
 0x757   : > { %11021 = vmatpush3.bf16.msra.mxu0 %v12367_v7  ;;  %v8570_v4 = vpack.c.b16 %v8568_v31, %v8568_v31  ;;  %v12410_v7 = vld [vmem:[%s18948_s5 + $0x260] sm:$0xff]   ;;  %v12409_v28 = vld [vmem:[%s18948_s5 + $0x2a8] sm:$0xff]   ;;  %v12437_v41 = vld [vmem:[%s18948_s5 + $0x330] sm:$0xff]  }
 0x758   : > { %11022 = vmatprep.subr.bf16.mxu0 %v12370_v58  ;;  %v12412_v58 = vld [vmem:[%s18948_s5 + $0x2e0] sm:$0xff]   ;;  %v12439_v53 = vld [vmem:[%s18948_s5 + $0x328] sm:$0xff]   ;;  %v12443_v31 = vld [vmem:[%s18948_s5 + $0x318] sm:$0xff]  }
 0x759   : > { %11043 = vmatpush3.bf16.msra.mxu1 %v12369_v26  ;;  %v12411_v26 = vld [vmem:[%s18948_s5 + $0x220] sm:$0xff]  }
 0x75a   : > { %11044 = vmatprep.subr.bf16.mxu1 %v12372_v27  ;;  %v12414_v27 = vld [vmem:[%s18948_s5 + $0x258] sm:$0xff]   ;;  %v12441_v39 = vld [vmem:[%s18948_s5 + $0x320] sm:$0xff]  }
 0x75b   : > { %11023 = vmatpush3.bf16.msra.mxu0 %v12371_v3  ;;  %v12413_v3 = vld [vmem:[%s18948_s5 + $0x2a0] sm:$0xff]  }
 0x75c   : > { %11024 = vmatprep.subr.bf16.mxu0 %v12374_v47  ;;  %v12416_v47 = vld [vmem:[%s18948_s5 + $0x2d8] sm:$0xff]  }
 0x75d   : > { %11045 = vmatpush3.bf16.msra.mxu1 %v12373_v37  ;;  %v12415_v37 = vld [vmem:[%s18948_s5 + $0x218] sm:$0xff]  }
 0x75e   : > { %11046 = vmatprep.subr.bf16.mxu1 %v12376_v25  ;;  %v18722_v25 = vld [vmem:[#allocation3] sm:$0x88] }
 0x75f   : > { %11025 = vmatpush3.bf16.msra.mxu0 %v12375_v1  ;;  %v12418_v1 = vld [vmem:[%s18948_s5 + $0x250] sm:$0xff]  }
 0x760   : > { %11026 = vmatprep.subr.bf16.mxu0 %v12378_v38  ;;  %v10822_v38 = vcombine.low %v18610_v40, %v18610_v40  ;;  %v12419_v40 = vld [vmem:[%s18948_s5 + $0x210] sm:$0xff]  }
 0x761   : > { %11047 = vmatpush3.bf16.msra.mxu1 %v12377_v24  ;;  %v12417_v24 = vld [vmem:[%s18948_s5 + $0x298] sm:$0xff]  }
 0x762   : > { %11048 = vmatprep.subr.bf16.mxu1 %v12380_v17  ;;  %v18732_v17 = vld [vmem:[#allocation3 + $0x8] sm:$0x88]  ;;  %v8381_v59 = vunpack.c.l.b16 %v10822_v38  ;;  %v12455_v38 = vld [vmem:[%s18950_s7 + $0x10] sm:$0xff]  }
 0x763   : > { %11027 = vmatpush3.bf16.msra.mxu0 %v12379_v5  ;;  %v12420_v5 = vld [vmem:[%s18948_s5 + $0x2d0] sm:$0xff]  }
 0x764   : > { %11028 = vmatprep.subr.bf16.mxu0 %v12382_v13  ;;  %v10923_v13 = vcombine.high %v18722_v25, %v18722_v25  ;;  %v8564_v32 = vrot.slane %v8381_v59, 4 }
 0x765   : > { %11049 = vmatpush3.bf16.msra.mxu1 %v12381_v0  ;;  %v12422_v0 = vld [vmem:[%s18948_s5 + $0x248] sm:$0xff]  }
 0x766   : > { %11050 = vmatprep.subr.bf16.mxu1 %v12384_v18  ;;  %v10921_v18 = vcombine.high %v18732_v17, %v18732_v17 }
 0x767   : > { %11029 = vmatpush3.bf16.msra.mxu0 %v12383_v43  ;;  %v8758_v43 = vunpack.c.l.b16 %v10923_v13  ;;  %v12459_v13 = vld [vmem:[%s18952_s9 + $0x20] sm:$0xff]  }
 0x768   : > { %11030 = vmatprep.subr.bf16.mxu0 %v12386_v21  ;;  %v8379_v21 = vunpack.c.l.b16 %v10820_v33  ;;  %v12457_v33 = vld [vmem:[%s18950_s7] sm:$0xff]  }
 0x769   : > { %11051 = vmatpush3.bf16.msra.mxu1 %v12385_v16  ;;  %v8756_v16 = vunpack.c.l.b16 %v10921_v18 }
 0x76a   : > { %11052 = vmatprep.subr.bf16.mxu1 %v12388_v10  ;;  %v8384_v10 = vrot.slane %v8381_v59, 3  ;;  %v8563_v29 = vrot.slane %v8379_v21, 5 }
 0x76b   : > { %11031 = vmatpush3.bf16.msra.mxu0 %v12387_v11  ;;  %v8763_v11 = vrot.slane %v8758_v43, 5 }
 0x76c   : > { %11032 = vmatprep.subr.bf16.mxu0 %v12390_v63  ;;  %v8383_v63 = vrot.slane %v8379_v21, 4  ;;  %v8565_v62 = vsel %vm7670_vm6, %v8564_v32, %v8563_v29 }
 0x76d   : > { %11053 = vmatpush3.bf16.msra.mxu1 %v12389_v22  ;;  %v12430_v22 = vld [vmem:[%s18948_s5 + $0x378] sm:$0xff]   ;;  %v8569_v30 = vpack.c.b16 %v8565_v62, %v8565_v62 }
 0x76e   : > { %11054 = vmatprep.subr.bf16.mxu1 %v12392_v49  ;;  %v8762_v49 = vrot.slane %v8756_v16, 6  ;;  %v8385_v57 = vsel %vm7670_vm6, %v8384_v10, %v8383_v63 }
 0x76f   : > { %11033 = vmatpush3.bf16.msra.mxu0 %v12391_v6  ;;  %v8389_v44 = vpack.c.b16 %v8385_v57, %v8385_v57 }
 0x770   : > { %11062 = vmatprep.subr.bf16.mxu0 %v12394_v12  ;;  %v8764_v6 = vsel %vm7670_vm6, %v8763_v11, %v8762_v49  ;;  %v12431_v12 = vld [vmem:[%s18948_s5 + $0x338] sm:$0xff]  }
 0x771   : > { %11055 = vmatpush3.bf16.msra.mxu1 %v12393_v14  ;;  %v8766_v14 = vpack.c.b16 %v8764_v6, %v8764_v6 }
 0x772   : > { %8146 = vmatmul.mubr.bf16.vlgmr.msra.gmra.mxu0 %v8013_v51  ;;  %11084 = vmatprep.subr.bf16.mxu1 %v12400_v46  ;;  %v12438_v46 = vld [vmem:[%s18948_s5 + $0x368] sm:$0xff]   ;;  %v12442_v51 = vld [vmem:[%s18948_s5 + $0x358] sm:$0xff]  }
 0x773   : > { %11063 = vmatpush3.bf16.msra.mxu0 %v12395_v35  ;;  %8521 = vmatprep.mubr.bf16.mxu0 %v8390_v34  ;;  %v12440_v35 = vld [vmem:[%s18948_s5 + $0x360] sm:$0xff]   ;;  %v10922_v34 = vcombine.low %v18722_v25, %v18722_v25 }
 0x774   : > { %8326 = vmatmul.mubr.bf16.vlgmr.msra.gmra.mxu1 %v8193_v20  ;;  %11064 = vmatprep.subr.bf16.mxu0 %v12402_v42  ;;  %v12444_v42 = vld [vmem:[%s18948_s5 + $0x350] sm:$0xff]   ;;  %v12453_v25 = vld [vmem:[%s18950_s7 + $0x20] sm:$0xff]  }
 0x775   : > { %11085 = vmatpush3.bf16.msra.mxu1 %v12401_v56  ;;  %8701 = vmatprep.mubr.bf16.mxu1 %v8570_v4  ;;  %v10920_v56 = vcombine.low %v18732_v17, %v18732_v17  ;;  %v12445_v20 = vld [vmem:[%s18948_s5 + $0x310] sm:$0xff]   ;;  %v8757_v4 = vunpack.c.l.b16 %v10922_v34  ;;  %v12458_v17 = vld [vmem:[%s18952_s9 + $0x28] ss:$0 sps:$4 sm:$0x33]  }
 0x776   : > { %11086 = vmatprep.subr.bf16.mxu1 %v12404_v48  ;;  %v12446_v48 = vld [vmem:[%s18948_s5 + $0x348] sm:$0xff]  }
 0x777   : > { %11065 = vmatpush3.bf16.msra.mxu0 %v12403_v8  ;;  %v8755_v8 = vunpack.c.l.b16 %v10920_v56 }
 0x778   : > { %11066 = vmatprep.subr.bf16.mxu0 %v12406_v52  ;;  %v12447_v52 = vld [vmem:[%s18948_s5 + $0x308] sm:$0xff]  }
 0x779   : > { %11087 = vmatpush3.bf16.msra.mxu1 %v12405_v54  ;;  %v12448_v54 = vld [vmem:[%s18948_s5 + $0x340] sm:$0xff]  }
 0x77a   : > { %11088 = vmatprep.subr.bf16.mxu1 %v12408_v36  ;;  %v8760_v36 = vrot.slane %v8757_v4, 5 }
 0x77b   : > { %11067 = vmatpush3.bf16.msra.mxu0 %v12407_v50  ;;  %v8759_v50 = vrot.slane %v8755_v8, 6 }
 0x77c   : > { %11068 = vmatprep.subr.bf16.mxu0 %v12410_v7  ;;  %v12449_v7 = vld [vmem:[%s18948_s5 + $0x300] sm:$0xff]  }
 0x77d   : > { %11089 = vmatpush3.bf16.msra.mxu1 %v12409_v28  ;;  %v8761_v28 = vsel %vm7670_vm6, %v8760_v36, %v8759_v50  ;;  %v12462_v50 = vld [vmem:[%s18952_s9 + $0x8] sm:$0xff]  }
 0x77e   : > { %11090 = vmatprep.subr.bf16.mxu1 %v12412_v58  ;;  %v8765_v58 = vpack.c.b16 %v8761_v28, %v8761_v28  ;;  %v10941_v28 = vld [vmem:[%s18951_s8] ss:$0 sm:$0xff] }
 0x77f   : > { %11069 = vmatpush3.bf16.msra.mxu0 %v12411_v26  ;;  %v12450_v26 = vld [vmem:[%s18950_s7 + $0x38] ss:$0 sps:$4 sm:$0xff]  }
 0x780   : > { %11070 = vmatprep.subr.bf16.mxu0 %v12414_v27  ;;  %v13167_v27 = vmov 0.0  }
 0x781   : > { %11091 = vmatpush3.bf16.msra.mxu1 %v12413_v3  ;;  %v8989_v3 = vsel %vm1560_vm1, %v12450_v26, 0  ;;  %vm13168_vm1 = vmmov 0  }
 0x782   : > { %11092 = vmatprep.subr.bf16.mxu1 %v12416_v47  ;;  %v12451_v47 = vld [vmem:[%s18950_s7 + $0x30] sm:$0xff]  }
 0x783   : > { %11071 = vmatpush3.bf16.msra.mxu0 %v12415_v37  ;;  %v12452_v37 = vld [vmem:[%s18950_s7 + $0x28] sm:$0xff]  }
 0x784   : > { %11072 = vmatprep.subr.bf16.mxu0 %v12418_v1  ;;  %v12454_v1 = vld [vmem:[%s18950_s7 + $0x18] sm:$0xff]  }
 0x785   : > { %11093 = vmatpush3.bf16.msra.mxu1 %v12417_v24  ;;  %v12456_v24 = vld [vmem:[%s18950_s7 + $0x8] sm:$0xff]  }
 0x786   : > { %11094 = vmatprep.subr.bf16.mxu1 %v12420_v5  ;;  %v9090_v5 = vsel %vm9088_vm7, %v12458_v17, 0 }
 0x787   : > { %11073 = vmatpush3.bf16.msra.mxu0 %v12419_v40  ;;  %v12460_v40 = vld [vmem:[%s18952_s9 + $0x18] sm:$0xff]  }
 0x788   : > { %11074 = vmatprep.subr.bf16.mxu0 %v12422_v0  ;;  %v12461_v0 = vld [vmem:[%s18952_s9 + $0x10] sm:$0xff]  }
 0x789   : > { %11095 = vmatpush3.bf16.msra.mxu1 %v12421_v45 }
 0x78a   : > { %11096 = vmatprep.subr.bf16.mxu1 %v12424_v23 }
 0x78b   : > { %11075 = vmatpush3.bf16.msra.mxu0 %v12423_v2 }
 0x78c   : > { %11076 = vmatprep.subr.bf16.mxu0 %v12426_v19 }
 0x78d   : > { %11097 = vmatpush3.bf16.msra.mxu1 %v12425_v61 }
 0x78e   : > { %11098 = vmatprep.subr.bf16.mxu1 %v12428_v60 }
 0x78f   : > { %11077 = vmatpush3.bf16.msra.mxu0 %v12427_v55 }
 0x790   : > { %11106 = vmatprep.subr.bf16.mxu0 %v12430_v22 }
 0x791   : > { %11099 = vmatpush3.bf16.msra.mxu1 %v12429_v9 }
 0x792   : > { %8522 = vmatmul.mubr.bf16.vlgmr.msra.gmra.mxu0 %v8389_v44  ;;  %11144 = vmatprep.subr.bf16.mxu1 %v13167_v27 }
 0x793   : > { %11107 = vmatpush3.bf16.msra.mxu0 %v12431_v12  ;;  %8897 = vmatprep.mubr.bf16.mxu0 %v8766_v14 }
 0x794   : > { %8702 = vmatmul.mubr.bf16.vlgmr.msra.gmra.mxu1 %v8569_v30  ;;  %11108 = vmatprep.subr.bf16.mxu0 %v12436_v15 }
 0x795   : > { %11145 = vmatpush3.bf16.msra.mxu1 %v8989_v3  ;;  %11160 = vmatprep.mubr.msk.bf16.mxu1 %vm13168_vm1, %v13167_v27 }
 0x796   : > { %11146 = vmatprep.subr.bf16.mxu1 %v13167_v27 }
 0x797   : > { %11109 = vmatpush3.bf16.msra.mxu0 %v12437_v41 }
 0x798   : > { %11110 = vmatprep.subr.bf16.mxu0 %v12438_v46 }
 0x799   : > { %11147 = vmatpush3.bf16.msra.mxu1 %v12451_v47 }
 0x79a   : > { %11148 = vmatprep.subr.bf16.mxu1 %v13167_v27 }
 0x79b   : > { %11111 = vmatpush3.bf16.msra.mxu0 %v12439_v53 }
 0x79c   : > { %11112 = vmatprep.subr.bf16.mxu0 %v12440_v35 }
 0x79d   : > { %11149 = vmatpush3.bf16.msra.mxu1 %v12452_v37 }
 0x79e   : > { %11150 = vmatprep.subr.bf16.mxu1 %v13167_v27 }
 0x79f   : > { %11113 = vmatpush3.bf16.msra.mxu0 %v12441_v39 }
 0x7a0   : > { %11114 = vmatprep.subr.bf16.mxu0 %v12442_v51 }
 0x7a1   : > { %11151 = vmatpush3.bf16.msra.mxu1 %v12453_v25 }
 0x7a2   : > { %11152 = vmatprep.subr.bf16.mxu1 %v13167_v27 }
 0x7a3   : > { %11115 = vmatpush3.bf16.msra.mxu0 %v12443_v31 }
 0x7a4   : > { %11116 = vmatprep.subr.bf16.mxu0 %v12444_v42 }
 0x7a5   : > { %11153 = vmatpush3.bf16.msra.mxu1 %v12454_v1 }
 0x7a6   : > { %11154 = vmatprep.subr.bf16.mxu1 %v13167_v27 }
 0x7a7   : > { %11117 = vmatpush3.bf16.msra.mxu0 %v12445_v20  ;;  %v10940_v20 = vld [vmem:[%s18949_s6] ss:$0 sm:$0xff] }
 0x7a8   : > { %11118 = vmatprep.subr.bf16.mxu0 %v12446_v48 }
 0x7a9   : > { %11155 = vmatpush3.bf16.msra.mxu1 %v12455_v38 }
 0x7aa   : > { %11156 = vmatprep.subr.bf16.mxu1 %v13167_v27 }
 0x7ab   : > { %11119 = vmatpush3.bf16.msra.mxu0 %v12447_v52 }
 0x7ac   : > { %11120 = vmatprep.subr.bf16.mxu0 %v12448_v54 }
 0x7ad   : > { %11157 = vmatpush3.bf16.msra.mxu1 %v12456_v24 }
 0x7ae   : > { %11158 = vmatprep.subr.bf16.mxu1 %v13167_v27 }
 0x7af   : > { %11121 = vmatpush3.bf16.msra.mxu0 %v12449_v7  ;;  %v12463_v7 = vld [vmem:[%s18952_s9] sm:$0xff]  }
 0x7b0   : > { %11164 = vmatprep.subr.bf16.mxu0 %v13167_v27 }
 0x7b1   : > { %11159 = vmatpush3.bf16.msra.mxu1 %v12457_v33 }
 0x7b2   : > { %8898 = vmatmul.mubr.bf16.vlgmr.msra.gmra.mxu0 %v8765_v58 }
 0x7b3   : > { %11176 = vmatprep.mubr.msk.bf16.mxu0 %vm13168_vm1, %v13167_v27  ;;  %11165 = vmatpush3.bf16.msra.mxu0 %v9090_v5 }
 0x7b4   : > { %11166 = vmatprep.subr.bf16.mxu0 %v13167_v27 }
 0x7b7   : > { %11167 = vmatpush3.bf16.msra.mxu0 %v12459_v13 }
 0x7b8   : > { %11168 = vmatprep.subr.bf16.mxu0 %v13167_v27 }
 0x7bb   : > { %11169 = vmatpush3.bf16.msra.mxu0 %v12460_v40 }
 0x7bc   : > { %11170 = vmatprep.subr.bf16.mxu0 %v13167_v27 }
 0x7bf   : > { %11171 = vmatpush3.bf16.msra.mxu0 %v12461_v0 }
 0x7c0   : > { %11172 = vmatprep.subr.bf16.mxu0 %v13167_v27 }
 0x7c3   : > { %11173 = vmatpush3.bf16.msra.mxu0 %v12462_v50 }
 0x7c4   : > { %11174 = vmatprep.subr.bf16.mxu0 %v13167_v27  ;;  %v10951_v27 = vld [vmem:[%s18953_s10] ss:$0 sm:$0xff] }
 0x7c7   : > { %11175 = vmatpush3.bf16.msra.mxu0 %v12463_v7 }
 0x812   : > { %v10990_v18 = vpop.f32.mrf.mxu0 }
 0x814   : > { %v10991_v59 = vpop.f32.mrf.mxu0  ;;  %v11012_v45 = vpop.f32.mrf.mxu1 }
 0x815   : > { %v10992_v23 = vadd.f32 %v10991_v59, %v10990_v18 }
 0x816   : > { %v10993_v43 = vpop.f32.mrf.mxu0  ;;  %v11013_v21 = vpop.f32.mrf.mxu1 }
 0x817   : > { %v11014_v2 = vadd.f32 %v11013_v21, %v11012_v45 }
 0x818   : > { %v10994_v19 = vpop.f32.mrf.mxu0  ;;  %v11015_v16 = vpop.f32.mrf.mxu1 }
 0x819   : > { %v7953_v10 = vadd.f32 %v11014_v2, %v10992_v23 }
 0x81a   : > { %v11016_v61 = vpop.f32.mrf.mxu1 }
 0x832   : > { %v11034_v60 = vpop.f32.mrf.mxu0 }
 0x834   : > { %v11035_v11 = vpop.f32.mrf.mxu0  ;;  %v11056_v63 = vpop.f32.mrf.mxu1 }
 0x835   : > { %v11036_v30 = vadd.f32 %v11035_v11, %v11034_v60 }
 0x836   : > { %v11037_v32 = vpop.f32.mrf.mxu0  ;;  %v11057_v55 = vpop.f32.mrf.mxu1 }
 0x837   : > { %v8153_v41 = vadd.f32 %v11036_v30, %v7953_v10  ;;  %v11058_v46 = vadd.f32 %v11057_v55, %v11056_v63 }
 0x838   : > { %v11038_v22 = vpop.f32.mrf.mxu0  ;;  %v11059_v49 = vpop.f32.mrf.mxu1 }
 0x839   : > { %v8333_v35 = vadd.f32 %v11058_v46, %v8153_v41 }
 0x83a   : > { %v11060_v29 = vpop.f32.mrf.mxu1 }
 0x852   : > { %v11078_v9 = vpop.f32.mrf.mxu0 }
 0x854   : > { %v11079_v57 = vpop.f32.mrf.mxu0  ;;  %v11100_v6 = vpop.f32.mrf.mxu1 }
 0x855   : > { %v11080_v53 = vadd.f32 %v11079_v57, %v11078_v9 }
 0x856   : > { %v11081_v12 = vpop.f32.mrf.mxu0  ;;  %v11101_v62 = vpop.f32.mrf.mxu1 }
 0x857   : > { %v8529_v39 = vadd.f32 %v11080_v53, %v8333_v35  ;;  %v11102_v51 = vadd.f32 %v11101_v62, %v11100_v6 }
 0x858   : > { %v11082_v44 = vpop.f32.mrf.mxu0  ;;  %v11103_v15 = vpop.f32.mrf.mxu1 }
 0x859   : > { %v8709_v34 = vadd.f32 %v11102_v51, %v8529_v39 }
 0x85a   : > { %v11104_v14 = vpop.f32.mrf.mxu1 }
 0x872   : > { %v11122_v31 = vpop.f32.mrf.mxu0 }
 0x874   : > { %v11123_v42 = vpop.f32.mrf.mxu0 }
 0x875   : > { %v11124_v56 = vadd.f32 %v11123_v42, %v11122_v31 }
 0x876   : > { %v11125_v48 = vpop.f32.mrf.mxu0 }
 0x877   : > { %v8905_v4 = vadd.f32 %v11124_v56, %v8709_v34 }
 0x878   : > { %v11126_v8 = vpop.f32.mrf.mxu0 }
 0x879   : > { %v8913_v52 = vadd.f32 %v10940_v20, %v8905_v4 }
 0x87b   : > { %v8914_v54 = vmax.f32 %v8913_v52, 0.0 }
 0x87d   : > { %v8915_v36 = vpack.c.bf16 %v8914_v54, %v8914_v54 }
 0x87f   : > { %11161 = vmatmul.mubr.msk.bf16.vlgmr.msra.gmra.mxu1 %vm8983_vm8, %v8915_v36 }
 0x93f   : > { %v9025_v58 = vpop.f32.mrf.mxu1 }
 0x940   : > { %v9026_v26 = vadd.f32 %v10941_v28, %v9025_v58 }
 0x941   : > { %v11162_v3 = vpop.f32.mrf.mxu1 }
 0x942   : > { %v9031_v47 = vmax.f32 %v9026_v26, 0.0 }
 0x943   : > { %v9028_v37 = vpop.f32.mrf.mxu1 }
 0x944   : > { %v9032_v25 = vpack.c.bf16 %v9031_v47, %v9031_v47 }
 0x945   : > { %v11163_v1 = vpop.f32.mrf.mxu1 }
 0x946   : > { %11177 = vmatmul.mubr.msk.bf16.vlgmr.msra.gmra.mxu0 %vm9084_vm9, %v9032_v25 }
 0xa06   : > { %v9126_v38 = vpop.f32.mrf.mxu0 }
 0xa07   : > { %v9127_v24 = vadd.f32 %v10951_v27, %v9126_v38 }
 0xa08   : > { %v11178_v17 = vpop.f32.mrf.mxu0 }
 0xa09   : > { %9132 = vst [vmem:[%s382_s15] sm:$0x3] %v9127_v24 }
 0xa0a   : > { %v9129_v5 = vpop.f32.mrf.mxu0 }
 0xa0b   : > { %13117 = shalt.err (!%p13114_p3)
}
 0xa0c   : > { %s13118_s12 = scalar_lea.hbm %s18902_s16, 32  ;;  %s13122_s14 = scalar_lea.hbm %s18954_s11, 64 }
 0xa0d   : > { %p13119_p4 = scmp.ne.s32.totalorder %s18902_s16, %s13118_s12  ;;  %p13123_p9 = scmp.lt.s32.totalorder %s18902_s16, %s18954_s11 }
 0xa0e   : > { %p13124_p10 = scmp.lt.s32.totalorder %s13122_s14, %s13118_s12 }
 0xa0f   : > { %p13120_p7 = pnand %p13119_p4, %p13268_p5 }
 0xa10   : > { %p13125_p11 = por %p13124_p10, %p13123_p9 }
 0xa11   : > { %p13121_p8 = pneg %p13120_p7 }
 0xa13   : > { %p13126_p12 = pnand %p13125_p11, %p13121_p8 }
 0xa15   : > { %13129 = shalt.err (!%p13126_p12)
}
 0xa16   : > { %11180 = dma.vmem_to_hbm [thread:$0]  (%p13268_p5), %s18904_s24, 32, %s18902_s16, %s9134_s22   ;;  %v11179_v13 = vpop.f32.mrf.mxu0 }
 0xa17 PF: > { %p11186_p13 = scmp.ge.s32.totalorder %s13164_s20, 2  ;;  %s9159_s30 = sand.u32 1, %s13152_s17  }
 0xa18   : > { %s9160_s29 = scalar_lea.sflag [#allocation5], %s9159_s30 }
 0xa19   : > { %p11183_p0 = pnand %p11186_p13, %p13272_p6 }
 0xa1b   : > { %p11184_p1 = pneg %p11183_p0 }
 0xa1d   : > { %13147 = dma.done.wait (%p11184_p1), %s9160_s29, 32  }
 0xa1e   : > { %13149 = vsyncadd (%p11184_p1), %s9160_s29, 4294967264  ;;  %p21_p2 = scmp.ge.s32.totalorder %s13255_s23, 4   ;;  %s19038_s17 = smov %s13156_s18 }
 0xa1f   : > { %s19039_s18 = smov %s13160_s19  ;;  %s19040_s19 = smov %s13266_s26 }
 0xa20   : > { %s19041_s20 = smov %s13255_s23  ;;  %23 = sbr.rel (!%p21_p2) target bundleno = 5 (0x5), region = 117 }
 0xa25   :  { %9165 = vsyncpa [#allocation5], 1 }
 0xa26   :  { %9167 = vsyncpa [#allocation5 + $0x1], 1 }

</bundles_post_ra>
